<compile_context>
chip_gen: v7x
topology: tpu7x:2x2x1
jax: 0.10.0
libtpu: 0.0.40
codegen_flags: <defaults>
</compile_context>

<pallas_src>
import functools

import jax
import jax.numpy as jnp
from jax import lax
from jax.experimental import pallas as pl
from jax.experimental.pallas import tpu as pltpu

# ---- model hyper-params (scaled-down LCBC) ----
D = 128          # d_model   (768 in the original module)
H = 8            # nhead     (matches module)
HD = D // H      # head dim
FF = 256         # dim_feedforward (2048 in the original module)
NUM_LAYERS = 6   # matches module
EPS = 1e-5       # layer_norm_eps default


def _layer_norm(z, g, b):
    mu = jnp.mean(z, axis=-1, keepdims=True)
    var = jnp.mean((z - mu) ** 2, axis=-1, keepdims=True)
    return (z - mu) * lax.rsqrt(var + EPS) * g + b


def _lcbc_fused_kernel(v_ref, t_ref, pm_ref, sm_ref,
                       w_in_ref, b_in_ref, w_out_ref, b_out_ref,
                       w1_ref, b1_ref, w2_ref, b2_ref,
                       g1_ref, be1_ref, g2_ref, be2_ref,
                       hg_ref, hb_ref, hw_ref, hbias_ref,
                       o_ref, attn_ref, *, exact_softmax=False):
    BB, Sv, Dm = v_ref.shape
    St = t_ref.shape[1]
    S = Sv + St
    scale = 1.0 / (HD ** 0.5)

    # Assemble the fused sequence in VMEM (vision ++ text along seq), then
    # collapse batch into the matmul M dimension.
    x = jnp.concatenate([v_ref[...], t_ref[...]], axis=1).reshape(BB * S, Dm)

    pack_mask = pm_ref[...]         # (H*S, D)   bf16 block-diagonal head mask
    seg_mat = sm_ref[...]           # (H*S, H*S) f32 block-diag ones (segment sum)

    for l in range(NUM_LAYERS):     # static unroll; stacked weights stay in VMEM
        w_in, b_in = w_in_ref[l], b_in_ref[l]
        w_out, b_out = w_out_ref[l], b_out_ref[l]
        w1, b1 = w1_ref[l], b1_ref[l]
        w2, b2 = w2_ref[l], b2_ref[l]
        g1, be1 = g1_ref[l], be1_ref[l]
        g2, be2 = g2_ref[l], be2_ref[l]

        # --- self-attention: all 8 heads lane-packed into one 128-wide slab ---
        qkv = jnp.dot(x.astype(jnp.bfloat16), w_in,
                      preferred_element_type=jnp.float32) + b_in      # (BB*S, 3D)
        qkv16 = qkv.astype(jnp.bfloat16)
        for b in range(BB):                                           # BB is 1 or 2
            blk = qkv16[b * S:(b + 1) * S]                            # (S, 3D)
            q = blk[:, :Dm]
            k = blk[:, Dm:2 * Dm]
            v = blk[:, 2 * Dm:3 * Dm]
            # Block-diagonal packs: head h occupies rows h*S:(h+1)*S and
            # cols h*HD:(h+1)*HD (sublane concat + 0/1 mask; no transpose).
            k_pack = jnp.concatenate([k] * H, axis=0) * pack_mask     # (H*S, D)
            v_pack = jnp.concatenate([v] * H, axis=0) * pack_mask     # (H*S, D)
            # Scores for all heads at once: contract over D; the transpose is
            # folded into the MXU operand push (no materialized k.T).
            s = lax.dot_general(q, k_pack, (((1,), (1,)), ((), ())),
                                preferred_element_type=jnp.float32) * scale  # (S, H*S)
            # One full-width softmax; a per-row global max is a valid shift
            # for every head's softmax.
            s = s - jnp.max(s, axis=-1, keepdims=True)
            p = jnp.exp(s)
            # Per-head denominators via one MXU segment-sum (block-diag ones),
            # broadcast back across each head's S columns.
            denom = jnp.maximum(
                jnp.dot(p, seg_mat, preferred_element_type=jnp.float32), 1e-30)
            if exact_softmax:
                p = p / denom
            else:
                p = p * pl.reciprocal(denom, approx=True)
            # P @ V for all heads -> per-head columns already concatenated
            # in PyTorch MHA order; fold out_proj right after.
            pv = jnp.dot(p.astype(jnp.bfloat16), v_pack,
                         preferred_element_type=jnp.float32)          # (S, D)
            attn_ref[b * S:(b + 1) * S, :] = jnp.dot(
                pv.astype(jnp.bfloat16), w_out,
                preferred_element_type=jnp.float32)                   # (S, D)

        # post-norm residual (norm_first=False)
        x = _layer_norm(x + attn_ref[...] + b_out, g1, be1)

        # --- feed-forward block (ReLU) ---
        ff = jnp.dot(x.astype(jnp.bfloat16), w1,
                     preferred_element_type=jnp.float32) + b1
        ff = jnp.maximum(ff, 0.0)
        ff = jnp.dot(ff.astype(jnp.bfloat16), w2,
                     preferred_element_type=jnp.float32) + b2
        x = _layer_norm(x + ff, g2, be2)

    # --- head epilogue: mean over seq -> LayerNorm -> Linear (lane-padded) ---
    m = jnp.mean(x.reshape(BB, S, Dm), axis=1)                        # (BB, D)
    z = _layer_norm(m, hg_ref[...], hb_ref[...])
    logits = jnp.dot(z.astype(jnp.bfloat16), hw_ref[...],
                     preferred_element_type=jnp.float32) + hbias_ref[...]    # (BB, PAD)
    o_ref[0] = logits.astype(o_ref.dtype)


def _full_spec(arr):
    n = arr.ndim
    return pl.BlockSpec(arr.shape, lambda b: (0,) * n)   # same block every step -> no re-DMA


def _num_tensorcores():
    # Generation-aware: only v7x exposes 2 TensorCores per chip worth sharding
    # a tiny batch over; v5e / v6e are single-TC (grid split would just be a
    # serial loop with extra per-step overhead).
    try:
        kind = jax.devices()[0].device_kind.lower()
    except Exception:
        return 1
    return 2 if ("v7" in kind or "7x" in kind) else 1


def lcbc_forward(vision_features, text_features, params, num_actions, action_bins,
                 exact_softmax=False):
    B, Sv, Dm = vision_features.shape
    St = text_features.shape[1]
    S = Sv + St
    AB = num_actions * action_bins
    PAD = ((AB + 127) // 128) * 128              # lane-dense head output (unmasked stores)

    # TODO(synk): at real LCBC width (768/2048) the resident weight slab would
    # exceed v7x's 64 MiB VMEM; a layer-axis streaming grid would be needed.
    NB = 2 if (B % 2 == 0 and B >= 2 and _num_tensorcores() >= 2) else 1
    BB = B // NB

    lp, hp = params["layers"], params["head"]

    # Constant packing masks (built once in the wrapper, resident in VMEM).
    head_of_row = jnp.arange(H * S) // S                       # (H*S,)
    head_of_col = jnp.arange(Dm) // HD                         # (D,)
    pack_mask = (head_of_row[:, None] == head_of_col[None, :]).astype(jnp.bfloat16)
    seg_mat = (head_of_row[:, None] == head_of_row[None, :]).astype(jnp.float32)

    bf16 = jnp.bfloat16
    hw_pad = jnp.pad(hp["w"], ((0, 0), (0, PAD - AB))).astype(bf16)
    hbias_pad = jnp.pad(hp["bias"], ((0, 0), (0, PAD - AB)))

    consts = (pack_mask, seg_mat,
              lp["w_in"].astype(bf16), lp["b_in"],
              lp["w_out"].astype(bf16), lp["b_out"],
              lp["w1"].astype(bf16), lp["b1"],
              lp["w2"].astype(bf16), lp["b2"],
              lp["g1"], lp["be1"], lp["g2"], lp["be2"],
              hp["g"], hp["b"], hw_pad, hbias_pad)

    in_specs = [pl.BlockSpec((BB, Sv, Dm), lambda b: (b, 0, 0)),
                pl.BlockSpec((BB, St, Dm), lambda b: (b, 0, 0))]
    in_specs += [_full_spec(c) for c in consts]

    kernel = functools.partial(_lcbc_fused_kernel, exact_softmax=exact_softmax)

    out = pl.pallas_call(
        kernel,
        out_shape=jax.ShapeDtypeStruct((NB, BB, PAD), jnp.float32),
        grid=(NB,),
        in_specs=in_specs,
        out_specs=pl.BlockSpec((1, BB, PAD), lambda b: (b, 0, 0)),
        scratch_shapes=[pltpu.VMEM((BB * S, Dm), jnp.float32)],
        compiler_params=pltpu.CompilerParams(
            dimension_semantics=("parallel",),
            vmem_limit_bytes=32 * 1024 * 1024),
    )(vision_features, text_features, *consts)

    logits = out.reshape(B, PAD)[:, :AB]
    # Rearrange '... (a b) -> ... a b', b=action_bins
    return logits.reshape(B, num_actions, action_bins)


def init_params(key, num_actions, action_bins):
    # Deterministic synthetic initialization (no checkpoint loading).
    # NOTE: weights are stored input-major (D, N); real PyTorch checkpoints
    # (N, D) would need transposing / in_proj re-packing before use.
    keys = jax.random.split(key, 5)

    def normal(k, shape, scale=0.02):
        return scale * jax.random.normal(k, shape, jnp.float32)

    L = NUM_LAYERS
    layers = dict(
        w_in=normal(keys[0], (L, D, 3 * D)),            # in_proj, stacked over layers
        b_in=jnp.zeros((L, 1, 3 * D), jnp.float32),
        w_out=normal(keys[1], (L, D, D)),               # out_proj
        b_out=jnp.zeros((L, 1, D), jnp.float32),
        w1=normal(keys[2], (L, D, FF)),                 # linear1
        b1=jnp.zeros((L, 1, FF), jnp.float32),
        w2=normal(keys[3], (L, FF, D)),                 # linear2
        b2=jnp.zeros((L, 1, D), jnp.float32),
        g1=jnp.ones((L, 1, D), jnp.float32),            # norm1
        be1=jnp.zeros((L, 1, D), jnp.float32),
        g2=jnp.ones((L, 1, D), jnp.float32),            # norm2
        be2=jnp.zeros((L, 1, D), jnp.float32),
    )
    head = dict(
        g=jnp.ones((1, D), jnp.float32),                # LayerNorm
        b=jnp.zeros((1, D), jnp.float32),
        w=normal(keys[4], (D, num_actions * action_bins)),
        bias=jnp.zeros((1, num_actions * action_bins), jnp.float32),
    )
    return dict(layers=layers, head=head)


if __name__ == "__main__":
    # TODO(synk): pretrained CLIP vision / T5 text encoders + tokenizer are frozen
    # backbones with no Pallas equivalent; their outputs are synthesized here.
    B, SEQ_VISION, SEQ_TEXT = 2, 10, 6
    NUM_ACTIONS, ACTION_BINS = 4, 3

    key = jax.random.PRNGKey(0)
    k_v, k_t, k_p = jax.random.split(key, 3)
    vision_features = jax.random.normal(k_v, (B, SEQ_VISION, D), jnp.float32)
    text_features = jax.random.normal(k_t, (B, SEQ_TEXT, D), jnp.float32)

    params = init_params(k_p, NUM_ACTIONS, ACTION_BINS)

    fwd = jax.jit(functools.partial(lcbc_forward,
                                    num_actions=NUM_ACTIONS,
                                    action_bins=ACTION_BINS))
    logits = fwd(vision_features, text_features, params)
    jax.block_until_ready(logits)
    assert logits.shape == (B, NUM_ACTIONS, ACTION_BINS), logits.shape
    assert bool(jnp.all(jnp.isfinite(logits)))
    print("KERNEL_OK")
</pallas_src>

<mosaic_0001>
module attributes {stable_mosaic.version = 11 : i64} {
  func.func @_lcbc_fused_kernel(%arg0: i32, %arg1: memref<2x10x128xf32, #tpu.memory_space<vmem>>, %arg2: memref<2x6x128xf32, #tpu.memory_space<vmem>>, %arg3: memref<128x128xbf16, #tpu.memory_space<vmem>>, %arg4: memref<128x128xf32, #tpu.memory_space<vmem>>, %arg5: memref<6x128x384xbf16, #tpu.memory_space<vmem>>, %arg6: memref<6x1x384xf32, #tpu.memory_space<vmem>>, %arg7: memref<6x128x128xbf16, #tpu.memory_space<vmem>>, %arg8: memref<6x1x128xf32, #tpu.memory_space<vmem>>, %arg9: memref<6x128x256xbf16, #tpu.memory_space<vmem>>, %arg10: memref<6x1x256xf32, #tpu.memory_space<vmem>>, %arg11: memref<6x256x128xbf16, #tpu.memory_space<vmem>>, %arg12: memref<6x1x128xf32, #tpu.memory_space<vmem>>, %arg13: memref<6x1x128xf32, #tpu.memory_space<vmem>>, %arg14: memref<6x1x128xf32, #tpu.memory_space<vmem>>, %arg15: memref<6x1x128xf32, #tpu.memory_space<vmem>>, %arg16: memref<6x1x128xf32, #tpu.memory_space<vmem>>, %arg17: memref<1x128xf32, #tpu.memory_space<vmem>>, %arg18: memref<1x128xf32, #tpu.memory_space<vmem>>, %arg19: memref<128x128xbf16, #tpu.memory_space<vmem>>, %arg20: memref<1x128xf32, #tpu.memory_space<vmem>>, %arg21: memref<1x2x128xf32, #tpu.memory_space<vmem>>, %arg22: memref<32x128xf32, #tpu.memory_space<vmem>>) attributes {dimension_semantics = [#tpu.dimension_semantics<parallel>], iteration_bounds = array<i64: 1>, scalar_prefetch = 0 : i64, scratch_operands = 1 : i64, tpu.core_type = #tpu.core_type<tc>, window_params = [{transform_indices = @transform_0, window_bounds = array<i64: 2, 10, 128>}, {transform_indices = @transform_1, window_bounds = array<i64: 2, 6, 128>}, {pipeline_mode = #tpu.pipeline_mode<synchronous>, transform_indices = @transform_2, window_bounds = array<i64: 128, 128>}, {pipeline_mode = #tpu.pipeline_mode<synchronous>, transform_indices = @transform_3, window_bounds = array<i64: 128, 128>}, {pipeline_mode = #tpu.pipeline_mode<synchronous>, transform_indices = @transform_4, window_bounds = array<i64: 6, 128, 384>}, {pipeline_mode = #tpu.pipeline_mode<synchronous>, transform_indices = @transform_5, window_bounds = array<i64: 6, 1, 384>}, {pipeline_mode = #tpu.pipeline_mode<synchronous>, transform_indices = @transform_6, window_bounds = array<i64: 6, 128, 128>}, {pipeline_mode = #tpu.pipeline_mode<synchronous>, transform_indices = @transform_7, window_bounds = array<i64: 6, 1, 128>}, {pipeline_mode = #tpu.pipeline_mode<synchronous>, transform_indices = @transform_8, window_bounds = array<i64: 6, 128, 256>}, {pipeline_mode = #tpu.pipeline_mode<synchronous>, transform_indices = @transform_9, window_bounds = array<i64: 6, 1, 256>}, {pipeline_mode = #tpu.pipeline_mode<synchronous>, transform_indices = @transform_10, window_bounds = array<i64: 6, 256, 128>}, {pipeline_mode = #tpu.pipeline_mode<synchronous>, transform_indices = @transform_11, window_bounds = array<i64: 6, 1, 128>}, {pipeline_mode = #tpu.pipeline_mode<synchronous>, transform_indices = @transform_12, window_bounds = array<i64: 6, 1, 128>}, {pipeline_mode = #tpu.pipeline_mode<synchronous>, transform_indices = @transform_13, window_bounds = array<i64: 6, 1, 128>}, {pipeline_mode = #tpu.pipeline_mode<synchronous>, transform_indices = @transform_14, window_bounds = array<i64: 6, 1, 128>}, {pipeline_mode = #tpu.pipeline_mode<synchronous>, transform_indices = @transform_15, window_bounds = array<i64: 6, 1, 128>}, {pipeline_mode = #tpu.pipeline_mode<synchronous>, transform_indices = @transform_16, window_bounds = array<i64: 1, 128>}, {pipeline_mode = #tpu.pipeline_mode<synchronous>, transform_indices = @transform_17, window_bounds = array<i64: 1, 128>}, {pipeline_mode = #tpu.pipeline_mode<synchronous>, transform_indices = @transform_18, window_bounds = array<i64: 128, 128>}, {pipeline_mode = #tpu.pipeline_mode<synchronous>, transform_indices = @transform_19, window_bounds = array<i64: 1, 128>}, {transform_indices = @transform_20, window_bounds = array<i64: 1, 2, 128>}]} {
    %c0 = arith.constant 0 : index
    %c0_0 = arith.constant 0 : index
    %c0_1 = arith.constant 0 : index
    %0 = vector.load %arg1[%c0, %c0_0, %c0_1] : memref<2x10x128xf32, #tpu.memory_space<vmem>>, vector<2x10x128xf32>
    %c0_2 = arith.constant 0 : index
    %c0_3 = arith.constant 0 : index
    %c0_4 = arith.constant 0 : index
    %1 = vector.load %arg2[%c0_2, %c0_3, %c0_4] : memref<2x6x128xf32, #tpu.memory_space<vmem>>, vector<2x6x128xf32>
    %2 = tpu.concatenate %0, %1 in 1 : vector<2x10x128xf32>, vector<2x6x128xf32> -> vector<2x16x128xf32>
    %3 = vector.shape_cast %2 : vector<2x16x128xf32> to vector<32x128xf32>
    %c0_5 = arith.constant 0 : index
    %c0_6 = arith.constant 0 : index
    %4 = vector.load %arg3[%c0_5, %c0_6] : memref<128x128xbf16, #tpu.memory_space<vmem>>, vector<128x128xbf16>
    %c0_7 = arith.constant 0 : index
    %c0_8 = arith.constant 0 : index
    %5 = vector.load %arg4[%c0_7, %c0_8] : memref<128x128xf32, #tpu.memory_space<vmem>>, vector<128x128xf32>
    %c0_9 = arith.constant 0 : index
    %c0_10 = arith.constant 0 : index
    %c0_11 = arith.constant 0 : index
    %6 = vector.load %arg5[%c0_9, %c0_10, %c0_11] : memref<6x128x384xbf16, #tpu.memory_space<vmem>>, vector<1x128x384xbf16>
    %7 = vector.shape_cast %6 : vector<1x128x384xbf16> to vector<128x384xbf16>
    %c0_12 = arith.constant 0 : index
    %c0_13 = arith.constant 0 : index
    %c0_14 = arith.constant 0 : index
    %8 = vector.load %arg6[%c0_12, %c0_13, %c0_14] : memref<6x1x384xf32, #tpu.memory_space<vmem>>, vector<1x1x384xf32>
    %9 = vector.shape_cast %8 : vector<1x1x384xf32> to vector<1x384xf32>
    %c0_15 = arith.constant 0 : index
    %c0_16 = arith.constant 0 : index
    %c0_17 = arith.constant 0 : index
    %10 = vector.load %arg7[%c0_15, %c0_16, %c0_17] : memref<6x128x128xbf16, #tpu.memory_space<vmem>>, vector<1x128x128xbf16>
    %11 = vector.shape_cast %10 : vector<1x128x128xbf16> to vector<128x128xbf16>
    %c0_18 = arith.constant 0 : index
    %c0_19 = arith.constant 0 : index
    %c0_20 = arith.constant 0 : index
    %12 = vector.load %arg8[%c0_18, %c0_19, %c0_20] : memref<6x1x128xf32, #tpu.memory_space<vmem>>, vector<1x1x128xf32>
    %13 = vector.shape_cast %12 : vector<1x1x128xf32> to vector<1x128xf32>
    %c0_21 = arith.constant 0 : index
    %c0_22 = arith.constant 0 : index
    %c0_23 = arith.constant 0 : index
    %14 = vector.load %arg9[%c0_21, %c0_22, %c0_23] : memref<6x128x256xbf16, #tpu.memory_space<vmem>>, vector<1x128x256xbf16>
    %15 = vector.shape_cast %14 : vector<1x128x256xbf16> to vector<128x256xbf16>
    %c0_24 = arith.constant 0 : index
    %c0_25 = arith.constant 0 : index
    %c0_26 = arith.constant 0 : index
    %16 = vector.load %arg10[%c0_24, %c0_25, %c0_26] : memref<6x1x256xf32, #tpu.memory_space<vmem>>, vector<1x1x256xf32>
    %17 = vector.shape_cast %16 : vector<1x1x256xf32> to vector<1x256xf32>
    %c0_27 = arith.constant 0 : index
    %c0_28 = arith.constant 0 : index
    %c0_29 = arith.constant 0 : index
    %18 = vector.load %arg11[%c0_27, %c0_28, %c0_29] : memref<6x256x128xbf16, #tpu.memory_space<vmem>>, vector<1x256x128xbf16>
    %19 = vector.shape_cast %18 : vector<1x256x128xbf16> to vector<256x128xbf16>
    %c0_30 = arith.constant 0 : index
    %c0_31 = arith.constant 0 : index
    %c0_32 = arith.constant 0 : index
    %20 = vector.load %arg12[%c0_30, %c0_31, %c0_32] : memref<6x1x128xf32, #tpu.memory_space<vmem>>, vector<1x1x128xf32>
    %21 = vector.shape_cast %20 : vector<1x1x128xf32> to vector<1x128xf32>
    %c0_33 = arith.constant 0 : index
    %c0_34 = arith.constant 0 : index
    %c0_35 = arith.constant 0 : index
    %22 = vector.load %arg13[%c0_33, %c0_34, %c0_35] : memref<6x1x128xf32, #tpu.memory_space<vmem>>, vector<1x1x128xf32>
    %23 = vector.shape_cast %22 : vector<1x1x128xf32> to vector<1x128xf32>
    %c0_36 = arith.constant 0 : index
    %c0_37 = arith.constant 0 : index
    %c0_38 = arith.constant 0 : index
    %24 = vector.load %arg14[%c0_36, %c0_37, %c0_38] : memref<6x1x128xf32, #tpu.memory_space<vmem>>, vector<1x1x128xf32>
    %25 = vector.shape_cast %24 : vector<1x1x128xf32> to vector<1x128xf32>
    %c0_39 = arith.constant 0 : index
    %c0_40 = arith.constant 0 : index
    %c0_41 = arith.constant 0 : index
    %26 = vector.load %arg15[%c0_39, %c0_40, %c0_41] : memref<6x1x128xf32, #tpu.memory_space<vmem>>, vector<1x1x128xf32>
    %27 = vector.shape_cast %26 : vector<1x1x128xf32> to vector<1x128xf32>
    %c0_42 = arith.constant 0 : index
    %c0_43 = arith.constant 0 : index
    %c0_44 = arith.constant 0 : index
    %28 = vector.load %arg16[%c0_42, %c0_43, %c0_44] : memref<6x1x128xf32, #tpu.memory_space<vmem>>, vector<1x1x128xf32>
    %29 = vector.shape_cast %28 : vector<1x1x128xf32> to vector<1x128xf32>
    %30 = arith.truncf %3 : vector<32x128xf32> to vector<32x128xbf16>
    %cst = arith.constant dense<0.000000e+00> : vector<32x384xf32>
    %31 = tpu.matmul %30, %7, %cst {dimension_numbers = #tpu.dot_dimension_numbers<[1], [0], [0], [1], [0, 0, 1, 1], [], []>} : vector<32x128xbf16>, vector<128x384xbf16>, vector<32x384xf32> -> vector<32x384xf32>
    %32 = vector.broadcast %9 : vector<1x384xf32> to vector<32x384xf32>
    %33 = arith.addf %31, %32 : vector<32x384xf32>
    %34 = arith.truncf %33 : vector<32x384xf32> to vector<32x384xbf16>
    %35 = vector.extract_strided_slice %34 {offsets = [0, 0], sizes = [16, 384], strides = [1, 1]} : vector<32x384xbf16> to vector<16x384xbf16>
    %36 = vector.extract_strided_slice %35 {offsets = [0, 0], sizes = [16, 128], strides = [1, 1]} : vector<16x384xbf16> to vector<16x128xbf16>
    %37 = vector.extract_strided_slice %35 {offsets = [0, 128], sizes = [16, 128], strides = [1, 1]} : vector<16x384xbf16> to vector<16x128xbf16>
    %38 = vector.extract_strided_slice %35 {offsets = [0, 256], sizes = [16, 128], strides = [1, 1]} : vector<16x384xbf16> to vector<16x128xbf16>
    %39 = tpu.concatenate %37, %37, %37, %37, %37, %37, %37, %37 in 0 : vector<16x128xbf16>, vector<16x128xbf16>, vector<16x128xbf16>, vector<16x128xbf16>, vector<16x128xbf16>, vector<16x128xbf16>, vector<16x128xbf16>, vector<16x128xbf16> -> vector<128x128xbf16>
    %40 = arith.mulf %39, %4 : vector<128x128xbf16>
    %41 = tpu.concatenate %38, %38, %38, %38, %38, %38, %38, %38 in 0 : vector<16x128xbf16>, vector<16x128xbf16>, vector<16x128xbf16>, vector<16x128xbf16>, vector<16x128xbf16>, vector<16x128xbf16>, vector<16x128xbf16>, vector<16x128xbf16> -> vector<128x128xbf16>
    %42 = arith.mulf %41, %4 : vector<128x128xbf16>
    %cst_45 = arith.constant dense<0.000000e+00> : vector<16x128xf32>
    %43 = tpu.matmul %36, %40, %cst_45 {dimension_numbers = #tpu.dot_dimension_numbers<[1], [1], [0], [0], [0, 0, 1, 0], [], []>} : vector<16x128xbf16>, vector<128x128xbf16>, vector<16x128xf32> -> vector<16x128xf32>
    %cst_46 = arith.constant 2.500000e-01 : f32
    %44 = vector.broadcast %cst_46 : f32 to vector<16x128xf32>
    %45 = arith.mulf %43, %44 : vector<16x128xf32>
    %cst_47 = arith.constant dense<0xFF800000> : vector<16xf32>
    %46 = vector.multi_reduction <maximumf>, %45, %cst_47 [1] : vector<16x128xf32> to vector<16xf32>
    %47 = vector.shape_cast %46 : vector<16xf32> to vector<16x1xf32>
    %48 = vector.broadcast %47 : vector<16x1xf32> to vector<16x128xf32>
    %49 = arith.subf %45, %48 : vector<16x128xf32>
    %50 = math.exp %49 : vector<16x128xf32>
    %cst_48 = arith.constant dense<0.000000e+00> : vector<16x128xf32>
    %51 = tpu.matmul %50, %5, %cst_48 {dimension_numbers = #tpu.dot_dimension_numbers<[1], [0], [0], [1], [0, 0, 1, 1], [], []>} : vector<16x128xf32>, vector<128x128xf32>, vector<16x128xf32> -> vector<16x128xf32>
    %cst_49 = arith.constant 1.000000e-30 : f32
    %52 = vector.broadcast %cst_49 : f32 to vector<16x128xf32>
    %53 = arith.maximumf %51, %52 : vector<16x128xf32>
    %54 = tpu.reciprocal %53 {approx = true} : vector<16x128xf32> -> vector<16x128xf32>
    %55 = arith.mulf %50, %54 : vector<16x128xf32>
    %56 = arith.truncf %55 : vector<16x128xf32> to vector<16x128xbf16>
    %cst_50 = arith.constant dense<0.000000e+00> : vector<16x128xf32>
    %57 = tpu.matmul %56, %42, %cst_50 {dimension_numbers = #tpu.dot_dimension_numbers<[1], [0], [0], [1], [0, 0, 1, 1], [], []>} : vector<16x128xbf16>, vector<128x128xbf16>, vector<16x128xf32> -> vector<16x128xf32>
    %58 = arith.truncf %57 : vector<16x128xf32> to vector<16x128xbf16>
    %cst_51 = arith.constant dense<0.000000e+00> : vector<16x128xf32>
    %59 = tpu.matmul %58, %11, %cst_51 {dimension_numbers = #tpu.dot_dimension_numbers<[1], [0], [0], [1], [0, 0, 1, 1], [], []>} : vector<16x128xbf16>, vector<128x128xbf16>, vector<16x128xf32> -> vector<16x128xf32>
    %c0_52 = arith.constant 0 : index
    %c0_53 = arith.constant 0 : index
    %60 = vector.load %arg22[%c0_52, %c0_53] : memref<32x128xf32, #tpu.memory_space<vmem>>, vector<16x128xf32>
    tpu.vector_store %arg22[%c0_52, %c0_53], %59 {strides = array<i32>} : memref<32x128xf32, #tpu.memory_space<vmem>>, vector<16x128xf32>,
    %61 = vector.extract_strided_slice %34 {offsets = [16, 0], sizes = [16, 384], strides = [1, 1]} : vector<32x384xbf16> to vector<16x384xbf16>
    %62 = vector.extract_strided_slice %61 {offsets = [0, 0], sizes = [16, 128], strides = [1, 1]} : vector<16x384xbf16> to vector<16x128xbf16>
    %63 = vector.extract_strided_slice %61 {offsets = [0, 128], sizes = [16, 128], strides = [1, 1]} : vector<16x384xbf16> to vector<16x128xbf16>
    %64 = vector.extract_strided_slice %61 {offsets = [0, 256], sizes = [16, 128], strides = [1, 1]} : vector<16x384xbf16> to vector<16x128xbf16>
    %65 = tpu.concatenate %63, %63, %63, %63, %63, %63, %63, %63 in 0 : vector<16x128xbf16>, vector<16x128xbf16>, vector<16x128xbf16>, vector<16x128xbf16>, vector<16x128xbf16>, vector<16x128xbf16>, vector<16x128xbf16>, vector<16x128xbf16> -> vector<128x128xbf16>
    %66 = arith.mulf %65, %4 : vector<128x128xbf16>
    %67 = tpu.concatenate %64, %64, %64, %64, %64, %64, %64, %64 in 0 : vector<16x128xbf16>, vector<16x128xbf16>, vector<16x128xbf16>, vector<16x128xbf16>, vector<16x128xbf16>, vector<16x128xbf16>, vector<16x128xbf16>, vector<16x128xbf16> -> vector<128x128xbf16>
    %68 = arith.mulf %67, %4 : vector<128x128xbf16>
    %cst_54 = arith.constant dense<0.000000e+00> : vector<16x128xf32>
    %69 = tpu.matmul %62, %66, %cst_54 {dimension_numbers = #tpu.dot_dimension_numbers<[1], [1], [0], [0], [0, 0, 1, 0], [], []>} : vector<16x128xbf16>, vector<128x128xbf16>, vector<16x128xf32> -> vector<16x128xf32>
    %cst_55 = arith.constant 2.500000e-01 : f32
    %70 = vector.broadcast %cst_55 : f32 to vector<16x128xf32>
    %71 = arith.mulf %69, %70 : vector<16x128xf32>
    %cst_56 = arith.constant dense<0xFF800000> : vector<16xf32>
    %72 = vector.multi_reduction <maximumf>, %71, %cst_56 [1] : vector<16x128xf32> to vector<16xf32>
    %73 = vector.shape_cast %72 : vector<16xf32> to vector<16x1xf32>
    %74 = vector.broadcast %73 : vector<16x1xf32> to vector<16x128xf32>
    %75 = arith.subf %71, %74 : vector<16x128xf32>
    %76 = math.exp %75 : vector<16x128xf32>
    %cst_57 = arith.constant dense<0.000000e+00> : vector<16x128xf32>
    %77 = tpu.matmul %76, %5, %cst_57 {dimension_numbers = #tpu.dot_dimension_numbers<[1], [0], [0], [1], [0, 0, 1, 1], [], []>} : vector<16x128xf32>, vector<128x128xf32>, vector<16x128xf32> -> vector<16x128xf32>
    %cst_58 = arith.constant 1.000000e-30 : f32
    %78 = vector.broadcast %cst_58 : f32 to vector<16x128xf32>
    %79 = arith.maximumf %77, %78 : vector<16x128xf32>
    %80 = tpu.reciprocal %79 {approx = true} : vector<16x128xf32> -> vector<16x128xf32>
    %81 = arith.mulf %76, %80 : vector<16x128xf32>
    %82 = arith.truncf %81 : vector<16x128xf32> to vector<16x128xbf16>
    %cst_59 = arith.constant dense<0.000000e+00> : vector<16x128xf32>
    %83 = tpu.matmul %82, %68, %cst_59 {dimension_numbers = #tpu.dot_dimension_numbers<[1], [0], [0], [1], [0, 0, 1, 1], [], []>} : vector<16x128xbf16>, vector<128x128xbf16>, vector<16x128xf32> -> vector<16x128xf32>
    %84 = arith.truncf %83 : vector<16x128xf32> to vector<16x128xbf16>
    %cst_60 = arith.constant dense<0.000000e+00> : vector<16x128xf32>
    %85 = tpu.matmul %84, %11, %cst_60 {dimension_numbers = #tpu.dot_dimension_numbers<[1], [0], [0], [1], [0, 0, 1, 1], [], []>} : vector<16x128xbf16>, vector<128x128xbf16>, vector<16x128xf32> -> vector<16x128xf32>
    %c16 = arith.constant 16 : index
    %c0_61 = arith.constant 0 : index
    %86 = vector.load %arg22[%c16, %c0_61] : memref<32x128xf32, #tpu.memory_space<vmem>>, vector<16x128xf32>
    tpu.vector_store %arg22[%c16, %c0_61], %85 {strides = array<i32>} : memref<32x128xf32, #tpu.memory_space<vmem>>, vector<16x128xf32>,
    %c0_62 = arith.constant 0 : index
    %c0_63 = arith.constant 0 : index
    %87 = vector.load %arg22[%c0_62, %c0_63] : memref<32x128xf32, #tpu.memory_space<vmem>>, vector<32x128xf32>
    %88 = arith.addf %3, %87 : vector<32x128xf32>
    %89 = vector.broadcast %13 : vector<1x128xf32> to vector<32x128xf32>
    %90 = arith.addf %88, %89 : vector<32x128xf32>
    %cst_64 = arith.constant dense<0.000000e+00> : vector<32xf32>
    %91 = vector.multi_reduction <add>, %90, %cst_64 [1] : vector<32x128xf32> to vector<32xf32>
    %92 = vector.shape_cast %91 : vector<32xf32> to vector<32x1xf32>
    %cst_65 = arith.constant 1.280000e+02 : f32
    %93 = vector.broadcast %cst_65 : f32 to vector<32x1xf32>
    %94 = arith.divf %92, %93 : vector<32x1xf32>
    %95 = vector.broadcast %94 : vector<32x1xf32> to vector<32x128xf32>
    %96 = arith.subf %90, %95 : vector<32x128xf32>
    %97 = arith.mulf %96, %96 : vector<32x128xf32>
    %cst_66 = arith.constant dense<0.000000e+00> : vector<32xf32>
    %98 = vector.multi_reduction <add>, %97, %cst_66 [1] : vector<32x128xf32> to vector<32xf32>
    %99 = vector.shape_cast %98 : vector<32xf32> to vector<32x1xf32>
    %cst_67 = arith.constant 1.280000e+02 : f32
    %100 = vector.broadcast %cst_67 : f32 to vector<32x1xf32>
    %101 = arith.divf %99, %100 : vector<32x1xf32>
    %102 = vector.broadcast %94 : vector<32x1xf32> to vector<32x128xf32>
    %103 = arith.subf %90, %102 : vector<32x128xf32>
    %cst_68 = arith.constant 9.99999974E-6 : f32
    %104 = vector.broadcast %cst_68 : f32 to vector<32x1xf32>
    %105 = arith.addf %101, %104 : vector<32x1xf32>
    %106 = math.rsqrt %105 : vector<32x1xf32>
    %107 = vector.broadcast %106 : vector<32x1xf32> to vector<32x128xf32>
    %108 = arith.mulf %103, %107 : vector<32x128xf32>
    %109 = vector.broadcast %23 : vector<1x128xf32> to vector<32x128xf32>
    %110 = arith.mulf %108, %109 : vector<32x128xf32>
    %111 = vector.broadcast %25 : vector<1x128xf32> to vector<32x128xf32>
    %112 = arith.addf %110, %111 : vector<32x128xf32>
    %113 = arith.truncf %112 : vector<32x128xf32> to vector<32x128xbf16>
    %cst_69 = arith.constant dense<0.000000e+00> : vector<32x256xf32>
    %114 = tpu.matmul %113, %15, %cst_69 {dimension_numbers = #tpu.dot_dimension_numbers<[1], [0], [0], [1], [0, 0, 1, 1], [], []>} : vector<32x128xbf16>, vector<128x256xbf16>, vector<32x256xf32> -> vector<32x256xf32>
    %115 = vector.broadcast %17 : vector<1x256xf32> to vector<32x256xf32>
    %116 = arith.addf %114, %115 : vector<32x256xf32>
    %cst_70 = arith.constant 0.000000e+00 : f32
    %117 = vector.broadcast %cst_70 : f32 to vector<32x256xf32>
    %118 = arith.maximumf %116, %117 : vector<32x256xf32>
    %119 = arith.truncf %118 : vector<32x256xf32> to vector<32x256xbf16>
    %cst_71 = arith.constant dense<0.000000e+00> : vector<32x128xf32>
    %120 = tpu.matmul %119, %19, %cst_71 {dimension_numbers = #tpu.dot_dimension_numbers<[1], [0], [0], [1], [0, 0, 1, 1], [], []>} : vector<32x256xbf16>, vector<256x128xbf16>, vector<32x128xf32> -> vector<32x128xf32>
    %121 = vector.broadcast %21 : vector<1x128xf32> to vector<32x128xf32>
    %122 = arith.addf %120, %121 : vector<32x128xf32>
    %123 = arith.addf %112, %122 : vector<32x128xf32>
    %cst_72 = arith.constant dense<0.000000e+00> : vector<32xf32>
    %124 = vector.multi_reduction <add>, %123, %cst_72 [1] : vector<32x128xf32> to vector<32xf32>
    %125 = vector.shape_cast %124 : vector<32xf32> to vector<32x1xf32>
    %cst_73 = arith.constant 1.280000e+02 : f32
    %126 = vector.broadcast %cst_73 : f32 to vector<32x1xf32>
    %127 = arith.divf %125, %126 : vector<32x1xf32>
    %128 = vector.broadcast %127 : vector<32x1xf32> to vector<32x128xf32>
    %129 = arith.subf %123, %128 : vector<32x128xf32>
    %130 = arith.mulf %129, %129 : vector<32x128xf32>
    %cst_74 = arith.constant dense<0.000000e+00> : vector<32xf32>
    %131 = vector.multi_reduction <add>, %130, %cst_74 [1] : vector<32x128xf32> to vector<32xf32>
    %132 = vector.shape_cast %131 : vector<32xf32> to vector<32x1xf32>
    %cst_75 = arith.constant 1.280000e+02 : f32
    %133 = vector.broadcast %cst_75 : f32 to vector<32x1xf32>
    %134 = arith.divf %132, %133 : vector<32x1xf32>
    %135 = vector.broadcast %127 : vector<32x1xf32> to vector<32x128xf32>
    %136 = arith.subf %123, %135 : vector<32x128xf32>
    %cst_76 = arith.constant 9.99999974E-6 : f32
    %137 = vector.broadcast %cst_76 : f32 to vector<32x1xf32>
    %138 = arith.addf %134, %137 : vector<32x1xf32>
    %139 = math.rsqrt %138 : vector<32x1xf32>
    %140 = vector.broadcast %139 : vector<32x1xf32> to vector<32x128xf32>
    %141 = arith.mulf %136, %140 : vector<32x128xf32>
    %142 = vector.broadcast %27 : vector<1x128xf32> to vector<32x128xf32>
    %143 = arith.mulf %141, %142 : vector<32x128xf32>
    %144 = vector.broadcast %29 : vector<1x128xf32> to vector<32x128xf32>
    %145 = arith.addf %143, %144 : vector<32x128xf32>
    %c1 = arith.constant 1 : index
    %c0_77 = arith.constant 0 : index
    %c0_78 = arith.constant 0 : index
    %146 = vector.load %arg5[%c1, %c0_77, %c0_78] : memref<6x128x384xbf16, #tpu.memory_space<vmem>>, vector<1x128x384xbf16>
    %147 = vector.shape_cast %146 : vector<1x128x384xbf16> to vector<128x384xbf16>
    %c1_79 = arith.constant 1 : index
    %c0_80 = arith.constant 0 : index
    %c0_81 = arith.constant 0 : index
    %148 = vector.load %arg6[%c1_79, %c0_80, %c0_81] : memref<6x1x384xf32, #tpu.memory_space<vmem>>, vector<1x1x384xf32>
    %149 = vector.shape_cast %148 : vector<1x1x384xf32> to vector<1x384xf32>
    %c1_82 = arith.constant 1 : index
    %c0_83 = arith.constant 0 : index
    %c0_84 = arith.constant 0 : index
    %150 = vector.load %arg7[%c1_82, %c0_83, %c0_84] : memref<6x128x128xbf16, #tpu.memory_space<vmem>>, vector<1x128x128xbf16>
    %151 = vector.shape_cast %150 : vector<1x128x128xbf16> to vector<128x128xbf16>
    %c1_85 = arith.constant 1 : index
    %c0_86 = arith.constant 0 : index
    %c0_87 = arith.constant 0 : index
    %152 = vector.load %arg8[%c1_85, %c0_86, %c0_87] : memref<6x1x128xf32, #tpu.memory_space<vmem>>, vector<1x1x128xf32>
    %153 = vector.shape_cast %152 : vector<1x1x128xf32> to vector<1x128xf32>
    %c1_88 = arith.constant 1 : index
    %c0_89 = arith.constant 0 : index
    %c0_90 = arith.constant 0 : index
    %154 = vector.load %arg9[%c1_88, %c0_89, %c0_90] : memref<6x128x256xbf16, #tpu.memory_space<vmem>>, vector<1x128x256xbf16>
    %155 = vector.shape_cast %154 : vector<1x128x256xbf16> to vector<128x256xbf16>
    %c1_91 = arith.constant 1 : index
    %c0_92 = arith.constant 0 : index
    %c0_93 = arith.constant 0 : index
    %156 = vector.load %arg10[%c1_91, %c0_92, %c0_93] : memref<6x1x256xf32, #tpu.memory_space<vmem>>, vector<1x1x256xf32>
    %157 = vector.shape_cast %156 : vector<1x1x256xf32> to vector<1x256xf32>
    %c1_94 = arith.constant 1 : index
    %c0_95 = arith.constant 0 : index
    %c0_96 = arith.constant 0 : index
    %158 = vector.load %arg11[%c1_94, %c0_95, %c0_96] : memref<6x256x128xbf16, #tpu.memory_space<vmem>>, vector<1x256x128xbf16>
    %159 = vector.shape_cast %158 : vector<1x256x128xbf16> to vector<256x128xbf16>
    %c1_97 = arith.constant 1 : index
    %c0_98 = arith.constant 0 : index
    %c0_99 = arith.constant 0 : index
    %160 = vector.load %arg12[%c1_97, %c0_98, %c0_99] : memref<6x1x128xf32, #tpu.memory_space<vmem>>, vector<1x1x128xf32>
    %161 = vector.shape_cast %160 : vector<1x1x128xf32> to vector<1x128xf32>
    %c1_100 = arith.constant 1 : index
    %c0_101 = arith.constant 0 : index
    %c0_102 = arith.constant 0 : index
    %162 = vector.load %arg13[%c1_100, %c0_101, %c0_102] : memref<6x1x128xf32, #tpu.memory_space<vmem>>, vector<1x1x128xf32>
    %163 = vector.shape_cast %162 : vector<1x1x128xf32> to vector<1x128xf32>
    %c1_103 = arith.constant 1 : index
    %c0_104 = arith.constant 0 : index
    %c0_105 = arith.constant 0 : index
    %164 = vector.load %arg14[%c1_103, %c0_104, %c0_105] : memref<6x1x128xf32, #tpu.memory_space<vmem>>, vector<1x1x128xf32>
    %165 = vector.shape_cast %164 : vector<1x1x128xf32> to vector<1x128xf32>
    %c1_106 = arith.constant 1 : index
    %c0_107 = arith.constant 0 : index
    %c0_108 = arith.constant 0 : index
    %166 = vector.load %arg15[%c1_106, %c0_107, %c0_108] : memref<6x1x128xf32, #tpu.memory_space<vmem>>, vector<1x1x128xf32>
    %167 = vector.shape_cast %166 : vector<1x1x128xf32> to vector<1x128xf32>
    %c1_109 = arith.constant 1 : index
    %c0_110 = arith.constant 0 : index
    %c0_111 = arith.constant 0 : index
    %168 = vector.load %arg16[%c1_109, %c0_110, %c0_111] : memref<6x1x128xf32, #tpu.memory_space<vmem>>, vector<1x1x128xf32>
    %169 = vector.shape_cast %168 : vector<1x1x128xf32> to vector<1x128xf32>
    %170 = arith.truncf %145 : vector<32x128xf32> to vector<32x128xbf16>
    %cst_112 = arith.constant dense<0.000000e+00> : vector<32x384xf32>
    %171 = tpu.matmul %170, %147, %cst_112 {dimension_numbers = #tpu.dot_dimension_numbers<[1], [0], [0], [1], [0, 0, 1, 1], [], []>} : vector<32x128xbf16>, vector<128x384xbf16>, vector<32x384xf32> -> vector<32x384xf32>
    %172 = vector.broadcast %149 : vector<1x384xf32> to vector<32x384xf32>
    %173 = arith.addf %171, %172 : vector<32x384xf32>
    %174 = arith.truncf %173 : vector<32x384xf32> to vector<32x384xbf16>
    %175 = vector.extract_strided_slice %174 {offsets = [0, 0], sizes = [16, 384], strides = [1, 1]} : vector<32x384xbf16> to vector<16x384xbf16>
    %176 = vector.extract_strided_slice %175 {offsets = [0, 0], sizes = [16, 128], strides = [1, 1]} : vector<16x384xbf16> to vector<16x128xbf16>
    %177 = vector.extract_strided_slice %175 {offsets = [0, 128], sizes = [16, 128], strides = [1, 1]} : vector<16x384xbf16> to vector<16x128xbf16>
    %178 = vector.extract_strided_slice %175 {offsets = [0, 256], sizes = [16, 128], strides = [1, 1]} : vector<16x384xbf16> to vector<16x128xbf16>
    %179 = tpu.concatenate %177, %177, %177, %177, %177, %177, %177, %177 in 0 : vector<16x128xbf16>, vector<16x128xbf16>, vector<16x128xbf16>, vector<16x128xbf16>, vector<16x128xbf16>, vector<16x128xbf16>, vector<16x128xbf16>, vector<16x128xbf16> -> vector<128x128xbf16>
    %180 = arith.mulf %179, %4 : vector<128x128xbf16>
    %181 = tpu.concatenate %178, %178, %178, %178, %178, %178, %178, %178 in 0 : vector<16x128xbf16>, vector<16x128xbf16>, vector<16x128xbf16>, vector<16x128xbf16>, vector<16x128xbf16>, vector<16x128xbf16>, vector<16x128xbf16>, vector<16x128xbf16> -> vector<128x128xbf16>
    %182 = arith.mulf %181, %4 : vector<128x128xbf16>
    %cst_113 = arith.constant dense<0.000000e+00> : vector<16x128xf32>
    %183 = tpu.matmul %176, %180, %cst_113 {dimension_numbers = #tpu.dot_dimension_numbers<[1], [1], [0], [0], [0, 0, 1, 0], [], []>} : vector<16x128xbf16>, vector<128x128xbf16>, vector<16x128xf32> -> vector<16x128xf32>
    %cst_114 = arith.constant 2.500000e-01 : f32
    %184 = vector.broadcast %cst_114 : f32 to vector<16x128xf32>
    %185 = arith.mulf %183, %184 : vector<16x128xf32>
    %cst_115 = arith.constant dense<0xFF800000> : vector<16xf32>
    %186 = vector.multi_reduction <maximumf>, %185, %cst_115 [1] : vector<16x128xf32> to vector<16xf32>
    %187 = vector.shape_cast %186 : vector<16xf32> to vector<16x1xf32>
    %188 = vector.broadcast %187 : vector<16x1xf32> to vector<16x128xf32>
    %189 = arith.subf %185, %188 : vector<16x128xf32>
    %190 = math.exp %189 : vector<16x128xf32>
    %cst_116 = arith.constant dense<0.000000e+00> : vector<16x128xf32>
    %191 = tpu.matmul %190, %5, %cst_116 {dimension_numbers = #tpu.dot_dimension_numbers<[1], [0], [0], [1], [0, 0, 1, 1], [], []>} : vector<16x128xf32>, vector<128x128xf32>, vector<16x128xf32> -> vector<16x128xf32>
    %cst_117 = arith.constant 1.000000e-30 : f32
    %192 = vector.broadcast %cst_117 : f32 to vector<16x128xf32>
    %193 = arith.maximumf %191, %192 : vector<16x128xf32>
    %194 = tpu.reciprocal %193 {approx = true} : vector<16x128xf32> -> vector<16x128xf32>
    %195 = arith.mulf %190, %194 : vector<16x128xf32>
    %196 = arith.truncf %195 : vector<16x128xf32> to vector<16x128xbf16>
    %cst_118 = arith.constant dense<0.000000e+00> : vector<16x128xf32>
    %197 = tpu.matmul %196, %182, %cst_118 {dimension_numbers = #tpu.dot_dimension_numbers<[1], [0], [0], [1], [0, 0, 1, 1], [], []>} : vector<16x128xbf16>, vector<128x128xbf16>, vector<16x128xf32> -> vector<16x128xf32>
    %198 = arith.truncf %197 : vector<16x128xf32> to vector<16x128xbf16>
    %cst_119 = arith.constant dense<0.000000e+00> : vector<16x128xf32>
    %199 = tpu.matmul %198, %151, %cst_119 {dimension_numbers = #tpu.dot_dimension_numbers<[1], [0], [0], [1], [0, 0, 1, 1], [], []>} : vector<16x128xbf16>, vector<128x128xbf16>, vector<16x128xf32> -> vector<16x128xf32>
    %c0_120 = arith.constant 0 : index
    %c0_121 = arith.constant 0 : index
    %200 = vector.load %arg22[%c0_120, %c0_121] : memref<32x128xf32, #tpu.memory_space<vmem>>, vector<16x128xf32>
    tpu.vector_store %arg22[%c0_120, %c0_121], %199 {strides = array<i32>} : memref<32x128xf32, #tpu.memory_space<vmem>>, vector<16x128xf32>,
    %201 = vector.extract_strided_slice %174 {offsets = [16, 0], sizes = [16, 384], strides = [1, 1]} : vector<32x384xbf16> to vector<16x384xbf16>
    %202 = vector.extract_strided_slice %201 {offsets = [0, 0], sizes = [16, 128], strides = [1, 1]} : vector<16x384xbf16> to vector<16x128xbf16>
    %203 = vector.extract_strided_slice %201 {offsets = [0, 128], sizes = [16, 128], strides = [1, 1]} : vector<16x384xbf16> to vector<16x128xbf16>
    %204 = vector.extract_strided_slice %201 {offsets = [0, 256], sizes = [16, 128], strides = [1, 1]} : vector<16x384xbf16> to vector<16x128xbf16>
    %205 = tpu.concatenate %203, %203, %203, %203, %203, %203, %203, %203 in 0 : vector<16x128xbf16>, vector<16x128xbf16>, vector<16x128xbf16>, vector<16x128xbf16>, vector<16x128xbf16>, vector<16x128xbf16>, vector<16x128xbf16>, vector<16x128xbf16> -> vector<128x128xbf16>
    %206 = arith.mulf %205, %4 : vector<128x128xbf16>
    %207 = tpu.concatenate %204, %204, %204, %204, %204, %204, %204, %204 in 0 : vector<16x128xbf16>, vector<16x128xbf16>, vector<16x128xbf16>, vector<16x128xbf16>, vector<16x128xbf16>, vector<16x128xbf16>, vector<16x128xbf16>, vector<16x128xbf16> -> vector<128x128xbf16>
    %208 = arith.mulf %207, %4 : vector<128x128xbf16>
    %cst_122 = arith.constant dense<0.000000e+00> : vector<16x128xf32>
    %209 = tpu.matmul %202, %206, %cst_122 {dimension_numbers = #tpu.dot_dimension_numbers<[1], [1], [0], [0], [0, 0, 1, 0], [], []>} : vector<16x128xbf16>, vector<128x128xbf16>, vector<16x128xf32> -> vector<16x128xf32>
    %cst_123 = arith.constant 2.500000e-01 : f32
    %210 = vector.broadcast %cst_123 : f32 to vector<16x128xf32>
    %211 = arith.mulf %209, %210 : vector<16x128xf32>
    %cst_124 = arith.constant dense<0xFF800000> : vector<16xf32>
    %212 = vector.multi_reduction <maximumf>, %211, %cst_124 [1] : vector<16x128xf32> to vector<16xf32>
    %213 = vector.shape_cast %212 : vector<16xf32> to vector<16x1xf32>
    %214 = vector.broadcast %213 : vector<16x1xf32> to vector<16x128xf32>
    %215 = arith.subf %211, %214 : vector<16x128xf32>
    %216 = math.exp %215 : vector<16x128xf32>
    %cst_125 = arith.constant dense<0.000000e+00> : vector<16x128xf32>
    %217 = tpu.matmul %216, %5, %cst_125 {dimension_numbers = #tpu.dot_dimension_numbers<[1], [0], [0], [1], [0, 0, 1, 1], [], []>} : vector<16x128xf32>, vector<128x128xf32>, vector<16x128xf32> -> vector<16x128xf32>
    %cst_126 = arith.constant 1.000000e-30 : f32
    %218 = vector.broadcast %cst_126 : f32 to vector<16x128xf32>
    %219 = arith.maximumf %217, %218 : vector<16x128xf32>
    %220 = tpu.reciprocal %219 {approx = true} : vector<16x128xf32> -> vector<16x128xf32>
    %221 = arith.mulf %216, %220 : vector<16x128xf32>
    %222 = arith.truncf %221 : vector<16x128xf32> to vector<16x128xbf16>
    %cst_127 = arith.constant dense<0.000000e+00> : vector<16x128xf32>
    %223 = tpu.matmul %222, %208, %cst_127 {dimension_numbers = #tpu.dot_dimension_numbers<[1], [0], [0], [1], [0, 0, 1, 1], [], []>} : vector<16x128xbf16>, vector<128x128xbf16>, vector<16x128xf32> -> vector<16x128xf32>
    %224 = arith.truncf %223 : vector<16x128xf32> to vector<16x128xbf16>
    %cst_128 = arith.constant dense<0.000000e+00> : vector<16x128xf32>
    %225 = tpu.matmul %224, %151, %cst_128 {dimension_numbers = #tpu.dot_dimension_numbers<[1], [0], [0], [1], [0, 0, 1, 1], [], []>} : vector<16x128xbf16>, vector<128x128xbf16>, vector<16x128xf32> -> vector<16x128xf32>
    %c16_129 = arith.constant 16 : index
    %c0_130 = arith.constant 0 : index
    %226 = vector.load %arg22[%c16_129, %c0_130] : memref<32x128xf32, #tpu.memory_space<vmem>>, vector<16x128xf32>
    tpu.vector_store %arg22[%c16_129, %c0_130], %225 {strides = array<i32>} : memref<32x128xf32, #tpu.memory_space<vmem>>, vector<16x128xf32>,
    %c0_131 = arith.constant 0 : index
    %c0_132 = arith.constant 0 : index
    %227 = vector.load %arg22[%c0_131, %c0_132] : memref<32x128xf32, #tpu.memory_space<vmem>>, vector<32x128xf32>
    %228 = arith.addf %145, %227 : vector<32x128xf32>
    %229 = vector.broadcast %153 : vector<1x128xf32> to vector<32x128xf32>
    %230 = arith.addf %228, %229 : vector<32x128xf32>
    %cst_133 = arith.constant dense<0.000000e+00> : vector<32xf32>
    %231 = vector.multi_reduction <add>, %230, %cst_133 [1] : vector<32x128xf32> to vector<32xf32>
    %232 = vector.shape_cast %231 : vector<32xf32> to vector<32x1xf32>
    %cst_134 = arith.constant 1.280000e+02 : f32
    %233 = vector.broadcast %cst_134 : f32 to vector<32x1xf32>
    %234 = arith.divf %232, %233 : vector<32x1xf32>
    %235 = vector.broadcast %234 : vector<32x1xf32> to vector<32x128xf32>
    %236 = arith.subf %230, %235 : vector<32x128xf32>
    %237 = arith.mulf %236, %236 : vector<32x128xf32>
    %cst_135 = arith.constant dense<0.000000e+00> : vector<32xf32>
    %238 = vector.multi_reduction <add>, %237, %cst_135 [1] : vector<32x128xf32> to vector<32xf32>
    %239 = vector.shape_cast %238 : vector<32xf32> to vector<32x1xf32>
    %cst_136 = arith.constant 1.280000e+02 : f32
    %240 = vector.broadcast %cst_136 : f32 to vector<32x1xf32>
    %241 = arith.divf %239, %240 : vector<32x1xf32>
    %242 = vector.broadcast %234 : vector<32x1xf32> to vector<32x128xf32>
    %243 = arith.subf %230, %242 : vector<32x128xf32>
    %cst_137 = arith.constant 9.99999974E-6 : f32
    %244 = vector.broadcast %cst_137 : f32 to vector<32x1xf32>
    %245 = arith.addf %241, %244 : vector<32x1xf32>
    %246 = math.rsqrt %245 : vector<32x1xf32>
    %247 = vector.broadcast %246 : vector<32x1xf32> to vector<32x128xf32>
    %248 = arith.mulf %243, %247 : vector<32x128xf32>
    %249 = vector.broadcast %163 : vector<1x128xf32> to vector<32x128xf32>
    %250 = arith.mulf %248, %249 : vector<32x128xf32>
    %251 = vector.broadcast %165 : vector<1x128xf32> to vector<32x128xf32>
    %252 = arith.addf %250, %251 : vector<32x128xf32>
    %253 = arith.truncf %252 : vector<32x128xf32> to vector<32x128xbf16>
    %cst_138 = arith.constant dense<0.000000e+00> : vector<32x256xf32>
    %254 = tpu.matmul %253, %155, %cst_138 {dimension_numbers = #tpu.dot_dimension_numbers<[1], [0], [0], [1], [0, 0, 1, 1], [], []>} : vector<32x128xbf16>, vector<128x256xbf16>, vector<32x256xf32> -> vector<32x256xf32>
    %255 = vector.broadcast %157 : vector<1x256xf32> to vector<32x256xf32>
    %256 = arith.addf %254, %255 : vector<32x256xf32>
    %cst_139 = arith.constant 0.000000e+00 : f32
    %257 = vector.broadcast %cst_139 : f32 to vector<32x256xf32>
    %258 = arith.maximumf %256, %257 : vector<32x256xf32>
    %259 = arith.truncf %258 : vector<32x256xf32> to vector<32x256xbf16>
    %cst_140 = arith.constant dense<0.000000e+00> : vector<32x128xf32>
    %260 = tpu.matmul %259, %159, %cst_140 {dimension_numbers = #tpu.dot_dimension_numbers<[1], [0], [0], [1], [0, 0, 1, 1], [], []>} : vector<32x256xbf16>, vector<256x128xbf16>, vector<32x128xf32> -> vector<32x128xf32>
    %261 = vector.broadcast %161 : vector<1x128xf32> to vector<32x128xf32>
    %262 = arith.addf %260, %261 : vector<32x128xf32>
    %263 = arith.addf %252, %262 : vector<32x128xf32>
    %cst_141 = arith.constant dense<0.000000e+00> : vector<32xf32>
    %264 = vector.multi_reduction <add>, %263, %cst_141 [1] : vector<32x128xf32> to vector<32xf32>
    %265 = vector.shape_cast %264 : vector<32xf32> to vector<32x1xf32>
    %cst_142 = arith.constant 1.280000e+02 : f32
    %266 = vector.broadcast %cst_142 : f32 to vector<32x1xf32>
    %267 = arith.divf %265, %266 : vector<32x1xf32>
    %268 = vector.broadcast %267 : vector<32x1xf32> to vector<32x128xf32>
    %269 = arith.subf %263, %268 : vector<32x128xf32>
    %270 = arith.mulf %269, %269 : vector<32x128xf32>
    %cst_143 = arith.constant dense<0.000000e+00> : vector<32xf32>
    %271 = vector.multi_reduction <add>, %270, %cst_143 [1] : vector<32x128xf32> to vector<32xf32>
    %272 = vector.shape_cast %271 : vector<32xf32> to vector<32x1xf32>
    %cst_144 = arith.constant 1.280000e+02 : f32
    %273 = vector.broadcast %cst_144 : f32 to vector<32x1xf32>
    %274 = arith.divf %272, %273 : vector<32x1xf32>
    %275 = vector.broadcast %267 : vector<32x1xf32> to vector<32x128xf32>
    %276 = arith.subf %263, %275 : vector<32x128xf32>
    %cst_145 = arith.constant 9.99999974E-6 : f32
    %277 = vector.broadcast %cst_145 : f32 to vector<32x1xf32>
    %278 = arith.addf %274, %277 : vector<32x1xf32>
    %279 = math.rsqrt %278 : vector<32x1xf32>
    %280 = vector.broadcast %279 : vector<32x1xf32> to vector<32x128xf32>
    %281 = arith.mulf %276, %280 : vector<32x128xf32>
    %282 = vector.broadcast %167 : vector<1x128xf32> to vector<32x128xf32>
    %283 = arith.mulf %281, %282 : vector<32x128xf32>
    %284 = vector.broadcast %169 : vector<1x128xf32> to vector<32x128xf32>
    %285 = arith.addf %283, %284 : vector<32x128xf32>
    %c2 = arith.constant 2 : index
    %c0_146 = arith.constant 0 : index
    %c0_147 = arith.constant 0 : index
    %286 = vector.load %arg5[%c2, %c0_146, %c0_147] : memref<6x128x384xbf16, #tpu.memory_space<vmem>>, vector<1x128x384xbf16>
    %287 = vector.shape_cast %286 : vector<1x128x384xbf16> to vector<128x384xbf16>
    %c2_148 = arith.constant 2 : index
    %c0_149 = arith.constant 0 : index
    %c0_150 = arith.constant 0 : index
    %288 = vector.load %arg6[%c2_148, %c0_149, %c0_150] : memref<6x1x384xf32, #tpu.memory_space<vmem>>, vector<1x1x384xf32>
    %289 = vector.shape_cast %288 : vector<1x1x384xf32> to vector<1x384xf32>
    %c2_151 = arith.constant 2 : index
    %c0_152 = arith.constant 0 : index
    %c0_153 = arith.constant 0 : index
    %290 = vector.load %arg7[%c2_151, %c0_152, %c0_153] : memref<6x128x128xbf16, #tpu.memory_space<vmem>>, vector<1x128x128xbf16>
    %291 = vector.shape_cast %290 : vector<1x128x128xbf16> to vector<128x128xbf16>
    %c2_154 = arith.constant 2 : index
    %c0_155 = arith.constant 0 : index
    %c0_156 = arith.constant 0 : index
    %292 = vector.load %arg8[%c2_154, %c0_155, %c0_156] : memref<6x1x128xf32, #tpu.memory_space<vmem>>, vector<1x1x128xf32>
    %293 = vector.shape_cast %292 : vector<1x1x128xf32> to vector<1x128xf32>
    %c2_157 = arith.constant 2 : index
    %c0_158 = arith.constant 0 : index
    %c0_159 = arith.constant 0 : index
    %294 = vector.load %arg9[%c2_157, %c0_158, %c0_159] : memref<6x128x256xbf16, #tpu.memory_space<vmem>>, vector<1x128x256xbf16>
    %295 = vector.shape_cast %294 : vector<1x128x256xbf16> to vector<128x256xbf16>
    %c2_160 = arith.constant 2 : index
    %c0_161 = arith.constant 0 : index
    %c0_162 = arith.constant 0 : index
    %296 = vector.load %arg10[%c2_160, %c0_161, %c0_162] : memref<6x1x256xf32, #tpu.memory_space<vmem>>, vector<1x1x256xf32>
    %297 = vector.shape_cast %296 : vector<1x1x256xf32> to vector<1x256xf32>
    %c2_163 = arith.constant 2 : index
    %c0_164 = arith.constant 0 : index
    %c0_165 = arith.constant 0 : index
    %298 = vector.load %arg11[%c2_163, %c0_164, %c0_165] : memref<6x256x128xbf16, #tpu.memory_space<vmem>>, vector<1x256x128xbf16>
    %299 = vector.shape_cast %298 : vector<1x256x128xbf16> to vector<256x128xbf16>
    %c2_166 = arith.constant 2 : index
    %c0_167 = arith.constant 0 : index
    %c0_168 = arith.constant 0 : index
    %300 = vector.load %arg12[%c2_166, %c0_167, %c0_168] : memref<6x1x128xf32, #tpu.memory_space<vmem>>, vector<1x1x128xf32>
    %301 = vector.shape_cast %300 : vector<1x1x128xf32> to vector<1x128xf32>
    %c2_169 = arith.constant 2 : index
    %c0_170 = arith.constant 0 : index
    %c0_171 = arith.constant 0 : index
    %302 = vector.load %arg13[%c2_169, %c0_170, %c0_171] : memref<6x1x128xf32, #tpu.memory_space<vmem>>, vector<1x1x128xf32>
    %303 = vector.shape_cast %302 : vector<1x1x128xf32> to vector<1x128xf32>
    %c2_172 = arith.constant 2 : index
    %c0_173 = arith.constant 0 : index
    %c0_174 = arith.constant 0 : index
    %304 = vector.load %arg14[%c2_172, %c0_173, %c0_174] : memref<6x1x128xf32, #tpu.memory_space<vmem>>, vector<1x1x128xf32>
    %305 = vector.shape_cast %304 : vector<1x1x128xf32> to vector<1x128xf32>
    %c2_175 = arith.constant 2 : index
    %c0_176 = arith.constant 0 : index
    %c0_177 = arith.constant 0 : index
    %306 = vector.load %arg15[%c2_175, %c0_176, %c0_177] : memref<6x1x128xf32, #tpu.memory_space<vmem>>, vector<1x1x128xf32>
    %307 = vector.shape_cast %306 : vector<1x1x128xf32> to vector<1x128xf32>
    %c2_178 = arith.constant 2 : index
    %c0_179 = arith.constant 0 : index
    %c0_180 = arith.constant 0 : index
    %308 = vector.load %arg16[%c2_178, %c0_179, %c0_180] : memref<6x1x128xf32, #tpu.memory_space<vmem>>, vector<1x1x128xf32>
    %309 = vector.shape_cast %308 : vector<1x1x128xf32> to vector<1x128xf32>
    %310 = arith.truncf %285 : vector<32x128xf32> to vector<32x128xbf16>
    %cst_181 = arith.constant dense<0.000000e+00> : vector<32x384xf32>
    %311 = tpu.matmul %310, %287, %cst_181 {dimension_numbers = #tpu.dot_dimension_numbers<[1], [0], [0], [1], [0, 0, 1, 1], [], []>} : vector<32x128xbf16>, vector<128x384xbf16>, vector<32x384xf32> -> vector<32x384xf32>
    %312 = vector.broadcast %289 : vector<1x384xf32> to vector<32x384xf32>
    %313 = arith.addf %311, %312 : vector<32x384xf32>
    %314 = arith.truncf %313 : vector<32x384xf32> to vector<32x384xbf16>
    %315 = vector.extract_strided_slice %314 {offsets = [0, 0], sizes = [16, 384], strides = [1, 1]} : vector<32x384xbf16> to vector<16x384xbf16>
    %316 = vector.extract_strided_slice %315 {offsets = [0, 0], sizes = [16, 128], strides = [1, 1]} : vector<16x384xbf16> to vector<16x128xbf16>
    %317 = vector.extract_strided_slice %315 {offsets = [0, 128], sizes = [16, 128], strides = [1, 1]} : vector<16x384xbf16> to vector<16x128xbf16>
    %318 = vector.extract_strided_slice %315 {offsets = [0, 256], sizes = [16, 128], strides = [1, 1]} : vector<16x384xbf16> to vector<16x128xbf16>
    %319 = tpu.concatenate %317, %317, %317, %317, %317, %317, %317, %317 in 0 : vector<16x128xbf16>, vector<16x128xbf16>, vector<16x128xbf16>, vector<16x128xbf16>, vector<16x128xbf16>, vector<16x128xbf16>, vector<16x128xbf16>, vector<16x128xbf16> -> vector<128x128xbf16>
    %320 = arith.mulf %319, %4 : vector<128x128xbf16>
    %321 = tpu.concatenate %318, %318, %318, %318, %318, %318, %318, %318 in 0 : vector<16x128xbf16>, vector<16x128xbf16>, vector<16x128xbf16>, vector<16x128xbf16>, vector<16x128xbf16>, vector<16x128xbf16>, vector<16x128xbf16>, vector<16x128xbf16> -> vector<128x128xbf16>
    %322 = arith.mulf %321, %4 : vector<128x128xbf16>
    %cst_182 = arith.constant dense<0.000000e+00> : vector<16x128xf32>
    %323 = tpu.matmul %316, %320, %cst_182 {dimension_numbers = #tpu.dot_dimension_numbers<[1], [1], [0], [0], [0, 0, 1, 0], [], []>} : vector<16x128xbf16>, vector<128x128xbf16>, vector<16x128xf32> -> vector<16x128xf32>
    %cst_183 = arith.constant 2.500000e-01 : f32
    %324 = vector.broadcast %cst_183 : f32 to vector<16x128xf32>
    %325 = arith.mulf %323, %324 : vector<16x128xf32>
    %cst_184 = arith.constant dense<0xFF800000> : vector<16xf32>
    %326 = vector.multi_reduction <maximumf>, %325, %cst_184 [1] : vector<16x128xf32> to vector<16xf32>
    %327 = vector.shape_cast %326 : vector<16xf32> to vector<16x1xf32>
    %328 = vector.broadcast %327 : vector<16x1xf32> to vector<16x128xf32>
    %329 = arith.subf %325, %328 : vector<16x128xf32>
    %330 = math.exp %329 : vector<16x128xf32>
    %cst_185 = arith.constant dense<0.000000e+00> : vector<16x128xf32>
    %331 = tpu.matmul %330, %5, %cst_185 {dimension_numbers = #tpu.dot_dimension_numbers<[1], [0], [0], [1], [0, 0, 1, 1], [], []>} : vector<16x128xf32>, vector<128x128xf32>, vector<16x128xf32> -> vector<16x128xf32>
    %cst_186 = arith.constant 1.000000e-30 : f32
    %332 = vector.broadcast %cst_186 : f32 to vector<16x128xf32>
    %333 = arith.maximumf %331, %332 : vector<16x128xf32>
    %334 = tpu.reciprocal %333 {approx = true} : vector<16x128xf32> -> vector<16x128xf32>
    %335 = arith.mulf %330, %334 : vector<16x128xf32>
    %336 = arith.truncf %335 : vector<16x128xf32> to vector<16x128xbf16>
    %cst_187 = arith.constant dense<0.000000e+00> : vector<16x128xf32>
    %337 = tpu.matmul %336, %322, %cst_187 {dimension_numbers = #tpu.dot_dimension_numbers<[1], [0], [0], [1], [0, 0, 1, 1], [], []>} : vector<16x128xbf16>, vector<128x128xbf16>, vector<16x128xf32> -> vector<16x128xf32>
    %338 = arith.truncf %337 : vector<16x128xf32> to vector<16x128xbf16>
    %cst_188 = arith.constant dense<0.000000e+00> : vector<16x128xf32>
    %339 = tpu.matmul %338, %291, %cst_188 {dimension_numbers = #tpu.dot_dimension_numbers<[1], [0], [0], [1], [0, 0, 1, 1], [], []>} : vector<16x128xbf16>, vector<128x128xbf16>, vector<16x128xf32> -> vector<16x128xf32>
    %c0_189 = arith.constant 0 : index
    %c0_190 = arith.constant 0 : index
    %340 = vector.load %arg22[%c0_189, %c0_190] : memref<32x128xf32, #tpu.memory_space<vmem>>, vector<16x128xf32>
    tpu.vector_store %arg22[%c0_189, %c0_190], %339 {strides = array<i32>} : memref<32x128xf32, #tpu.memory_space<vmem>>, vector<16x128xf32>,
    %341 = vector.extract_strided_slice %314 {offsets = [16, 0], sizes = [16, 384], strides = [1, 1]} : vector<32x384xbf16> to vector<16x384xbf16>
    %342 = vector.extract_strided_slice %341 {offsets = [0, 0], sizes = [16, 128], strides = [1, 1]} : vector<16x384xbf16> to vector<16x128xbf16>
    %343 = vector.extract_strided_slice %341 {offsets = [0, 128], sizes = [16, 128], strides = [1, 1]} : vector<16x384xbf16> to vector<16x128xbf16>
    %344 = vector.extract_strided_slice %341 {offsets = [0, 256], sizes = [16, 128], strides = [1, 1]} : vector<16x384xbf16> to vector<16x128xbf16>
    %345 = tpu.concatenate %343, %343, %343, %343, %343, %343, %343, %343 in 0 : vector<16x128xbf16>, vector<16x128xbf16>, vector<16x128xbf16>, vector<16x128xbf16>, vector<16x128xbf16>, vector<16x128xbf16>, vector<16x128xbf16>, vector<16x128xbf16> -> vector<128x128xbf16>
    %346 = arith.mulf %345, %4 : vector<128x128xbf16>
    %347 = tpu.concatenate %344, %344, %344, %344, %344, %344, %344, %344 in 0 : vector<16x128xbf16>, vector<16x128xbf16>, vector<16x128xbf16>, vector<16x128xbf16>, vector<16x128xbf16>, vector<16x128xbf16>, vector<16x128xbf16>, vector<16x128xbf16> -> vector<128x128xbf16>
    %348 = arith.mulf %347, %4 : vector<128x128xbf16>
    %cst_191 = arith.constant dense<0.000000e+00> : vector<16x128xf32>
    %349 = tpu.matmul %342, %346, %cst_191 {dimension_numbers = #tpu.dot_dimension_numbers<[1], [1], [0], [0], [0, 0, 1, 0], [], []>} : vector<16x128xbf16>, vector<128x128xbf16>, vector<16x128xf32> -> vector<16x128xf32>
    %cst_192 = arith.constant 2.500000e-01 : f32
    %350 = vector.broadcast %cst_192 : f32 to vector<16x128xf32>
    %351 = arith.mulf %349, %350 : vector<16x128xf32>
    %cst_193 = arith.constant dense<0xFF800000> : vector<16xf32>
    %352 = vector.multi_reduction <maximumf>, %351, %cst_193 [1] : vector<16x128xf32> to vector<16xf32>
    %353 = vector.shape_cast %352 : vector<16xf32> to vector<16x1xf32>
    %354 = vector.broadcast %353 : vector<16x1xf32> to vector<16x128xf32>
    %355 = arith.subf %351, %354 : vector<16x128xf32>
    %356 = math.exp %355 : vector<16x128xf32>
    %cst_194 = arith.constant dense<0.000000e+00> : vector<16x128xf32>
    %357 = tpu.matmul %356, %5, %cst_194 {dimension_numbers = #tpu.dot_dimension_numbers<[1], [0], [0], [1], [0, 0, 1, 1], [], []>} : vector<16x128xf32>, vector<128x128xf32>, vector<16x128xf32> -> vector<16x128xf32>
    %cst_195 = arith.constant 1.000000e-30 : f32
    %358 = vector.broadcast %cst_195 : f32 to vector<16x128xf32>
    %359 = arith.maximumf %357, %358 : vector<16x128xf32>
    %360 = tpu.reciprocal %359 {approx = true} : vector<16x128xf32> -> vector<16x128xf32>
    %361 = arith.mulf %356, %360 : vector<16x128xf32>
    %362 = arith.truncf %361 : vector<16x128xf32> to vector<16x128xbf16>
    %cst_196 = arith.constant dense<0.000000e+00> : vector<16x128xf32>
    %363 = tpu.matmul %362, %348, %cst_196 {dimension_numbers = #tpu.dot_dimension_numbers<[1], [0], [0], [1], [0, 0, 1, 1], [], []>} : vector<16x128xbf16>, vector<128x128xbf16>, vector<16x128xf32> -> vector<16x128xf32>
    %364 = arith.truncf %363 : vector<16x128xf32> to vector<16x128xbf16>
    %cst_197 = arith.constant dense<0.000000e+00> : vector<16x128xf32>
    %365 = tpu.matmul %364, %291, %cst_197 {dimension_numbers = #tpu.dot_dimension_numbers<[1], [0], [0], [1], [0, 0, 1, 1], [], []>} : vector<16x128xbf16>, vector<128x128xbf16>, vector<16x128xf32> -> vector<16x128xf32>
    %c16_198 = arith.constant 16 : index
    %c0_199 = arith.constant 0 : index
    %366 = vector.load %arg22[%c16_198, %c0_199] : memref<32x128xf32, #tpu.memory_space<vmem>>, vector<16x128xf32>
    tpu.vector_store %arg22[%c16_198, %c0_199], %365 {strides = array<i32>} : memref<32x128xf32, #tpu.memory_space<vmem>>, vector<16x128xf32>,
    %c0_200 = arith.constant 0 : index
    %c0_201 = arith.constant 0 : index
    %367 = vector.load %arg22[%c0_200, %c0_201] : memref<32x128xf32, #tpu.memory_space<vmem>>, vector<32x128xf32>
    %368 = arith.addf %285, %367 : vector<32x128xf32>
    %369 = vector.broadcast %293 : vector<1x128xf32> to vector<32x128xf32>
    %370 = arith.addf %368, %369 : vector<32x128xf32>
    %cst_202 = arith.constant dense<0.000000e+00> : vector<32xf32>
    %371 = vector.multi_reduction <add>, %370, %cst_202 [1] : vector<32x128xf32> to vector<32xf32>
    %372 = vector.shape_cast %371 : vector<32xf32> to vector<32x1xf32>
    %cst_203 = arith.constant 1.280000e+02 : f32
    %373 = vector.broadcast %cst_203 : f32 to vector<32x1xf32>
    %374 = arith.divf %372, %373 : vector<32x1xf32>
    %375 = vector.broadcast %374 : vector<32x1xf32> to vector<32x128xf32>
    %376 = arith.subf %370, %375 : vector<32x128xf32>
    %377 = arith.mulf %376, %376 : vector<32x128xf32>
    %cst_204 = arith.constant dense<0.000000e+00> : vector<32xf32>
    %378 = vector.multi_reduction <add>, %377, %cst_204 [1] : vector<32x128xf32> to vector<32xf32>
    %379 = vector.shape_cast %378 : vector<32xf32> to vector<32x1xf32>
    %cst_205 = arith.constant 1.280000e+02 : f32
    %380 = vector.broadcast %cst_205 : f32 to vector<32x1xf32>
    %381 = arith.divf %379, %380 : vector<32x1xf32>
    %382 = vector.broadcast %374 : vector<32x1xf32> to vector<32x128xf32>
    %383 = arith.subf %370, %382 : vector<32x128xf32>
    %cst_206 = arith.constant 9.99999974E-6 : f32
    %384 = vector.broadcast %cst_206 : f32 to vector<32x1xf32>
    %385 = arith.addf %381, %384 : vector<32x1xf32>
    %386 = math.rsqrt %385 : vector<32x1xf32>
    %387 = vector.broadcast %386 : vector<32x1xf32> to vector<32x128xf32>
    %388 = arith.mulf %383, %387 : vector<32x128xf32>
    %389 = vector.broadcast %303 : vector<1x128xf32> to vector<32x128xf32>
    %390 = arith.mulf %388, %389 : vector<32x128xf32>
    %391 = vector.broadcast %305 : vector<1x128xf32> to vector<32x128xf32>
    %392 = arith.addf %390, %391 : vector<32x128xf32>
    %393 = arith.truncf %392 : vector<32x128xf32> to vector<32x128xbf16>
    %cst_207 = arith.constant dense<0.000000e+00> : vector<32x256xf32>
    %394 = tpu.matmul %393, %295, %cst_207 {dimension_numbers = #tpu.dot_dimension_numbers<[1], [0], [0], [1], [0, 0, 1, 1], [], []>} : vector<32x128xbf16>, vector<128x256xbf16>, vector<32x256xf32> -> vector<32x256xf32>
    %395 = vector.broadcast %297 : vector<1x256xf32> to vector<32x256xf32>
    %396 = arith.addf %394, %395 : vector<32x256xf32>
    %cst_208 = arith.constant 0.000000e+00 : f32
    %397 = vector.broadcast %cst_208 : f32 to vector<32x256xf32>
    %398 = arith.maximumf %396, %397 : vector<32x256xf32>
    %399 = arith.truncf %398 : vector<32x256xf32> to vector<32x256xbf16>
    %cst_209 = arith.constant dense<0.000000e+00> : vector<32x128xf32>
    %400 = tpu.matmul %399, %299, %cst_209 {dimension_numbers = #tpu.dot_dimension_numbers<[1], [0], [0], [1], [0, 0, 1, 1], [], []>} : vector<32x256xbf16>, vector<256x128xbf16>, vector<32x128xf32> -> vector<32x128xf32>
    %401 = vector.broadcast %301 : vector<1x128xf32> to vector<32x128xf32>
    %402 = arith.addf %400, %401 : vector<32x128xf32>
    %403 = arith.addf %392, %402 : vector<32x128xf32>
    %cst_210 = arith.constant dense<0.000000e+00> : vector<32xf32>
    %404 = vector.multi_reduction <add>, %403, %cst_210 [1] : vector<32x128xf32> to vector<32xf32>
    %405 = vector.shape_cast %404 : vector<32xf32> to vector<32x1xf32>
    %cst_211 = arith.constant 1.280000e+02 : f32
    %406 = vector.broadcast %cst_211 : f32 to vector<32x1xf32>
    %407 = arith.divf %405, %406 : vector<32x1xf32>
    %408 = vector.broadcast %407 : vector<32x1xf32> to vector<32x128xf32>
    %409 = arith.subf %403, %408 : vector<32x128xf32>
    %410 = arith.mulf %409, %409 : vector<32x128xf32>
    %cst_212 = arith.constant dense<0.000000e+00> : vector<32xf32>
    %411 = vector.multi_reduction <add>, %410, %cst_212 [1] : vector<32x128xf32> to vector<32xf32>
    %412 = vector.shape_cast %411 : vector<32xf32> to vector<32x1xf32>
    %cst_213 = arith.constant 1.280000e+02 : f32
    %413 = vector.broadcast %cst_213 : f32 to vector<32x1xf32>
    %414 = arith.divf %412, %413 : vector<32x1xf32>
    %415 = vector.broadcast %407 : vector<32x1xf32> to vector<32x128xf32>
    %416 = arith.subf %403, %415 : vector<32x128xf32>
    %cst_214 = arith.constant 9.99999974E-6 : f32
    %417 = vector.broadcast %cst_214 : f32 to vector<32x1xf32>
    %418 = arith.addf %414, %417 : vector<32x1xf32>
    %419 = math.rsqrt %418 : vector<32x1xf32>
    %420 = vector.broadcast %419 : vector<32x1xf32> to vector<32x128xf32>
    %421 = arith.mulf %416, %420 : vector<32x128xf32>
    %422 = vector.broadcast %307 : vector<1x128xf32> to vector<32x128xf32>
    %423 = arith.mulf %421, %422 : vector<32x128xf32>
    %424 = vector.broadcast %309 : vector<1x128xf32> to vector<32x128xf32>
    %425 = arith.addf %423, %424 : vector<32x128xf32>
    %c3 = arith.constant 3 : index
    %c0_215 = arith.constant 0 : index
    %c0_216 = arith.constant 0 : index
    %426 = vector.load %arg5[%c3, %c0_215, %c0_216] : memref<6x128x384xbf16, #tpu.memory_space<vmem>>, vector<1x128x384xbf16>
    %427 = vector.shape_cast %426 : vector<1x128x384xbf16> to vector<128x384xbf16>
    %c3_217 = arith.constant 3 : index
    %c0_218 = arith.constant 0 : index
    %c0_219 = arith.constant 0 : index
    %428 = vector.load %arg6[%c3_217, %c0_218, %c0_219] : memref<6x1x384xf32, #tpu.memory_space<vmem>>, vector<1x1x384xf32>
    %429 = vector.shape_cast %428 : vector<1x1x384xf32> to vector<1x384xf32>
    %c3_220 = arith.constant 3 : index
    %c0_221 = arith.constant 0 : index
    %c0_222 = arith.constant 0 : index
    %430 = vector.load %arg7[%c3_220, %c0_221, %c0_222] : memref<6x128x128xbf16, #tpu.memory_space<vmem>>, vector<1x128x128xbf16>
    %431 = vector.shape_cast %430 : vector<1x128x128xbf16> to vector<128x128xbf16>
    %c3_223 = arith.constant 3 : index
    %c0_224 = arith.constant 0 : index
    %c0_225 = arith.constant 0 : index
    %432 = vector.load %arg8[%c3_223, %c0_224, %c0_225] : memref<6x1x128xf32, #tpu.memory_space<vmem>>, vector<1x1x128xf32>
    %433 = vector.shape_cast %432 : vector<1x1x128xf32> to vector<1x128xf32>
    %c3_226 = arith.constant 3 : index
    %c0_227 = arith.constant 0 : index
    %c0_228 = arith.constant 0 : index
    %434 = vector.load %arg9[%c3_226, %c0_227, %c0_228] : memref<6x128x256xbf16, #tpu.memory_space<vmem>>, vector<1x128x256xbf16>
    %435 = vector.shape_cast %434 : vector<1x128x256xbf16> to vector<128x256xbf16>
    %c3_229 = arith.constant 3 : index
    %c0_230 = arith.constant 0 : index
    %c0_231 = arith.constant 0 : index
    %436 = vector.load %arg10[%c3_229, %c0_230, %c0_231] : memref<6x1x256xf32, #tpu.memory_space<vmem>>, vector<1x1x256xf32>
    %437 = vector.shape_cast %436 : vector<1x1x256xf32> to vector<1x256xf32>
    %c3_232 = arith.constant 3 : index
    %c0_233 = arith.constant 0 : index
    %c0_234 = arith.constant 0 : index
    %438 = vector.load %arg11[%c3_232, %c0_233, %c0_234] : memref<6x256x128xbf16, #tpu.memory_space<vmem>>, vector<1x256x128xbf16>
    %439 = vector.shape_cast %438 : vector<1x256x128xbf16> to vector<256x128xbf16>
    %c3_235 = arith.constant 3 : index
    %c0_236 = arith.constant 0 : index
    %c0_237 = arith.constant 0 : index
    %440 = vector.load %arg12[%c3_235, %c0_236, %c0_237] : memref<6x1x128xf32, #tpu.memory_space<vmem>>, vector<1x1x128xf32>
    %441 = vector.shape_cast %440 : vector<1x1x128xf32> to vector<1x128xf32>
    %c3_238 = arith.constant 3 : index
    %c0_239 = arith.constant 0 : index
    %c0_240 = arith.constant 0 : index
    %442 = vector.load %arg13[%c3_238, %c0_239, %c0_240] : memref<6x1x128xf32, #tpu.memory_space<vmem>>, vector<1x1x128xf32>
    %443 = vector.shape_cast %442 : vector<1x1x128xf32> to vector<1x128xf32>
    %c3_241 = arith.constant 3 : index
    %c0_242 = arith.constant 0 : index
    %c0_243 = arith.constant 0 : index
    %444 = vector.load %arg14[%c3_241, %c0_242, %c0_243] : memref<6x1x128xf32, #tpu.memory_space<vmem>>, vector<1x1x128xf32>
    %445 = vector.shape_cast %444 : vector<1x1x128xf32> to vector<1x128xf32>
    %c3_244 = arith.constant 3 : index
    %c0_245 = arith.constant 0 : index
    %c0_246 = arith.constant 0 : index
    %446 = vector.load %arg15[%c3_244, %c0_245, %c0_246] : memref<6x1x128xf32, #tpu.memory_space<vmem>>, vector<1x1x128xf32>
    %447 = vector.shape_cast %446 : vector<1x1x128xf32> to vector<1x128xf32>
    %c3_247 = arith.constant 3 : index
    %c0_248 = arith.constant 0 : index
    %c0_249 = arith.constant 0 : index
    %448 = vector.load %arg16[%c3_247, %c0_248, %c0_249] : memref<6x1x128xf32, #tpu.memory_space<vmem>>, vector<1x1x128xf32>
    %449 = vector.shape_cast %448 : vector<1x1x128xf32> to vector<1x128xf32>
    %450 = arith.truncf %425 : vector<32x128xf32> to vector<32x128xbf16>
    %cst_250 = arith.constant dense<0.000000e+00> : vector<32x384xf32>
    %451 = tpu.matmul %450, %427, %cst_250 {dimension_numbers = #tpu.dot_dimension_numbers<[1], [0], [0], [1], [0, 0, 1, 1], [], []>} : vector<32x128xbf16>, vector<128x384xbf16>, vector<32x384xf32> -> vector<32x384xf32>
    %452 = vector.broadcast %429 : vector<1x384xf32> to vector<32x384xf32>
    %453 = arith.addf %451, %452 : vector<32x384xf32>
    %454 = arith.truncf %453 : vector<32x384xf32> to vector<32x384xbf16>
    %455 = vector.extract_strided_slice %454 {offsets = [0, 0], sizes = [16, 384], strides = [1, 1]} : vector<32x384xbf16> to vector<16x384xbf16>
    %456 = vector.extract_strided_slice %455 {offsets = [0, 0], sizes = [16, 128], strides = [1, 1]} : vector<16x384xbf16> to vector<16x128xbf16>
    %457 = vector.extract_strided_slice %455 {offsets = [0, 128], sizes = [16, 128], strides = [1, 1]} : vector<16x384xbf16> to vector<16x128xbf16>
    %458 = vector.extract_strided_slice %455 {offsets = [0, 256], sizes = [16, 128], strides = [1, 1]} : vector<16x384xbf16> to vector<16x128xbf16>
    %459 = tpu.concatenate %457, %457, %457, %457, %457, %457, %457, %457 in 0 : vector<16x128xbf16>, vector<16x128xbf16>, vector<16x128xbf16>, vector<16x128xbf16>, vector<16x128xbf16>, vector<16x128xbf16>, vector<16x128xbf16>, vector<16x128xbf16> -> vector<128x128xbf16>
    %460 = arith.mulf %459, %4 : vector<128x128xbf16>
    %461 = tpu.concatenate %458, %458, %458, %458, %458, %458, %458, %458 in 0 : vector<16x128xbf16>, vector<16x128xbf16>, vector<16x128xbf16>, vector<16x128xbf16>, vector<16x128xbf16>, vector<16x128xbf16>, vector<16x128xbf16>, vector<16x128xbf16> -> vector<128x128xbf16>
    %462 = arith.mulf %461, %4 : vector<128x128xbf16>
    %cst_251 = arith.constant dense<0.000000e+00> : vector<16x128xf32>
    %463 = tpu.matmul %456, %460, %cst_251 {dimension_numbers = #tpu.dot_dimension_numbers<[1], [1], [0], [0], [0, 0, 1, 0], [], []>} : vector<16x128xbf16>, vector<128x128xbf16>, vector<16x128xf32> -> vector<16x128xf32>
    %cst_252 = arith.constant 2.500000e-01 : f32
    %464 = vector.broadcast %cst_252 : f32 to vector<16x128xf32>
    %465 = arith.mulf %463, %464 : vector<16x128xf32>
    %cst_253 = arith.constant dense<0xFF800000> : vector<16xf32>
    %466 = vector.multi_reduction <maximumf>, %465, %cst_253 [1] : vector<16x128xf32> to vector<16xf32>
    %467 = vector.shape_cast %466 : vector<16xf32> to vector<16x1xf32>
    %468 = vector.broadcast %467 : vector<16x1xf32> to vector<16x128xf32>
    %469 = arith.subf %465, %468 : vector<16x128xf32>
    %470 = math.exp %469 : vector<16x128xf32>
    %cst_254 = arith.constant dense<0.000000e+00> : vector<16x128xf32>
    %471 = tpu.matmul %470, %5, %cst_254 {dimension_numbers = #tpu.dot_dimension_numbers<[1], [0], [0], [1], [0, 0, 1, 1], [], []>} : vector<16x128xf32>, vector<128x128xf32>, vector<16x128xf32> -> vector<16x128xf32>
    %cst_255 = arith.constant 1.000000e-30 : f32
    %472 = vector.broadcast %cst_255 : f32 to vector<16x128xf32>
    %473 = arith.maximumf %471, %472 : vector<16x128xf32>
    %474 = tpu.reciprocal %473 {approx = true} : vector<16x128xf32> -> vector<16x128xf32>
    %475 = arith.mulf %470, %474 : vector<16x128xf32>
    %476 = arith.truncf %475 : vector<16x128xf32> to vector<16x128xbf16>
    %cst_256 = arith.constant dense<0.000000e+00> : vector<16x128xf32>
    %477 = tpu.matmul %476, %462, %cst_256 {dimension_numbers = #tpu.dot_dimension_numbers<[1], [0], [0], [1], [0, 0, 1, 1], [], []>} : vector<16x128xbf16>, vector<128x128xbf16>, vector<16x128xf32> -> vector<16x128xf32>
    %478 = arith.truncf %477 : vector<16x128xf32> to vector<16x128xbf16>
    %cst_257 = arith.constant dense<0.000000e+00> : vector<16x128xf32>
    %479 = tpu.matmul %478, %431, %cst_257 {dimension_numbers = #tpu.dot_dimension_numbers<[1], [0], [0], [1], [0, 0, 1, 1], [], []>} : vector<16x128xbf16>, vector<128x128xbf16>, vector<16x128xf32> -> vector<16x128xf32>
    %c0_258 = arith.constant 0 : index
    %c0_259 = arith.constant 0 : index
    %480 = vector.load %arg22[%c0_258, %c0_259] : memref<32x128xf32, #tpu.memory_space<vmem>>, vector<16x128xf32>
    tpu.vector_store %arg22[%c0_258, %c0_259], %479 {strides = array<i32>} : memref<32x128xf32, #tpu.memory_space<vmem>>, vector<16x128xf32>,
    %481 = vector.extract_strided_slice %454 {offsets = [16, 0], sizes = [16, 384], strides = [1, 1]} : vector<32x384xbf16> to vector<16x384xbf16>
    %482 = vector.extract_strided_slice %481 {offsets = [0, 0], sizes = [16, 128], strides = [1, 1]} : vector<16x384xbf16> to vector<16x128xbf16>
    %483 = vector.extract_strided_slice %481 {offsets = [0, 128], sizes = [16, 128], strides = [1, 1]} : vector<16x384xbf16> to vector<16x128xbf16>
    %484 = vector.extract_strided_slice %481 {offsets = [0, 256], sizes = [16, 128], strides = [1, 1]} : vector<16x384xbf16> to vector<16x128xbf16>
    %485 = tpu.concatenate %483, %483, %483, %483, %483, %483, %483, %483 in 0 : vector<16x128xbf16>, vector<16x128xbf16>, vector<16x128xbf16>, vector<16x128xbf16>, vector<16x128xbf16>, vector<16x128xbf16>, vector<16x128xbf16>, vector<16x128xbf16> -> vector<128x128xbf16>
    %486 = arith.mulf %485, %4 : vector<128x128xbf16>
    %487 = tpu.concatenate %484, %484, %484, %484, %484, %484, %484, %484 in 0 : vector<16x128xbf16>, vector<16x128xbf16>, vector<16x128xbf16>, vector<16x128xbf16>, vector<16x128xbf16>, vector<16x128xbf16>, vector<16x128xbf16>, vector<16x128xbf16> -> vector<128x128xbf16>
    %488 = arith.mulf %487, %4 : vector<128x128xbf16>
    %cst_260 = arith.constant dense<0.000000e+00> : vector<16x128xf32>
    %489 = tpu.matmul %482, %486, %cst_260 {dimension_numbers = #tpu.dot_dimension_numbers<[1], [1], [0], [0], [0, 0, 1, 0], [], []>} : vector<16x128xbf16>, vector<128x128xbf16>, vector<16x128xf32> -> vector<16x128xf32>
    %cst_261 = arith.constant 2.500000e-01 : f32
    %490 = vector.broadcast %cst_261 : f32 to vector<16x128xf32>
    %491 = arith.mulf %489, %490 : vector<16x128xf32>
    %cst_262 = arith.constant dense<0xFF800000> : vector<16xf32>
    %492 = vector.multi_reduction <maximumf>, %491, %cst_262 [1] : vector<16x128xf32> to vector<16xf32>
    %493 = vector.shape_cast %492 : vector<16xf32> to vector<16x1xf32>
    %494 = vector.broadcast %493 : vector<16x1xf32> to vector<16x128xf32>
    %495 = arith.subf %491, %494 : vector<16x128xf32>
    %496 = math.exp %495 : vector<16x128xf32>
    %cst_263 = arith.constant dense<0.000000e+00> : vector<16x128xf32>
    %497 = tpu.matmul %496, %5, %cst_263 {dimension_numbers = #tpu.dot_dimension_numbers<[1], [0], [0], [1], [0, 0, 1, 1], [], []>} : vector<16x128xf32>, vector<128x128xf32>, vector<16x128xf32> -> vector<16x128xf32>
    %cst_264 = arith.constant 1.000000e-30 : f32
    %498 = vector.broadcast %cst_264 : f32 to vector<16x128xf32>
    %499 = arith.maximumf %497, %498 : vector<16x128xf32>
    %500 = tpu.reciprocal %499 {approx = true} : vector<16x128xf32> -> vector<16x128xf32>
    %501 = arith.mulf %496, %500 : vector<16x128xf32>
    %502 = arith.truncf %501 : vector<16x128xf32> to vector<16x128xbf16>
    %cst_265 = arith.constant dense<0.000000e+00> : vector<16x128xf32>
    %503 = tpu.matmul %502, %488, %cst_265 {dimension_numbers = #tpu.dot_dimension_numbers<[1], [0], [0], [1], [0, 0, 1, 1], [], []>} : vector<16x128xbf16>, vector<128x128xbf16>, vector<16x128xf32> -> vector<16x128xf32>
    %504 = arith.truncf %503 : vector<16x128xf32> to vector<16x128xbf16>
    %cst_266 = arith.constant dense<0.000000e+00> : vector<16x128xf32>
    %505 = tpu.matmul %504, %431, %cst_266 {dimension_numbers = #tpu.dot_dimension_numbers<[1], [0], [0], [1], [0, 0, 1, 1], [], []>} : vector<16x128xbf16>, vector<128x128xbf16>, vector<16x128xf32> -> vector<16x128xf32>
    %c16_267 = arith.constant 16 : index
    %c0_268 = arith.constant 0 : index
    %506 = vector.load %arg22[%c16_267, %c0_268] : memref<32x128xf32, #tpu.memory_space<vmem>>, vector<16x128xf32>
    tpu.vector_store %arg22[%c16_267, %c0_268], %505 {strides = array<i32>} : memref<32x128xf32, #tpu.memory_space<vmem>>, vector<16x128xf32>,
    %c0_269 = arith.constant 0 : index
    %c0_270 = arith.constant 0 : index
    %507 = vector.load %arg22[%c0_269, %c0_270] : memref<32x128xf32, #tpu.memory_space<vmem>>, vector<32x128xf32>
    %508 = arith.addf %425, %507 : vector<32x128xf32>
    %509 = vector.broadcast %433 : vector<1x128xf32> to vector<32x128xf32>
    %510 = arith.addf %508, %509 : vector<32x128xf32>
    %cst_271 = arith.constant dense<0.000000e+00> : vector<32xf32>
    %511 = vector.multi_reduction <add>, %510, %cst_271 [1] : vector<32x128xf32> to vector<32xf32>
    %512 = vector.shape_cast %511 : vector<32xf32> to vector<32x1xf32>
    %cst_272 = arith.constant 1.280000e+02 : f32
    %513 = vector.broadcast %cst_272 : f32 to vector<32x1xf32>
    %514 = arith.divf %512, %513 : vector<32x1xf32>
    %515 = vector.broadcast %514 : vector<32x1xf32> to vector<32x128xf32>
    %516 = arith.subf %510, %515 : vector<32x128xf32>
    %517 = arith.mulf %516, %516 : vector<32x128xf32>
    %cst_273 = arith.constant dense<0.000000e+00> : vector<32xf32>
    %518 = vector.multi_reduction <add>, %517, %cst_273 [1] : vector<32x128xf32> to vector<32xf32>
    %519 = vector.shape_cast %518 : vector<32xf32> to vector<32x1xf32>
    %cst_274 = arith.constant 1.280000e+02 : f32
    %520 = vector.broadcast %cst_274 : f32 to vector<32x1xf32>
    %521 = arith.divf %519, %520 : vector<32x1xf32>
    %522 = vector.broadcast %514 : vector<32x1xf32> to vector<32x128xf32>
    %523 = arith.subf %510, %522 : vector<32x128xf32>
    %cst_275 = arith.constant 9.99999974E-6 : f32
    %524 = vector.broadcast %cst_275 : f32 to vector<32x1xf32>
    %525 = arith.addf %521, %524 : vector<32x1xf32>
    %526 = math.rsqrt %525 : vector<32x1xf32>
    %527 = vector.broadcast %526 : vector<32x1xf32> to vector<32x128xf32>
    %528 = arith.mulf %523, %527 : vector<32x128xf32>
    %529 = vector.broadcast %443 : vector<1x128xf32> to vector<32x128xf32>
    %530 = arith.mulf %528, %529 : vector<32x128xf32>
    %531 = vector.broadcast %445 : vector<1x128xf32> to vector<32x128xf32>
    %532 = arith.addf %530, %531 : vector<32x128xf32>
    %533 = arith.truncf %532 : vector<32x128xf32> to vector<32x128xbf16>
    %cst_276 = arith.constant dense<0.000000e+00> : vector<32x256xf32>
    %534 = tpu.matmul %533, %435, %cst_276 {dimension_numbers = #tpu.dot_dimension_numbers<[1], [0], [0], [1], [0, 0, 1, 1], [], []>} : vector<32x128xbf16>, vector<128x256xbf16>, vector<32x256xf32> -> vector<32x256xf32>
    %535 = vector.broadcast %437 : vector<1x256xf32> to vector<32x256xf32>
    %536 = arith.addf %534, %535 : vector<32x256xf32>
    %cst_277 = arith.constant 0.000000e+00 : f32
    %537 = vector.broadcast %cst_277 : f32 to vector<32x256xf32>
    %538 = arith.maximumf %536, %537 : vector<32x256xf32>
    %539 = arith.truncf %538 : vector<32x256xf32> to vector<32x256xbf16>
    %cst_278 = arith.constant dense<0.000000e+00> : vector<32x128xf32>
    %540 = tpu.matmul %539, %439, %cst_278 {dimension_numbers = #tpu.dot_dimension_numbers<[1], [0], [0], [1], [0, 0, 1, 1], [], []>} : vector<32x256xbf16>, vector<256x128xbf16>, vector<32x128xf32> -> vector<32x128xf32>
    %541 = vector.broadcast %441 : vector<1x128xf32> to vector<32x128xf32>
    %542 = arith.addf %540, %541 : vector<32x128xf32>
    %543 = arith.addf %532, %542 : vector<32x128xf32>
    %cst_279 = arith.constant dense<0.000000e+00> : vector<32xf32>
    %544 = vector.multi_reduction <add>, %543, %cst_279 [1] : vector<32x128xf32> to vector<32xf32>
    %545 = vector.shape_cast %544 : vector<32xf32> to vector<32x1xf32>
    %cst_280 = arith.constant 1.280000e+02 : f32
    %546 = vector.broadcast %cst_280 : f32 to vector<32x1xf32>
    %547 = arith.divf %545, %546 : vector<32x1xf32>
    %548 = vector.broadcast %547 : vector<32x1xf32> to vector<32x128xf32>
    %549 = arith.subf %543, %548 : vector<32x128xf32>
    %550 = arith.mulf %549, %549 : vector<32x128xf32>
    %cst_281 = arith.constant dense<0.000000e+00> : vector<32xf32>
    %551 = vector.multi_reduction <add>, %550, %cst_281 [1] : vector<32x128xf32> to vector<32xf32>
    %552 = vector.shape_cast %551 : vector<32xf32> to vector<32x1xf32>
    %cst_282 = arith.constant 1.280000e+02 : f32
    %553 = vector.broadcast %cst_282 : f32 to vector<32x1xf32>
    %554 = arith.divf %552, %553 : vector<32x1xf32>
    %555 = vector.broadcast %547 : vector<32x1xf32> to vector<32x128xf32>
    %556 = arith.subf %543, %555 : vector<32x128xf32>
    %cst_283 = arith.constant 9.99999974E-6 : f32
    %557 = vector.broadcast %cst_283 : f32 to vector<32x1xf32>
    %558 = arith.addf %554, %557 : vector<32x1xf32>
    %559 = math.rsqrt %558 : vector<32x1xf32>
    %560 = vector.broadcast %559 : vector<32x1xf32> to vector<32x128xf32>
    %561 = arith.mulf %556, %560 : vector<32x128xf32>
    %562 = vector.broadcast %447 : vector<1x128xf32> to vector<32x128xf32>
    %563 = arith.mulf %561, %562 : vector<32x128xf32>
    %564 = vector.broadcast %449 : vector<1x128xf32> to vector<32x128xf32>
    %565 = arith.addf %563, %564 : vector<32x128xf32>
    %c4 = arith.constant 4 : index
    %c0_284 = arith.constant 0 : index
    %c0_285 = arith.constant 0 : index
    %566 = vector.load %arg5[%c4, %c0_284, %c0_285] : memref<6x128x384xbf16, #tpu.memory_space<vmem>>, vector<1x128x384xbf16>
    %567 = vector.shape_cast %566 : vector<1x128x384xbf16> to vector<128x384xbf16>
    %c4_286 = arith.constant 4 : index
    %c0_287 = arith.constant 0 : index
    %c0_288 = arith.constant 0 : index
    %568 = vector.load %arg6[%c4_286, %c0_287, %c0_288] : memref<6x1x384xf32, #tpu.memory_space<vmem>>, vector<1x1x384xf32>
    %569 = vector.shape_cast %568 : vector<1x1x384xf32> to vector<1x384xf32>
    %c4_289 = arith.constant 4 : index
    %c0_290 = arith.constant 0 : index
    %c0_291 = arith.constant 0 : index
    %570 = vector.load %arg7[%c4_289, %c0_290, %c0_291] : memref<6x128x128xbf16, #tpu.memory_space<vmem>>, vector<1x128x128xbf16>
    %571 = vector.shape_cast %570 : vector<1x128x128xbf16> to vector<128x128xbf16>
    %c4_292 = arith.constant 4 : index
    %c0_293 = arith.constant 0 : index
    %c0_294 = arith.constant 0 : index
    %572 = vector.load %arg8[%c4_292, %c0_293, %c0_294] : memref<6x1x128xf32, #tpu.memory_space<vmem>>, vector<1x1x128xf32>
    %573 = vector.shape_cast %572 : vector<1x1x128xf32> to vector<1x128xf32>
    %c4_295 = arith.constant 4 : index
    %c0_296 = arith.constant 0 : index
    %c0_297 = arith.constant 0 : index
    %574 = vector.load %arg9[%c4_295, %c0_296, %c0_297] : memref<6x128x256xbf16, #tpu.memory_space<vmem>>, vector<1x128x256xbf16>
    %575 = vector.shape_cast %574 : vector<1x128x256xbf16> to vector<128x256xbf16>
    %c4_298 = arith.constant 4 : index
    %c0_299 = arith.constant 0 : index
    %c0_300 = arith.constant 0 : index
    %576 = vector.load %arg10[%c4_298, %c0_299, %c0_300] : memref<6x1x256xf32, #tpu.memory_space<vmem>>, vector<1x1x256xf32>
    %577 = vector.shape_cast %576 : vector<1x1x256xf32> to vector<1x256xf32>
    %c4_301 = arith.constant 4 : index
    %c0_302 = arith.constant 0 : index
    %c0_303 = arith.constant 0 : index
    %578 = vector.load %arg11[%c4_301, %c0_302, %c0_303] : memref<6x256x128xbf16, #tpu.memory_space<vmem>>, vector<1x256x128xbf16>
    %579 = vector.shape_cast %578 : vector<1x256x128xbf16> to vector<256x128xbf16>
    %c4_304 = arith.constant 4 : index
    %c0_305 = arith.constant 0 : index
    %c0_306 = arith.constant 0 : index
    %580 = vector.load %arg12[%c4_304, %c0_305, %c0_306] : memref<6x1x128xf32, #tpu.memory_space<vmem>>, vector<1x1x128xf32>
    %581 = vector.shape_cast %580 : vector<1x1x128xf32> to vector<1x128xf32>
    %c4_307 = arith.constant 4 : index
    %c0_308 = arith.constant 0 : index
    %c0_309 = arith.constant 0 : index
    %582 = vector.load %arg13[%c4_307, %c0_308, %c0_309] : memref<6x1x128xf32, #tpu.memory_space<vmem>>, vector<1x1x128xf32>
    %583 = vector.shape_cast %582 : vector<1x1x128xf32> to vector<1x128xf32>
    %c4_310 = arith.constant 4 : index
    %c0_311 = arith.constant 0 : index
    %c0_312 = arith.constant 0 : index
    %584 = vector.load %arg14[%c4_310, %c0_311, %c0_312] : memref<6x1x128xf32, #tpu.memory_space<vmem>>, vector<1x1x128xf32>
    %585 = vector.shape_cast %584 : vector<1x1x128xf32> to vector<1x128xf32>
    %c4_313 = arith.constant 4 : index
    %c0_314 = arith.constant 0 : index
    %c0_315 = arith.constant 0 : index
    %586 = vector.load %arg15[%c4_313, %c0_314, %c0_315] : memref<6x1x128xf32, #tpu.memory_space<vmem>>, vector<1x1x128xf32>
    %587 = vector.shape_cast %586 : vector<1x1x128xf32> to vector<1x128xf32>
    %c4_316 = arith.constant 4 : index
    %c0_317 = arith.constant 0 : index
    %c0_318 = arith.constant 0 : index
    %588 = vector.load %arg16[%c4_316, %c0_317, %c0_318] : memref<6x1x128xf32, #tpu.memory_space<vmem>>, vector<1x1x128xf32>
    %589 = vector.shape_cast %588 : vector<1x1x128xf32> to vector<1x128xf32>
    %590 = arith.truncf %565 : vector<32x128xf32> to vector<32x128xbf16>
    %cst_319 = arith.constant dense<0.000000e+00> : vector<32x384xf32>
    %591 = tpu.matmul %590, %567, %cst_319 {dimension_numbers = #tpu.dot_dimension_numbers<[1], [0], [0], [1], [0, 0, 1, 1], [], []>} : vector<32x128xbf16>, vector<128x384xbf16>, vector<32x384xf32> -> vector<32x384xf32>
    %592 = vector.broadcast %569 : vector<1x384xf32> to vector<32x384xf32>
    %593 = arith.addf %591, %592 : vector<32x384xf32>
    %594 = arith.truncf %593 : vector<32x384xf32> to vector<32x384xbf16>
    %595 = vector.extract_strided_slice %594 {offsets = [0, 0], sizes = [16, 384], strides = [1, 1]} : vector<32x384xbf16> to vector<16x384xbf16>
    %596 = vector.extract_strided_slice %595 {offsets = [0, 0], sizes = [16, 128], strides = [1, 1]} : vector<16x384xbf16> to vector<16x128xbf16>
    %597 = vector.extract_strided_slice %595 {offsets = [0, 128], sizes = [16, 128], strides = [1, 1]} : vector<16x384xbf16> to vector<16x128xbf16>
    %598 = vector.extract_strided_slice %595 {offsets = [0, 256], sizes = [16, 128], strides = [1, 1]} : vector<16x384xbf16> to vector<16x128xbf16>
    %599 = tpu.concatenate %597, %597, %597, %597, %597, %597, %597, %597 in 0 : vector<16x128xbf16>, vector<16x128xbf16>, vector<16x128xbf16>, vector<16x128xbf16>, vector<16x128xbf16>, vector<16x128xbf16>, vector<16x128xbf16>, vector<16x128xbf16> -> vector<128x128xbf16>
    %600 = arith.mulf %599, %4 : vector<128x128xbf16>
    %601 = tpu.concatenate %598, %598, %598, %598, %598, %598, %598, %598 in 0 : vector<16x128xbf16>, vector<16x128xbf16>, vector<16x128xbf16>, vector<16x128xbf16>, vector<16x128xbf16>, vector<16x128xbf16>, vector<16x128xbf16>, vector<16x128xbf16> -> vector<128x128xbf16>
    %602 = arith.mulf %601, %4 : vector<128x128xbf16>
    %cst_320 = arith.constant dense<0.000000e+00> : vector<16x128xf32>
    %603 = tpu.matmul %596, %600, %cst_320 {dimension_numbers = #tpu.dot_dimension_numbers<[1], [1], [0], [0], [0, 0, 1, 0], [], []>} : vector<16x128xbf16>, vector<128x128xbf16>, vector<16x128xf32> -> vector<16x128xf32>
    %cst_321 = arith.constant 2.500000e-01 : f32
    %604 = vector.broadcast %cst_321 : f32 to vector<16x128xf32>
    %605 = arith.mulf %603, %604 : vector<16x128xf32>
    %cst_322 = arith.constant dense<0xFF800000> : vector<16xf32>
    %606 = vector.multi_reduction <maximumf>, %605, %cst_322 [1] : vector<16x128xf32> to vector<16xf32>
    %607 = vector.shape_cast %606 : vector<16xf32> to vector<16x1xf32>
    %608 = vector.broadcast %607 : vector<16x1xf32> to vector<16x128xf32>
    %609 = arith.subf %605, %608 : vector<16x128xf32>
    %610 = math.exp %609 : vector<16x128xf32>
    %cst_323 = arith.constant dense<0.000000e+00> : vector<16x128xf32>
    %611 = tpu.matmul %610, %5, %cst_323 {dimension_numbers = #tpu.dot_dimension_numbers<[1], [0], [0], [1], [0, 0, 1, 1], [], []>} : vector<16x128xf32>, vector<128x128xf32>, vector<16x128xf32> -> vector<16x128xf32>
    %cst_324 = arith.constant 1.000000e-30 : f32
    %612 = vector.broadcast %cst_324 : f32 to vector<16x128xf32>
    %613 = arith.maximumf %611, %612 : vector<16x128xf32>
    %614 = tpu.reciprocal %613 {approx = true} : vector<16x128xf32> -> vector<16x128xf32>
    %615 = arith.mulf %610, %614 : vector<16x128xf32>
    %616 = arith.truncf %615 : vector<16x128xf32> to vector<16x128xbf16>
    %cst_325 = arith.constant dense<0.000000e+00> : vector<16x128xf32>
    %617 = tpu.matmul %616, %602, %cst_325 {dimension_numbers = #tpu.dot_dimension_numbers<[1], [0], [0], [1], [0, 0, 1, 1], [], []>} : vector<16x128xbf16>, vector<128x128xbf16>, vector<16x128xf32> -> vector<16x128xf32>
    %618 = arith.truncf %617 : vector<16x128xf32> to vector<16x128xbf16>
    %cst_326 = arith.constant dense<0.000000e+00> : vector<16x128xf32>
    %619 = tpu.matmul %618, %571, %cst_326 {dimension_numbers = #tpu.dot_dimension_numbers<[1], [0], [0], [1], [0, 0, 1, 1], [], []>} : vector<16x128xbf16>, vector<128x128xbf16>, vector<16x128xf32> -> vector<16x128xf32>
    %c0_327 = arith.constant 0 : index
    %c0_328 = arith.constant 0 : index
    %620 = vector.load %arg22[%c0_327, %c0_328] : memref<32x128xf32, #tpu.memory_space<vmem>>, vector<16x128xf32>
    tpu.vector_store %arg22[%c0_327, %c0_328], %619 {strides = array<i32>} : memref<32x128xf32, #tpu.memory_space<vmem>>, vector<16x128xf32>,
    %621 = vector.extract_strided_slice %594 {offsets = [16, 0], sizes = [16, 384], strides = [1, 1]} : vector<32x384xbf16> to vector<16x384xbf16>
    %622 = vector.extract_strided_slice %621 {offsets = [0, 0], sizes = [16, 128], strides = [1, 1]} : vector<16x384xbf16> to vector<16x128xbf16>
    %623 = vector.extract_strided_slice %621 {offsets = [0, 128], sizes = [16, 128], strides = [1, 1]} : vector<16x384xbf16> to vector<16x128xbf16>
    %624 = vector.extract_strided_slice %621 {offsets = [0, 256], sizes = [16, 128], strides = [1, 1]} : vector<16x384xbf16> to vector<16x128xbf16>
    %625 = tpu.concatenate %623, %623, %623, %623, %623, %623, %623, %623 in 0 : vector<16x128xbf16>, vector<16x128xbf16>, vector<16x128xbf16>, vector<16x128xbf16>, vector<16x128xbf16>, vector<16x128xbf16>, vector<16x128xbf16>, vector<16x128xbf16> -> vector<128x128xbf16>
    %626 = arith.mulf %625, %4 : vector<128x128xbf16>
    %627 = tpu.concatenate %624, %624, %624, %624, %624, %624, %624, %624 in 0 : vector<16x128xbf16>, vector<16x128xbf16>, vector<16x128xbf16>, vector<16x128xbf16>, vector<16x128xbf16>, vector<16x128xbf16>, vector<16x128xbf16>, vector<16x128xbf16> -> vector<128x128xbf16>
    %628 = arith.mulf %627, %4 : vector<128x128xbf16>
    %cst_329 = arith.constant dense<0.000000e+00> : vector<16x128xf32>
    %629 = tpu.matmul %622, %626, %cst_329 {dimension_numbers = #tpu.dot_dimension_numbers<[1], [1], [0], [0], [0, 0, 1, 0], [], []>} : vector<16x128xbf16>, vector<128x128xbf16>, vector<16x128xf32> -> vector<16x128xf32>
    %cst_330 = arith.constant 2.500000e-01 : f32
    %630 = vector.broadcast %cst_330 : f32 to vector<16x128xf32>
    %631 = arith.mulf %629, %630 : vector<16x128xf32>
    %cst_331 = arith.constant dense<0xFF800000> : vector<16xf32>
    %632 = vector.multi_reduction <maximumf>, %631, %cst_331 [1] : vector<16x128xf32> to vector<16xf32>
    %633 = vector.shape_cast %632 : vector<16xf32> to vector<16x1xf32>
    %634 = vector.broadcast %633 : vector<16x1xf32> to vector<16x128xf32>
    %635 = arith.subf %631, %634 : vector<16x128xf32>
    %636 = math.exp %635 : vector<16x128xf32>
    %cst_332 = arith.constant dense<0.000000e+00> : vector<16x128xf32>
    %637 = tpu.matmul %636, %5, %cst_332 {dimension_numbers = #tpu.dot_dimension_numbers<[1], [0], [0], [1], [0, 0, 1, 1], [], []>} : vector<16x128xf32>, vector<128x128xf32>, vector<16x128xf32> -> vector<16x128xf32>
    %cst_333 = arith.constant 1.000000e-30 : f32
    %638 = vector.broadcast %cst_333 : f32 to vector<16x128xf32>
    %639 = arith.maximumf %637, %638 : vector<16x128xf32>
    %640 = tpu.reciprocal %639 {approx = true} : vector<16x128xf32> -> vector<16x128xf32>
    %641 = arith.mulf %636, %640 : vector<16x128xf32>
    %642 = arith.truncf %641 : vector<16x128xf32> to vector<16x128xbf16>
    %cst_334 = arith.constant dense<0.000000e+00> : vector<16x128xf32>
    %643 = tpu.matmul %642, %628, %cst_334 {dimension_numbers = #tpu.dot_dimension_numbers<[1], [0], [0], [1], [0, 0, 1, 1], [], []>} : vector<16x128xbf16>, vector<128x128xbf16>, vector<16x128xf32> -> vector<16x128xf32>
    %644 = arith.truncf %643 : vector<16x128xf32> to vector<16x128xbf16>
    %cst_335 = arith.constant dense<0.000000e+00> : vector<16x128xf32>
    %645 = tpu.matmul %644, %571, %cst_335 {dimension_numbers = #tpu.dot_dimension_numbers<[1], [0], [0], [1], [0, 0, 1, 1], [], []>} : vector<16x128xbf16>, vector<128x128xbf16>, vector<16x128xf32> -> vector<16x128xf32>
    %c16_336 = arith.constant 16 : index
    %c0_337 = arith.constant 0 : index
    %646 = vector.load %arg22[%c16_336, %c0_337] : memref<32x128xf32, #tpu.memory_space<vmem>>, vector<16x128xf32>
    tpu.vector_store %arg22[%c16_336, %c0_337], %645 {strides = array<i32>} : memref<32x128xf32, #tpu.memory_space<vmem>>, vector<16x128xf32>,
    %c0_338 = arith.constant 0 : index
    %c0_339 = arith.constant 0 : index
    %647 = vector.load %arg22[%c0_338, %c0_339] : memref<32x128xf32, #tpu.memory_space<vmem>>, vector<32x128xf32>
    %648 = arith.addf %565, %647 : vector<32x128xf32>
    %649 = vector.broadcast %573 : vector<1x128xf32> to vector<32x128xf32>
    %650 = arith.addf %648, %649 : vector<32x128xf32>
    %cst_340 = arith.constant dense<0.000000e+00> : vector<32xf32>
    %651 = vector.multi_reduction <add>, %650, %cst_340 [1] : vector<32x128xf32> to vector<32xf32>
    %652 = vector.shape_cast %651 : vector<32xf32> to vector<32x1xf32>
    %cst_341 = arith.constant 1.280000e+02 : f32
    %653 = vector.broadcast %cst_341 : f32 to vector<32x1xf32>
    %654 = arith.divf %652, %653 : vector<32x1xf32>
    %655 = vector.broadcast %654 : vector<32x1xf32> to vector<32x128xf32>
    %656 = arith.subf %650, %655 : vector<32x128xf32>
    %657 = arith.mulf %656, %656 : vector<32x128xf32>
    %cst_342 = arith.constant dense<0.000000e+00> : vector<32xf32>
    %658 = vector.multi_reduction <add>, %657, %cst_342 [1] : vector<32x128xf32> to vector<32xf32>
    %659 = vector.shape_cast %658 : vector<32xf32> to vector<32x1xf32>
    %cst_343 = arith.constant 1.280000e+02 : f32
    %660 = vector.broadcast %cst_343 : f32 to vector<32x1xf32>
    %661 = arith.divf %659, %660 : vector<32x1xf32>
    %662 = vector.broadcast %654 : vector<32x1xf32> to vector<32x128xf32>
    %663 = arith.subf %650, %662 : vector<32x128xf32>
    %cst_344 = arith.constant 9.99999974E-6 : f32
    %664 = vector.broadcast %cst_344 : f32 to vector<32x1xf32>
    %665 = arith.addf %661, %664 : vector<32x1xf32>
    %666 = math.rsqrt %665 : vector<32x1xf32>
    %667 = vector.broadcast %666 : vector<32x1xf32> to vector<32x128xf32>
    %668 = arith.mulf %663, %667 : vector<32x128xf32>
    %669 = vector.broadcast %583 : vector<1x128xf32> to vector<32x128xf32>
    %670 = arith.mulf %668, %669 : vector<32x128xf32>
    %671 = vector.broadcast %585 : vector<1x128xf32> to vector<32x128xf32>
    %672 = arith.addf %670, %671 : vector<32x128xf32>
    %673 = arith.truncf %672 : vector<32x128xf32> to vector<32x128xbf16>
    %cst_345 = arith.constant dense<0.000000e+00> : vector<32x256xf32>
    %674 = tpu.matmul %673, %575, %cst_345 {dimension_numbers = #tpu.dot_dimension_numbers<[1], [0], [0], [1], [0, 0, 1, 1], [], []>} : vector<32x128xbf16>, vector<128x256xbf16>, vector<32x256xf32> -> vector<32x256xf32>
    %675 = vector.broadcast %577 : vector<1x256xf32> to vector<32x256xf32>
    %676 = arith.addf %674, %675 : vector<32x256xf32>
    %cst_346 = arith.constant 0.000000e+00 : f32
    %677 = vector.broadcast %cst_346 : f32 to vector<32x256xf32>
    %678 = arith.maximumf %676, %677 : vector<32x256xf32>
    %679 = arith.truncf %678 : vector<32x256xf32> to vector<32x256xbf16>
    %cst_347 = arith.constant dense<0.000000e+00> : vector<32x128xf32>
    %680 = tpu.matmul %679, %579, %cst_347 {dimension_numbers = #tpu.dot_dimension_numbers<[1], [0], [0], [1], [0, 0, 1, 1], [], []>} : vector<32x256xbf16>, vector<256x128xbf16>, vector<32x128xf32> -> vector<32x128xf32>
    %681 = vector.broadcast %581 : vector<1x128xf32> to vector<32x128xf32>
    %682 = arith.addf %680, %681 : vector<32x128xf32>
    %683 = arith.addf %672, %682 : vector<32x128xf32>
    %cst_348 = arith.constant dense<0.000000e+00> : vector<32xf32>
    %684 = vector.multi_reduction <add>, %683, %cst_348 [1] : vector<32x128xf32> to vector<32xf32>
    %685 = vector.shape_cast %684 : vector<32xf32> to vector<32x1xf32>
    %cst_349 = arith.constant 1.280000e+02 : f32
    %686 = vector.broadcast %cst_349 : f32 to vector<32x1xf32>
    %687 = arith.divf %685, %686 : vector<32x1xf32>
    %688 = vector.broadcast %687 : vector<32x1xf32> to vector<32x128xf32>
    %689 = arith.subf %683, %688 : vector<32x128xf32>
    %690 = arith.mulf %689, %689 : vector<32x128xf32>
    %cst_350 = arith.constant dense<0.000000e+00> : vector<32xf32>
    %691 = vector.multi_reduction <add>, %690, %cst_350 [1] : vector<32x128xf32> to vector<32xf32>
    %692 = vector.shape_cast %691 : vector<32xf32> to vector<32x1xf32>
    %cst_351 = arith.constant 1.280000e+02 : f32
    %693 = vector.broadcast %cst_351 : f32 to vector<32x1xf32>
    %694 = arith.divf %692, %693 : vector<32x1xf32>
    %695 = vector.broadcast %687 : vector<32x1xf32> to vector<32x128xf32>
    %696 = arith.subf %683, %695 : vector<32x128xf32>
    %cst_352 = arith.constant 9.99999974E-6 : f32
    %697 = vector.broadcast %cst_352 : f32 to vector<32x1xf32>
    %698 = arith.addf %694, %697 : vector<32x1xf32>
    %699 = math.rsqrt %698 : vector<32x1xf32>
    %700 = vector.broadcast %699 : vector<32x1xf32> to vector<32x128xf32>
    %701 = arith.mulf %696, %700 : vector<32x128xf32>
    %702 = vector.broadcast %587 : vector<1x128xf32> to vector<32x128xf32>
    %703 = arith.mulf %701, %702 : vector<32x128xf32>
    %704 = vector.broadcast %589 : vector<1x128xf32> to vector<32x128xf32>
    %705 = arith.addf %703, %704 : vector<32x128xf32>
    %c5 = arith.constant 5 : index
    %c0_353 = arith.constant 0 : index
    %c0_354 = arith.constant 0 : index
    %706 = vector.load %arg5[%c5, %c0_353, %c0_354] : memref<6x128x384xbf16, #tpu.memory_space<vmem>>, vector<1x128x384xbf16>
    %707 = vector.shape_cast %706 : vector<1x128x384xbf16> to vector<128x384xbf16>
    %c5_355 = arith.constant 5 : index
    %c0_356 = arith.constant 0 : index
    %c0_357 = arith.constant 0 : index
    %708 = vector.load %arg6[%c5_355, %c0_356, %c0_357] : memref<6x1x384xf32, #tpu.memory_space<vmem>>, vector<1x1x384xf32>
    %709 = vector.shape_cast %708 : vector<1x1x384xf32> to vector<1x384xf32>
    %c5_358 = arith.constant 5 : index
    %c0_359 = arith.constant 0 : index
    %c0_360 = arith.constant 0 : index
    %710 = vector.load %arg7[%c5_358, %c0_359, %c0_360] : memref<6x128x128xbf16, #tpu.memory_space<vmem>>, vector<1x128x128xbf16>
    %711 = vector.shape_cast %710 : vector<1x128x128xbf16> to vector<128x128xbf16>
    %c5_361 = arith.constant 5 : index
    %c0_362 = arith.constant 0 : index
    %c0_363 = arith.constant 0 : index
    %712 = vector.load %arg8[%c5_361, %c0_362, %c0_363] : memref<6x1x128xf32, #tpu.memory_space<vmem>>, vector<1x1x128xf32>
    %713 = vector.shape_cast %712 : vector<1x1x128xf32> to vector<1x128xf32>
    %c5_364 = arith.constant 5 : index
    %c0_365 = arith.constant 0 : index
    %c0_366 = arith.constant 0 : index
    %714 = vector.load %arg9[%c5_364, %c0_365, %c0_366] : memref<6x128x256xbf16, #tpu.memory_space<vmem>>, vector<1x128x256xbf16>
    %715 = vector.shape_cast %714 : vector<1x128x256xbf16> to vector<128x256xbf16>
    %c5_367 = arith.constant 5 : index
    %c0_368 = arith.constant 0 : index
    %c0_369 = arith.constant 0 : index
    %716 = vector.load %arg10[%c5_367, %c0_368, %c0_369] : memref<6x1x256xf32, #tpu.memory_space<vmem>>, vector<1x1x256xf32>
    %717 = vector.shape_cast %716 : vector<1x1x256xf32> to vector<1x256xf32>
    %c5_370 = arith.constant 5 : index
    %c0_371 = arith.constant 0 : index
    %c0_372 = arith.constant 0 : index
    %718 = vector.load %arg11[%c5_370, %c0_371, %c0_372] : memref<6x256x128xbf16, #tpu.memory_space<vmem>>, vector<1x256x128xbf16>
    %719 = vector.shape_cast %718 : vector<1x256x128xbf16> to vector<256x128xbf16>
    %c5_373 = arith.constant 5 : index
    %c0_374 = arith.constant 0 : index
    %c0_375 = arith.constant 0 : index
    %720 = vector.load %arg12[%c5_373, %c0_374, %c0_375] : memref<6x1x128xf32, #tpu.memory_space<vmem>>, vector<1x1x128xf32>
    %721 = vector.shape_cast %720 : vector<1x1x128xf32> to vector<1x128xf32>
    %c5_376 = arith.constant 5 : index
    %c0_377 = arith.constant 0 : index
    %c0_378 = arith.constant 0 : index
    %722 = vector.load %arg13[%c5_376, %c0_377, %c0_378] : memref<6x1x128xf32, #tpu.memory_space<vmem>>, vector<1x1x128xf32>
    %723 = vector.shape_cast %722 : vector<1x1x128xf32> to vector<1x128xf32>
    %c5_379 = arith.constant 5 : index
    %c0_380 = arith.constant 0 : index
    %c0_381 = arith.constant 0 : index
    %724 = vector.load %arg14[%c5_379, %c0_380, %c0_381] : memref<6x1x128xf32, #tpu.memory_space<vmem>>, vector<1x1x128xf32>
    %725 = vector.shape_cast %724 : vector<1x1x128xf32> to vector<1x128xf32>
    %c5_382 = arith.constant 5 : index
    %c0_383 = arith.constant 0 : index
    %c0_384 = arith.constant 0 : index
    %726 = vector.load %arg15[%c5_382, %c0_383, %c0_384] : memref<6x1x128xf32, #tpu.memory_space<vmem>>, vector<1x1x128xf32>
    %727 = vector.shape_cast %726 : vector<1x1x128xf32> to vector<1x128xf32>
    %c5_385 = arith.constant 5 : index
    %c0_386 = arith.constant 0 : index
    %c0_387 = arith.constant 0 : index
    %728 = vector.load %arg16[%c5_385, %c0_386, %c0_387] : memref<6x1x128xf32, #tpu.memory_space<vmem>>, vector<1x1x128xf32>
    %729 = vector.shape_cast %728 : vector<1x1x128xf32> to vector<1x128xf32>
    %730 = arith.truncf %705 : vector<32x128xf32> to vector<32x128xbf16>
    %cst_388 = arith.constant dense<0.000000e+00> : vector<32x384xf32>
    %731 = tpu.matmul %730, %707, %cst_388 {dimension_numbers = #tpu.dot_dimension_numbers<[1], [0], [0], [1], [0, 0, 1, 1], [], []>} : vector<32x128xbf16>, vector<128x384xbf16>, vector<32x384xf32> -> vector<32x384xf32>
    %732 = vector.broadcast %709 : vector<1x384xf32> to vector<32x384xf32>
    %733 = arith.addf %731, %732 : vector<32x384xf32>
    %734 = arith.truncf %733 : vector<32x384xf32> to vector<32x384xbf16>
    %735 = vector.extract_strided_slice %734 {offsets = [0, 0], sizes = [16, 384], strides = [1, 1]} : vector<32x384xbf16> to vector<16x384xbf16>
    %736 = vector.extract_strided_slice %735 {offsets = [0, 0], sizes = [16, 128], strides = [1, 1]} : vector<16x384xbf16> to vector<16x128xbf16>
    %737 = vector.extract_strided_slice %735 {offsets = [0, 128], sizes = [16, 128], strides = [1, 1]} : vector<16x384xbf16> to vector<16x128xbf16>
    %738 = vector.extract_strided_slice %735 {offsets = [0, 256], sizes = [16, 128], strides = [1, 1]} : vector<16x384xbf16> to vector<16x128xbf16>
    %739 = tpu.concatenate %737, %737, %737, %737, %737, %737, %737, %737 in 0 : vector<16x128xbf16>, vector<16x128xbf16>, vector<16x128xbf16>, vector<16x128xbf16>, vector<16x128xbf16>, vector<16x128xbf16>, vector<16x128xbf16>, vector<16x128xbf16> -> vector<128x128xbf16>
    %740 = arith.mulf %739, %4 : vector<128x128xbf16>
    %741 = tpu.concatenate %738, %738, %738, %738, %738, %738, %738, %738 in 0 : vector<16x128xbf16>, vector<16x128xbf16>, vector<16x128xbf16>, vector<16x128xbf16>, vector<16x128xbf16>, vector<16x128xbf16>, vector<16x128xbf16>, vector<16x128xbf16> -> vector<128x128xbf16>
    %742 = arith.mulf %741, %4 : vector<128x128xbf16>
    %cst_389 = arith.constant dense<0.000000e+00> : vector<16x128xf32>
    %743 = tpu.matmul %736, %740, %cst_389 {dimension_numbers = #tpu.dot_dimension_numbers<[1], [1], [0], [0], [0, 0, 1, 0], [], []>} : vector<16x128xbf16>, vector<128x128xbf16>, vector<16x128xf32> -> vector<16x128xf32>
    %cst_390 = arith.constant 2.500000e-01 : f32
    %744 = vector.broadcast %cst_390 : f32 to vector<16x128xf32>
    %745 = arith.mulf %743, %744 : vector<16x128xf32>
    %cst_391 = arith.constant dense<0xFF800000> : vector<16xf32>
    %746 = vector.multi_reduction <maximumf>, %745, %cst_391 [1] : vector<16x128xf32> to vector<16xf32>
    %747 = vector.shape_cast %746 : vector<16xf32> to vector<16x1xf32>
    %748 = vector.broadcast %747 : vector<16x1xf32> to vector<16x128xf32>
    %749 = arith.subf %745, %748 : vector<16x128xf32>
    %750 = math.exp %749 : vector<16x128xf32>
    %cst_392 = arith.constant dense<0.000000e+00> : vector<16x128xf32>
    %751 = tpu.matmul %750, %5, %cst_392 {dimension_numbers = #tpu.dot_dimension_numbers<[1], [0], [0], [1], [0, 0, 1, 1], [], []>} : vector<16x128xf32>, vector<128x128xf32>, vector<16x128xf32> -> vector<16x128xf32>
    %cst_393 = arith.constant 1.000000e-30 : f32
    %752 = vector.broadcast %cst_393 : f32 to vector<16x128xf32>
    %753 = arith.maximumf %751, %752 : vector<16x128xf32>
    %754 = tpu.reciprocal %753 {approx = true} : vector<16x128xf32> -> vector<16x128xf32>
    %755 = arith.mulf %750, %754 : vector<16x128xf32>
    %756 = arith.truncf %755 : vector<16x128xf32> to vector<16x128xbf16>
    %cst_394 = arith.constant dense<0.000000e+00> : vector<16x128xf32>
    %757 = tpu.matmul %756, %742, %cst_394 {dimension_numbers = #tpu.dot_dimension_numbers<[1], [0], [0], [1], [0, 0, 1, 1], [], []>} : vector<16x128xbf16>, vector<128x128xbf16>, vector<16x128xf32> -> vector<16x128xf32>
    %758 = arith.truncf %757 : vector<16x128xf32> to vector<16x128xbf16>
    %cst_395 = arith.constant dense<0.000000e+00> : vector<16x128xf32>
    %759 = tpu.matmul %758, %711, %cst_395 {dimension_numbers = #tpu.dot_dimension_numbers<[1], [0], [0], [1], [0, 0, 1, 1], [], []>} : vector<16x128xbf16>, vector<128x128xbf16>, vector<16x128xf32> -> vector<16x128xf32>
    %c0_396 = arith.constant 0 : index
    %c0_397 = arith.constant 0 : index
    %760 = vector.load %arg22[%c0_396, %c0_397] : memref<32x128xf32, #tpu.memory_space<vmem>>, vector<16x128xf32>
    tpu.vector_store %arg22[%c0_396, %c0_397], %759 {strides = array<i32>} : memref<32x128xf32, #tpu.memory_space<vmem>>, vector<16x128xf32>,
    %761 = vector.extract_strided_slice %734 {offsets = [16, 0], sizes = [16, 384], strides = [1, 1]} : vector<32x384xbf16> to vector<16x384xbf16>
    %762 = vector.extract_strided_slice %761 {offsets = [0, 0], sizes = [16, 128], strides = [1, 1]} : vector<16x384xbf16> to vector<16x128xbf16>
    %763 = vector.extract_strided_slice %761 {offsets = [0, 128], sizes = [16, 128], strides = [1, 1]} : vector<16x384xbf16> to vector<16x128xbf16>
    %764 = vector.extract_strided_slice %761 {offsets = [0, 256], sizes = [16, 128], strides = [1, 1]} : vector<16x384xbf16> to vector<16x128xbf16>
    %765 = tpu.concatenate %763, %763, %763, %763, %763, %763, %763, %763 in 0 : vector<16x128xbf16>, vector<16x128xbf16>, vector<16x128xbf16>, vector<16x128xbf16>, vector<16x128xbf16>, vector<16x128xbf16>, vector<16x128xbf16>, vector<16x128xbf16> -> vector<128x128xbf16>
    %766 = arith.mulf %765, %4 : vector<128x128xbf16>
    %767 = tpu.concatenate %764, %764, %764, %764, %764, %764, %764, %764 in 0 : vector<16x128xbf16>, vector<16x128xbf16>, vector<16x128xbf16>, vector<16x128xbf16>, vector<16x128xbf16>, vector<16x128xbf16>, vector<16x128xbf16>, vector<16x128xbf16> -> vector<128x128xbf16>
    %768 = arith.mulf %767, %4 : vector<128x128xbf16>
    %cst_398 = arith.constant dense<0.000000e+00> : vector<16x128xf32>
    %769 = tpu.matmul %762, %766, %cst_398 {dimension_numbers = #tpu.dot_dimension_numbers<[1], [1], [0], [0], [0, 0, 1, 0], [], []>} : vector<16x128xbf16>, vector<128x128xbf16>, vector<16x128xf32> -> vector<16x128xf32>
    %cst_399 = arith.constant 2.500000e-01 : f32
    %770 = vector.broadcast %cst_399 : f32 to vector<16x128xf32>
    %771 = arith.mulf %769, %770 : vector<16x128xf32>
    %cst_400 = arith.constant dense<0xFF800000> : vector<16xf32>
    %772 = vector.multi_reduction <maximumf>, %771, %cst_400 [1] : vector<16x128xf32> to vector<16xf32>
    %773 = vector.shape_cast %772 : vector<16xf32> to vector<16x1xf32>
    %774 = vector.broadcast %773 : vector<16x1xf32> to vector<16x128xf32>
    %775 = arith.subf %771, %774 : vector<16x128xf32>
    %776 = math.exp %775 : vector<16x128xf32>
    %cst_401 = arith.constant dense<0.000000e+00> : vector<16x128xf32>
    %777 = tpu.matmul %776, %5, %cst_401 {dimension_numbers = #tpu.dot_dimension_numbers<[1], [0], [0], [1], [0, 0, 1, 1], [], []>} : vector<16x128xf32>, vector<128x128xf32>, vector<16x128xf32> -> vector<16x128xf32>
    %cst_402 = arith.constant 1.000000e-30 : f32
    %778 = vector.broadcast %cst_402 : f32 to vector<16x128xf32>
    %779 = arith.maximumf %777, %778 : vector<16x128xf32>
    %780 = tpu.reciprocal %779 {approx = true} : vector<16x128xf32> -> vector<16x128xf32>
    %781 = arith.mulf %776, %780 : vector<16x128xf32>
    %782 = arith.truncf %781 : vector<16x128xf32> to vector<16x128xbf16>
    %cst_403 = arith.constant dense<0.000000e+00> : vector<16x128xf32>
    %783 = tpu.matmul %782, %768, %cst_403 {dimension_numbers = #tpu.dot_dimension_numbers<[1], [0], [0], [1], [0, 0, 1, 1], [], []>} : vector<16x128xbf16>, vector<128x128xbf16>, vector<16x128xf32> -> vector<16x128xf32>
    %784 = arith.truncf %783 : vector<16x128xf32> to vector<16x128xbf16>
    %cst_404 = arith.constant dense<0.000000e+00> : vector<16x128xf32>
    %785 = tpu.matmul %784, %711, %cst_404 {dimension_numbers = #tpu.dot_dimension_numbers<[1], [0], [0], [1], [0, 0, 1, 1], [], []>} : vector<16x128xbf16>, vector<128x128xbf16>, vector<16x128xf32> -> vector<16x128xf32>
    %c16_405 = arith.constant 16 : index
    %c0_406 = arith.constant 0 : index
    %786 = vector.load %arg22[%c16_405, %c0_406] : memref<32x128xf32, #tpu.memory_space<vmem>>, vector<16x128xf32>
    tpu.vector_store %arg22[%c16_405, %c0_406], %785 {strides = array<i32>} : memref<32x128xf32, #tpu.memory_space<vmem>>, vector<16x128xf32>,
    %c0_407 = arith.constant 0 : index
    %c0_408 = arith.constant 0 : index
    %787 = vector.load %arg22[%c0_407, %c0_408] : memref<32x128xf32, #tpu.memory_space<vmem>>, vector<32x128xf32>
    %788 = arith.addf %705, %787 : vector<32x128xf32>
    %789 = vector.broadcast %713 : vector<1x128xf32> to vector<32x128xf32>
    %790 = arith.addf %788, %789 : vector<32x128xf32>
    %cst_409 = arith.constant dense<0.000000e+00> : vector<32xf32>
    %791 = vector.multi_reduction <add>, %790, %cst_409 [1] : vector<32x128xf32> to vector<32xf32>
    %792 = vector.shape_cast %791 : vector<32xf32> to vector<32x1xf32>
    %cst_410 = arith.constant 1.280000e+02 : f32
    %793 = vector.broadcast %cst_410 : f32 to vector<32x1xf32>
    %794 = arith.divf %792, %793 : vector<32x1xf32>
    %795 = vector.broadcast %794 : vector<32x1xf32> to vector<32x128xf32>
    %796 = arith.subf %790, %795 : vector<32x128xf32>
    %797 = arith.mulf %796, %796 : vector<32x128xf32>
    %cst_411 = arith.constant dense<0.000000e+00> : vector<32xf32>
    %798 = vector.multi_reduction <add>, %797, %cst_411 [1] : vector<32x128xf32> to vector<32xf32>
    %799 = vector.shape_cast %798 : vector<32xf32> to vector<32x1xf32>
    %cst_412 = arith.constant 1.280000e+02 : f32
    %800 = vector.broadcast %cst_412 : f32 to vector<32x1xf32>
    %801 = arith.divf %799, %800 : vector<32x1xf32>
    %802 = vector.broadcast %794 : vector<32x1xf32> to vector<32x128xf32>
    %803 = arith.subf %790, %802 : vector<32x128xf32>
    %cst_413 = arith.constant 9.99999974E-6 : f32
    %804 = vector.broadcast %cst_413 : f32 to vector<32x1xf32>
    %805 = arith.addf %801, %804 : vector<32x1xf32>
    %806 = math.rsqrt %805 : vector<32x1xf32>
    %807 = vector.broadcast %806 : vector<32x1xf32> to vector<32x128xf32>
    %808 = arith.mulf %803, %807 : vector<32x128xf32>
    %809 = vector.broadcast %723 : vector<1x128xf32> to vector<32x128xf32>
    %810 = arith.mulf %808, %809 : vector<32x128xf32>
    %811 = vector.broadcast %725 : vector<1x128xf32> to vector<32x128xf32>
    %812 = arith.addf %810, %811 : vector<32x128xf32>
    %813 = arith.truncf %812 : vector<32x128xf32> to vector<32x128xbf16>
    %cst_414 = arith.constant dense<0.000000e+00> : vector<32x256xf32>
    %814 = tpu.matmul %813, %715, %cst_414 {dimension_numbers = #tpu.dot_dimension_numbers<[1], [0], [0], [1], [0, 0, 1, 1], [], []>} : vector<32x128xbf16>, vector<128x256xbf16>, vector<32x256xf32> -> vector<32x256xf32>
    %815 = vector.broadcast %717 : vector<1x256xf32> to vector<32x256xf32>
    %816 = arith.addf %814, %815 : vector<32x256xf32>
    %cst_415 = arith.constant 0.000000e+00 : f32
    %817 = vector.broadcast %cst_415 : f32 to vector<32x256xf32>
    %818 = arith.maximumf %816, %817 : vector<32x256xf32>
    %819 = arith.truncf %818 : vector<32x256xf32> to vector<32x256xbf16>
    %cst_416 = arith.constant dense<0.000000e+00> : vector<32x128xf32>
    %820 = tpu.matmul %819, %719, %cst_416 {dimension_numbers = #tpu.dot_dimension_numbers<[1], [0], [0], [1], [0, 0, 1, 1], [], []>} : vector<32x256xbf16>, vector<256x128xbf16>, vector<32x128xf32> -> vector<32x128xf32>
    %821 = vector.broadcast %721 : vector<1x128xf32> to vector<32x128xf32>
    %822 = arith.addf %820, %821 : vector<32x128xf32>
    %823 = arith.addf %812, %822 : vector<32x128xf32>
    %cst_417 = arith.constant dense<0.000000e+00> : vector<32xf32>
    %824 = vector.multi_reduction <add>, %823, %cst_417 [1] : vector<32x128xf32> to vector<32xf32>
    %825 = vector.shape_cast %824 : vector<32xf32> to vector<32x1xf32>
    %cst_418 = arith.constant 1.280000e+02 : f32
    %826 = vector.broadcast %cst_418 : f32 to vector<32x1xf32>
    %827 = arith.divf %825, %826 : vector<32x1xf32>
    %828 = vector.broadcast %827 : vector<32x1xf32> to vector<32x128xf32>
    %829 = arith.subf %823, %828 : vector<32x128xf32>
    %830 = arith.mulf %829, %829 : vector<32x128xf32>
    %cst_419 = arith.constant dense<0.000000e+00> : vector<32xf32>
    %831 = vector.multi_reduction <add>, %830, %cst_419 [1] : vector<32x128xf32> to vector<32xf32>
    %832 = vector.shape_cast %831 : vector<32xf32> to vector<32x1xf32>
    %cst_420 = arith.constant 1.280000e+02 : f32
    %833 = vector.broadcast %cst_420 : f32 to vector<32x1xf32>
    %834 = arith.divf %832, %833 : vector<32x1xf32>
    %835 = vector.broadcast %827 : vector<32x1xf32> to vector<32x128xf32>
    %836 = arith.subf %823, %835 : vector<32x128xf32>
    %cst_421 = arith.constant 9.99999974E-6 : f32
    %837 = vector.broadcast %cst_421 : f32 to vector<32x1xf32>
    %838 = arith.addf %834, %837 : vector<32x1xf32>
    %839 = math.rsqrt %838 : vector<32x1xf32>
    %840 = vector.broadcast %839 : vector<32x1xf32> to vector<32x128xf32>
    %841 = arith.mulf %836, %840 : vector<32x128xf32>
    %842 = vector.broadcast %727 : vector<1x128xf32> to vector<32x128xf32>
    %843 = arith.mulf %841, %842 : vector<32x128xf32>
    %844 = vector.broadcast %729 : vector<1x128xf32> to vector<32x128xf32>
    %845 = arith.addf %843, %844 : vector<32x128xf32>
    %846 = vector.shape_cast %845 : vector<32x128xf32> to vector<2x16x128xf32>
    %cst_422 = arith.constant dense<0.000000e+00> : vector<2x128xf32>
    %847 = vector.multi_reduction <add>, %846, %cst_422 [1] : vector<2x16x128xf32> to vector<2x128xf32>
    %cst_423 = arith.constant 1.600000e+01 : f32
    %848 = vector.broadcast %cst_423 : f32 to vector<2x128xf32>
    %849 = arith.divf %847, %848 : vector<2x128xf32>
    %c0_424 = arith.constant 0 : index
    %c0_425 = arith.constant 0 : index
    %850 = vector.load %arg17[%c0_424, %c0_425] : memref<1x128xf32, #tpu.memory_space<vmem>>, vector<1x128xf32>
    %c0_426 = arith.constant 0 : index
    %c0_427 = arith.constant 0 : index
    %851 = vector.load %arg18[%c0_426, %c0_427] : memref<1x128xf32, #tpu.memory_space<vmem>>, vector<1x128xf32>
    %cst_428 = arith.constant dense<0.000000e+00> : vector<2xf32>
    %852 = vector.multi_reduction <add>, %849, %cst_428 [1] : vector<2x128xf32> to vector<2xf32>
    %853 = vector.shape_cast %852 : vector<2xf32> to vector<2x1xf32>
    %cst_429 = arith.constant 1.280000e+02 : f32
    %854 = vector.broadcast %cst_429 : f32 to vector<2x1xf32>
    %855 = arith.divf %853, %854 : vector<2x1xf32>
    %856 = vector.broadcast %855 : vector<2x1xf32> to vector<2x128xf32>
    %857 = arith.subf %849, %856 : vector<2x128xf32>
    %858 = arith.mulf %857, %857 : vector<2x128xf32>
    %cst_430 = arith.constant dense<0.000000e+00> : vector<2xf32>
    %859 = vector.multi_reduction <add>, %858, %cst_430 [1] : vector<2x128xf32> to vector<2xf32>
    %860 = vector.shape_cast %859 : vector<2xf32> to vector<2x1xf32>
    %cst_431 = arith.constant 1.280000e+02 : f32
    %861 = vector.broadcast %cst_431 : f32 to vector<2x1xf32>
    %862 = arith.divf %860, %861 : vector<2x1xf32>
    %863 = vector.broadcast %855 : vector<2x1xf32> to vector<2x128xf32>
    %864 = arith.subf %849, %863 : vector<2x128xf32>
    %cst_432 = arith.constant 9.99999974E-6 : f32
    %865 = vector.broadcast %cst_432 : f32 to vector<2x1xf32>
    %866 = arith.addf %862, %865 : vector<2x1xf32>
    %867 = math.rsqrt %866 : vector<2x1xf32>
    %868 = vector.broadcast %867 : vector<2x1xf32> to vector<2x128xf32>
    %869 = arith.mulf %864, %868 : vector<2x128xf32>
    %870 = vector.broadcast %850 : vector<1x128xf32> to vector<2x128xf32>
    %871 = arith.mulf %869, %870 : vector<2x128xf32>
    %872 = vector.broadcast %851 : vector<1x128xf32> to vector<2x128xf32>
    %873 = arith.addf %871, %872 : vector<2x128xf32>
    %874 = arith.truncf %873 : vector<2x128xf32> to vector<2x128xbf16>
    %c0_433 = arith.constant 0 : index
    %c0_434 = arith.constant 0 : index
    %875 = vector.load %arg19[%c0_433, %c0_434] : memref<128x128xbf16, #tpu.memory_space<vmem>>, vector<128x128xbf16>
    %cst_435 = arith.constant dense<0.000000e+00> : vector<2x128xf32>
    %876 = tpu.matmul %874, %875, %cst_435 {dimension_numbers = #tpu.dot_dimension_numbers<[1], [0], [0], [1], [0, 0, 1, 1], [], []>} : vector<2x128xbf16>, vector<128x128xbf16>, vector<2x128xf32> -> vector<2x128xf32>
    %c0_436 = arith.constant 0 : index
    %c0_437 = arith.constant 0 : index
    %877 = vector.load %arg20[%c0_436, %c0_437] : memref<1x128xf32, #tpu.memory_space<vmem>>, vector<1x128xf32>
    %878 = vector.broadcast %877 : vector<1x128xf32> to vector<2x128xf32>
    %879 = arith.addf %876, %878 : vector<2x128xf32>
    %c0_438 = arith.constant 0 : index
    %c0_439 = arith.constant 0 : index
    %c0_440 = arith.constant 0 : index
    %880 = vector.load %arg21[%c0_438, %c0_439, %c0_440] : memref<1x2x128xf32, #tpu.memory_space<vmem>>, vector<1x2x128xf32>
    %881 = vector.shape_cast %880 : vector<1x2x128xf32> to vector<2x128xf32>
    %882 = vector.shape_cast %879 : vector<2x128xf32> to vector<1x2x128xf32>
    tpu.vector_store %arg21[%c0_438, %c0_439, %c0_440], %882 {strides = array<i32>} : memref<1x2x128xf32, #tpu.memory_space<vmem>>, vector<1x2x128xf32>,
    return
  }
  func.func @transform_0(%arg0: i32) -> (i32, i32, i32) {
    %c0_i32 = arith.constant 0 : i32
    %c0_i32_0 = arith.constant 0 : i32
    %c0_i32_1 = arith.constant 0 : i32
    return %arg0, %c0_i32, %c0_i32_0 : i32, i32, i32
  }
  func.func @transform_1(%arg0: i32) -> (i32, i32, i32) {
    %c0_i32 = arith.constant 0 : i32
    %c0_i32_0 = arith.constant 0 : i32
    %c0_i32_1 = arith.constant 0 : i32
    return %arg0, %c0_i32, %c0_i32_0 : i32, i32, i32
  }
  func.func @transform_2(%arg0: i32) -> (i32, i32) {
    %c0_i32 = arith.constant 0 : i32
    %c0_i32_0 = arith.constant 0 : i32
    %c0_i32_1 = arith.constant 0 : i32
    return %c0_i32, %c0_i32_0 : i32, i32
  }
  func.func @transform_3(%arg0: i32) -> (i32, i32) {
    %c0_i32 = arith.constant 0 : i32
    %c0_i32_0 = arith.constant 0 : i32
    %c0_i32_1 = arith.constant 0 : i32
    return %c0_i32, %c0_i32_0 : i32, i32
  }
  func.func @transform_4(%arg0: i32) -> (i32, i32, i32) {
    %c0_i32 = arith.constant 0 : i32
    %c0_i32_0 = arith.constant 0 : i32
    %c0_i32_1 = arith.constant 0 : i32
    %c0_i32_2 = arith.constant 0 : i32
    return %c0_i32, %c0_i32_0, %c0_i32_1 : i32, i32, i32
  }
  func.func @transform_5(%arg0: i32) -> (i32, i32, i32) {
    %c0_i32 = arith.constant 0 : i32
    %c0_i32_0 = arith.constant 0 : i32
    %c0_i32_1 = arith.constant 0 : i32
    %c0_i32_2 = arith.constant 0 : i32
    return %c0_i32, %c0_i32_0, %c0_i32_1 : i32, i32, i32
  }
  func.func @transform_6(%arg0: i32) -> (i32, i32, i32) {
    %c0_i32 = arith.constant 0 : i32
    %c0_i32_0 = arith.constant 0 : i32
    %c0_i32_1 = arith.constant 0 : i32
    %c0_i32_2 = arith.constant 0 : i32
    return %c0_i32, %c0_i32_0, %c0_i32_1 : i32, i32, i32
  }
  func.func @transform_7(%arg0: i32) -> (i32, i32, i32) {
    %c0_i32 = arith.constant 0 : i32
    %c0_i32_0 = arith.constant 0 : i32
    %c0_i32_1 = arith.constant 0 : i32
    %c0_i32_2 = arith.constant 0 : i32
    return %c0_i32, %c0_i32_0, %c0_i32_1 : i32, i32, i32
  }
  func.func @transform_8(%arg0: i32) -> (i32, i32, i32) {
    %c0_i32 = arith.constant 0 : i32
    %c0_i32_0 = arith.constant 0 : i32
    %c0_i32_1 = arith.constant 0 : i32
    %c0_i32_2 = arith.constant 0 : i32
    return %c0_i32, %c0_i32_0, %c0_i32_1 : i32, i32, i32
  }
  func.func @transform_9(%arg0: i32) -> (i32, i32, i32) {
    %c0_i32 = arith.constant 0 : i32
    %c0_i32_0 = arith.constant 0 : i32
    %c0_i32_1 = arith.constant 0 : i32
    %c0_i32_2 = arith.constant 0 : i32
    return %c0_i32, %c0_i32_0, %c0_i32_1 : i32, i32, i32
  }
  func.func @transform_10(%arg0: i32) -> (i32, i32, i32) {
    %c0_i32 = arith.constant 0 : i32
    %c0_i32_0 = arith.constant 0 : i32
    %c0_i32_1 = arith.constant 0 : i32
    %c0_i32_2 = arith.constant 0 : i32
    return %c0_i32, %c0_i32_0, %c0_i32_1 : i32, i32, i32
  }
  func.func @transform_11(%arg0: i32) -> (i32, i32, i32) {
    %c0_i32 = arith.constant 0 : i32
    %c0_i32_0 = arith.constant 0 : i32
    %c0_i32_1 = arith.constant 0 : i32
    %c0_i32_2 = arith.constant 0 : i32
    return %c0_i32, %c0_i32_0, %c0_i32_1 : i32, i32, i32
  }
  func.func @transform_12(%arg0: i32) -> (i32, i32, i32) {
    %c0_i32 = arith.constant 0 : i32
    %c0_i32_0 = arith.constant 0 : i32
    %c0_i32_1 = arith.constant 0 : i32
    %c0_i32_2 = arith.constant 0 : i32
    return %c0_i32, %c0_i32_0, %c0_i32_1 : i32, i32, i32
  }
  func.func @transform_13(%arg0: i32) -> (i32, i32, i32) {
    %c0_i32 = arith.constant 0 : i32
    %c0_i32_0 = arith.constant 0 : i32
    %c0_i32_1 = arith.constant 0 : i32
    %c0_i32_2 = arith.constant 0 : i32
    return %c0_i32, %c0_i32_0, %c0_i32_1 : i32, i32, i32
  }
  func.func @transform_14(%arg0: i32) -> (i32, i32, i32) {
    %c0_i32 = arith.constant 0 : i32
    %c0_i32_0 = arith.constant 0 : i32
    %c0_i32_1 = arith.constant 0 : i32
    %c0_i32_2 = arith.constant 0 : i32
    return %c0_i32, %c0_i32_0, %c0_i32_1 : i32, i32, i32
  }
  func.func @transform_15(%arg0: i32) -> (i32, i32, i32) {
    %c0_i32 = arith.constant 0 : i32
    %c0_i32_0 = arith.constant 0 : i32
    %c0_i32_1 = arith.constant 0 : i32
    %c0_i32_2 = arith.constant 0 : i32
    return %c0_i32, %c0_i32_0, %c0_i32_1 : i32, i32, i32
  }
  func.func @transform_16(%arg0: i32) -> (i32, i32) {
    %c0_i32 = arith.constant 0 : i32
    %c0_i32_0 = arith.constant 0 : i32
    %c0_i32_1 = arith.constant 0 : i32
    return %c0_i32, %c0_i32_0 : i32, i32
  }
  func.func @transform_17(%arg0: i32) -> (i32, i32) {
    %c0_i32 = arith.constant 0 : i32
    %c0_i32_0 = arith.constant 0 : i32
    %c0_i32_1 = arith.constant 0 : i32
    return %c0_i32, %c0_i32_0 : i32, i32
  }
  func.func @transform_18(%arg0: i32) -> (i32, i32) {
    %c0_i32 = arith.constant 0 : i32
    %c0_i32_0 = arith.constant 0 : i32
    %c0_i32_1 = arith.constant 0 : i32
    return %c0_i32, %c0_i32_0 : i32, i32
  }
  func.func @transform_19(%arg0: i32) -> (i32, i32) {
    %c0_i32 = arith.constant 0 : i32
    %c0_i32_0 = arith.constant 0 : i32
    %c0_i32_1 = arith.constant 0 : i32
    return %c0_i32, %c0_i32_0 : i32, i32
  }
  func.func @transform_20(%arg0: i32) -> (i32, i32, i32) {
    %c0_i32 = arith.constant 0 : i32
    %c0_i32_0 = arith.constant 0 : i32
    %c0_i32_1 = arith.constant 0 : i32
    return %arg0, %c0_i32, %c0_i32_0 : i32, i32, i32
  }
}

</mosaic_0001>

<bundles_post_ra>
// kernel: lcbc_forward.1
= control target key start
LH: loop header
LB: loop body
LE: loop exit
PB: predicated region body
PF: predicated region fallthrough
CT: control target
= control target key end

     0   :  { %v12574_v1 = vmov 0   ;;  %vm78_vm0 = vcmask 1041408   ;;  %v12575_v23 = vmov 0.0   ;;  %vm12576_vm1 = vmmov 0   ;;  %s15929_s4 = inlined_call_operand.vmem [shape: bf16[6,128,384], index: 4, kind: input, shape index: {}]   ;;  %s15930_s0 = inlined_call_operand.vmem [shape: f32[2,10,128], index: 0, kind: input, shape index: {}]   ;;  %s15931_s1 = inlined_call_operand.vmem [shape: f32[2,6,128], index: 1, kind: input, shape index: {}]   ;;  %s15932_s2 = inlined_call_operand.vmem [shape: bf16[128,128], index: 2, kind: input, shape index: {}]   ;;  %s15933_s5 = inlined_call_operand.vmem [shape: f32[6,1,384], index: 5, kind: input, shape index: {}]   ;;  %s15934_s3 = inlined_call_operand.vmem [shape: f32[128,128], index: 3, kind: input, shape index: {}]   ;;  %s15935_s6 = inlined_call_operand.vmem [shape: bf16[6,128,128], index: 6, kind: input, shape index: {}]   ;;  %s15936_s7 = inlined_call_operand.vmem [shape: f32[6,1,128], index: 7, kind: input, shape index: {}]   ;;  %s15937_s8 = inlined_call_operand.vmem [shape: bf16[6,128,256], index: 8, kind: input, shape index: {}]   ;;  %s15938_s12 = inlined_call_operand.vmem [shape: f32[6,1,128], index: 12, kind: input, shape index: {}]   ;;  %s15939_s13 = inlined_call_operand.vmem [shape: f32[6,1,128], index: 13, kind: input, shape index: {}]   ;;  %s15940_s10 = inlined_call_operand.vmem [shape: bf16[6,256,128], index: 10, kind: input, shape index: {}]   ;;  %s15941_s9 = inlined_call_operand.vmem [shape: f32[6,1,256], index: 9, kind: input, shape index: {}]   ;;  %s15942_s11 = inlined_call_operand.vmem [shape: f32[6,1,128], index: 11, kind: input, shape index: {}]   ;;  %s15943_s14 = inlined_call_operand.vmem [shape: f32[6,1,128], index: 14, kind: input, shape index: {}]   ;;  %s15944_s15 = inlined_call_operand.vmem [shape: f32[6,1,128], index: 15, kind: input, shape index: {}]   ;;  %s15945_s18 = inlined_call_operand.vmem [shape: bf16[128,128], index: 18, kind: input, shape index: {}]   ;;  %s15946_s16 = inlined_call_operand.vmem [shape: f32[1,128], index: 16, kind: input, shape index: {}]   ;;  %s15947_s17 = inlined_call_operand.vmem [shape: f32[1,128], index: 17, kind: input, shape index: {}]   ;;  %s15948_s19 = inlined_call_operand.vmem [shape: f32[1,128], index: 19, kind: input, shape index: {}]   ;;  %s15949_s20 = inlined_call_operand.vmem [shape: f32[1,2,128], index: 20, kind: output, shape index: {}]  }
   0x1   :  { %15955 = sst [smem:[#allocation3_spill]] %s15929_s4  ;;  %395 = vmatprep.mubr.bf16.mxu0 %v12574_v1  ;;  %v220_v30 = vlaneseq  ;;  %vm8265_vm2 = vcmask 1041409  }
   0x2   :  { %15956 = sst [smem:[#allocation4_spill]] %s15930_s0  ;;  %s15960_s23 = sld [smem:[#allocation3_spill]] }
   0x3   :  { %15957 = sst [smem:[#allocation5_spill]] %s15931_s1  ;;  %s15961_s26 = sld [smem:[#allocation4_spill]]  ;;  %v12764_v31 = vshrl.u32 %v220_v30, 7 }
   0x4   :  { %15958 = sst [smem:[#allocation6_spill]] %s15932_s2  ;;  %s15962_s30 = sld [smem:[#allocation5_spill]] }
   0x5   :  { %15959 = sst [smem:[#allocation7_spill]] %s15933_s5  ;;  %v12767_v32 = vsub.s32 0, %v12764_v31  ;;  %v12775_v34 = vsub.s32 1, %v12764_v31  ;;  %s15964_s4 = sld [smem:[#allocation6_spill]] }
   0x6   :  { %s15963_s28 = sld [smem:[#allocation7_spill]] }
   0x8   :  { %v11842_v0 = vld [vmem:[%s15960_s23 + $0x4] ss:$12 sps:$4 sm:$0xff]   ;;  %v11844_v2 = vld [vmem:[%s15960_s23] ss:$12 sps:$4 sm:$0xff]   ;;  %v11845_v3 = vld [vmem:[%s15960_s23 + $0x1c] ss:$12 sps:$4 sm:$0xff]  }
   0x9   :  { %363 = vmatprep.subr.bf16.mxu0 %v11842_v0  ;;  %v11847_v4 = vld [vmem:[%s15960_s23 + $0x18] ss:$12 sps:$4 sm:$0xff]   ;;  %v11848_v5 = vld [vmem:[%s15960_s23 + $0x34] ss:$12 sps:$4 sm:$0xff]   ;;  %v11850_v6 = vld [vmem:[%s15960_s23 + $0x30] ss:$12 sps:$4 sm:$0xff]  }
   0xa   :  { %364 = vmatpush1.bf16.msra.mxu0 %v11844_v2  ;;  %v11851_v7 = vld [vmem:[%s15960_s23 + $0x4c] ss:$12 sps:$4 sm:$0xff]   ;;  %v11853_v8 = vld [vmem:[%s15960_s23 + $0x48] ss:$12 sps:$4 sm:$0xff]   ;;  %v11854_v9 = vld [vmem:[%s15960_s23 + $0x64] ss:$12 sps:$4 sm:$0xff]  }
   0xb   :  { %365 = vmatprep.subr.bf16.mxu0 %v11845_v3  ;;  %v66_v10 = vld [vmem:[%s15961_s26] sm:$0xff]  ;;  %v67_v11 = vld [vmem:[%s15961_s26 + $0x8] sm:$0x3]  ;;  %v11862_v20 = vld [vmem:[%s15960_s23 + $0x90] ss:$12 sps:$4 sm:$0xff]  }
   0xc   :  { %v70_v12 = vld [vmem:[%s15962_s30] sm:$0x3f]  ;;  %v11857_v15 = vld [vmem:[%s15960_s23 + $0x7c] ss:$12 sps:$4 sm:$0xff]   ;;  %v11863_v21 = vld [vmem:[%s15960_s23 + $0xac] ss:$12 sps:$4 sm:$0xff]  }
   0xd   :  { %v74_v13 = vrot.slane %v70_v12, 6  ;;  %v11856_v14 = vld [vmem:[%s15960_s23 + $0x60] ss:$12 sps:$4 sm:$0xff]   ;;  %v11859_v18 = vld [vmem:[%s15960_s23 + $0x78] ss:$12 sps:$4 sm:$0xff]   ;;  %v68_v25 = vld [vmem:[%s15961_s26 + $0x10] sm:$0xff] }
   0xe   :  { %366 = vmatpush1.bf16.msra.mxu0 %v11847_v4  ;;  %v11860_v19 = vld [vmem:[%s15960_s23 + $0x94] ss:$12 sps:$4 sm:$0xff]   ;;  %v71_v24 = vld [vmem:[%s15962_s30 + $0x8] sm:$0x3f]  ;;  %v69_v26 = vld [vmem:[%s15961_s26 + $0x18] sm:$0x3] }
   0xf   :  { %367 = vmatprep.subr.bf16.mxu0 %v11848_v5  ;;  %v12726_v16 = vsel %vm78_vm0, %v67_v11, %v74_v13  ;;  %v11865_v22 = vld [vmem:[%s15960_s23 + $0xa8] ss:$12 sps:$4 sm:$0xff]   ;;  %v75_v27 = vrot.slane %v71_v24, 6  ;;  %v12772_v33 = vld [vmem:[%s15963_s28] sm:$0x7]  ;;  %v12805_v53 = vld [vmem:[%s15964_s4 + $0x18] sm:$0xff]  }
  0x10   :  { %v217_v17 = vpack.c.bf16 %v12726_v16, %v66_v10  ;;  %v223_v35 = vrot.slane %v12772_v33, %v12767_v32  ;;  %v227_v37 = vrot.slane %v12772_v33, %v12775_v34  ;;  %v12784_v45 = vld [vmem:[%s15964_s4] sm:$0xff]   ;;  %v12791_v49 = vld [vmem:[%s15964_s4 + $0x8] sm:$0xff]   ;;  %v12798_v51 = vld [vmem:[%s15964_s4 + $0x10] sm:$0xff]  }
  0x11   :  { %v12756_v28 = vsel %vm78_vm0, %v69_v26, %v75_v27  ;;  %v12812_v55 = vld [vmem:[%s15964_s4 + $0x20] sm:$0xff]   ;;  %v12819_v57 = vld [vmem:[%s15964_s4 + $0x28] sm:$0xff]   ;;  %v12826_v59 = vld [vmem:[%s15964_s4 + $0x30] sm:$0xff]  }
  0x12   :  { %368 = vmatpush1.bf16.msra.mxu0 %v11850_v6  ;;  %10191 = vmatprep.mubr.bf16.mxu1 %v217_v17  ;;  %v12759_v29 = vpack.c.bf16 %v12756_v28, %v68_v25  ;;  %v12833_v61 = vld [vmem:[%s15964_s4 + $0x38] sm:$0xff]   ;;  %v11874_v10 = vld [vmem:[%s15960_s23 + $0x8] ss:$12 sps:$4 sm:$0xff]   ;;  %v11875_v11 = vld [vmem:[%s15960_s23 + $0x20] ss:$12 sps:$4 sm:$0xff]  }
  0x13   :  { %369 = vmatprep.subr.bf16.mxu0 %v11851_v7  ;;  %10175 = vmatprep.subr.bf16.mxu1 %v11874_v10  ;;  %v11876_v12 = vld [vmem:[%s15960_s23 + $0x38] ss:$12 sps:$4 sm:$0xff]   ;;  %v11877_v13 = vld [vmem:[%s15960_s23 + $0x50] ss:$12 sps:$4 sm:$0xff]   ;;  %v102_v27 = vld [vmem:[%s15934_s3 + $0x28] sm:$0xff] }
  0x14   :  { %10176 = vmatpush3.bf16.msra.mxu1 %v11874_v10  ;;  %v100_v24 = vld [vmem:[%s15934_s3 + $0x18] sm:$0xff]  ;;  %v101_v26 = vld [vmem:[%s15934_s3 + $0x20] sm:$0xff] }
  0x15   :  { %10177 = vmatprep.subr.bf16.mxu1 %v11875_v11  ;;  %v12897_v30 = vpack.c.bf16 %v102_v27, %v101_v26 }
  0x16   :  { %370 = vmatpush1.bf16.msra.mxu0 %v11853_v8 }
  0x17   :  { %371 = vmatprep.subr.bf16.mxu0 %v11854_v9 }
  0x18   :  { %10178 = vmatpush3.bf16.msra.mxu1 %v11875_v11 }
  0x19   :  { %10179 = vmatprep.subr.bf16.mxu1 %v11876_v12 }
  0x1a   :  { %372 = vmatpush1.bf16.msra.mxu0 %v11856_v14  ;;  %v11878_v14 = vld [vmem:[%s15960_s23 + $0x68] ss:$12 sps:$4 sm:$0xff]  }
  0x1b   :  { %373 = vmatprep.subr.bf16.mxu0 %v11857_v15  ;;  %v11879_v15 = vld [vmem:[%s15960_s23 + $0x80] ss:$12 sps:$4 sm:$0xff]  }
  0x1c   :  { %10180 = vmatpush3.bf16.msra.mxu1 %v11876_v12 }
  0x1d   :  { %10181 = vmatprep.subr.bf16.mxu1 %v11877_v13 }
  0x1e   :  { %374 = vmatpush1.bf16.msra.mxu0 %v11859_v18  ;;  %v11881_v18 = vld [vmem:[%s15960_s23 + $0xb0] ss:$12 sps:$4 sm:$0xff]  }
  0x1f   :  { %375 = vmatprep.subr.bf16.mxu0 %v11860_v19  ;;  %v97_v19 = vld [vmem:[%s15934_s3] sm:$0xff] }
  0x20   :  { %10182 = vmatpush3.bf16.msra.mxu1 %v11877_v13 }
  0x21   :  { %10183 = vmatprep.subr.bf16.mxu1 %v11878_v14 }
  0x22   :  { %376 = vmatpush1.bf16.msra.mxu0 %v11862_v20  ;;  %v98_v20 = vld [vmem:[%s15934_s3 + $0x8] sm:$0xff] }
  0x23   :  { %377 = vmatprep.subr.bf16.mxu0 %v11863_v21  ;;  %v12877_v21 = vpack.c.bf16 %v98_v20, %v97_v19 }
  0x24   :  { %10184 = vmatpush3.bf16.msra.mxu1 %v11878_v14 }
  0x25   :  { %10185 = vmatprep.subr.bf16.mxu1 %v11879_v15 }
  0x26   :  { %378 = vmatpush1.bf16.msra.mxu0 %v11865_v22  ;;  %v99_v22 = vld [vmem:[%s15934_s3 + $0x10] sm:$0xff] }
  0x27   :  { %10195 = vmatprep.subr.bf16.mxu0 %v12575_v23  ;;  %v12886_v25 = vpack.c.bf16 %v100_v24, %v99_v22 }
  0x28   :  { %10186 = vmatpush3.bf16.msra.mxu1 %v11879_v15 }
  0x29   :  { %396 = vmatmul.mubr.bf16.vlgmr.msra.gmra.mrb[0].mxu0 %v217_v17  ;;  %v11880_v17 = vld [vmem:[%s15960_s23 + $0x98] ss:$12 sps:$4 sm:$0xff]  }
  0x2a   :  { %405 = vmatprep.mubr.bf16.mxu0 %v12574_v1  ;;  %10187 = vmatprep.subr.bf16.mxu1 %v11880_v17 }
  0x2c   :  { %10188 = vmatpush3.bf16.msra.mxu1 %v11880_v17 }
  0x2d   :  { %10189 = vmatprep.subr.bf16.mxu1 %v11881_v18 }
  0x30   :  { %10190 = vmatpush3.bf16.msra.mxu1 %v11881_v18 }
  0x31   :  { %406 = vmatmul.mubr.bf16.gmra.mrb[4].mxu0 %v12759_v29  ;;  %11456 = vmatprep.subr.bf16.mxu1 %v12877_v21 }
  0x32   :  { %10211 = vmatprep.mubr.msk.bf16.mxu0 %vm12576_vm1, %v12575_v23 }
  0x33   :  { %10192 = vmatmul.mubr.bf16.vlgmr.msra.gmra.mrb[0].mxu1 %v12759_v29 }
  0x34   :  { %11458 = vmatpush3.bf16.msra.mxu1 %v12877_v21 }
  0x35   :  { %11460 = vmatprep.subr.bf16.mxu1 %v12886_v25 }
  0x38   :  { %11462 = vmatpush3.bf16.msra.mxu1 %v12886_v25 }
  0x39   :  { %11464 = vmatprep.subr.bf16.mxu1 %v12897_v30 }
  0x3c   :  { %11466 = vmatpush3.bf16.msra.mxu1 %v12897_v30 }
  0xfc   :  { %v397_v36 = vpop.f32.mrb[0].mxu0 }
  0xfd   :  { %v399_v38 = vpop.f32.mrb[1].mxu0  ;;  %v398_v40 = vadd.f32 %v397_v36, %v223_v35  ;;  %v104_v36 = vld [vmem:[%s15934_s3 + $0x38] sm:$0xff] }
  0xfe   :  { %v401_v39 = vpop.f32.mrb[2].mxu0  ;;  %v400_v43 = vadd.f32 %v399_v38, %v227_v37 }
  0xff   :  { %v402_v41 = vadd.f32 %v401_v39, %v223_v35  ;;  %v403_v42 = vpop.f32.mrb[3].mxu0 }
 0x100   :  { %v404_v44 = vadd.f32 %v403_v42, %v227_v37 }
 0x101   :  { %v465_v46 = vpack.c.bf16 %v402_v41, %v398_v40 }
 0x102   :  { %v466_v47 = vpack.c.bf16 %v404_v44, %v400_v43  ;;  %v105_v43 = vld [vmem:[%s15934_s3 + $0x40] sm:$0xff]  ;;  %v106_v44 = vld [vmem:[%s15934_s3 + $0x48] sm:$0xff] }
 0x104   :  { %v519_v48 = vmul.bf16 %v12784_v45, %v466_v47  ;;  %v520_v50 = vmul.bf16 %v12791_v49, %v466_v47  ;;  %v521_v52 = vmul.bf16 %v12798_v51, %v466_v47  ;;  %v522_v54 = vmul.bf16 %v12805_v53, %v466_v47  ;;  %v407_v63 = vpop.f32.mrb[4].mxu0 }
 0x105   :  { %v523_v56 = vmul.bf16 %v12812_v55, %v466_v47  ;;  %v524_v58 = vmul.bf16 %v12819_v57, %v466_v47  ;;  %v525_v60 = vmul.bf16 %v12826_v59, %v466_v47  ;;  %v526_v62 = vmul.bf16 %v12833_v61, %v466_v47  ;;  %v409_v2 = vpop.f32.mrb[5].mxu0  ;;  %v107_v47 = vld [vmem:[%s15934_s3 + $0x50] sm:$0xff] }
 0x106   :  { %10196 = vmatpush3.bf16.xpose.msra.mxu0 %v519_v48  ;;  %v12839_v0 = vadd.f32 %v407_v63, %v223_v35  ;;  %v410_v3 = vadd.f32 %v409_v2, %v227_v37  ;;  %v411_v4 = vpop.f32.mrb[6].mxu0  ;;  %v108_v48 = vld [vmem:[%s15934_s3 + $0x58] sm:$0xff]  ;;  %v12954_v63 = vsub.s32 2, %v12764_v31 }
 0x107   :  { %10197 = vmatprep.subr.bf16.mxu0 %v12575_v23  ;;  %v12841_v5 = vadd.f32 %v411_v4, %v223_v35  ;;  %v413_v6 = vpop.f32.mrb[7].mxu0  ;;  %v103_v35 = vld [vmem:[%s15934_s3 + $0x30] sm:$0xff] }
 0x108   :  { %v414_v7 = vadd.f32 %v413_v6, %v227_v37  ;;  %v12907_v37 = vpack.c.bf16 %v104_v36, %v103_v35  ;;  %v231_v2 = vrot.slane %v12772_v33, %v12954_v63 }
 0x109   :  { %v468_v8 = vpack.c.bf16 %v12841_v5, %v12839_v0  ;;  %v11889_v0 = vld [vmem:[%s15935_s6 + $0x38] sm:$0xff]  }
 0x10a   :  { %v12845_v9 = vpack.c.bf16 %v414_v7, %v410_v3  ;;  %11468 = vmatprep.subr.bf16.mxu1 %v12907_v37  ;;  %v10193_v3 = vpop.f32.mrb[0].mxu1 }
 0x10b   :  { %11470 = vmatpush3.bf16.msra.mxu1 %v12907_v37  ;;  %v459_v4 = vadd.f32 %v10193_v3, %v231_v2  ;;  %v450_v6 = vpop.f32.mrb[1].mxu1 }
 0x10c   :  { %v451_v7 = vadd.f32 %v450_v6, %v231_v2  ;;  %v10194_v10 = vpop.f32.mrb[2].mxu1 }
 0x10d   :  { %v462_v11 = vadd.f32 %v10194_v10, %v231_v2  ;;  %v453_v12 = vpop.f32.mrb[3].mxu1 }
 0x10e   :  { %10198 = vmatpush3.bf16.xpose.msra.mxu0 %v520_v50  ;;  %v12928_v50 = vpack.c.bf16 %v108_v48, %v107_v47  ;;  %v454_v13 = vadd.f32 %v453_v12, %v231_v2  ;;  %v11886_v47 = vld [vmem:[%s15935_s6 + $0x20] sm:$0xff]   ;;  %v11887_v48 = vld [vmem:[%s15935_s6 + $0x28] sm:$0xff]   ;;  %v804_v12 = vmul.bf16 %v12791_v49, %v12845_v9 }
 0x10f   :  { %10199 = vmatprep.subr.bf16.mxu0 %v12575_v23  ;;  %v12958_v14 = vpack.c.bf16 %v462_v11, %v459_v4  ;;  %v803_v11 = vmul.bf16 %v12784_v45, %v12845_v9 }
 0x110   :  { %v467_v15 = vpack.c.bf16 %v454_v13, %v451_v7  ;;  %v805_v13 = vmul.bf16 %v12798_v51, %v12845_v9 }
 0x112   :  { %v527_v24 = vmul.bf16 %v12784_v45, %v467_v15  ;;  %v528_v27 = vmul.bf16 %v12791_v49, %v467_v15  ;;  %v529_v35 = vmul.bf16 %v12798_v51, %v467_v15  ;;  %v530_v36 = vmul.bf16 %v12805_v53, %v467_v15 }
 0x116   :  { %10200 = vmatpush3.bf16.xpose.msra.mxu0 %v521_v52  ;;  %v109_v52 = vld [vmem:[%s15934_s3 + $0x60] sm:$0xff] }
 0x117   :  { %10201 = vmatprep.subr.bf16.mxu0 %v12575_v23 }
 0x11e   :  { %10202 = vmatpush3.bf16.xpose.msra.mxu0 %v522_v54  ;;  %v110_v54 = vld [vmem:[%s15934_s3 + $0x68] sm:$0xff] }
 0x11f   :  { %10203 = vmatprep.subr.bf16.mxu0 %v12575_v23 }
 0x126   :  { %10204 = vmatpush3.bf16.xpose.msra.mxu0 %v523_v56  ;;  %v111_v56 = vld [vmem:[%s15934_s3 + $0x70] sm:$0xff] }
 0x127   :  { %10205 = vmatprep.subr.bf16.mxu0 %v12575_v23 }
 0x12e   :  { %10206 = vmatpush3.bf16.xpose.msra.mxu0 %v524_v58  ;;  %v12941_v58 = vpack.c.bf16 %v110_v54, %v109_v52  ;;  %v11888_v52 = vld [vmem:[%s15935_s6 + $0x30] sm:$0xff]  }
 0x12f   :  { %10207 = vmatprep.subr.bf16.mxu0 %v12575_v23 }
 0x136   :  { %10208 = vmatpush3.bf16.xpose.msra.mxu0 %v525_v60  ;;  %v112_v60 = vld [vmem:[%s15934_s3 + $0x78] sm:$0xff] }
 0x137   :  { %10209 = vmatprep.subr.bf16.mxu0 %v12575_v23 }
 0x13e   :  { %10210 = vmatpush3.bf16.xpose.msra.mxu0 %v526_v62  ;;  %v12946_v62 = vpack.c.bf16 %v112_v60, %v111_v56 }
 0x13f   :  { %10270 = vmatprep.subr.bf16.mxu0 %v12575_v23 }
 0x145   :  { %10212 = vmatmul.mubr.bf16.vlgmr.msra.gmra.mrb[8].mxu0 %v465_v46  ;;  %v12918_v46 = vpack.c.bf16 %v106_v44, %v105_v43  ;;  %v11884_v43 = vld [vmem:[%s15935_s6 + $0x10] sm:$0xff]   ;;  %v11885_v44 = vld [vmem:[%s15935_s6 + $0x18] sm:$0xff]  }
 0x146   :  { %10286 = vmatprep.mubr.msk.bf16.mxu0 %vm12576_vm1, %v12575_v23 }
 0x147   :  { %11472 = vmatprep.subr.bf16.mxu1 %v12918_v46 }
 0x148   :  { %11474 = vmatpush3.bf16.msra.mxu1 %v12918_v46 }
 0x149   :  { %11476 = vmatprep.subr.bf16.mxu1 %v12928_v50 }
 0x14c   :  { %11478 = vmatpush3.bf16.msra.mxu1 %v12928_v50 }
 0x14d   :  { %11480 = vmatprep.subr.bf16.mxu1 %v12941_v58 }
 0x150   :  { %11482 = vmatpush3.bf16.msra.mxu1 %v12941_v58 }
 0x151   :  { %11484 = vmatprep.subr.bf16.mxu1 %v12946_v62 }
 0x154   :  { %11486 = vmatpush3.bf16.msra.mxu1 %v12946_v62 }
 0x155   :  { %10250 = vmatprep.subr.bf16.mxu1 %v12575_v23 }
 0x218   :  { %v569_v29 = vpop.f32.mrb[8].mxu0 }
 0x219   :  { %v576_v38 = vmul.f32 0.25, %v569_v29  ;;  %v10213_v39 = vpop.f32.mrb[9].mxu0  ;;  %v531_v29 = vmul.bf16 %v12812_v55, %v467_v15 }
 0x21a   :  { %v572_v40 = vpop.f32.mrb[10].mxu0  ;;  %v533_v39 = vmul.bf16 %v12826_v59, %v467_v15 }
 0x21b   :  { %578 = vmax.xlane.f32.xlu0 %v576_v38  ;;  %v10214_v41 = vpop.f32.mrb[11].mxu0  ;;  %v577_v42 = vmul.f32 0.25, %v572_v40  ;;  %v534_v40 = vmul.bf16 %v12833_v61, %v467_v15 }
 0x21c   :  { %v11882_v41 = vld [vmem:[%s15935_s6] sm:$0xff]  }
 0x21d   :  { %10271 = vmatpush3.bf16.msra.mxu0 %v11882_v41 }
 0x21e   :  { %10272 = vmatprep.subr.bf16.mxu0 %v12575_v23 }
 0x21f   :  { %580 = vmax.xlane.f32.xlu0 %v577_v42 }
 0x2a8   :  { %v579_v17 = vpop.xlane.xlu0 %578 }
 0x2a9   :  { %v582_v18 = vsub.f32 %v576_v38, %v579_v17  ;;  %v532_v38 = vmul.bf16 %v12819_v57, %v467_v15  ;;  %v806_v15 = vmul.bf16 %v12805_v53, %v12845_v9  ;;  %v807_v17 = vmul.bf16 %v12812_v55, %v12845_v9 }
 0x2ab   :  { %v584_v19 = vmul.f32 1.442695, %v582_v18  ;;  %v808_v18 = vmul.bf16 %v12819_v57, %v12845_v9 }
 0x2ac   :  { %v581_v20 = vpop.xlane.xlu0 %580 }
 0x2ad   :  { %12338 = vpow2.f32 %v584_v19  ;;  %v583_v31 = vsub.f32 %v577_v42, %v581_v20  ;;  %v11883_v42 = vld [vmem:[%s15935_s6 + $0x8] sm:$0xff]   ;;  %v809_v19 = vmul.bf16 %v12826_v59, %v12845_v9  ;;  %v810_v20 = vmul.bf16 %v12833_v61, %v12845_v9 }
 0x2ae   :  { %10273 = vmatpush3.bf16.msra.mxu0 %v11883_v42 }
 0x2af   :  { %v586_v22 = vmul.f32 1.442695, %v583_v31  ;;  %10274 = vmatprep.subr.bf16.mxu0 %v12575_v23 }
 0x2b1   :  { %12340 = vpow2.f32 %v586_v22 }
 0x2b2   :  { %10275 = vmatpush3.bf16.msra.mxu0 %v11884_v43 }
 0x2b3   :  { %10276 = vmatprep.subr.bf16.mxu0 %v12575_v23 }
 0x2b6   :  { %10277 = vmatpush3.bf16.msra.mxu0 %v11885_v44 }
 0x2b7   :  { %v12339_v33 = vpop.eup %12338  ;;  %10278 = vmatprep.subr.bf16.mxu0 %v12575_v23 }
 0x2b8   :  { %10247 = vmatprep.mubr.f32.mxu1 %v12339_v33 }
 0x2ba   :  { %10279 = vmatpush3.bf16.msra.mxu0 %v11886_v47 }
 0x2bb   :  { %v12341_v26 = vpop.eup %12340  ;;  %10280 = vmatprep.subr.bf16.mxu0 %v12575_v23 }
 0x2bc   :  { %10248 = vmatmul.mubr.f32.vlgmr.msra.gmra.mrb[4].mxu1 %v12341_v26 }
 0x2bd   :  { %10251 = vmatpush3.bf16.msra.mxu1 %v527_v24  ;;  %10266 = vmatprep.mubr.msk.bf16.mxu1 %vm12576_vm1, %v12575_v23 }
 0x2be   :  { %10252 = vmatprep.subr.bf16.mxu1 %v12575_v23  ;;  %10281 = vmatpush3.bf16.msra.mxu0 %v11887_v48 }
 0x2bf   :  { %10282 = vmatprep.subr.bf16.mxu0 %v12575_v23 }
 0x2c1   :  { %10253 = vmatpush3.bf16.msra.mxu1 %v528_v27 }
 0x2c2   :  { %10254 = vmatprep.subr.bf16.mxu1 %v12575_v23  ;;  %10283 = vmatpush3.bf16.msra.mxu0 %v11888_v52 }
 0x2c3   :  { %10284 = vmatprep.subr.bf16.mxu0 %v12575_v23 }
 0x2c5   :  { %10255 = vmatpush3.bf16.msra.mxu1 %v529_v35 }
 0x2c6   :  { %10256 = vmatprep.subr.bf16.mxu1 %v12575_v23  ;;  %10285 = vmatpush3.bf16.msra.mxu0 %v11889_v0 }
 0x2c7   :  { %11488 = vmatprep.subr.bf16.mxu0 %v12877_v21 }
 0x2c9   :  { %10257 = vmatpush3.bf16.msra.mxu1 %v530_v36 }
 0x2ca   :  { %10258 = vmatprep.subr.bf16.mxu1 %v12575_v23 }
 0x2cd   :  { %10259 = vmatpush3.bf16.msra.mxu1 %v531_v29 }
 0x2ce   :  { %10260 = vmatprep.subr.bf16.mxu1 %v12575_v23 }
 0x2d1   :  { %10261 = vmatpush3.bf16.msra.mxu1 %v532_v38 }
 0x2d2   :  { %10262 = vmatprep.subr.bf16.mxu1 %v12575_v23 }
 0x2d5   :  { %10263 = vmatpush3.bf16.msra.mxu1 %v533_v39 }
 0x2d6   :  { %10264 = vmatprep.subr.bf16.mxu1 %v12575_v23 }
 0x2d9   :  { %10265 = vmatpush3.bf16.msra.mxu1 %v534_v40 }
 0x2da   :  { %10290 = vmatprep.subr.bf16.mxu1 %v12575_v23 }
 0x38f   :  { %v10249_v54 = vpop.f32.mrb[4].mxu1 }
 0x390   :  { %v664_v56 = vmax.f32 %v10249_v54, 1e-30  ;;  %v654_v60 = vpop.f32.mrb[5].mxu1 }
 0x391   :  { %v663_v2 = vmax.f32 %v654_v60, 1e-30 }
 0x392   :  { %12342 = vrcp.f32 %v664_v56 }
 0x393   :  { %12344 = vrcp.f32 %v663_v2 }
 0x39c   :  { %v12343_v3 = vpop.eup %12342 }
 0x39d   :  { %v12345_v4 = vpop.eup %12344  ;;  %v668_v6 = vmul.f32 %v12343_v3, %v12341_v26 }
 0x39e   :  { %v667_v7 = vmul.f32 %v12345_v4, %v12339_v33 }
 0x3a0   :  { %v669_v10 = vpack.c.bf16 %v668_v6, %v667_v7  ;;  %v811_v7 = vmul.bf16 %v12784_v45, %v12958_v14  ;;  %v814_v45 = vmul.bf16 %v12805_v53, %v12958_v14  ;;  %v818_v53 = vmul.bf16 %v12833_v61, %v12958_v14 }
 0x3a2   :  { %10267 = vmatmul.mubr.bf16.vlgmr.msra.gmra.mrb[8].mxu1 %v669_v10  ;;  %v813_v10 = vmul.bf16 %v12798_v51, %v12958_v14  ;;  %v817_v51 = vmul.bf16 %v12826_v59, %v12958_v14 }
 0x3a3   :  { %10291 = vmatpush3.bf16.xpose.msra.mxu1 %v803_v11  ;;  %10306 = vmatprep.mubr.msk.bf16.mxu1 %vm12576_vm1, %v12575_v23  ;;  %v815_v11 = vmul.bf16 %v12812_v55, %v12958_v14  ;;  %v11892_v55 = vld [vmem:[%s15937_s8 + $0x4] ss:$8 sps:$4 sm:$0xff]  }
 0x3a4   :  { %10292 = vmatprep.subr.bf16.mxu1 %v12575_v23 }
 0x3ab   :  { %10293 = vmatpush3.bf16.xpose.msra.mxu1 %v804_v12 }
 0x3ac   :  { %10294 = vmatprep.subr.bf16.mxu1 %v12575_v23 }
 0x3b3   :  { %10295 = vmatpush3.bf16.xpose.msra.mxu1 %v805_v13 }
 0x3b4   :  { %10296 = vmatprep.subr.bf16.mxu1 %v12575_v23 }
 0x3bb   :  { %10297 = vmatpush3.bf16.xpose.msra.mxu1 %v806_v15 }
 0x3bc   :  { %10298 = vmatprep.subr.bf16.mxu1 %v12575_v23 }
 0x3c3   :  { %10299 = vmatpush3.bf16.xpose.msra.mxu1 %v807_v17 }
 0x3c4   :  { %10300 = vmatprep.subr.bf16.mxu1 %v12575_v23 }
 0x3cb   :  { %10301 = vmatpush3.bf16.xpose.msra.mxu1 %v808_v18 }
 0x3cc   :  { %10302 = vmatprep.subr.bf16.mxu1 %v12575_v23 }
 0x3d3   :  { %10303 = vmatpush3.bf16.xpose.msra.mxu1 %v809_v19 }
 0x3d4   :  { %10304 = vmatprep.subr.bf16.mxu1 %v12575_v23 }
 0x3db   :  { %10305 = vmatpush3.bf16.xpose.msra.mxu1 %v810_v20 }
 0x3dc   :  { %10365 = vmatprep.subr.bf16.mxu1 %v12575_v23 }
 0x3e2   :  { %10307 = vmatmul.mubr.bf16.vlgmr.msra.gmra.mrb[12].mxu1 %v468_v8 }
 0x3e3   :  { %10366 = vmatpush3.bf16.msra.mxu1 %v11882_v41  ;;  %10381 = vmatprep.mubr.msk.bf16.mxu1 %vm12576_vm1, %v12575_v23 }
 0x3e4   :  { %10367 = vmatprep.subr.bf16.mxu1 %v12575_v23 }
 0x3e7   :  { %10368 = vmatpush3.bf16.msra.mxu1 %v11883_v42 }
 0x3e8   :  { %10369 = vmatprep.subr.bf16.mxu1 %v12575_v23 }
 0x3eb   :  { %10370 = vmatpush3.bf16.msra.mxu1 %v11884_v43 }
 0x3ec   :  { %10371 = vmatprep.subr.bf16.mxu1 %v12575_v23 }
 0x3ef   :  { %10372 = vmatpush3.bf16.msra.mxu1 %v11885_v44  ;;  %v13067_v44 = vld [vmem:[%s15936_s7] ss:$0 sm:$0xff] }
 0x3f0   :  { %10373 = vmatprep.subr.bf16.mxu1 %v12575_v23 }
 0x3f3   :  { %10374 = vmatpush3.bf16.msra.mxu1 %v11886_v47  ;;  %v12532_v47 = vld [vmem:[%s15961_s26] sm:$0xff] }
 0x3f4   :  { %10375 = vmatprep.subr.bf16.mxu1 %v12575_v23 }
 0x3f7   :  { %10376 = vmatpush3.bf16.msra.mxu1 %v11887_v48 }
 0x3f8   :  { %10377 = vmatprep.subr.bf16.mxu1 %v12575_v23 }
 0x3fb   :  { %10378 = vmatpush3.bf16.msra.mxu1 %v11888_v52 }
 0x3fc   :  { %10379 = vmatprep.subr.bf16.mxu1 %v12575_v23 }
 0x3ff   :  { %10380 = vmatpush3.bf16.msra.mxu1 %v11889_v0 }
 0x475   :  { %v704_v5 = vpop.f32.mrb[8].mxu1 }
 0x476   :  { %v10268_v8 = vpop.f32.mrb[9].mxu1 }
 0x477   :  { %v707_v9 = vpop.f32.mrb[10].mxu1 }
 0x478   :  { %v711_v31 = vpack.c.bf16 %v707_v9, %v704_v5  ;;  %v10269_v22 = vpop.f32.mrb[11].mxu1 }
 0x479   :  { %v11890_v22 = vld [vmem:[%s15937_s8] ss:$8 sps:$4 sm:$0xff]  }
 0x47a   :  { %10287 = vmatmul.mubr.bf16.vlgmr.msra.gmra.mrb[12].mxu0 %v711_v31 }
 0x47b   :  { %11490 = vmatpush3.bf16.msra.mxu0 %v12877_v21 }
 0x47c   :  { %11492 = vmatprep.subr.bf16.mxu0 %v12886_v25 }
 0x47f   :  { %11494 = vmatpush3.bf16.msra.mxu0 %v12886_v25 }
 0x480   :  { %11496 = vmatprep.subr.bf16.mxu0 %v12897_v30 }
 0x483   :  { %11498 = vmatpush3.bf16.msra.mxu0 %v12897_v30 }
 0x484   :  { %11500 = vmatprep.subr.bf16.mxu0 %v12907_v37 }
 0x487   :  { %11502 = vmatpush3.bf16.msra.mxu0 %v12907_v37 }
 0x488   :  { %11504 = vmatprep.subr.bf16.mxu0 %v12918_v46 }
 0x48b   :  { %11506 = vmatpush3.bf16.msra.mxu0 %v12918_v46 }
 0x48c   :  { %11508 = vmatprep.subr.bf16.mxu0 %v12928_v50 }
 0x48f   :  { %11510 = vmatpush3.bf16.msra.mxu0 %v12928_v50 }
 0x490   :  { %11512 = vmatprep.subr.bf16.mxu0 %v12941_v58 }
 0x493   :  { %11514 = vmatpush3.bf16.msra.mxu0 %v12941_v58 }
 0x494   :  { %11516 = vmatprep.subr.bf16.mxu0 %v12946_v62 }
 0x497   :  { %11518 = vmatpush3.bf16.msra.mxu0 %v12946_v62 }
 0x498   :  { %10345 = vmatprep.subr.bf16.mxu0 %v12575_v23 }
 0x4b5   :  { %v853_v33 = vpop.f32.mrb[12].mxu1 }
 0x4b6   :  { %v860_v24 = vmul.f32 0.25, %v853_v33  ;;  %v10308_v26 = vpop.f32.mrb[13].mxu1 }
 0x4b7   :  { %v856_v27 = vpop.f32.mrb[14].mxu1  ;;  %v11893_v26 = vld [vmem:[%s15937_s8 + $0x10] ss:$8 sps:$4 sm:$0xff]  }
 0x4b8   :  { %862 = vmax.xlane.f32.xlu1 %v860_v24  ;;  %v10309_v35 = vpop.f32.mrb[15].mxu1  ;;  %v861_v36 = vmul.f32 0.25, %v856_v27  ;;  %v11898_v27 = vld [vmem:[%s15937_s8 + $0x24] ss:$8 sps:$4 sm:$0xff]  }
 0x4b9   :  { %v11896_v35 = vld [vmem:[%s15937_s8 + $0x20] ss:$8 sps:$4 sm:$0xff]  }
 0x4bc   :  { %864 = vmax.xlane.f32.xlu1 %v861_v36 }
 0x545   :  { %v863_v29 = vpop.xlane.xlu1 %862 }
 0x546   :  { %v866_v38 = vsub.f32 %v860_v24, %v863_v29  ;;  %v11895_v24 = vld [vmem:[%s15937_s8 + $0x14] ss:$8 sps:$4 sm:$0xff]   ;;  %v11899_v29 = vld [vmem:[%s15937_s8 + $0x30] ss:$8 sps:$4 sm:$0xff]  }
 0x548   :  { %v868_v39 = vmul.f32 1.442695, %v866_v38  ;;  %v11904_v38 = vld [vmem:[%s15937_s8 + $0x44] ss:$8 sps:$4 sm:$0xff]  }
 0x549   :  { %v865_v40 = vpop.xlane.xlu1 %864 }
 0x54a   :  { %12346 = vpow2.f32 %v868_v39  ;;  %v867_v41 = vsub.f32 %v861_v36, %v865_v40  ;;  %v11901_v36 = vld [vmem:[%s15937_s8 + $0x34] ss:$8 sps:$4 sm:$0xff]   ;;  %v11902_v39 = vld [vmem:[%s15937_s8 + $0x40] ss:$8 sps:$4 sm:$0xff]  }
 0x54b   :  { %v11907_v40 = vld [vmem:[%s15937_s8 + $0x54] ss:$8 sps:$4 sm:$0xff]  }
 0x54c   :  { %v870_v42 = vmul.f32 1.442695, %v867_v41  ;;  %v11905_v41 = vld [vmem:[%s15937_s8 + $0x50] ss:$8 sps:$4 sm:$0xff]  }
 0x54d   :  { %v794_v43 = vpop.f32.mrb[12].mxu0 }
 0x54e   :  { %12348 = vpow2.f32 %v870_v42  ;;  %v1043_v48 = vadd.f32 %v12532_v47, %v794_v43  ;;  %v10288_v52 = vpop.f32.mrb[13].mxu0  ;;  %v11910_v42 = vld [vmem:[%s15937_s8 + $0x64] ss:$8 sps:$4 sm:$0xff]   ;;  %v11908_v43 = vld [vmem:[%s15937_s8 + $0x60] ss:$8 sps:$4 sm:$0xff]  }
 0x54f   :  { %v797_v54 = vpop.f32.mrb[14].mxu0  ;;  %v11913_v47 = vld [vmem:[%s15937_s8 + $0x74] ss:$8 sps:$4 sm:$0xff]  }
 0x550   :  { %v1044_v56 = vadd.f32 %v797_v54, %v12726_v16  ;;  %v10289_v60 = vpop.f32.mrb[15].mxu0  ;;  %v1053_v2 = vadd.f32 %v13067_v44, %v1043_v48  ;;  %v812_v16 = vmul.bf16 %v12791_v49, %v12958_v14  ;;  %v816_v49 = vmul.bf16 %v12819_v57, %v12958_v14  ;;  %v11911_v48 = vld [vmem:[%s15937_s8 + $0x70] ss:$8 sps:$4 sm:$0xff]  }
 0x552   :  { %1057 = vadd.xlane.f32.xlu0 %v1053_v2  ;;  %v1054_v3 = vadd.f32 %v13067_v44, %v1044_v56 }
 0x554   :  { %v12347_v4 = vpop.eup %12346  ;;  %1059 = vadd.xlane.f32.xlu1 %v1054_v3 }
 0x555   :  { %10342 = vmatprep.mubr.f32.mxu0 %v12347_v4 }
 0x558   :  { %v12349_v6 = vpop.eup %12348 }
 0x559   :  { %10343 = vmatmul.mubr.f32.vlgmr.msra.gmra.mrb[16].mxu0 %v12349_v6 }
 0x55a   :  { %10346 = vmatpush3.bf16.msra.mxu0 %v811_v7  ;;  %10361 = vmatprep.mubr.msk.bf16.mxu0 %vm12576_vm1, %v12575_v23 }
 0x55b   :  { %10347 = vmatprep.subr.bf16.mxu0 %v12575_v23 }
 0x55e   :  { %10348 = vmatpush3.bf16.msra.mxu0 %v812_v16 }
 0x55f   :  { %10349 = vmatprep.subr.bf16.mxu0 %v12575_v23 }
 0x562   :  { %10350 = vmatpush3.bf16.msra.mxu0 %v813_v10 }
 0x563   :  { %10351 = vmatprep.subr.bf16.mxu0 %v12575_v23 }
 0x566   :  { %10352 = vmatpush3.bf16.msra.mxu0 %v814_v45 }
 0x567   :  { %10353 = vmatprep.subr.bf16.mxu0 %v12575_v23 }
 0x56a   :  { %10354 = vmatpush3.bf16.msra.mxu0 %v815_v11  ;;  %v13158_v11 = vld [vmem:[%s15939_s13] ss:$0 sm:$0xff] }
 0x56b   :  { %10355 = vmatprep.subr.bf16.mxu0 %v12575_v23 }
 0x56e   :  { %10356 = vmatpush3.bf16.msra.mxu0 %v816_v49 }
 0x56f   :  { %10357 = vmatprep.subr.bf16.mxu0 %v12575_v23 }
 0x572   :  { %10358 = vmatpush3.bf16.msra.mxu0 %v817_v51 }
 0x573   :  { %10359 = vmatprep.subr.bf16.mxu0 %v12575_v23 }
 0x576   :  { %10360 = vmatpush3.bf16.msra.mxu0 %v818_v53 }
 0x577   :  { %1215 = vmatprep.subr.bf16.mxu0 %v11892_v55 }
 0x5df   :  { %v1058_v12 = vpop.xlane.xlu0 %1057 }
 0x5e0   :  { %v1066_v57 = vmul.f32 0.0078125, %v1058_v12  ;;  %v11914_v12 = vld [vmem:[%s15940_s10 + $0x40] sm:$0xff]  }
 0x5e1   :  { %v1060_v13 = vpop.xlane.xlu1 %1059  ;;  %9498 = vmatprep.subr.bf16.mxu1 %v11914_v12 }
 0x5e2   :  { %v1067_v15 = vmul.f32 0.0078125, %v1060_v13  ;;  %v1070_v17 = vsub.f32 %v1053_v2, %v1066_v57 }
 0x5e4   :  { %v1074_v18 = vmul.f32 %v1070_v17, %v1070_v17  ;;  %v1071_v19 = vsub.f32 %v1054_v3, %v1067_v15 }
 0x5e6   :  { %1078 = vadd.xlane.f32.xlu0 %v1074_v18  ;;  %v1075_v59 = vmul.f32 %v1071_v19, %v1071_v19 }
 0x5e8   :  { %1080 = vadd.xlane.f32.xlu1 %v1075_v59  ;;  %v11916_v59 = vld [vmem:[%s15940_s10 + $0x48] sm:$0xff]  }
 0x62c   :  { %v10344_v20 = vpop.f32.mrb[16].mxu0 }
 0x62d   :  { %v948_v0 = vmax.f32 %v10344_v20, 1e-30  ;;  %v938_v5 = vpop.f32.mrb[17].mxu0  ;;  %v11917_v20 = vld [vmem:[%s15940_s10 + $0x8] sm:$0xff]  }
 0x62e   :  { %v947_v61 = vmax.f32 %v938_v5, 1e-30  ;;  %v11919_v5 = vld [vmem:[%s15940_s10 + $0x10] sm:$0xff]  }
 0x62f   :  { %12350 = vrcp.f32 %v948_v0  ;;  %v11918_v0 = vld [vmem:[%s15940_s10 + $0x50] sm:$0xff]  }
 0x630   :  { %12352 = vrcp.f32 %v947_v61  ;;  %v11920_v61 = vld [vmem:[%s15940_s10 + $0x58] sm:$0xff]  }
 0x639   :  { %v12351_v14 = vpop.eup %12350 }
 0x63a   :  { %v12353_v8 = vpop.eup %12352  ;;  %v952_v9 = vmul.f32 %v12351_v14, %v12349_v6  ;;  %v13152_v6 = vld [vmem:[%s15938_s12] ss:$0 sm:$0xff]  ;;  %v11921_v14 = vld [vmem:[%s15940_s10 + $0x18] sm:$0xff]  }
 0x63b   :  { %v951_v31 = vmul.f32 %v12353_v8, %v12347_v4  ;;  %v11922_v8 = vld [vmem:[%s15940_s10 + $0x60] sm:$0xff]  }
 0x63d   :  { %v953_v33 = vpack.c.bf16 %v952_v9, %v951_v31  ;;  %v11923_v9 = vld [vmem:[%s15940_s10 + $0x20] sm:$0xff]   ;;  %v11924_v31 = vld [vmem:[%s15940_s10 + $0x68] sm:$0xff]  }
 0x63f   :  { %10362 = vmatmul.mubr.bf16.vlgmr.msra.gmra.mrb[20].mxu0 %v953_v33  ;;  %v11926_v33 = vld [vmem:[%s15940_s10 + $0x70] sm:$0xff]  }
 0x640   :  { %1216 = vmatpush1.bf16.msra.mxu0 %v11890_v22  ;;  %1247 = vmatprep.mubr.bf16.mxu0 %v12574_v1  ;;  %v11925_v22 = vld [vmem:[%s15940_s10 + $0x28] sm:$0xff]  }
 0x641   :  { %1217 = vmatprep.subr.bf16.mxu0 %v11895_v24  ;;  %v11927_v24 = vld [vmem:[%s15940_s10 + $0x30] sm:$0xff]  }
 0x644   :  { %1218 = vmatpush1.bf16.msra.mxu0 %v11893_v26  ;;  %v11928_v26 = vld [vmem:[%s15940_s10 + $0x78] sm:$0xff]  }
 0x645   :  { %1219 = vmatprep.subr.bf16.mxu0 %v11898_v27  ;;  %v11929_v27 = vld [vmem:[%s15940_s10 + $0x38] sm:$0xff]  }
 0x648   :  { %1220 = vmatpush1.bf16.msra.mxu0 %v11896_v35  ;;  %v179_v35 = vld [vmem:[%s15941_s9] sm:$0x3] }
 0x649   :  { %1221 = vmatprep.subr.bf16.mxu0 %v11901_v36  ;;  %v13222_v36 = vrot.slane %v179_v35, %v12767_v32 }
 0x64c   :  { %1222 = vmatpush1.bf16.msra.mxu0 %v11899_v29  ;;  %v13225_v29 = vrot.slane %v179_v35, %v12775_v34  ;;  %v11935_v35 = vld [vmem:[%s15960_s23 + $0xdc] ss:$12 sps:$4 sm:$0xff]  }
 0x64d   :  { %1223 = vmatprep.subr.bf16.mxu0 %v11904_v38 }
 0x650   :  { %1224 = vmatpush1.bf16.msra.mxu0 %v11902_v39 }
 0x651   :  { %1225 = vmatprep.subr.bf16.mxu0 %v11907_v40 }
 0x654   :  { %1226 = vmatpush1.bf16.msra.mxu0 %v11905_v41 }
 0x655   :  { %1227 = vmatprep.subr.bf16.mxu0 %v11910_v42 }
 0x658   :  { %1228 = vmatpush1.bf16.msra.mxu0 %v11908_v43 }
 0x659   :  { %1229 = vmatprep.subr.bf16.mxu0 %v11913_v47 }
 0x65c   :  { %1230 = vmatpush1.bf16.msra.mxu0 %v11911_v48 }
 0x673   :  { %v1079_v52 = vpop.xlane.xlu0 %1078 }
 0x674   :  { %v1086_v54 = vmul.f32 0.0078125, %v1079_v52 }
 0x675   :  { %v1081_v56 = vpop.xlane.xlu1 %1080 }
 0x676   :  { %v1090_v60 = vadd.f32 1e-05, %v1086_v54  ;;  %v1087_v2 = vmul.f32 0.0078125, %v1081_v56 }
 0x678   :  { %12354 = vrsqrt.f32 %v1090_v60  ;;  %v1091_v3 = vadd.f32 1e-05, %v1087_v2 }
 0x67a   :  { %12356 = vrsqrt.f32 %v1091_v3 }
 0x682   :  { %v12355_v4 = vpop.eup %12354 }
 0x683   :  { %v1098_v7 = vmul.f32 %v12355_v4, %v1070_v17  ;;  %v11915_v17 = vld [vmem:[%s15940_s10] sm:$0xff]  }
 0x684   :  { %v12357_v16 = vpop.eup %12356 }
 0x685   :  { %v1099_v10 = vmul.f32 %v12357_v16, %v1071_v19  ;;  %v1108_v45 = vmul.f32 %v13152_v6, %v1098_v7  ;;  %v12533_v7 = vld [vmem:[%s15961_s26 + $0x10] sm:$0xff] }
 0x687   :  { %v1109_v49 = vmul.f32 %v13152_v6, %v1099_v10  ;;  %v13162_v51 = vadd.f32 %v13158_v11, %v1108_v45 }
 0x689   :  { %v13165_v53 = vadd.f32 %v13158_v11, %v1109_v49 }
 0x68b   :  { %v1122_v55 = vpack.c.bf16 %v13165_v53, %v13162_v51 }
 0x68d   :  { %1248 = vmatmul.mubr.bf16.vlgmr.msra.gmra.mrb[24].mxu0 %v1122_v55 }
 0x68e   :  { %1257 = vmatprep.mubr.bf16.mxu0 %v12574_v1 }
 0x712   :  { %v988_v57 = vpop.f32.mrb[20].mxu0 }
 0x713   :  { %v10363_v13 = vpop.f32.mrb[21].mxu0 }
 0x714   :  { %v991_v15 = vpop.f32.mrb[22].mxu0 }
 0x715   :  { %v995_v18 = vpack.c.bf16 %v991_v15, %v988_v57  ;;  %v10364_v19 = vpop.f32.mrb[23].mxu0 }
 0x717   :  { %10382 = vmatmul.mubr.bf16.vlgmr.msra.gmra.mrb[16].mxu1 %v995_v18 }
 0x718   :  { %9499 = vmatpush3.bf16.msra.mxu1 %v11915_v17 }
 0x719   :  { %9500 = vmatprep.subr.bf16.mxu1 %v11916_v59 }
 0x71c   :  { %9501 = vmatpush3.bf16.msra.mxu1 %v11917_v20 }
 0x71d   :  { %9502 = vmatprep.subr.bf16.mxu1 %v11918_v0 }
 0x720   :  { %9503 = vmatpush3.bf16.msra.mxu1 %v11919_v5  ;;  %v13240_v5 = vld [vmem:[%s15942_s11] ss:$0 sm:$0xff] }
 0x721   :  { %9504 = vmatprep.subr.bf16.mxu1 %v11920_v61 }
 0x724   :  { %9505 = vmatpush3.bf16.msra.mxu1 %v11921_v14 }
 0x725   :  { %9506 = vmatprep.subr.bf16.mxu1 %v11922_v8 }
 0x728   :  { %9507 = vmatpush3.bf16.msra.mxu1 %v11923_v9 }
 0x729   :  { %9508 = vmatprep.subr.bf16.mxu1 %v11924_v31 }
 0x72c   :  { %9509 = vmatpush3.bf16.msra.mxu1 %v11925_v22 }
 0x72d   :  { %9510 = vmatprep.subr.bf16.mxu1 %v11926_v33 }
 0x730   :  { %9511 = vmatpush3.bf16.msra.mxu1 %v11927_v24 }
 0x731   :  { %9512 = vmatprep.subr.bf16.mxu1 %v11928_v26  ;;  %v11930_v26 = vld [vmem:[%s15960_s23 + $0xc0] ss:$12 sps:$4 sm:$0xff]  }
 0x734   :  { %9513 = vmatpush3.bf16.msra.mxu1 %v11929_v27  ;;  %v11932_v27 = vld [vmem:[%s15960_s23 + $0xc4] ss:$12 sps:$4 sm:$0xff]  }
 0x735   :  { %1761 = vmatprep.subr.bf16.mxu0 %v11932_v27 }
 0x736   :  { %1762 = vmatpush1.bf16.msra.mxu0 %v11930_v26 }
 0x737   :  { %1763 = vmatprep.subr.bf16.mxu0 %v11935_v35 }
 0x760   :  { %v1249_v38 = vpop.f32.mrb[24].mxu0 }
 0x761   :  { %v1250_v39 = vadd.f32 %v1249_v38, %v13222_v36  ;;  %v1251_v40 = vpop.f32.mrb[25].mxu0 }
 0x762   :  { %v1252_v41 = vadd.f32 %v1251_v40, %v13225_v29  ;;  %v1253_v42 = vpop.f32.mrb[26].mxu0 }
 0x763   :  { %v1254_v43 = vadd.f32 %v1253_v42, %v13222_v36  ;;  %v1255_v47 = vpop.f32.mrb[27].mxu0  ;;  %v1268_v52 = vmax.f32 %v1250_v39, 0.0 }
 0x764   :  { %v1256_v48 = vadd.f32 %v1255_v47, %v13225_v29  ;;  %v1269_v56 = vmax.f32 %v1252_v41, 0.0 }
 0x765   :  { %v1270_v54 = vmax.f32 %v1254_v43, 0.0 }
 0x766   :  { %v1271_v60 = vmax.f32 %v1256_v48, 0.0 }
 0x767   :  { %v1276_v2 = vpack.c.bf16 %v1270_v54, %v1268_v52 }
 0x768   :  { %v1277_v3 = vpack.c.bf16 %v1271_v60, %v1269_v56 }
 0x76a   :  { %1414 = vmatprep.mubr.bf16.mxu1 %v1277_v3 }
 0x76b   :  { %1415 = vmatmul.mubr.bf16.vlgmr.msra.gmra.mrb[20].mxu1 %v1276_v2 }
 0x7ea   :  { %v1030_v4 = vpop.f32.mrb[16].mxu1 }
 0x7eb   :  { %v1045_v16 = vadd.f32 %v12533_v7, %v1030_v4  ;;  %v10383_v10 = vpop.f32.mrb[17].mxu1 }
 0x7ec   :  { %v1033_v45 = vpop.f32.mrb[18].mxu1 }
 0x7ed   :  { %v1046_v49 = vadd.f32 %v1033_v45, %v12756_v28  ;;  %v10384_v55 = vpop.f32.mrb[19].mxu1  ;;  %v1055_v12 = vadd.f32 %v13067_v44, %v1045_v16 }
 0x7ef   :  { %1061 = vadd.xlane.f32.xlu0 %v1055_v12  ;;  %v1056_v57 = vadd.f32 %v13067_v44, %v1046_v49 }
 0x7f1   :  { %1063 = vadd.xlane.f32.xlu1 %v1056_v57 }
 0x83e   :  { %v9514_v13 = vpop.f32.mrb[20].mxu1 }
 0x83f   :  { %v9515_v15 = vpop.f32.mrb[21].mxu1 }
 0x840   :  { %v9516_v17 = vadd.f32 %v9515_v15, %v9514_v13  ;;  %v9517_v18 = vpop.f32.mrb[22].mxu1  ;;  %v11936_v13 = vld [vmem:[%s15960_s23 + $0xf0] ss:$12 sps:$4 sm:$0xff]  }
 0x841   :  { %v9518_v19 = vpop.f32.mrb[23].mxu1  ;;  %v11944_v15 = vld [vmem:[%s15960_s23 + $0x124] ss:$12 sps:$4 sm:$0xff]  }
 0x842   :  { %v9519_v59 = vadd.f32 %v9518_v19, %v9517_v18  ;;  %v1417_v8 = vadd.f32 %v9516_v17, %v13240_v5  ;;  %v11942_v17 = vld [vmem:[%s15960_s23 + $0x120] ss:$12 sps:$4 sm:$0xff]   ;;  %v11947_v18 = vld [vmem:[%s15960_s23 + $0x13c] ss:$12 sps:$4 sm:$0xff]   ;;  %v11945_v19 = vld [vmem:[%s15960_s23 + $0x138] ss:$12 sps:$4 sm:$0xff]  }
 0x844   :  { %v1420_v31 = vadd.f32 %v9519_v59, %v13240_v5  ;;  %v1431_v33 = vadd.f32 %v1417_v8, %v13162_v51  ;;  %v11933_v51 = vld [vmem:[%s15960_s23 + $0xd8] ss:$12 sps:$4 sm:$0xff]   ;;  %v11950_v59 = vld [vmem:[%s15960_s23 + $0x154] ss:$12 sps:$4 sm:$0xff]  }
 0x845   :  { %1764 = vmatpush1.bf16.msra.mxu0 %v11933_v51  ;;  %v13315_v51 = vld [vmem:[%s15944_s15] ss:$0 sm:$0xff] }
 0x846   :  { %v1432_v24 = vadd.f32 %v1420_v31, %v13165_v53 }
 0x87c   :  { %v1062_v20 = vpop.xlane.xlu0 %1061 }
 0x87d   :  { %v1068_v0 = vmul.f32 0.0078125, %v1062_v20  ;;  %v11948_v20 = vld [vmem:[%s15960_s23 + $0x150] ss:$12 sps:$4 sm:$0xff]  }
 0x87e   :  { %v1064_v28 = vpop.xlane.xlu1 %1063 }
 0x87f   :  { %v1069_v61 = vmul.f32 0.0078125, %v1064_v28  ;;  %v1072_v14 = vsub.f32 %v1055_v12, %v1068_v0  ;;  %v11951_v0 = vld [vmem:[%s15960_s23 + $0x168] ss:$12 sps:$4 sm:$0xff]   ;;  %v11953_v28 = vld [vmem:[%s15960_s23 + $0x16c] ss:$12 sps:$4 sm:$0xff]  }
 0x881   :  { %v1076_v44 = vmul.f32 %v1072_v14, %v1072_v14  ;;  %v1073_v9 = vsub.f32 %v1056_v57, %v1069_v61  ;;  %v11938_v57 = vld [vmem:[%s15960_s23 + $0xf4] ss:$12 sps:$4 sm:$0xff]  }
 0x882   :  { %1765 = vmatprep.subr.bf16.mxu0 %v11938_v57 }
 0x883   :  { %1082 = vadd.xlane.f32.xlu0 %v1076_v44  ;;  %v1077_v22 = vmul.f32 %v1073_v9, %v1073_v9  ;;  %1766 = vmatpush1.bf16.msra.mxu0 %v11936_v13 }
 0x885   :  { %1084 = vadd.xlane.f32.xlu1 %v1077_v22 }
 0x887   :  { %1435 = vadd.xlane.f32.xlu0 %v1431_v33 }
 0x889   :  { %1437 = vadd.xlane.f32.xlu1 %v1432_v24 }
 0x910   :  { %v1083_v53 = vpop.xlane.xlu0 %1082 }
 0x911   :  { %v1088_v38 = vmul.f32 0.0078125, %v1083_v53 }
 0x912   :  { %v1085_v39 = vpop.xlane.xlu1 %1084 }
 0x913   :  { %v1092_v40 = vadd.f32 1e-05, %v1088_v38  ;;  %v1089_v41 = vmul.f32 0.0078125, %v1085_v39 }
 0x914   :  { %v1436_v42 = vpop.xlane.xlu0 %1435 }
 0x915   :  { %12358 = vrsqrt.f32 %v1092_v40  ;;  %v1093_v43 = vadd.f32 1e-05, %v1089_v41  ;;  %v1443_v47 = vmul.f32 0.0078125, %v1436_v42 }
 0x916   :  { %v1438_v48 = vpop.xlane.xlu1 %1437 }
 0x917   :  { %12360 = vrsqrt.f32 %v1093_v43  ;;  %v1444_v52 = vmul.f32 0.0078125, %v1438_v48  ;;  %v1447_v54 = vsub.f32 %v1431_v33, %v1443_v47  ;;  %v13309_v33 = vld [vmem:[%s15943_s14] ss:$0 sm:$0xff] }
 0x919   :  { %v1451_v56 = vmul.f32 %v1447_v54, %v1447_v54  ;;  %v1448_v60 = vsub.f32 %v1432_v24, %v1444_v52 }
 0x91b   :  { %1455 = vadd.xlane.f32.xlu0 %v1451_v56  ;;  %v1452_v2 = vmul.f32 %v1448_v60, %v1448_v60 }
 0x91d   :  { %1457 = vadd.xlane.f32.xlu1 %v1452_v2 }
 0x91f   :  { %v12359_v3 = vpop.eup %12358 }
 0x920   :  { %v1100_v4 = vmul.f32 %v12359_v3, %v1072_v14 }
 0x921   :  { %v12361_v7 = vpop.eup %12360 }
 0x922   :  { %v1101_v16 = vmul.f32 %v12361_v7, %v1073_v9  ;;  %v1110_v10 = vmul.f32 %v13152_v6, %v1100_v4 }
 0x924   :  { %v1111_v45 = vmul.f32 %v13152_v6, %v1101_v16  ;;  %v13261_v49 = vadd.f32 %v13158_v11, %v1110_v10  ;;  %v11941_v6 = vld [vmem:[%s15960_s23 + $0x10c] ss:$12 sps:$4 sm:$0xff]   ;;  %v13334_v10 = vld [vmem:[%s15963_s28 + $0x3] sm:$0x7] }
 0x925   :  { %1767 = vmatprep.subr.bf16.mxu0 %v11941_v6 }
 0x926   :  { %v13264_v55 = vadd.f32 %v13158_v11, %v1111_v45  ;;  %v11939_v11 = vld [vmem:[%s15960_s23 + $0x108] ss:$12 sps:$4 sm:$0xff]  }
 0x927   :  { %1768 = vmatpush1.bf16.msra.mxu0 %v11939_v11 }
 0x928   :  { %v1123_v12 = vpack.c.bf16 %v13264_v55, %v13261_v49  ;;  %1769 = vmatprep.subr.bf16.mxu0 %v11944_v15 }
 0x92a   :  { %1258 = vmatmul.mubr.bf16.gmra.mrb[28].mxu0 %v1123_v12 }
 0x92b   :  { %1793 = vmatprep.mubr.bf16.mxu0 %v12574_v1  ;;  %1770 = vmatpush1.bf16.msra.mxu0 %v11942_v17 }
 0x92c   :  { %1771 = vmatprep.subr.bf16.mxu0 %v11947_v18 }
 0x92f   :  { %1772 = vmatpush1.bf16.msra.mxu0 %v11945_v19 }
 0x930   :  { %1773 = vmatprep.subr.bf16.mxu0 %v11950_v59  ;;  %v13357_v59 = vld [vmem:[%s15964_s4] sm:$0xff]  }
 0x933   :  { %1774 = vmatpush1.bf16.msra.mxu0 %v11948_v20 }
 0x934   :  { %1775 = vmatprep.subr.bf16.mxu0 %v11953_v28 }
 0x937   :  { %1776 = vmatpush1.bf16.msra.mxu0 %v11951_v0  ;;  %v13364_v0 = vld [vmem:[%s15964_s4 + $0x8] sm:$0xff]  }
 0x938   :  { %10405 = vmatprep.subr.bf16.mxu0 %v12575_v23 }
 0x9a8   :  { %v1456_v61 = vpop.xlane.xlu0 %1455 }
 0x9a9   :  { %v1463_v14 = vmul.f32 0.0078125, %v1456_v61  ;;  %v13371_v61 = vld [vmem:[%s15964_s4 + $0x10] sm:$0xff]  }
 0x9aa   :  { %v1458_v8 = vpop.xlane.xlu1 %1457 }
 0x9ab   :  { %v1467_v44 = vadd.f32 1e-05, %v1463_v14  ;;  %v1464_v9 = vmul.f32 0.0078125, %v1458_v8  ;;  %v13378_v8 = vld [vmem:[%s15964_s4 + $0x18] sm:$0xff]  }
 0x9ad   :  { %12362 = vrsqrt.f32 %v1467_v44  ;;  %v1468_v31 = vadd.f32 1e-05, %v1464_v9  ;;  %v13385_v9 = vld [vmem:[%s15964_s4 + $0x20] sm:$0xff]  }
 0x9af   :  { %12364 = vrsqrt.f32 %v1468_v31 }
 0x9b7   :  { %v12363_v22 = vpop.eup %12362 }
 0x9b8   :  { %v1475_v24 = vmul.f32 %v12363_v22, %v1447_v54  ;;  %v13392_v22 = vld [vmem:[%s15964_s4 + $0x28] sm:$0xff]  }
 0x9b9   :  { %v12365_v26 = vpop.eup %12364 }
 0x9ba   :  { %v1485_v27 = vmul.f32 %v13309_v33, %v1475_v24  ;;  %v1476_v35 = vmul.f32 %v12365_v26, %v1448_v60  ;;  %v13399_v26 = vld [vmem:[%s15964_s4 + $0x30] sm:$0xff]  }
 0x9bc   :  { %v1486_v53 = vmul.f32 %v13309_v33, %v1476_v35  ;;  %v13319_v38 = vadd.f32 %v13315_v51, %v1485_v27  ;;  %v13406_v35 = vld [vmem:[%s15964_s4 + $0x38] sm:$0xff]  }
 0x9be   :  { %v13322_v39 = vadd.f32 %v13315_v51, %v1486_v53 }
 0x9c0   :  { %v1615_v40 = vpack.c.bf16 %v13322_v39, %v13319_v38 }
 0x9c2   :  { %1794 = vmatmul.mubr.bf16.vlgmr.msra.gmra.mrb[32].mxu0 %v1615_v40 }
 0x9c3   :  { %1803 = vmatprep.mubr.bf16.mxu0 %v12574_v1 }
 0x9fd   :  { %v1259_v41 = vpop.f32.mrb[28].mxu0 }
 0x9fe   :  { %v1260_v42 = vadd.f32 %v1259_v41, %v13222_v36  ;;  %v1261_v43 = vpop.f32.mrb[29].mxu0 }
 0x9ff   :  { %v1262_v47 = vadd.f32 %v1261_v43, %v13225_v29  ;;  %v1263_v48 = vpop.f32.mrb[30].mxu0 }
 0xa00   :  { %v1264_v52 = vadd.f32 %v1263_v48, %v13222_v36  ;;  %v1265_v54 = vpop.f32.mrb[31].mxu0  ;;  %v1272_v60 = vmax.f32 %v1260_v42, 0.0  ;;  %v13338_v36 = vrot.slane %v13334_v10, %v12767_v32 }
 0xa01   :  { %v1266_v56 = vadd.f32 %v1265_v54, %v13225_v29  ;;  %v1273_v3 = vmax.f32 %v1262_v47, 0.0  ;;  %v13342_v29 = vrot.slane %v13334_v10, %v12775_v34 }
 0xa02   :  { %v1274_v2 = vmax.f32 %v1264_v52, 0.0 }
 0xa03   :  { %v1275_v4 = vmax.f32 %v1266_v56, 0.0 }
 0xa04   :  { %v1278_v7 = vpack.c.bf16 %v1274_v2, %v1272_v60  ;;  %v11954_v2 = vld [vmem:[%s15960_s23 + $0xc8] ss:$12 sps:$4 sm:$0xff]  }
 0xa05   :  { %v1279_v16 = vpack.c.bf16 %v1275_v4, %v1273_v3  ;;  %v11955_v3 = vld [vmem:[%s15960_s23 + $0xe0] ss:$12 sps:$4 sm:$0xff]   ;;  %10385 = vmatprep.subr.bf16.mxu1 %v11954_v2 }
 0xa06   :  { %10386 = vmatpush3.bf16.msra.mxu1 %v11954_v2 }
 0xa07   :  { %1422 = vmatprep.mubr.bf16.mxu1 %v1279_v16  ;;  %10387 = vmatprep.subr.bf16.mxu1 %v11955_v3 }
 0xa08   :  { %1423 = vmatmul.mubr.bf16.gmra.mrb[24].mxu1 %v1278_v7 }
 0xa09   :  { %10401 = vmatprep.mubr.bf16.mxu1 %v1615_v40 }
 0xa0a   :  { %10388 = vmatpush3.bf16.msra.mxu1 %v11955_v3 }
 0xa95   :  { %v1795_v45 = vpop.f32.mrb[32].mxu0 }
 0xa96   :  { %v1797_v12 = vpop.f32.mrb[33].mxu0  ;;  %v13345_v13 = vadd.f32 %v1795_v45, %v13338_v36 }
 0xa97   :  { %v1799_v57 = vpop.f32.mrb[34].mxu0  ;;  %v1798_v15 = vadd.f32 %v1797_v12, %v13342_v29 }
 0xa98   :  { %v13348_v6 = vadd.f32 %v1799_v57, %v13338_v36  ;;  %v1801_v11 = vpop.f32.mrb[35].mxu0  ;;  %v11956_v57 = vld [vmem:[%s15960_s23 + $0xf8] ss:$12 sps:$4 sm:$0xff]  }
 0xa99   :  { %v1802_v17 = vadd.f32 %v1801_v11, %v13342_v29  ;;  %10389 = vmatprep.subr.bf16.mxu1 %v11956_v57  ;;  %v11957_v11 = vld [vmem:[%s15960_s23 + $0x110] ss:$12 sps:$4 sm:$0xff]  }
 0xa9a   :  { %v1863_v18 = vpack.c.bf16 %v13348_v6, %v13345_v13  ;;  %10390 = vmatpush3.bf16.msra.mxu1 %v11956_v57 }
 0xa9b   :  { %v1864_v19 = vpack.c.bf16 %v1802_v17, %v1798_v15  ;;  %10391 = vmatprep.subr.bf16.mxu1 %v11957_v11  ;;  %v11958_v15 = vld [vmem:[%s15960_s23 + $0x128] ss:$12 sps:$4 sm:$0xff]   ;;  %v11959_v17 = vld [vmem:[%s15960_s23 + $0x140] ss:$12 sps:$4 sm:$0xff]  }
 0xa9d   :  { %v1869_v20 = vmul.bf16 %v13357_v59, %v1864_v19  ;;  %v1870_v28 = vmul.bf16 %v13364_v0, %v1864_v19  ;;  %v1871_v14 = vmul.bf16 %v13371_v61, %v1864_v19  ;;  %v1872_v44 = vmul.bf16 %v13378_v8, %v1864_v19 }
 0xa9e   :  { %v1873_v31 = vmul.bf16 %v13385_v9, %v1864_v19  ;;  %v1874_v24 = vmul.bf16 %v13392_v22, %v1864_v19  ;;  %v1875_v27 = vmul.bf16 %v13399_v26, %v1864_v19  ;;  %v1876_v53 = vmul.bf16 %v13406_v35, %v1864_v19  ;;  %10392 = vmatpush3.bf16.msra.mxu1 %v11957_v11  ;;  %v11960_v19 = vld [vmem:[%s15960_s23 + $0x158] ss:$12 sps:$4 sm:$0xff]  }
 0xa9f   :  { %10406 = vmatpush3.bf16.xpose.msra.mxu0 %v1869_v20  ;;  %10393 = vmatprep.subr.bf16.mxu1 %v11958_v15  ;;  %v11961_v20 = vld [vmem:[%s15960_s23 + $0x170] ss:$12 sps:$4 sm:$0xff]  }
 0xaa0   :  { %10407 = vmatprep.subr.bf16.mxu0 %v12575_v23 }
 0xaa2   :  { %10394 = vmatpush3.bf16.msra.mxu1 %v11958_v15 }
 0xaa3   :  { %10395 = vmatprep.subr.bf16.mxu1 %v11959_v17 }
 0xaa6   :  { %10396 = vmatpush3.bf16.msra.mxu1 %v11959_v17 }
 0xaa7   :  { %10408 = vmatpush3.bf16.xpose.msra.mxu0 %v1870_v28  ;;  %10397 = vmatprep.subr.bf16.mxu1 %v11960_v19 }
 0xaa8   :  { %10409 = vmatprep.subr.bf16.mxu0 %v12575_v23 }
 0xaaa   :  { %10398 = vmatpush3.bf16.msra.mxu1 %v11960_v19 }
 0xaab   :  { %10399 = vmatprep.subr.bf16.mxu1 %v11961_v20 }
 0xaae   :  { %10400 = vmatpush3.bf16.msra.mxu1 %v11961_v20 }
 0xaaf   :  { %10410 = vmatpush3.bf16.xpose.msra.mxu0 %v1871_v14  ;;  %11520 = vmatprep.subr.bf16.mxu1 %v12877_v21 }
 0xab0   :  { %10411 = vmatprep.subr.bf16.mxu0 %v12575_v23 }
 0xab7   :  { %10412 = vmatpush3.bf16.xpose.msra.mxu0 %v1872_v44 }
 0xab8   :  { %10413 = vmatprep.subr.bf16.mxu0 %v12575_v23 }
 0xabf   :  { %10414 = vmatpush3.bf16.xpose.msra.mxu0 %v1873_v31 }
 0xac0   :  { %10415 = vmatprep.subr.bf16.mxu0 %v12575_v23 }
 0xac7   :  { %10416 = vmatpush3.bf16.xpose.msra.mxu0 %v1874_v24 }
 0xac8   :  { %10417 = vmatprep.subr.bf16.mxu0 %v12575_v23 }
 0xacf   :  { %10418 = vmatpush3.bf16.xpose.msra.mxu0 %v1875_v27 }
 0xad0   :  { %10419 = vmatprep.subr.bf16.mxu0 %v12575_v23 }
 0xad7   :  { %10420 = vmatpush3.bf16.xpose.msra.mxu0 %v1876_v53 }
 0xad8   :  { %10480 = vmatprep.subr.bf16.mxu0 %v12575_v23 }
 0xadb   :  { %v9520_v40 = vpop.f32.mrb[24].mxu1 }
 0xadc   :  { %v9521_v41 = vpop.f32.mrb[25].mxu1 }
 0xadd   :  { %v9522_v42 = vadd.f32 %v9521_v41, %v9520_v40  ;;  %v9523_v43 = vpop.f32.mrb[26].mxu1 }
 0xade   :  { %v9524_v47 = vpop.f32.mrb[27].mxu1 }
 0xadf   :  { %v1425_v48 = vadd.f32 %v9522_v42, %v13240_v5  ;;  %v9525_v52 = vadd.f32 %v9524_v47, %v9523_v43 }
 0xae1   :  { %v1428_v54 = vadd.f32 %v9525_v52, %v13240_v5  ;;  %v1433_v56 = vadd.f32 %v1425_v48, %v13261_v49 }
 0xae3   :  { %1439 = vadd.xlane.f32.xlu0 %v1433_v56  ;;  %v1434_v60 = vadd.f32 %v1428_v54, %v13264_v55 }
 0xae5   :  { %1441 = vadd.xlane.f32.xlu1 %v1434_v60 }
 0xb70   :  { %v1440_v4 = vpop.xlane.xlu0 %1439 }
 0xb71   :  { %v1445_v5 = vmul.f32 0.0078125, %v1440_v4 }
 0xb72   :  { %v1442_v7 = vpop.xlane.xlu1 %1441 }
 0xb73   :  { %v1446_v49 = vmul.f32 0.0078125, %v1442_v7  ;;  %v1449_v16 = vsub.f32 %v1433_v56, %v1445_v5 }
 0xb75   :  { %v1453_v45 = vmul.f32 %v1449_v16, %v1449_v16  ;;  %v1450_v55 = vsub.f32 %v1434_v60, %v1446_v49 }
 0xb77   :  { %1459 = vadd.xlane.f32.xlu0 %v1453_v45  ;;  %v1454_v12 = vmul.f32 %v1450_v55, %v1450_v55 }
 0xb79   :  { %1461 = vadd.xlane.f32.xlu1 %v1454_v12 }
 0xc04   :  { %v1460_v28 = vpop.xlane.xlu0 %1459 }
 0xc05   :  { %v1465_v14 = vmul.f32 0.0078125, %v1460_v28 }
 0xc06   :  { %v1462_v44 = vpop.xlane.xlu1 %1461 }
 0xc07   :  { %v1469_v31 = vadd.f32 1e-05, %v1465_v14  ;;  %v1466_v24 = vmul.f32 0.0078125, %v1462_v44 }
 0xc09   :  { %12366 = vrsqrt.f32 %v1469_v31  ;;  %v1470_v27 = vadd.f32 1e-05, %v1466_v24 }
 0xc0b   :  { %12368 = vrsqrt.f32 %v1470_v27 }
 0xc13   :  { %v12367_v53 = vpop.eup %12366 }
 0xc14   :  { %v1477_v40 = vmul.f32 %v12367_v53, %v1449_v16 }
 0xc15   :  { %v12369_v41 = vpop.eup %12368 }
 0xc16   :  { %v1478_v42 = vmul.f32 %v12369_v41, %v1450_v55  ;;  %v1487_v43 = vmul.f32 %v13309_v33, %v1477_v40 }
 0xc18   :  { %v1488_v47 = vmul.f32 %v13309_v33, %v1478_v42  ;;  %v13442_v48 = vadd.f32 %v13315_v51, %v1487_v43  ;;  %v1629_v33 = vrot.slane %v13334_v10, %v12954_v63 }
 0xc1a   :  { %v13445_v52 = vadd.f32 %v13315_v51, %v1488_v47 }
 0xc1c   :  { %v1616_v54 = vpack.c.bf16 %v13445_v52, %v13442_v48 }
 0xc1e   :  { %1804 = vmatmul.mubr.bf16.gmra.mrb[36].mxu0 %v1616_v54  ;;  %10402 = vmatmul.mubr.bf16.vlgmr.msra.gmra.mrb[28].mxu1 %v1616_v54 }
 0xc1f   :  { %10421 = vmatprep.mubr.msk.bf16.mxu0 %vm12576_vm1, %v12575_v23  ;;  %11522 = vmatpush3.bf16.msra.mxu1 %v12877_v21 }
 0xc20   :  { %11524 = vmatprep.subr.bf16.mxu1 %v12886_v25 }
 0xc23   :  { %11526 = vmatpush3.bf16.msra.mxu1 %v12886_v25 }
 0xc24   :  { %11528 = vmatprep.subr.bf16.mxu1 %v12897_v30 }
 0xc26   :  { %10422 = vmatmul.mubr.bf16.vlgmr.msra.gmra.mrb[40].mxu0 %v1863_v18 }
 0xc27   :  { %11530 = vmatpush3.bf16.msra.mxu1 %v12897_v30  ;;  %10496 = vmatprep.mubr.msk.bf16.mxu0 %vm12576_vm1, %v12575_v23 }
 0xc28   :  { %11532 = vmatprep.subr.bf16.mxu1 %v12907_v37 }
 0xc2b   :  { %11534 = vmatpush3.bf16.msra.mxu1 %v12907_v37 }
 0xc2c   :  { %11536 = vmatprep.subr.bf16.mxu1 %v12918_v46 }
 0xc2f   :  { %11538 = vmatpush3.bf16.msra.mxu1 %v12918_v46 }
 0xc30   :  { %11540 = vmatprep.subr.bf16.mxu1 %v12928_v50 }
 0xc33   :  { %11542 = vmatpush3.bf16.msra.mxu1 %v12928_v50 }
 0xc34   :  { %11544 = vmatprep.subr.bf16.mxu1 %v12941_v58 }
 0xc37   :  { %11546 = vmatpush3.bf16.msra.mxu1 %v12941_v58 }
 0xc38   :  { %11548 = vmatprep.subr.bf16.mxu1 %v12946_v62 }
 0xc3b   :  { %11550 = vmatpush3.bf16.msra.mxu1 %v12946_v62 }
 0xc3c   :  { %10460 = vmatprep.subr.bf16.mxu1 %v12575_v23 }
 0xcf1   :  { %v1805_v51 = vpop.f32.mrb[36].mxu0  ;;  %v10403_v13 = vpop.f32.mrb[28].mxu1 }
 0xcf2   :  { %v1857_v6 = vadd.f32 %v10403_v13, %v1629_v33  ;;  %v1807_v18 = vpop.f32.mrb[37].mxu0  ;;  %v1848_v56 = vpop.f32.mrb[29].mxu1  ;;  %v13475_v3 = vadd.f32 %v1805_v51, %v13338_v36 }
 0xcf3   :  { %v1809_v60 = vpop.f32.mrb[38].mxu0  ;;  %v10404_v2 = vpop.f32.mrb[30].mxu1  ;;  %v1808_v16 = vadd.f32 %v1807_v18, %v13342_v29  ;;  %v1849_v45 = vadd.f32 %v1848_v56, %v1629_v33  ;;  %v11962_v18 = vld [vmem:[%s15935_s6 + $0x40] sm:$0xff]   ;;  %v11963_v56 = vld [vmem:[%s15935_s6 + $0x48] sm:$0xff]  }
 0xcf4   :  { %v13478_v4 = vadd.f32 %v1809_v60, %v13338_v36  ;;  %v1860_v5 = vadd.f32 %v10404_v2, %v1629_v33  ;;  %v1811_v7 = vpop.f32.mrb[39].mxu0  ;;  %v1851_v49 = vpop.f32.mrb[31].mxu1  ;;  %10481 = vmatpush3.bf16.msra.mxu0 %v11962_v18  ;;  %v11964_v60 = vld [vmem:[%s15935_s6 + $0x50] sm:$0xff]   ;;  %v11965_v2 = vld [vmem:[%s15935_s6 + $0x58] sm:$0xff]  }
 0xcf5   :  { %v1812_v10 = vadd.f32 %v1811_v7, %v13342_v29  ;;  %v1852_v55 = vadd.f32 %v1851_v49, %v1629_v33  ;;  %10482 = vmatprep.subr.bf16.mxu0 %v12575_v23  ;;  %v11967_v7 = vld [vmem:[%s15935_s6 + $0x68] sm:$0xff]   ;;  %v11968_v49 = vld [vmem:[%s15935_s6 + $0x70] sm:$0xff]  }
 0xcf6   :  { %v1866_v12 = vpack.c.bf16 %v13478_v4, %v13475_v3  ;;  %v13484_v57 = vpack.c.bf16 %v1860_v5, %v1857_v6  ;;  %v11966_v5 = vld [vmem:[%s15935_s6 + $0x60] sm:$0xff]   ;;  %v11969_v3 = vld [vmem:[%s15935_s6 + $0x78] sm:$0xff]  }
 0xcf7   :  { %v13486_v11 = vpack.c.bf16 %v1812_v10, %v1808_v16  ;;  %v1865_v15 = vpack.c.bf16 %v1852_v55, %v1849_v45 }
 0xcf8   :  { %10483 = vmatpush3.bf16.msra.mxu0 %v11963_v56 }
 0xcf9   :  { %v1919_v17 = vpop.f32.mrb[40].mxu0  ;;  %v1877_v42 = vmul.bf16 %v13357_v59, %v1865_v15  ;;  %v1878_v43 = vmul.bf16 %v13364_v0, %v1865_v15  ;;  %v1879_v47 = vmul.bf16 %v13371_v61, %v1865_v15  ;;  %v1880_v54 = vmul.bf16 %v13378_v8, %v1865_v15  ;;  %10484 = vmatprep.subr.bf16.mxu0 %v12575_v23 }
 0xcfa   :  { %v1926_v36 = vmul.f32 0.25, %v1919_v17  ;;  %v10423_v19 = vpop.f32.mrb[41].mxu0  ;;  %v1881_v33 = vmul.bf16 %v13385_v9, %v1865_v15  ;;  %v1882_v51 = vmul.bf16 %v13392_v22, %v1865_v15  ;;  %v1883_v13 = vmul.bf16 %v13399_v26, %v1865_v15 }
 0xcfb   :  { %v1922_v20 = vpop.f32.mrb[42].mxu0  ;;  %v1884_v6 = vmul.bf16 %v13406_v35, %v1865_v15 }
 0xcfc   :  { %v1927_v28 = vmul.f32 0.25, %v1922_v20  ;;  %1928 = vmax.xlane.f32.xlu0 %v1926_v36  ;;  %v10424_v14 = vpop.f32.mrb[43].mxu0  ;;  %10485 = vmatpush3.bf16.msra.mxu0 %v11964_v60 }
 0xcfd   :  { %10486 = vmatprep.subr.bf16.mxu0 %v12575_v23  ;;  %v2154_v14 = vmul.bf16 %v13364_v0, %v13486_v11 }
 0xcfe   :  { %1930 = vmax.xlane.f32.xlu1 %v1927_v28 }
 0xd00   :  { %10487 = vmatpush3.bf16.msra.mxu0 %v11965_v2 }
 0xd01   :  { %10488 = vmatprep.subr.bf16.mxu0 %v12575_v23 }
 0xd04   :  { %10489 = vmatpush3.bf16.msra.mxu0 %v11966_v5 }
 0xd05   :  { %10490 = vmatprep.subr.bf16.mxu0 %v12575_v23 }
 0xd08   :  { %10491 = vmatpush3.bf16.msra.mxu0 %v11967_v7 }
 0xd09   :  { %10492 = vmatprep.subr.bf16.mxu0 %v12575_v23 }
 0xd0c   :  { %10493 = vmatpush3.bf16.msra.mxu0 %v11968_v49 }
 0xd0d   :  { %10494 = vmatprep.subr.bf16.mxu0 %v12575_v23 }
 0xd10   :  { %10495 = vmatpush3.bf16.msra.mxu0 %v11969_v3 }
 0xd11   :  { %11552 = vmatprep.subr.bf16.mxu0 %v12877_v21 }
 0xd89   :  { %v1929_v44 = vpop.xlane.xlu0 %1928 }
 0xd8a   :  { %v1932_v31 = vsub.f32 %v1926_v36, %v1929_v44  ;;  %v2155_v44 = vmul.bf16 %v13371_v61, %v13486_v11 }
 0xd8b   :  { %v1931_v29 = vpop.xlane.xlu1 %1930 }
 0xd8c   :  { %v1934_v24 = vmul.f32 1.442695, %v1932_v31  ;;  %v1933_v27 = vsub.f32 %v1927_v28, %v1931_v29  ;;  %v2153_v28 = vmul.bf16 %v13357_v59, %v13486_v11  ;;  %v2156_v31 = vmul.bf16 %v13378_v8, %v13486_v11 }
 0xd8d   :  { %v2157_v29 = vmul.bf16 %v13385_v9, %v13486_v11 }
 0xd8e   :  { %12370 = vpow2.f32 %v1934_v24  ;;  %v1936_v53 = vmul.f32 1.442695, %v1933_v27  ;;  %v2158_v24 = vmul.bf16 %v13392_v22, %v13486_v11  ;;  %v2159_v27 = vmul.bf16 %v13399_v26, %v13486_v11 }
 0xd90   :  { %12372 = vpow2.f32 %v1936_v53  ;;  %v2160_v53 = vmul.bf16 %v13406_v35, %v13486_v11 }
 0xd98   :  { %v12371_v40 = vpop.eup %12370 }
 0xd99   :  { %10457 = vmatprep.mubr.f32.mxu1 %v12371_v40 }
 0xd9a   :  { %v12373_v41 = vpop.eup %12372 }
 0xd9b   :  { %10458 = vmatmul.mubr.f32.vlgmr.msra.gmra.mrb[6].mxu1 %v12373_v41 }
 0xd9c   :  { %10461 = vmatpush3.bf16.msra.mxu1 %v1877_v42  ;;  %10476 = vmatprep.mubr.msk.bf16.mxu1 %vm12576_vm1, %v12575_v23 }
 0xd9d   :  { %10462 = vmatprep.subr.bf16.mxu1 %v12575_v23 }
 0xda0   :  { %10463 = vmatpush3.bf16.msra.mxu1 %v1878_v43 }
 0xda1   :  { %10464 = vmatprep.subr.bf16.mxu1 %v12575_v23 }
 0xda4   :  { %10465 = vmatpush3.bf16.msra.mxu1 %v1879_v47 }
 0xda5   :  { %10466 = vmatprep.subr.bf16.mxu1 %v12575_v23 }
 0xda8   :  { %10467 = vmatpush3.bf16.msra.mxu1 %v1880_v54 }
 0xda9   :  { %10468 = vmatprep.subr.bf16.mxu1 %v12575_v23 }
 0xdac   :  { %10469 = vmatpush3.bf16.msra.mxu1 %v1881_v33 }
 0xdad   :  { %10470 = vmatprep.subr.bf16.mxu1 %v12575_v23 }
 0xdb0   :  { %10471 = vmatpush3.bf16.msra.mxu1 %v1882_v51 }
 0xdb1   :  { %10472 = vmatprep.subr.bf16.mxu1 %v12575_v23 }
 0xdb4   :  { %10473 = vmatpush3.bf16.msra.mxu1 %v1883_v13 }
 0xdb5   :  { %10474 = vmatprep.subr.bf16.mxu1 %v12575_v23 }
 0xdb8   :  { %10475 = vmatpush3.bf16.msra.mxu1 %v1884_v6 }
 0xdb9   :  { %10500 = vmatprep.subr.bf16.mxu1 %v12575_v23 }
 0xe6e   :  { %v10459_v16 = vpop.f32.mrb[6].mxu1 }
 0xe6f   :  { %v2014_v45 = vmax.f32 %v10459_v16, 1e-30  ;;  %v2004_v10 = vpop.f32.mrb[7].mxu1 }
 0xe70   :  { %v2013_v55 = vmax.f32 %v2004_v10, 1e-30 }
 0xe71   :  { %12374 = vrcp.f32 %v2014_v45 }
 0xe72   :  { %12376 = vrcp.f32 %v2013_v55 }
 0xe7b   :  { %v12375_v15 = vpop.eup %12374 }
 0xe7c   :  { %v12377_v17 = vpop.eup %12376  ;;  %v2018_v36 = vmul.f32 %v12375_v15, %v12373_v41 }
 0xe7d   :  { %v2017_v19 = vmul.f32 %v12377_v17, %v12371_v40 }
 0xe7f   :  { %v2019_v20 = vpack.c.bf16 %v2018_v36, %v2017_v19 }
 0xe81   :  { %10477 = vmatmul.mubr.bf16.vlgmr.msra.gmra.mrb[32].mxu1 %v2019_v20  ;;  %v2161_v20 = vmul.bf16 %v13357_v59, %v13484_v57  ;;  %v2164_v59 = vmul.bf16 %v13378_v8, %v13484_v57  ;;  %v2168_v8 = vmul.bf16 %v13406_v35, %v13484_v57 }
 0xe82   :  { %10501 = vmatpush3.bf16.xpose.msra.mxu1 %v2153_v28  ;;  %10516 = vmatprep.mubr.msk.bf16.mxu1 %vm12576_vm1, %v12575_v23  ;;  %v2165_v28 = vmul.bf16 %v13385_v9, %v13484_v57  ;;  %v11972_v9 = vld [vmem:[%s15937_s8 + $0x84] ss:$8 sps:$4 sm:$0xff]  }
 0xe83   :  { %10502 = vmatprep.subr.bf16.mxu1 %v12575_v23 }
 0xe8a   :  { %10503 = vmatpush3.bf16.xpose.msra.mxu1 %v2154_v14 }
 0xe8b   :  { %10504 = vmatprep.subr.bf16.mxu1 %v12575_v23 }
 0xe92   :  { %10505 = vmatpush3.bf16.xpose.msra.mxu1 %v2155_v44 }
 0xe93   :  { %10506 = vmatprep.subr.bf16.mxu1 %v12575_v23 }
 0xe9a   :  { %10507 = vmatpush3.bf16.xpose.msra.mxu1 %v2156_v31 }
 0xe9b   :  { %10508 = vmatprep.subr.bf16.mxu1 %v12575_v23 }
 0xea2   :  { %10509 = vmatpush3.bf16.xpose.msra.mxu1 %v2157_v29 }
 0xea3   :  { %10510 = vmatprep.subr.bf16.mxu1 %v12575_v23 }
 0xeaa   :  { %10511 = vmatpush3.bf16.xpose.msra.mxu1 %v2158_v24 }
 0xeab   :  { %10512 = vmatprep.subr.bf16.mxu1 %v12575_v23 }
 0xeb2   :  { %10513 = vmatpush3.bf16.xpose.msra.mxu1 %v2159_v27 }
 0xeb3   :  { %10514 = vmatprep.subr.bf16.mxu1 %v12575_v23 }
 0xeba   :  { %10515 = vmatpush3.bf16.xpose.msra.mxu1 %v2160_v53 }
 0xebb   :  { %10575 = vmatprep.subr.bf16.mxu1 %v12575_v23 }
 0xec1   :  { %10517 = vmatmul.mubr.bf16.vlgmr.msra.gmra.mrb[36].mxu1 %v1866_v12 }
 0xec2   :  { %10576 = vmatpush3.bf16.msra.mxu1 %v11962_v18  ;;  %10591 = vmatprep.mubr.msk.bf16.mxu1 %vm12576_vm1, %v12575_v23 }
 0xec3   :  { %10577 = vmatprep.subr.bf16.mxu1 %v12575_v23 }
 0xec6   :  { %10578 = vmatpush3.bf16.msra.mxu1 %v11963_v56 }
 0xec7   :  { %10579 = vmatprep.subr.bf16.mxu1 %v12575_v23 }
 0xeca   :  { %10580 = vmatpush3.bf16.msra.mxu1 %v11964_v60 }
 0xecb   :  { %10581 = vmatprep.subr.bf16.mxu1 %v12575_v23 }
 0xece   :  { %10582 = vmatpush3.bf16.msra.mxu1 %v11965_v2 }
 0xecf   :  { %10583 = vmatprep.subr.bf16.mxu1 %v12575_v23 }
 0xed2   :  { %10584 = vmatpush3.bf16.msra.mxu1 %v11966_v5 }
 0xed3   :  { %10585 = vmatprep.subr.bf16.mxu1 %v12575_v23 }
 0xed6   :  { %10586 = vmatpush3.bf16.msra.mxu1 %v11967_v7  ;;  %v13595_v7 = vld [vmem:[%s15936_s7 + $0x1] ss:$0 sm:$0xff] }
 0xed7   :  { %10587 = vmatprep.subr.bf16.mxu1 %v12575_v23 }
 0xeda   :  { %10588 = vmatpush3.bf16.msra.mxu1 %v11968_v49 }
 0xedb   :  { %10589 = vmatprep.subr.bf16.mxu1 %v12575_v23 }
 0xede   :  { %10590 = vmatpush3.bf16.msra.mxu1 %v11969_v3 }
 0xf54   :  { %v2054_v4 = vpop.f32.mrb[32].mxu1 }
 0xf55   :  { %v10478_v12 = vpop.f32.mrb[33].mxu1 }
 0xf56   :  { %v2057_v11 = vpop.f32.mrb[34].mxu1 }
 0xf57   :  { %v2061_v40 = vpack.c.bf16 %v2057_v11, %v2054_v4  ;;  %v10479_v41 = vpop.f32.mrb[35].mxu1 }
 0xf58   :  { %v11970_v41 = vld [vmem:[%s15937_s8 + $0x80] ss:$8 sps:$4 sm:$0xff]  }
 0xf59   :  { %10497 = vmatmul.mubr.bf16.vlgmr.msra.gmra.mrb[44].mxu0 %v2061_v40 }
 0xf5a   :  { %11554 = vmatpush3.bf16.msra.mxu0 %v12877_v21 }
 0xf5b   :  { %11556 = vmatprep.subr.bf16.mxu0 %v12886_v25 }
 0xf5e   :  { %11558 = vmatpush3.bf16.msra.mxu0 %v12886_v25 }
 0xf5f   :  { %11560 = vmatprep.subr.bf16.mxu0 %v12897_v30 }
 0xf62   :  { %11562 = vmatpush3.bf16.msra.mxu0 %v12897_v30 }
 0xf63   :  { %11564 = vmatprep.subr.bf16.mxu0 %v12907_v37 }
 0xf66   :  { %11566 = vmatpush3.bf16.msra.mxu0 %v12907_v37 }
 0xf67   :  { %11568 = vmatprep.subr.bf16.mxu0 %v12918_v46 }
 0xf6a   :  { %11570 = vmatpush3.bf16.msra.mxu0 %v12918_v46 }
 0xf6b   :  { %11572 = vmatprep.subr.bf16.mxu0 %v12928_v50 }
 0xf6e   :  { %11574 = vmatpush3.bf16.msra.mxu0 %v12928_v50 }
 0xf6f   :  { %11576 = vmatprep.subr.bf16.mxu0 %v12941_v58 }
 0xf72   :  { %11578 = vmatpush3.bf16.msra.mxu0 %v12941_v58 }
 0xf73   :  { %11580 = vmatprep.subr.bf16.mxu0 %v12946_v62 }
 0xf76   :  { %11582 = vmatpush3.bf16.msra.mxu0 %v12946_v62 }
 0xf77   :  { %10555 = vmatprep.subr.bf16.mxu0 %v12575_v23 }
 0xf94   :  { %v2203_v42 = vpop.f32.mrb[36].mxu1 }
 0xf95   :  { %v2210_v43 = vmul.f32 0.25, %v2203_v42  ;;  %v10518_v47 = vpop.f32.mrb[37].mxu1 }
 0xf96   :  { %v2206_v54 = vpop.f32.mrb[38].mxu1  ;;  %v11973_v47 = vld [vmem:[%s15937_s8 + $0x90] ss:$8 sps:$4 sm:$0xff]  }
 0xf97   :  { %v2211_v33 = vmul.f32 0.25, %v2206_v54  ;;  %2212 = vmax.xlane.f32.xlu0 %v2210_v43  ;;  %v10519_v51 = vpop.f32.mrb[39].mxu1  ;;  %v11978_v54 = vld [vmem:[%s15937_s8 + $0xa4] ss:$8 sps:$4 sm:$0xff]  }
 0xf98   :  { %v11981_v51 = vld [vmem:[%s15937_s8 + $0xb4] ss:$8 sps:$4 sm:$0xff]  }
 0xf99   :  { %2214 = vmax.xlane.f32.xlu1 %v2211_v33 }
0x1024   :  { %v2213_v13 = vpop.xlane.xlu0 %2212 }
0x1025   :  { %v2216_v6 = vsub.f32 %v2210_v43, %v2213_v13  ;;  %v11975_v43 = vld [vmem:[%s15937_s8 + $0x94] ss:$8 sps:$4 sm:$0xff]   ;;  %v11979_v13 = vld [vmem:[%s15937_s8 + $0xb0] ss:$8 sps:$4 sm:$0xff]  }
0x1026   :  { %v2215_v18 = vpop.xlane.xlu1 %2214 }
0x1027   :  { %v2218_v56 = vmul.f32 1.442695, %v2216_v6  ;;  %v2217_v60 = vsub.f32 %v2211_v33, %v2215_v18  ;;  %v11976_v33 = vld [vmem:[%s15937_s8 + $0xa0] ss:$8 sps:$4 sm:$0xff]   ;;  %v11984_v6 = vld [vmem:[%s15937_s8 + $0xc4] ss:$8 sps:$4 sm:$0xff]  }
0x1028   :  { %v11982_v18 = vld [vmem:[%s15937_s8 + $0xc0] ss:$8 sps:$4 sm:$0xff]  }
0x1029   :  { %12378 = vpow2.f32 %v2218_v56  ;;  %v2220_v2 = vmul.f32 1.442695, %v2217_v60  ;;  %v11987_v56 = vld [vmem:[%s15937_s8 + $0xd4] ss:$8 sps:$4 sm:$0xff]   ;;  %v11985_v60 = vld [vmem:[%s15937_s8 + $0xd0] ss:$8 sps:$4 sm:$0xff]  }
0x102b   :  { %12380 = vpow2.f32 %v2220_v2  ;;  %v11990_v2 = vld [vmem:[%s15937_s8 + $0xe4] ss:$8 sps:$4 sm:$0xff]  }
0x102c   :  { %v2144_v5 = vpop.f32.mrb[44].mxu0 }
0x102d   :  { %v2393_v49 = vadd.f32 %v2144_v5, %v13319_v38  ;;  %v10498_v16 = vpop.f32.mrb[45].mxu0  ;;  %v2162_v38 = vmul.bf16 %v13364_v0, %v13484_v57  ;;  %v2166_v0 = vmul.bf16 %v13392_v22, %v13484_v57  ;;  %v11988_v5 = vld [vmem:[%s15937_s8 + $0xe0] ss:$8 sps:$4 sm:$0xff]  }
0x102e   :  { %v2147_v45 = vpop.f32.mrb[46].mxu0  ;;  %v11991_v16 = vld [vmem:[%s15937_s8 + $0xf0] ss:$8 sps:$4 sm:$0xff]  }
0x102f   :  { %v2394_v10 = vadd.f32 %v2147_v45, %v13322_v39  ;;  %v10499_v55 = vpop.f32.mrb[47].mxu0  ;;  %v2403_v15 = vadd.f32 %v13595_v7, %v2393_v49  ;;  %v2163_v39 = vmul.bf16 %v13371_v61, %v13484_v57  ;;  %v2167_v61 = vmul.bf16 %v13399_v26, %v13484_v57  ;;  %v11993_v49 = vld [vmem:[%s15937_s8 + $0xf4] ss:$8 sps:$4 sm:$0xff]  }
0x1031   :  { %2407 = vadd.xlane.f32.xlu0 %v2403_v15  ;;  %v2404_v17 = vadd.f32 %v13595_v7, %v2394_v10 }
0x1033   :  { %v12379_v36 = vpop.eup %12378  ;;  %2409 = vadd.xlane.f32.xlu1 %v2404_v17 }
0x1034   :  { %10552 = vmatprep.mubr.f32.mxu0 %v12379_v36 }
0x1035   :  { %v12381_v19 = vpop.eup %12380 }
0x1036   :  { %10553 = vmatmul.mubr.f32.vlgmr.msra.gmra.mrb[18].mxu0 %v12381_v19 }
0x1037   :  { %10556 = vmatpush3.bf16.msra.mxu0 %v2161_v20  ;;  %10571 = vmatprep.mubr.msk.bf16.mxu0 %vm12576_vm1, %v12575_v23  ;;  %v13678_v20 = vld [vmem:[%s15938_s12 + $0x1] ss:$0 sm:$0xff] }
0x1038   :  { %10557 = vmatprep.subr.bf16.mxu0 %v12575_v23 }
0x103b   :  { %10558 = vmatpush3.bf16.msra.mxu0 %v2162_v38 }
0x103c   :  { %10559 = vmatprep.subr.bf16.mxu0 %v12575_v23 }
0x103f   :  { %10560 = vmatpush3.bf16.msra.mxu0 %v2163_v39 }
0x1040   :  { %10561 = vmatprep.subr.bf16.mxu0 %v12575_v23 }
0x1043   :  { %10562 = vmatpush3.bf16.msra.mxu0 %v2164_v59 }
0x1044   :  { %10563 = vmatprep.subr.bf16.mxu0 %v12575_v23 }
0x1047   :  { %10564 = vmatpush3.bf16.msra.mxu0 %v2165_v28 }
0x1048   :  { %10565 = vmatprep.subr.bf16.mxu0 %v12575_v23 }
0x104b   :  { %10566 = vmatpush3.bf16.msra.mxu0 %v2166_v0  ;;  %v13684_v0 = vld [vmem:[%s15939_s13 + $0x1] ss:$0 sm:$0xff] }
0x104c   :  { %10567 = vmatprep.subr.bf16.mxu0 %v12575_v23 }
0x104f   :  { %10568 = vmatpush3.bf16.msra.mxu0 %v2167_v61 }
0x1050   :  { %10569 = vmatprep.subr.bf16.mxu0 %v12575_v23 }
0x1053   :  { %10570 = vmatpush3.bf16.msra.mxu0 %v2168_v8 }
0x1054   :  { %2564 = vmatprep.subr.bf16.mxu0 %v11972_v9 }
0x10be   :  { %v2408_v14 = vpop.xlane.xlu0 %2407 }
0x10bf   :  { %v2415_v22 = vmul.f32 0.0078125, %v2408_v14 }
0x10c0   :  { %v2410_v44 = vpop.xlane.xlu1 %2409 }
0x10c1   :  { %v2419_v31 = vsub.f32 %v2403_v15, %v2415_v22  ;;  %v2416_v29 = vmul.f32 0.0078125, %v2410_v44  ;;  %v11994_v22 = vld [vmem:[%s15940_s10 + $0xc0] sm:$0xff]  }
0x10c2   :  { %9626 = vmatprep.subr.bf16.mxu1 %v11994_v22 }
0x10c3   :  { %v2420_v24 = vsub.f32 %v2404_v17, %v2416_v29  ;;  %v2423_v27 = vmul.f32 %v2419_v31, %v2419_v31 }
0x10c5   :  { %2427 = vadd.xlane.f32.xlu0 %v2423_v27  ;;  %v2424_v26 = vmul.f32 %v2420_v24, %v2420_v24 }
0x10c7   :  { %2429 = vadd.xlane.f32.xlu1 %v2424_v26 }
0x1109   :  { %v10554_v53 = vpop.f32.mrb[18].mxu0 }
0x110a   :  { %v2298_v3 = vmax.f32 %v10554_v53, 1e-30  ;;  %v2288_v4 = vpop.f32.mrb[19].mxu0  ;;  %v11996_v53 = vld [vmem:[%s15940_s10 + $0xc8] sm:$0xff]  }
0x110b   :  { %v2297_v35 = vmax.f32 %v2288_v4, 1e-30  ;;  %v11998_v4 = vld [vmem:[%s15940_s10 + $0xd0] sm:$0xff]  }
0x110c   :  { %12382 = vrcp.f32 %v2298_v3  ;;  %v11997_v3 = vld [vmem:[%s15940_s10 + $0x88] sm:$0xff]  }
0x110d   :  { %12384 = vrcp.f32 %v2297_v35  ;;  %v11999_v35 = vld [vmem:[%s15940_s10 + $0x90] sm:$0xff]  }
0x1116   :  { %v12383_v57 = vpop.eup %12382 }
0x1117   :  { %v12385_v12 = vpop.eup %12384  ;;  %v2302_v11 = vmul.f32 %v12383_v57, %v12381_v19  ;;  %v12000_v57 = vld [vmem:[%s15940_s10 + $0xd8] sm:$0xff]  }
0x1118   :  { %v2301_v40 = vmul.f32 %v12385_v12, %v12379_v36  ;;  %v12001_v12 = vld [vmem:[%s15940_s10 + $0x98] sm:$0xff]  }
0x111a   :  { %v2303_v42 = vpack.c.bf16 %v2302_v11, %v2301_v40  ;;  %v12002_v11 = vld [vmem:[%s15940_s10 + $0xe0] sm:$0xff]  }
0x111b   :  { %v12003_v40 = vld [vmem:[%s15940_s10 + $0xa0] sm:$0xff]  }
0x111c   :  { %10572 = vmatmul.mubr.bf16.vlgmr.msra.gmra.mrb[48].mxu0 %v2303_v42  ;;  %v12005_v42 = vld [vmem:[%s15940_s10 + $0xa8] sm:$0xff]  }
0x111d   :  { %2565 = vmatpush1.bf16.msra.mxu0 %v11970_v41  ;;  %2596 = vmatprep.mubr.bf16.mxu0 %v12574_v1  ;;  %v12004_v41 = vld [vmem:[%s15940_s10 + $0xe8] sm:$0xff]  }
0x111e   :  { %2566 = vmatprep.subr.bf16.mxu0 %v11975_v43  ;;  %v12006_v43 = vld [vmem:[%s15940_s10 + $0xf0] sm:$0xff]  }
0x1121   :  { %2567 = vmatpush1.bf16.msra.mxu0 %v11973_v47  ;;  %v12007_v47 = vld [vmem:[%s15940_s10 + $0xb0] sm:$0xff]  }
0x1122   :  { %2568 = vmatprep.subr.bf16.mxu0 %v11978_v54  ;;  %v12008_v54 = vld [vmem:[%s15940_s10 + $0xf8] sm:$0xff]  }
0x1125   :  { %2569 = vmatpush1.bf16.msra.mxu0 %v11976_v33  ;;  %v12009_v33 = vld [vmem:[%s15940_s10 + $0xb8] sm:$0xff]  }
0x1126   :  { %2570 = vmatprep.subr.bf16.mxu0 %v11981_v51  ;;  %v8583_v51 = vld [vmem:[%s15941_s9 + $0x2] sm:$0x3] }
0x1129   :  { %2571 = vmatpush1.bf16.msra.mxu0 %v11979_v13  ;;  %v13748_v13 = vrot.slane %v8583_v51, %v12767_v32 }
0x112a   :  { %2572 = vmatprep.subr.bf16.mxu0 %v11984_v6  ;;  %v13751_v6 = vrot.slane %v8583_v51, %v12775_v34 }
0x112d   :  { %2573 = vmatpush1.bf16.msra.mxu0 %v11982_v18 }
0x112e   :  { %2574 = vmatprep.subr.bf16.mxu0 %v11987_v56 }
0x1131   :  { %2575 = vmatpush1.bf16.msra.mxu0 %v11985_v60 }
0x1132   :  { %2576 = vmatprep.subr.bf16.mxu0 %v11990_v2 }
0x1135   :  { %2577 = vmatpush1.bf16.msra.mxu0 %v11988_v5 }
0x1136   :  { %2578 = vmatprep.subr.bf16.mxu0 %v11993_v49 }
0x1139   :  { %2579 = vmatpush1.bf16.msra.mxu0 %v11991_v16 }
0x1152   :  { %v2428_v45 = vpop.xlane.xlu0 %2427 }
0x1153   :  { %v2435_v10 = vmul.f32 0.0078125, %v2428_v45 }
0x1154   :  { %v2430_v55 = vpop.xlane.xlu1 %2429 }
0x1155   :  { %v2439_v15 = vadd.f32 1e-05, %v2435_v10  ;;  %v2436_v17 = vmul.f32 0.0078125, %v2430_v55 }
0x1157   :  { %12386 = vrsqrt.f32 %v2439_v15  ;;  %v2440_v36 = vadd.f32 1e-05, %v2436_v17 }
0x1159   :  { %12388 = vrsqrt.f32 %v2440_v36 }
0x1161   :  { %v12387_v19 = vpop.eup %12386 }
0x1162   :  { %v2447_v38 = vmul.f32 %v12387_v19, %v2419_v31 }
0x1163   :  { %v12389_v39 = vpop.eup %12388 }
0x1164   :  { %v2448_v59 = vmul.f32 %v12389_v39, %v2420_v24  ;;  %v2457_v28 = vmul.f32 %v13678_v20, %v2447_v38  ;;  %v11995_v24 = vld [vmem:[%s15940_s10 + $0x80] sm:$0xff]  }
0x1166   :  { %v2458_v61 = vmul.f32 %v13678_v20, %v2448_v59  ;;  %v13688_v8 = vadd.f32 %v13684_v0, %v2457_v28 }
0x1168   :  { %v13691_v9 = vadd.f32 %v13684_v0, %v2458_v61 }
0x116a   :  { %v2471_v14 = vpack.c.bf16 %v13691_v9, %v13688_v8 }
0x116c   :  { %2597 = vmatmul.mubr.bf16.vlgmr.msra.gmra.mrb[52].mxu0 %v2471_v14 }
0x116d   :  { %2606 = vmatprep.mubr.bf16.mxu0 %v12574_v1 }
0x11ef   :  { %v2338_v44 = vpop.f32.mrb[48].mxu0 }
0x11f0   :  { %v10573_v31 = vpop.f32.mrb[49].mxu0 }
0x11f1   :  { %v2341_v29 = vpop.f32.mrb[50].mxu0 }
0x11f2   :  { %v2345_v27 = vpack.c.bf16 %v2341_v29, %v2338_v44  ;;  %v10574_v26 = vpop.f32.mrb[51].mxu0 }
0x11f4   :  { %10592 = vmatmul.mubr.bf16.vlgmr.msra.gmra.mrb[40].mxu1 %v2345_v27 }
0x11f5   :  { %9627 = vmatpush3.bf16.msra.mxu1 %v11995_v24 }
0x11f6   :  { %9628 = vmatprep.subr.bf16.mxu1 %v11996_v53 }
0x11f9   :  { %9629 = vmatpush3.bf16.msra.mxu1 %v11997_v3 }
0x11fa   :  { %9630 = vmatprep.subr.bf16.mxu1 %v11998_v4 }
0x11fd   :  { %9631 = vmatpush3.bf16.msra.mxu1 %v11999_v35 }
0x11fe   :  { %9632 = vmatprep.subr.bf16.mxu1 %v12000_v57 }
0x1201   :  { %9633 = vmatpush3.bf16.msra.mxu1 %v12001_v12 }
0x1202   :  { %9634 = vmatprep.subr.bf16.mxu1 %v12002_v11 }
0x1205   :  { %9635 = vmatpush3.bf16.msra.mxu1 %v12003_v40 }
0x1206   :  { %9636 = vmatprep.subr.bf16.mxu1 %v12004_v41 }
0x1209   :  { %9637 = vmatpush3.bf16.msra.mxu1 %v12005_v42 }
0x120a   :  { %9638 = vmatprep.subr.bf16.mxu1 %v12006_v43 }
0x120d   :  { %9639 = vmatpush3.bf16.msra.mxu1 %v12007_v47  ;;  %v12010_v47 = vld [vmem:[%s15960_s23 + $0x180] ss:$12 sps:$4 sm:$0xff]  }
0x120e   :  { %9640 = vmatprep.subr.bf16.mxu1 %v12008_v54  ;;  %v12012_v54 = vld [vmem:[%s15960_s23 + $0x184] ss:$12 sps:$4 sm:$0xff]  }
0x120f   :  { %3110 = vmatprep.subr.bf16.mxu0 %v12012_v54 }
0x1210   :  { %3111 = vmatpush1.bf16.msra.mxu0 %v12010_v47 }
0x1211   :  { %9641 = vmatpush3.bf16.msra.mxu1 %v12009_v33  ;;  %v12015_v33 = vld [vmem:[%s15960_s23 + $0x19c] ss:$12 sps:$4 sm:$0xff]  }
0x1212   :  { %3112 = vmatprep.subr.bf16.mxu0 %v12015_v33 }
0x123f   :  { %v2598_v18 = vpop.f32.mrb[52].mxu0 }
0x1240   :  { %v2599_v56 = vadd.f32 %v2598_v18, %v13748_v13  ;;  %v2600_v60 = vpop.f32.mrb[53].mxu0 }
0x1241   :  { %v2601_v2 = vadd.f32 %v2600_v60, %v13751_v6  ;;  %v2602_v5 = vpop.f32.mrb[54].mxu0 }
0x1242   :  { %v2603_v49 = vadd.f32 %v2602_v5, %v13748_v13  ;;  %v2604_v16 = vpop.f32.mrb[55].mxu0  ;;  %v2617_v10 = vmax.f32 %v2599_v56, 0.0 }
0x1243   :  { %v2605_v45 = vadd.f32 %v2604_v16, %v13751_v6  ;;  %v2618_v15 = vmax.f32 %v2601_v2, 0.0 }
0x1244   :  { %v2619_v55 = vmax.f32 %v2603_v49, 0.0 }
0x1245   :  { %v2620_v17 = vmax.f32 %v2605_v45, 0.0 }
0x1246   :  { %v2625_v36 = vpack.c.bf16 %v2619_v55, %v2617_v10 }
0x1247   :  { %v2626_v19 = vpack.c.bf16 %v2620_v17, %v2618_v15 }
0x1249   :  { %2763 = vmatprep.mubr.bf16.mxu1 %v2626_v19 }
0x124a   :  { %2764 = vmatmul.mubr.bf16.vlgmr.msra.gmra.mrb[44].mxu1 %v2625_v36 }
0x12c7   :  { %v2380_v38 = vpop.f32.mrb[40].mxu1 }
0x12c8   :  { %v2395_v39 = vadd.f32 %v2380_v38, %v13442_v48  ;;  %v10593_v59 = vpop.f32.mrb[41].mxu1  ;;  %v13764_v48 = vld [vmem:[%s15942_s11 + $0x1] ss:$0 sm:$0xff] }
0x12c9   :  { %v2383_v28 = vpop.f32.mrb[42].mxu1 }
0x12ca   :  { %v2396_v61 = vadd.f32 %v2383_v28, %v13445_v52  ;;  %v10594_v14 = vpop.f32.mrb[43].mxu1  ;;  %v2405_v22 = vadd.f32 %v13595_v7, %v2395_v39 }
0x12cc   :  { %2411 = vadd.xlane.f32.xlu0 %v2405_v22  ;;  %v2406_v44 = vadd.f32 %v13595_v7, %v2396_v61 }
0x12ce   :  { %2413 = vadd.xlane.f32.xlu1 %v2406_v44 }
0x131d   :  { %v9642_v31 = vpop.f32.mrb[44].mxu1 }
0x131e   :  { %v9643_v29 = vpop.f32.mrb[45].mxu1 }
0x131f   :  { %v9644_v24 = vadd.f32 %v9643_v29, %v9642_v31  ;;  %v9645_v27 = vpop.f32.mrb[46].mxu1  ;;  %v12019_v31 = vld [vmem:[%s15960_s23 + $0x1c8] ss:$12 sps:$4 sm:$0xff]   ;;  %v12024_v29 = vld [vmem:[%s15960_s23 + $0x1e4] ss:$12 sps:$4 sm:$0xff]  }
0x1320   :  { %v9646_v26 = vpop.f32.mrb[47].mxu1 }
0x1321   :  { %v9647_v53 = vadd.f32 %v9646_v26, %v9645_v27  ;;  %v2766_v12 = vadd.f32 %v9644_v24, %v13764_v48  ;;  %v12022_v24 = vld [vmem:[%s15960_s23 + $0x1e0] ss:$12 sps:$4 sm:$0xff]   ;;  %v12027_v27 = vld [vmem:[%s15960_s23 + $0x1fc] ss:$12 sps:$4 sm:$0xff]   ;;  %v12025_v26 = vld [vmem:[%s15960_s23 + $0x1f8] ss:$12 sps:$4 sm:$0xff]  }
0x1323   :  { %v2769_v40 = vadd.f32 %v9647_v53, %v13764_v48  ;;  %v2780_v42 = vadd.f32 %v2766_v12, %v13688_v8  ;;  %v12013_v8 = vld [vmem:[%s15960_s23 + $0x198] ss:$12 sps:$4 sm:$0xff]   ;;  %v12028_v53 = vld [vmem:[%s15960_s23 + $0x210] ss:$12 sps:$4 sm:$0xff]  }
0x1324   :  { %3113 = vmatpush1.bf16.msra.mxu0 %v12013_v8  ;;  %v13839_v8 = vld [vmem:[%s15944_s15 + $0x1] ss:$0 sm:$0xff] }
0x1325   :  { %v2781_v43 = vadd.f32 %v2769_v40, %v13691_v9 }
0x1359   :  { %v2412_v3 = vpop.xlane.xlu0 %2411 }
0x135a   :  { %v2417_v4 = vmul.f32 0.0078125, %v2412_v3  ;;  %v12030_v3 = vld [vmem:[%s15960_s23 + $0x214] ss:$12 sps:$4 sm:$0xff]  }
0x135b   :  { %v2414_v52 = vpop.xlane.xlu1 %2413 }
0x135c   :  { %v2421_v35 = vsub.f32 %v2405_v22, %v2417_v4  ;;  %v2418_v57 = vmul.f32 0.0078125, %v2414_v52  ;;  %v12033_v4 = vld [vmem:[%s15960_s23 + $0x22c] ss:$12 sps:$4 sm:$0xff]   ;;  %v12031_v52 = vld [vmem:[%s15960_s23 + $0x228] ss:$12 sps:$4 sm:$0xff]  }
0x135e   :  { %v2422_v7 = vsub.f32 %v2406_v44, %v2418_v57  ;;  %v2425_v11 = vmul.f32 %v2421_v35, %v2421_v35  ;;  %v12018_v44 = vld [vmem:[%s15960_s23 + $0x1b4] ss:$12 sps:$4 sm:$0xff]  }
0x135f   :  { %3114 = vmatprep.subr.bf16.mxu0 %v12018_v44 }
0x1360   :  { %2431 = vadd.xlane.f32.xlu0 %v2425_v11  ;;  %v2426_v41 = vmul.f32 %v2422_v7, %v2422_v7 }
0x1362   :  { %2433 = vadd.xlane.f32.xlu1 %v2426_v41 }
0x1364   :  { %2784 = vadd.xlane.f32.xlu0 %v2780_v42 }
0x1366   :  { %2786 = vadd.xlane.f32.xlu1 %v2781_v43 }
0x13ed   :  { %v2432_v9 = vpop.xlane.xlu0 %2431 }
0x13ee   :  { %v2437_v51 = vmul.f32 0.0078125, %v2432_v9 }
0x13ef   :  { %v2434_v18 = vpop.xlane.xlu1 %2433 }
0x13f0   :  { %v2441_v56 = vadd.f32 1e-05, %v2437_v51  ;;  %v2438_v60 = vmul.f32 0.0078125, %v2434_v18 }
0x13f1   :  { %v2785_v2 = vpop.xlane.xlu0 %2784 }
0x13f2   :  { %12390 = vrsqrt.f32 %v2441_v56  ;;  %v2442_v5 = vadd.f32 1e-05, %v2438_v60  ;;  %v2792_v49 = vmul.f32 0.0078125, %v2785_v2 }
0x13f3   :  { %v2787_v16 = vpop.xlane.xlu1 %2786 }
0x13f4   :  { %12392 = vrsqrt.f32 %v2442_v5  ;;  %v2796_v45 = vsub.f32 %v2780_v42, %v2792_v49  ;;  %v2793_v10 = vmul.f32 0.0078125, %v2787_v16  ;;  %v13833_v42 = vld [vmem:[%s15943_s14 + $0x1] ss:$0 sm:$0xff] }
0x13f6   :  { %v2797_v55 = vsub.f32 %v2781_v43, %v2793_v10  ;;  %v2800_v15 = vmul.f32 %v2796_v45, %v2796_v45 }
0x13f8   :  { %2804 = vadd.xlane.f32.xlu0 %v2800_v15  ;;  %v2801_v17 = vmul.f32 %v2797_v55, %v2797_v55 }
0x13fa   :  { %2806 = vadd.xlane.f32.xlu1 %v2801_v17 }
0x13fc   :  { %v12391_v36 = vpop.eup %12390 }
0x13fd   :  { %v2449_v19 = vmul.f32 %v12391_v36, %v2421_v35 }
0x13fe   :  { %v12393_v38 = vpop.eup %12392 }
0x13ff   :  { %v2450_v39 = vmul.f32 %v12393_v38, %v2422_v7  ;;  %v2459_v59 = vmul.f32 %v13678_v20, %v2449_v19 }
0x1401   :  { %v2460_v28 = vmul.f32 %v13678_v20, %v2450_v39  ;;  %v13785_v61 = vadd.f32 %v13684_v0, %v2459_v59  ;;  %v12016_v20 = vld [vmem:[%s15960_s23 + $0x1b0] ss:$12 sps:$4 sm:$0xff]   ;;  %v13858_v59 = vld [vmem:[%s15963_s28 + $0x6] sm:$0x7] }
0x1402   :  { %3115 = vmatpush1.bf16.msra.mxu0 %v12016_v20 }
0x1403   :  { %v13788_v14 = vadd.f32 %v13684_v0, %v2460_v28  ;;  %v12021_v0 = vld [vmem:[%s15960_s23 + $0x1cc] ss:$12 sps:$4 sm:$0xff]  }
0x1404   :  { %3116 = vmatprep.subr.bf16.mxu0 %v12021_v0 }
0x1405   :  { %v2472_v22 = vpack.c.bf16 %v13788_v14, %v13785_v61 }
0x1406   :  { %3117 = vmatpush1.bf16.msra.mxu0 %v12019_v31 }
0x1407   :  { %2607 = vmatmul.mubr.bf16.gmra.mrb[56].mxu0 %v2472_v22  ;;  %3118 = vmatprep.subr.bf16.mxu0 %v12024_v29 }
0x1408   :  { %3142 = vmatprep.mubr.bf16.mxu0 %v12574_v1 }
0x140a   :  { %3119 = vmatpush1.bf16.msra.mxu0 %v12022_v24 }
0x140b   :  { %3120 = vmatprep.subr.bf16.mxu0 %v12027_v27 }
0x140e   :  { %3121 = vmatpush1.bf16.msra.mxu0 %v12025_v26 }
0x140f   :  { %3122 = vmatprep.subr.bf16.mxu0 %v12030_v3 }
0x1412   :  { %3123 = vmatpush1.bf16.msra.mxu0 %v12028_v53  ;;  %v13881_v53 = vld [vmem:[%s15964_s4] sm:$0xff]  }
0x1413   :  { %3124 = vmatprep.subr.bf16.mxu0 %v12033_v4  ;;  %v13888_v4 = vld [vmem:[%s15964_s4 + $0x8] sm:$0xff]  }
0x1416   :  { %3125 = vmatpush1.bf16.msra.mxu0 %v12031_v52 }
0x1417   :  { %10615 = vmatprep.subr.bf16.mxu0 %v12575_v23 }
0x1485   :  { %v2805_v35 = vpop.xlane.xlu0 %2804 }
0x1486   :  { %v2812_v57 = vmul.f32 0.0078125, %v2805_v35  ;;  %v13895_v35 = vld [vmem:[%s15964_s4 + $0x10] sm:$0xff]  }
0x1487   :  { %v2807_v12 = vpop.xlane.xlu1 %2806 }
0x1488   :  { %v2816_v7 = vadd.f32 1e-05, %v2812_v57  ;;  %v2813_v11 = vmul.f32 0.0078125, %v2807_v12  ;;  %v13902_v12 = vld [vmem:[%s15964_s4 + $0x18] sm:$0xff]  }
0x148a   :  { %12394 = vrsqrt.f32 %v2816_v7  ;;  %v2817_v40 = vadd.f32 1e-05, %v2813_v11  ;;  %v13909_v11 = vld [vmem:[%s15964_s4 + $0x20] sm:$0xff]  }
0x148c   :  { %12396 = vrsqrt.f32 %v2817_v40 }
0x1494   :  { %v12395_v41 = vpop.eup %12394 }
0x1495   :  { %v2824_v43 = vmul.f32 %v12395_v41, %v2796_v45  ;;  %v13916_v41 = vld [vmem:[%s15964_s4 + $0x28] sm:$0xff]  }
0x1496   :  { %v12397_v47 = vpop.eup %12396 }
0x1497   :  { %v2834_v54 = vmul.f32 %v13833_v42, %v2824_v43  ;;  %v2825_v33 = vmul.f32 %v12397_v47, %v2797_v55  ;;  %v13923_v47 = vld [vmem:[%s15964_s4 + $0x30] sm:$0xff]  }
0x1499   :  { %v2835_v9 = vmul.f32 %v13833_v42, %v2825_v33  ;;  %v13843_v51 = vadd.f32 %v13839_v8, %v2834_v54  ;;  %v13930_v33 = vld [vmem:[%s15964_s4 + $0x38] sm:$0xff]  }
0x149b   :  { %v13846_v18 = vadd.f32 %v13839_v8, %v2835_v9 }
0x149d   :  { %v2964_v56 = vpack.c.bf16 %v13846_v18, %v13843_v51 }
0x149f   :  { %3143 = vmatmul.mubr.bf16.vlgmr.msra.gmra.mrb[60].mxu0 %v2964_v56 }
0x14a0   :  { %3152 = vmatprep.mubr.bf16.mxu0 %v12574_v1 }
0x14da   :  { %v2608_v60 = vpop.f32.mrb[56].mxu0 }
0x14db   :  { %v2609_v2 = vadd.f32 %v2608_v60, %v13748_v13  ;;  %v2610_v5 = vpop.f32.mrb[57].mxu0 }
0x14dc   :  { %v2611_v49 = vadd.f32 %v2610_v5, %v13751_v6  ;;  %v2612_v16 = vpop.f32.mrb[58].mxu0 }
0x14dd   :  { %v2613_v45 = vadd.f32 %v2612_v16, %v13748_v13  ;;  %v2614_v10 = vpop.f32.mrb[59].mxu0  ;;  %v2621_v15 = vmax.f32 %v2609_v2, 0.0  ;;  %v13862_v13 = vrot.slane %v13858_v59, %v12767_v32 }
0x14de   :  { %v2615_v55 = vadd.f32 %v2614_v10, %v13751_v6  ;;  %v2622_v36 = vmax.f32 %v2611_v49, 0.0  ;;  %v13866_v6 = vrot.slane %v13858_v59, %v12775_v34 }
0x14df   :  { %v2623_v17 = vmax.f32 %v2613_v45, 0.0 }
0x14e0   :  { %v2624_v19 = vmax.f32 %v2615_v55, 0.0 }
0x14e1   :  { %v2627_v38 = vpack.c.bf16 %v2623_v17, %v2621_v15  ;;  %v12034_v17 = vld [vmem:[%s15960_s23 + $0x188] ss:$12 sps:$4 sm:$0xff]  }
0x14e2   :  { %v2628_v39 = vpack.c.bf16 %v2624_v19, %v2622_v36  ;;  %v12035_v36 = vld [vmem:[%s15960_s23 + $0x1a0] ss:$12 sps:$4 sm:$0xff]   ;;  %10595 = vmatprep.subr.bf16.mxu1 %v12034_v17 }
0x14e3   :  { %10596 = vmatpush3.bf16.msra.mxu1 %v12034_v17 }
0x14e4   :  { %2771 = vmatprep.mubr.bf16.mxu1 %v2628_v39  ;;  %10597 = vmatprep.subr.bf16.mxu1 %v12035_v36 }
0x14e5   :  { %2772 = vmatmul.mubr.bf16.gmra.mrb[48].mxu1 %v2627_v38 }
0x14e6   :  { %10611 = vmatprep.mubr.bf16.mxu1 %v2964_v56 }
0x14e7   :  { %10598 = vmatpush3.bf16.msra.mxu1 %v12035_v36 }
0x1572   :  { %v3144_v28 = vpop.f32.mrb[60].mxu0 }
0x1573   :  { %v3146_v22 = vpop.f32.mrb[61].mxu0  ;;  %v13869_v20 = vadd.f32 %v3144_v28, %v13862_v13 }
0x1574   :  { %v3148_v44 = vpop.f32.mrb[62].mxu0  ;;  %v3147_v29 = vadd.f32 %v3146_v22, %v13866_v6 }
0x1575   :  { %v13872_v0 = vadd.f32 %v3148_v44, %v13862_v13  ;;  %v3150_v31 = vpop.f32.mrb[63].mxu0  ;;  %v12036_v44 = vld [vmem:[%s15960_s23 + $0x1b8] ss:$12 sps:$4 sm:$0xff]  }
0x1576   :  { %v3151_v24 = vadd.f32 %v3150_v31, %v13866_v6  ;;  %10599 = vmatprep.subr.bf16.mxu1 %v12036_v44  ;;  %v12037_v31 = vld [vmem:[%s15960_s23 + $0x1d0] ss:$12 sps:$4 sm:$0xff]  }
0x1577   :  { %v3212_v27 = vpack.c.bf16 %v13872_v0, %v13869_v20  ;;  %10600 = vmatpush3.bf16.msra.mxu1 %v12036_v44 }
0x1578   :  { %v3213_v26 = vpack.c.bf16 %v3151_v24, %v3147_v29  ;;  %10601 = vmatprep.subr.bf16.mxu1 %v12037_v31  ;;  %v12038_v29 = vld [vmem:[%s15960_s23 + $0x1e8] ss:$12 sps:$4 sm:$0xff]   ;;  %v12039_v24 = vld [vmem:[%s15960_s23 + $0x200] ss:$12 sps:$4 sm:$0xff]  }
0x157a   :  { %v3218_v3 = vmul.bf16 %v13881_v53, %v3213_v26  ;;  %v3219_v52 = vmul.bf16 %v13888_v4, %v3213_v26  ;;  %v3220_v57 = vmul.bf16 %v13895_v35, %v3213_v26  ;;  %v3221_v7 = vmul.bf16 %v13902_v12, %v3213_v26 }
0x157b   :  { %v3222_v40 = vmul.bf16 %v13909_v11, %v3213_v26  ;;  %v3223_v43 = vmul.bf16 %v13916_v41, %v3213_v26  ;;  %v3224_v54 = vmul.bf16 %v13923_v47, %v3213_v26  ;;  %v3225_v9 = vmul.bf16 %v13930_v33, %v3213_v26  ;;  %10602 = vmatpush3.bf16.msra.mxu1 %v12037_v31  ;;  %v12040_v26 = vld [vmem:[%s15960_s23 + $0x218] ss:$12 sps:$4 sm:$0xff]  }
0x157c   :  { %10616 = vmatpush3.bf16.xpose.msra.mxu0 %v3218_v3  ;;  %10603 = vmatprep.subr.bf16.mxu1 %v12038_v29  ;;  %v12041_v3 = vld [vmem:[%s15960_s23 + $0x230] ss:$12 sps:$4 sm:$0xff]  }
0x157d   :  { %10617 = vmatprep.subr.bf16.mxu0 %v12575_v23 }
0x157f   :  { %10604 = vmatpush3.bf16.msra.mxu1 %v12038_v29 }
0x1580   :  { %10605 = vmatprep.subr.bf16.mxu1 %v12039_v24 }
0x1583   :  { %10606 = vmatpush3.bf16.msra.mxu1 %v12039_v24 }
0x1584   :  { %10618 = vmatpush3.bf16.xpose.msra.mxu0 %v3219_v52  ;;  %10607 = vmatprep.subr.bf16.mxu1 %v12040_v26 }
0x1585   :  { %10619 = vmatprep.subr.bf16.mxu0 %v12575_v23 }
0x1587   :  { %10608 = vmatpush3.bf16.msra.mxu1 %v12040_v26 }
0x1588   :  { %10609 = vmatprep.subr.bf16.mxu1 %v12041_v3 }
0x158b   :  { %10610 = vmatpush3.bf16.msra.mxu1 %v12041_v3 }
0x158c   :  { %10620 = vmatpush3.bf16.xpose.msra.mxu0 %v3220_v57  ;;  %11584 = vmatprep.subr.bf16.mxu1 %v12877_v21 }
0x158d   :  { %10621 = vmatprep.subr.bf16.mxu0 %v12575_v23 }
0x1594   :  { %10622 = vmatpush3.bf16.xpose.msra.mxu0 %v3221_v7 }
0x1595   :  { %10623 = vmatprep.subr.bf16.mxu0 %v12575_v23 }
0x159c   :  { %10624 = vmatpush3.bf16.xpose.msra.mxu0 %v3222_v40 }
0x159d   :  { %10625 = vmatprep.subr.bf16.mxu0 %v12575_v23 }
0x15a4   :  { %10626 = vmatpush3.bf16.xpose.msra.mxu0 %v3223_v43 }
0x15a5   :  { %10627 = vmatprep.subr.bf16.mxu0 %v12575_v23 }
0x15ac   :  { %10628 = vmatpush3.bf16.xpose.msra.mxu0 %v3224_v54 }
0x15ad   :  { %10629 = vmatprep.subr.bf16.mxu0 %v12575_v23 }
0x15b4   :  { %10630 = vmatpush3.bf16.xpose.msra.mxu0 %v3225_v9 }
0x15b5   :  { %10690 = vmatprep.subr.bf16.mxu0 %v12575_v23 }
0x15b8   :  { %v9648_v56 = vpop.f32.mrb[48].mxu1 }
0x15b9   :  { %v9649_v60 = vpop.f32.mrb[49].mxu1 }
0x15ba   :  { %v9650_v2 = vadd.f32 %v9649_v60, %v9648_v56  ;;  %v9651_v5 = vpop.f32.mrb[50].mxu1 }
0x15bb   :  { %v9652_v49 = vpop.f32.mrb[51].mxu1 }
0x15bc   :  { %v2774_v16 = vadd.f32 %v9650_v2, %v13764_v48  ;;  %v9653_v45 = vadd.f32 %v9652_v49, %v9651_v5 }
0x15be   :  { %v2777_v10 = vadd.f32 %v9653_v45, %v13764_v48  ;;  %v2782_v55 = vadd.f32 %v2774_v16, %v13785_v61 }
0x15c0   :  { %2788 = vadd.xlane.f32.xlu0 %v2782_v55  ;;  %v2783_v15 = vadd.f32 %v2777_v10, %v13788_v14 }
0x15c2   :  { %2790 = vadd.xlane.f32.xlu1 %v2783_v15 }
0x164d   :  { %v2789_v19 = vpop.xlane.xlu0 %2788 }
0x164e   :  { %v2794_v48 = vmul.f32 0.0078125, %v2789_v19 }
0x164f   :  { %v2791_v38 = vpop.xlane.xlu1 %2790 }
0x1650   :  { %v2798_v61 = vsub.f32 %v2782_v55, %v2794_v48  ;;  %v2795_v39 = vmul.f32 0.0078125, %v2791_v38 }
0x1652   :  { %v2799_v28 = vsub.f32 %v2783_v15, %v2795_v39  ;;  %v2802_v14 = vmul.f32 %v2798_v61, %v2798_v61 }
0x1654   :  { %2808 = vadd.xlane.f32.xlu0 %v2802_v14  ;;  %v2803_v22 = vmul.f32 %v2799_v28, %v2799_v28 }
0x1656   :  { %2810 = vadd.xlane.f32.xlu1 %v2803_v22 }
0x16e1   :  { %v2809_v52 = vpop.xlane.xlu0 %2808 }
0x16e2   :  { %v2814_v57 = vmul.f32 0.0078125, %v2809_v52 }
0x16e3   :  { %v2811_v7 = vpop.xlane.xlu1 %2810 }
0x16e4   :  { %v2818_v40 = vadd.f32 1e-05, %v2814_v57  ;;  %v2815_v43 = vmul.f32 0.0078125, %v2811_v7 }
0x16e6   :  { %12398 = vrsqrt.f32 %v2818_v40  ;;  %v2819_v54 = vadd.f32 1e-05, %v2815_v43 }
0x16e8   :  { %12400 = vrsqrt.f32 %v2819_v54 }
0x16f0   :  { %v12399_v9 = vpop.eup %12398 }
0x16f1   :  { %v2826_v56 = vmul.f32 %v12399_v9, %v2798_v61 }
0x16f2   :  { %v12401_v60 = vpop.eup %12400 }
0x16f3   :  { %v2827_v2 = vmul.f32 %v12401_v60, %v2799_v28  ;;  %v2836_v5 = vmul.f32 %v13833_v42, %v2826_v56 }
0x16f5   :  { %v2837_v49 = vmul.f32 %v13833_v42, %v2827_v2  ;;  %v13966_v16 = vadd.f32 %v13839_v8, %v2836_v5  ;;  %v2978_v42 = vrot.slane %v13858_v59, %v12954_v63 }
0x16f7   :  { %v13969_v45 = vadd.f32 %v13839_v8, %v2837_v49 }
0x16f9   :  { %v2965_v10 = vpack.c.bf16 %v13969_v45, %v13966_v16 }
0x16fb   :  { %3153 = vmatmul.mubr.bf16.gmra.mrb[64].mxu0 %v2965_v10  ;;  %10612 = vmatmul.mubr.bf16.vlgmr.msra.gmra.mrb[52].mxu1 %v2965_v10 }
0x16fc   :  { %10631 = vmatprep.mubr.msk.bf16.mxu0 %vm12576_vm1, %v12575_v23  ;;  %11586 = vmatpush3.bf16.msra.mxu1 %v12877_v21 }
0x16fd   :  { %11588 = vmatprep.subr.bf16.mxu1 %v12886_v25 }
0x1700   :  { %11590 = vmatpush3.bf16.msra.mxu1 %v12886_v25 }
0x1701   :  { %11592 = vmatprep.subr.bf16.mxu1 %v12897_v30 }
0x1703   :  { %10632 = vmatmul.mubr.bf16.vlgmr.msra.gmra.mrb[68].mxu0 %v3212_v27 }
0x1704   :  { %11594 = vmatpush3.bf16.msra.mxu1 %v12897_v30  ;;  %10706 = vmatprep.mubr.msk.bf16.mxu0 %vm12576_vm1, %v12575_v23 }
0x1705   :  { %11596 = vmatprep.subr.bf16.mxu1 %v12907_v37 }
0x1708   :  { %11598 = vmatpush3.bf16.msra.mxu1 %v12907_v37 }
0x1709   :  { %11600 = vmatprep.subr.bf16.mxu1 %v12918_v46 }
0x170c   :  { %11602 = vmatpush3.bf16.msra.mxu1 %v12918_v46 }
0x170d   :  { %11604 = vmatprep.subr.bf16.mxu1 %v12928_v50 }
0x1710   :  { %11606 = vmatpush3.bf16.msra.mxu1 %v12928_v50 }
0x1711   :  { %11608 = vmatprep.subr.bf16.mxu1 %v12941_v58 }
0x1714   :  { %11610 = vmatpush3.bf16.msra.mxu1 %v12941_v58 }
0x1715   :  { %11612 = vmatprep.subr.bf16.mxu1 %v12946_v62 }
0x1718   :  { %11614 = vmatpush3.bf16.msra.mxu1 %v12946_v62 }
0x1719   :  { %10670 = vmatprep.subr.bf16.mxu1 %v12575_v23 }
0x17ce   :  { %v3154_v8 = vpop.f32.mrb[64].mxu0  ;;  %v10613_v20 = vpop.f32.mrb[52].mxu1 }
0x17cf   :  { %v3206_v0 = vadd.f32 %v10613_v20, %v2978_v42  ;;  %v3156_v27 = vpop.f32.mrb[65].mxu0  ;;  %v3197_v55 = vpop.f32.mrb[53].mxu1  ;;  %v13999_v36 = vadd.f32 %v3154_v8, %v13862_v13 }
0x17d0   :  { %v3158_v15 = vpop.f32.mrb[66].mxu0  ;;  %v10614_v17 = vpop.f32.mrb[54].mxu1  ;;  %v3157_v39 = vadd.f32 %v3156_v27, %v13866_v6  ;;  %v3198_v28 = vadd.f32 %v3197_v55, %v2978_v42  ;;  %v12042_v27 = vld [vmem:[%s15935_s6 + $0x80] sm:$0xff]   ;;  %v12043_v55 = vld [vmem:[%s15935_s6 + $0x88] sm:$0xff]  }
0x17d1   :  { %v14002_v19 = vadd.f32 %v3158_v15, %v13862_v13  ;;  %v3209_v48 = vadd.f32 %v10614_v17, %v2978_v42  ;;  %v3160_v38 = vpop.f32.mrb[67].mxu0  ;;  %v3200_v61 = vpop.f32.mrb[55].mxu1  ;;  %10691 = vmatpush3.bf16.msra.mxu0 %v12042_v27  ;;  %v12044_v15 = vld [vmem:[%s15935_s6 + $0x90] sm:$0xff]   ;;  %v12045_v17 = vld [vmem:[%s15935_s6 + $0x98] sm:$0xff]  }
0x17d2   :  { %v3161_v59 = vadd.f32 %v3160_v38, %v13866_v6  ;;  %v3201_v14 = vadd.f32 %v3200_v61, %v2978_v42  ;;  %10692 = vmatprep.subr.bf16.mxu0 %v12575_v23  ;;  %v12047_v38 = vld [vmem:[%s15935_s6 + $0xa8] sm:$0xff]   ;;  %v12048_v61 = vld [vmem:[%s15935_s6 + $0xb0] sm:$0xff]  }
0x17d3   :  { %v3215_v22 = vpack.c.bf16 %v14002_v19, %v13999_v36  ;;  %v14008_v44 = vpack.c.bf16 %v3209_v48, %v3206_v0  ;;  %v12046_v48 = vld [vmem:[%s15935_s6 + $0xa0] sm:$0xff]   ;;  %v12049_v36 = vld [vmem:[%s15935_s6 + $0xb8] sm:$0xff]  }
0x17d4   :  { %v14010_v31 = vpack.c.bf16 %v3161_v59, %v3157_v39  ;;  %v3214_v29 = vpack.c.bf16 %v3201_v14, %v3198_v28 }
0x17d5   :  { %10693 = vmatpush3.bf16.msra.mxu0 %v12043_v55 }
0x17d6   :  { %v3268_v24 = vpop.f32.mrb[68].mxu0  ;;  %v3226_v2 = vmul.bf16 %v13881_v53, %v3214_v29  ;;  %v3227_v5 = vmul.bf16 %v13888_v4, %v3214_v29  ;;  %v3228_v49 = vmul.bf16 %v13895_v35, %v3214_v29  ;;  %v3229_v10 = vmul.bf16 %v13902_v12, %v3214_v29  ;;  %10694 = vmatprep.subr.bf16.mxu0 %v12575_v23 }
0x17d7   :  { %v3275_v13 = vmul.f32 0.25, %v3268_v24  ;;  %v10633_v26 = vpop.f32.mrb[69].mxu0  ;;  %v3230_v42 = vmul.bf16 %v13909_v11, %v3214_v29  ;;  %v3231_v8 = vmul.bf16 %v13916_v41, %v3214_v29  ;;  %v3232_v20 = vmul.bf16 %v13923_v47, %v3214_v29 }
0x17d8   :  { %v3271_v3 = vpop.f32.mrb[70].mxu0  ;;  %v3233_v0 = vmul.bf16 %v13930_v33, %v3214_v29 }
0x17d9   :  { %v3276_v52 = vmul.f32 0.25, %v3271_v3  ;;  %3277 = vmax.xlane.f32.xlu0 %v3275_v13  ;;  %v10634_v57 = vpop.f32.mrb[71].mxu0  ;;  %10695 = vmatpush3.bf16.msra.mxu0 %v12044_v15 }
0x17da   :  { %10696 = vmatprep.subr.bf16.mxu0 %v12575_v23  ;;  %v3503_v57 = vmul.bf16 %v13888_v4, %v14010_v31 }
0x17db   :  { %3279 = vmax.xlane.f32.xlu1 %v3276_v52 }
0x17dd   :  { %10697 = vmatpush3.bf16.msra.mxu0 %v12045_v17 }
0x17de   :  { %10698 = vmatprep.subr.bf16.mxu0 %v12575_v23 }
0x17e1   :  { %10699 = vmatpush3.bf16.msra.mxu0 %v12046_v48 }
0x17e2   :  { %10700 = vmatprep.subr.bf16.mxu0 %v12575_v23 }
0x17e5   :  { %10701 = vmatpush3.bf16.msra.mxu0 %v12047_v38 }
0x17e6   :  { %10702 = vmatprep.subr.bf16.mxu0 %v12575_v23 }
0x17e9   :  { %10703 = vmatpush3.bf16.msra.mxu0 %v12048_v61 }
0x17ea   :  { %10704 = vmatprep.subr.bf16.mxu0 %v12575_v23 }
0x17ed   :  { %10705 = vmatpush3.bf16.msra.mxu0 %v12049_v36 }
0x17ee   :  { %11616 = vmatprep.subr.bf16.mxu0 %v12877_v21 }
0x1866   :  { %v3278_v7 = vpop.xlane.xlu0 %3277 }
0x1867   :  { %v3281_v40 = vsub.f32 %v3275_v13, %v3278_v7  ;;  %v3504_v7 = vmul.bf16 %v13895_v35, %v14010_v31 }
0x1868   :  { %v3280_v6 = vpop.xlane.xlu1 %3279 }
0x1869   :  { %v3283_v43 = vmul.f32 1.442695, %v3281_v40  ;;  %v3282_v54 = vsub.f32 %v3276_v52, %v3280_v6  ;;  %v3502_v52 = vmul.bf16 %v13881_v53, %v14010_v31  ;;  %v3505_v40 = vmul.bf16 %v13902_v12, %v14010_v31 }
0x186a   :  { %v3506_v6 = vmul.bf16 %v13909_v11, %v14010_v31 }
0x186b   :  { %12402 = vpow2.f32 %v3283_v43  ;;  %v3285_v9 = vmul.f32 1.442695, %v3282_v54  ;;  %v3507_v43 = vmul.bf16 %v13916_v41, %v14010_v31  ;;  %v3508_v54 = vmul.bf16 %v13923_v47, %v14010_v31 }
0x186d   :  { %12404 = vpow2.f32 %v3285_v9  ;;  %v3509_v9 = vmul.bf16 %v13930_v33, %v14010_v31 }
0x1875   :  { %v12403_v56 = vpop.eup %12402 }
0x1876   :  { %10667 = vmatprep.mubr.f32.mxu1 %v12403_v56 }
0x1877   :  { %v12405_v60 = vpop.eup %12404 }
0x1878   :  { %10668 = vmatmul.mubr.f32.vlgmr.msra.gmra.mrb[56].mxu1 %v12405_v60 }
0x1879   :  { %10671 = vmatpush3.bf16.msra.mxu1 %v3226_v2  ;;  %10686 = vmatprep.mubr.msk.bf16.mxu1 %vm12576_vm1, %v12575_v23 }
0x187a   :  { %10672 = vmatprep.subr.bf16.mxu1 %v12575_v23 }
0x187d   :  { %10673 = vmatpush3.bf16.msra.mxu1 %v3227_v5 }
0x187e   :  { %10674 = vmatprep.subr.bf16.mxu1 %v12575_v23 }
0x1881   :  { %10675 = vmatpush3.bf16.msra.mxu1 %v3228_v49 }
0x1882   :  { %10676 = vmatprep.subr.bf16.mxu1 %v12575_v23 }
0x1885   :  { %10677 = vmatpush3.bf16.msra.mxu1 %v3229_v10 }
0x1886   :  { %10678 = vmatprep.subr.bf16.mxu1 %v12575_v23 }
0x1889   :  { %10679 = vmatpush3.bf16.msra.mxu1 %v3230_v42 }
0x188a   :  { %10680 = vmatprep.subr.bf16.mxu1 %v12575_v23 }
0x188d   :  { %10681 = vmatpush3.bf16.msra.mxu1 %v3231_v8 }
0x188e   :  { %10682 = vmatprep.subr.bf16.mxu1 %v12575_v23 }
0x1891   :  { %10683 = vmatpush3.bf16.msra.mxu1 %v3232_v20 }
0x1892   :  { %10684 = vmatprep.subr.bf16.mxu1 %v12575_v23 }
0x1895   :  { %10685 = vmatpush3.bf16.msra.mxu1 %v3233_v0 }
0x1896   :  { %10710 = vmatprep.subr.bf16.mxu1 %v12575_v23 }
0x194b   :  { %v10669_v39 = vpop.f32.mrb[56].mxu1 }
0x194c   :  { %v3363_v28 = vmax.f32 %v10669_v39, 1e-30  ;;  %v3353_v59 = vpop.f32.mrb[57].mxu1 }
0x194d   :  { %v3362_v14 = vmax.f32 %v3353_v59, 1e-30 }
0x194e   :  { %12406 = vrcp.f32 %v3363_v28 }
0x194f   :  { %12408 = vrcp.f32 %v3362_v14 }
0x1958   :  { %v12407_v29 = vpop.eup %12406 }
0x1959   :  { %v12409_v24 = vpop.eup %12408  ;;  %v3367_v13 = vmul.f32 %v12407_v29, %v12405_v60 }
0x195a   :  { %v3366_v26 = vmul.f32 %v12409_v24, %v12403_v56 }
0x195c   :  { %v3368_v3 = vpack.c.bf16 %v3367_v13, %v3366_v26 }
0x195e   :  { %10687 = vmatmul.mubr.bf16.vlgmr.msra.gmra.mrb[60].mxu1 %v3368_v3  ;;  %v3510_v3 = vmul.bf16 %v13881_v53, %v14008_v44  ;;  %v3513_v53 = vmul.bf16 %v13902_v12, %v14008_v44  ;;  %v3517_v12 = vmul.bf16 %v13930_v33, %v14008_v44 }
0x195f   :  { %10711 = vmatpush3.bf16.xpose.msra.mxu1 %v3502_v52  ;;  %10726 = vmatprep.mubr.msk.bf16.mxu1 %vm12576_vm1, %v12575_v23  ;;  %v3514_v52 = vmul.bf16 %v13909_v11, %v14008_v44  ;;  %v12052_v11 = vld [vmem:[%s15937_s8 + $0x104] ss:$8 sps:$4 sm:$0xff]  }
0x1960   :  { %10712 = vmatprep.subr.bf16.mxu1 %v12575_v23 }
0x1967   :  { %10713 = vmatpush3.bf16.xpose.msra.mxu1 %v3503_v57 }
0x1968   :  { %10714 = vmatprep.subr.bf16.mxu1 %v12575_v23 }
0x196f   :  { %10715 = vmatpush3.bf16.xpose.msra.mxu1 %v3504_v7 }
0x1970   :  { %10716 = vmatprep.subr.bf16.mxu1 %v12575_v23 }
0x1977   :  { %10717 = vmatpush3.bf16.xpose.msra.mxu1 %v3505_v40 }
0x1978   :  { %10718 = vmatprep.subr.bf16.mxu1 %v12575_v23 }
0x197f   :  { %10719 = vmatpush3.bf16.xpose.msra.mxu1 %v3506_v6 }
0x1980   :  { %10720 = vmatprep.subr.bf16.mxu1 %v12575_v23 }
0x1987   :  { %10721 = vmatpush3.bf16.xpose.msra.mxu1 %v3507_v43 }
0x1988   :  { %10722 = vmatprep.subr.bf16.mxu1 %v12575_v23 }
0x198f   :  { %10723 = vmatpush3.bf16.xpose.msra.mxu1 %v3508_v54 }
0x1990   :  { %10724 = vmatprep.subr.bf16.mxu1 %v12575_v23 }
0x1997   :  { %10725 = vmatpush3.bf16.xpose.msra.mxu1 %v3509_v9 }
0x1998   :  { %10785 = vmatprep.subr.bf16.mxu1 %v12575_v23 }
0x199e   :  { %10727 = vmatmul.mubr.bf16.vlgmr.msra.gmra.mrb[64].mxu1 %v3215_v22 }
0x199f   :  { %10786 = vmatpush3.bf16.msra.mxu1 %v12042_v27  ;;  %10801 = vmatprep.mubr.msk.bf16.mxu1 %vm12576_vm1, %v12575_v23 }
0x19a0   :  { %10787 = vmatprep.subr.bf16.mxu1 %v12575_v23 }
0x19a3   :  { %10788 = vmatpush3.bf16.msra.mxu1 %v12043_v55 }
0x19a4   :  { %10789 = vmatprep.subr.bf16.mxu1 %v12575_v23 }
0x19a7   :  { %10790 = vmatpush3.bf16.msra.mxu1 %v12044_v15 }
0x19a8   :  { %10791 = vmatprep.subr.bf16.mxu1 %v12575_v23 }
0x19ab   :  { %10792 = vmatpush3.bf16.msra.mxu1 %v12045_v17 }
0x19ac   :  { %10793 = vmatprep.subr.bf16.mxu1 %v12575_v23 }
0x19af   :  { %10794 = vmatpush3.bf16.msra.mxu1 %v12046_v48 }
0x19b0   :  { %10795 = vmatprep.subr.bf16.mxu1 %v12575_v23 }
0x19b3   :  { %10796 = vmatpush3.bf16.msra.mxu1 %v12047_v38  ;;  %v14119_v38 = vld [vmem:[%s15936_s7 + $0x2] ss:$0 sm:$0xff] }
0x19b4   :  { %10797 = vmatprep.subr.bf16.mxu1 %v12575_v23 }
0x19b7   :  { %10798 = vmatpush3.bf16.msra.mxu1 %v12048_v61 }
0x19b8   :  { %10799 = vmatprep.subr.bf16.mxu1 %v12575_v23 }
0x19bb   :  { %10800 = vmatpush3.bf16.msra.mxu1 %v12049_v36 }
0x1a31   :  { %v3403_v19 = vpop.f32.mrb[60].mxu1 }
0x1a32   :  { %v10688_v22 = vpop.f32.mrb[61].mxu1 }
0x1a33   :  { %v3406_v31 = vpop.f32.mrb[62].mxu1 }
0x1a34   :  { %v3410_v56 = vpack.c.bf16 %v3406_v31, %v3403_v19  ;;  %v10689_v60 = vpop.f32.mrb[63].mxu1 }
0x1a35   :  { %v12050_v60 = vld [vmem:[%s15937_s8 + $0x100] ss:$8 sps:$4 sm:$0xff]  }
0x1a36   :  { %10707 = vmatmul.mubr.bf16.vlgmr.msra.gmra.mrb[72].mxu0 %v3410_v56 }
0x1a37   :  { %11618 = vmatpush3.bf16.msra.mxu0 %v12877_v21 }
0x1a38   :  { %11620 = vmatprep.subr.bf16.mxu0 %v12886_v25 }
0x1a3b   :  { %11622 = vmatpush3.bf16.msra.mxu0 %v12886_v25 }
0x1a3c   :  { %11624 = vmatprep.subr.bf16.mxu0 %v12897_v30 }
0x1a3f   :  { %11626 = vmatpush3.bf16.msra.mxu0 %v12897_v30 }
0x1a40   :  { %11628 = vmatprep.subr.bf16.mxu0 %v12907_v37 }
0x1a43   :  { %11630 = vmatpush3.bf16.msra.mxu0 %v12907_v37 }
0x1a44   :  { %11632 = vmatprep.subr.bf16.mxu0 %v12918_v46 }
0x1a47   :  { %11634 = vmatpush3.bf16.msra.mxu0 %v12918_v46 }
0x1a48   :  { %11636 = vmatprep.subr.bf16.mxu0 %v12928_v50 }
0x1a4b   :  { %11638 = vmatpush3.bf16.msra.mxu0 %v12928_v50 }
0x1a4c   :  { %11640 = vmatprep.subr.bf16.mxu0 %v12941_v58 }
0x1a4f   :  { %11642 = vmatpush3.bf16.msra.mxu0 %v12941_v58 }
0x1a50   :  { %11644 = vmatprep.subr.bf16.mxu0 %v12946_v62 }
0x1a53   :  { %11646 = vmatpush3.bf16.msra.mxu0 %v12946_v62 }
0x1a54   :  { %10765 = vmatprep.subr.bf16.mxu0 %v12575_v23 }
0x1a71   :  { %v3552_v2 = vpop.f32.mrb[64].mxu1 }
0x1a72   :  { %v3559_v5 = vmul.f32 0.25, %v3552_v2  ;;  %v10728_v49 = vpop.f32.mrb[65].mxu1 }
0x1a73   :  { %v3555_v10 = vpop.f32.mrb[66].mxu1  ;;  %v12053_v49 = vld [vmem:[%s15937_s8 + $0x110] ss:$8 sps:$4 sm:$0xff]  }
0x1a74   :  { %v3560_v42 = vmul.f32 0.25, %v3555_v10  ;;  %3561 = vmax.xlane.f32.xlu0 %v3559_v5  ;;  %v10729_v8 = vpop.f32.mrb[67].mxu1  ;;  %v12058_v10 = vld [vmem:[%s15937_s8 + $0x124] ss:$8 sps:$4 sm:$0xff]  }
0x1a75   :  { %v12061_v8 = vld [vmem:[%s15937_s8 + $0x134] ss:$8 sps:$4 sm:$0xff]  }
0x1a76   :  { %3563 = vmax.xlane.f32.xlu1 %v3560_v42 }
0x1b01   :  { %v3562_v20 = vpop.xlane.xlu0 %3561 }
0x1b02   :  { %v3565_v0 = vsub.f32 %v3559_v5, %v3562_v20  ;;  %v12055_v5 = vld [vmem:[%s15937_s8 + $0x114] ss:$8 sps:$4 sm:$0xff]   ;;  %v12059_v20 = vld [vmem:[%s15937_s8 + $0x130] ss:$8 sps:$4 sm:$0xff]  }
0x1b03   :  { %v3564_v27 = vpop.xlane.xlu1 %3563 }
0x1b04   :  { %v3567_v55 = vmul.f32 1.442695, %v3565_v0  ;;  %v3566_v15 = vsub.f32 %v3560_v42, %v3564_v27  ;;  %v12056_v42 = vld [vmem:[%s15937_s8 + $0x120] ss:$8 sps:$4 sm:$0xff]   ;;  %v12064_v0 = vld [vmem:[%s15937_s8 + $0x144] ss:$8 sps:$4 sm:$0xff]  }
0x1b05   :  { %v12062_v27 = vld [vmem:[%s15937_s8 + $0x140] ss:$8 sps:$4 sm:$0xff]  }
0x1b06   :  { %12410 = vpow2.f32 %v3567_v55  ;;  %v3569_v17 = vmul.f32 1.442695, %v3566_v15  ;;  %v12067_v55 = vld [vmem:[%s15937_s8 + $0x154] ss:$8 sps:$4 sm:$0xff]   ;;  %v12065_v15 = vld [vmem:[%s15937_s8 + $0x150] ss:$8 sps:$4 sm:$0xff]  }
0x1b08   :  { %12412 = vpow2.f32 %v3569_v17  ;;  %v12070_v17 = vld [vmem:[%s15937_s8 + $0x164] ss:$8 sps:$4 sm:$0xff]  }
0x1b09   :  { %v3493_v48 = vpop.f32.mrb[72].mxu0 }
0x1b0a   :  { %v3742_v61 = vadd.f32 %v3493_v48, %v13843_v51  ;;  %v10708_v39 = vpop.f32.mrb[73].mxu0  ;;  %v3511_v51 = vmul.bf16 %v13888_v4, %v14008_v44  ;;  %v3515_v4 = vmul.bf16 %v13916_v41, %v14008_v44  ;;  %v12068_v48 = vld [vmem:[%s15937_s8 + $0x160] ss:$8 sps:$4 sm:$0xff]  }
0x1b0b   :  { %v3496_v28 = vpop.f32.mrb[74].mxu0  ;;  %v12071_v39 = vld [vmem:[%s15937_s8 + $0x170] ss:$8 sps:$4 sm:$0xff]  }
0x1b0c   :  { %v3743_v59 = vadd.f32 %v3496_v28, %v13846_v18  ;;  %v10709_v14 = vpop.f32.mrb[75].mxu0  ;;  %v3752_v29 = vadd.f32 %v14119_v38, %v3742_v61  ;;  %v3512_v18 = vmul.bf16 %v13895_v35, %v14008_v44  ;;  %v3516_v35 = vmul.bf16 %v13923_v47, %v14008_v44  ;;  %v12073_v61 = vld [vmem:[%s15937_s8 + $0x174] ss:$8 sps:$4 sm:$0xff]  }
0x1b0e   :  { %3756 = vadd.xlane.f32.xlu0 %v3752_v29  ;;  %v3753_v24 = vadd.f32 %v14119_v38, %v3743_v59 }
0x1b10   :  { %v12411_v13 = vpop.eup %12410  ;;  %3758 = vadd.xlane.f32.xlu1 %v3753_v24 }
0x1b11   :  { %10762 = vmatprep.mubr.f32.mxu0 %v12411_v13 }
0x1b12   :  { %v12413_v26 = vpop.eup %12412 }
0x1b13   :  { %10763 = vmatmul.mubr.f32.vlgmr.msra.gmra.mrb[76].mxu0 %v12413_v26 }
0x1b14   :  { %10766 = vmatpush3.bf16.msra.mxu0 %v3510_v3  ;;  %10781 = vmatprep.mubr.msk.bf16.mxu0 %vm12576_vm1, %v12575_v23  ;;  %v14202_v3 = vld [vmem:[%s15938_s12 + $0x2] ss:$0 sm:$0xff] }
0x1b15   :  { %10767 = vmatprep.subr.bf16.mxu0 %v12575_v23 }
0x1b18   :  { %10768 = vmatpush3.bf16.msra.mxu0 %v3511_v51 }
0x1b19   :  { %10769 = vmatprep.subr.bf16.mxu0 %v12575_v23 }
0x1b1c   :  { %10770 = vmatpush3.bf16.msra.mxu0 %v3512_v18 }
0x1b1d   :  { %10771 = vmatprep.subr.bf16.mxu0 %v12575_v23 }
0x1b20   :  { %10772 = vmatpush3.bf16.msra.mxu0 %v3513_v53 }
0x1b21   :  { %10773 = vmatprep.subr.bf16.mxu0 %v12575_v23 }
0x1b24   :  { %10774 = vmatpush3.bf16.msra.mxu0 %v3514_v52 }
0x1b25   :  { %10775 = vmatprep.subr.bf16.mxu0 %v12575_v23 }
0x1b28   :  { %10776 = vmatpush3.bf16.msra.mxu0 %v3515_v4  ;;  %v14208_v4 = vld [vmem:[%s15939_s13 + $0x2] ss:$0 sm:$0xff] }
0x1b29   :  { %10777 = vmatprep.subr.bf16.mxu0 %v12575_v23 }
0x1b2c   :  { %10778 = vmatpush3.bf16.msra.mxu0 %v3516_v35 }
0x1b2d   :  { %10779 = vmatprep.subr.bf16.mxu0 %v12575_v23 }
0x1b30   :  { %10780 = vmatpush3.bf16.msra.mxu0 %v3517_v12 }
0x1b31   :  { %3913 = vmatprep.subr.bf16.mxu0 %v12052_v11 }
0x1b9b   :  { %v3757_v57 = vpop.xlane.xlu0 %3756 }
0x1b9c   :  { %v3764_v41 = vmul.f32 0.0078125, %v3757_v57 }
0x1b9d   :  { %v3759_v7 = vpop.xlane.xlu1 %3758 }
0x1b9e   :  { %v3768_v40 = vsub.f32 %v3752_v29, %v3764_v41  ;;  %v3765_v6 = vmul.f32 0.0078125, %v3759_v7  ;;  %v12074_v41 = vld [vmem:[%s15940_s10 + $0x140] sm:$0xff]  }
0x1b9f   :  { %9754 = vmatprep.subr.bf16.mxu1 %v12074_v41 }
0x1ba0   :  { %v3769_v43 = vsub.f32 %v3753_v24, %v3765_v6  ;;  %v3772_v54 = vmul.f32 %v3768_v40, %v3768_v40 }
0x1ba2   :  { %3776 = vadd.xlane.f32.xlu0 %v3772_v54  ;;  %v3773_v47 = vmul.f32 %v3769_v43, %v3769_v43 }
0x1ba4   :  { %3778 = vadd.xlane.f32.xlu1 %v3773_v47 }
0x1be6   :  { %v10764_v9 = vpop.f32.mrb[76].mxu0 }
0x1be7   :  { %v3647_v36 = vmax.f32 %v10764_v9, 1e-30  ;;  %v3637_v19 = vpop.f32.mrb[77].mxu0  ;;  %v12076_v9 = vld [vmem:[%s15940_s10 + $0x148] sm:$0xff]  }
0x1be8   :  { %v3646_v33 = vmax.f32 %v3637_v19, 1e-30  ;;  %v12078_v19 = vld [vmem:[%s15940_s10 + $0x150] sm:$0xff]  }
0x1be9   :  { %12414 = vrcp.f32 %v3647_v36  ;;  %v12077_v36 = vld [vmem:[%s15940_s10 + $0x108] sm:$0xff]  }
0x1bea   :  { %12416 = vrcp.f32 %v3646_v33  ;;  %v12079_v33 = vld [vmem:[%s15940_s10 + $0x110] sm:$0xff]  }
0x1bf3   :  { %v12415_v44 = vpop.eup %12414 }
0x1bf4   :  { %v12417_v22 = vpop.eup %12416  ;;  %v3651_v31 = vmul.f32 %v12415_v44, %v12413_v26  ;;  %v12080_v44 = vld [vmem:[%s15940_s10 + $0x158] sm:$0xff]  }
0x1bf5   :  { %v3650_v56 = vmul.f32 %v12417_v22, %v12411_v13  ;;  %v12081_v22 = vld [vmem:[%s15940_s10 + $0x118] sm:$0xff]  }
0x1bf7   :  { %v3652_v2 = vpack.c.bf16 %v3651_v31, %v3650_v56  ;;  %v12082_v31 = vld [vmem:[%s15940_s10 + $0x160] sm:$0xff]  }
0x1bf8   :  { %v12083_v56 = vld [vmem:[%s15940_s10 + $0x120] sm:$0xff]  }
0x1bf9   :  { %10782 = vmatmul.mubr.bf16.vlgmr.msra.gmra.mrb[80].mxu0 %v3652_v2  ;;  %v12085_v2 = vld [vmem:[%s15940_s10 + $0x128] sm:$0xff]  }
0x1bfa   :  { %3914 = vmatpush1.bf16.msra.mxu0 %v12050_v60  ;;  %3945 = vmatprep.mubr.bf16.mxu0 %v12574_v1  ;;  %v12084_v60 = vld [vmem:[%s15940_s10 + $0x168] sm:$0xff]  }
0x1bfb   :  { %3915 = vmatprep.subr.bf16.mxu0 %v12055_v5  ;;  %v12086_v5 = vld [vmem:[%s15940_s10 + $0x170] sm:$0xff]  }
0x1bfe   :  { %3916 = vmatpush1.bf16.msra.mxu0 %v12053_v49  ;;  %v12087_v49 = vld [vmem:[%s15940_s10 + $0x130] sm:$0xff]  }
0x1bff   :  { %3917 = vmatprep.subr.bf16.mxu0 %v12058_v10  ;;  %v12088_v10 = vld [vmem:[%s15940_s10 + $0x178] sm:$0xff]  }
0x1c02   :  { %3918 = vmatpush1.bf16.msra.mxu0 %v12056_v42  ;;  %v12089_v42 = vld [vmem:[%s15940_s10 + $0x138] sm:$0xff]  }
0x1c03   :  { %3919 = vmatprep.subr.bf16.mxu0 %v12061_v8  ;;  %v8757_v8 = vld [vmem:[%s15941_s9 + $0x4] sm:$0x3] }
0x1c06   :  { %3920 = vmatpush1.bf16.msra.mxu0 %v12059_v20  ;;  %v14272_v20 = vrot.slane %v8757_v8, %v12767_v32 }
0x1c07   :  { %3921 = vmatprep.subr.bf16.mxu0 %v12064_v0  ;;  %v14275_v0 = vrot.slane %v8757_v8, %v12775_v34 }
0x1c0a   :  { %3922 = vmatpush1.bf16.msra.mxu0 %v12062_v27 }
0x1c0b   :  { %3923 = vmatprep.subr.bf16.mxu0 %v12067_v55 }
0x1c0e   :  { %3924 = vmatpush1.bf16.msra.mxu0 %v12065_v15 }
0x1c0f   :  { %3925 = vmatprep.subr.bf16.mxu0 %v12070_v17 }
0x1c12   :  { %3926 = vmatpush1.bf16.msra.mxu0 %v12068_v48 }
0x1c13   :  { %3927 = vmatprep.subr.bf16.mxu0 %v12073_v61 }
0x1c16   :  { %3928 = vmatpush1.bf16.msra.mxu0 %v12071_v39 }
0x1c2f   :  { %v3777_v28 = vpop.xlane.xlu0 %3776 }
0x1c30   :  { %v3784_v59 = vmul.f32 0.0078125, %v3777_v28 }
0x1c31   :  { %v3779_v14 = vpop.xlane.xlu1 %3778 }
0x1c32   :  { %v3788_v29 = vadd.f32 1e-05, %v3784_v59  ;;  %v3785_v24 = vmul.f32 0.0078125, %v3779_v14 }
0x1c34   :  { %12418 = vrsqrt.f32 %v3788_v29  ;;  %v3789_v13 = vadd.f32 1e-05, %v3785_v24 }
0x1c36   :  { %12420 = vrsqrt.f32 %v3789_v13 }
0x1c3e   :  { %v12419_v26 = vpop.eup %12418 }
0x1c3f   :  { %v3796_v51 = vmul.f32 %v12419_v26, %v3768_v40 }
0x1c40   :  { %v12421_v18 = vpop.eup %12420 }
0x1c41   :  { %v3797_v53 = vmul.f32 %v12421_v18, %v3769_v43  ;;  %v3806_v52 = vmul.f32 %v14202_v3, %v3796_v51  ;;  %v12075_v43 = vld [vmem:[%s15940_s10 + $0x100] sm:$0xff]  }
0x1c43   :  { %v3807_v35 = vmul.f32 %v14202_v3, %v3797_v53  ;;  %v14212_v12 = vadd.f32 %v14208_v4, %v3806_v52 }
0x1c45   :  { %v14215_v11 = vadd.f32 %v14208_v4, %v3807_v35 }
0x1c47   :  { %v3820_v57 = vpack.c.bf16 %v14215_v11, %v14212_v12 }
0x1c49   :  { %3946 = vmatmul.mubr.bf16.vlgmr.msra.gmra.mrb[84].mxu0 %v3820_v57 }
0x1c4a   :  { %3955 = vmatprep.mubr.bf16.mxu0 %v12574_v1 }
0x1ccc   :  { %v3687_v7 = vpop.f32.mrb[80].mxu0 }
0x1ccd   :  { %v10783_v40 = vpop.f32.mrb[81].mxu0 }
0x1cce   :  { %v3690_v6 = vpop.f32.mrb[82].mxu0 }
0x1ccf   :  { %v3694_v54 = vpack.c.bf16 %v3690_v6, %v3687_v7  ;;  %v10784_v47 = vpop.f32.mrb[83].mxu0 }
0x1cd1   :  { %10802 = vmatmul.mubr.bf16.vlgmr.msra.gmra.mrb[68].mxu1 %v3694_v54 }
0x1cd2   :  { %9755 = vmatpush3.bf16.msra.mxu1 %v12075_v43 }
0x1cd3   :  { %9756 = vmatprep.subr.bf16.mxu1 %v12076_v9 }
0x1cd6   :  { %9757 = vmatpush3.bf16.msra.mxu1 %v12077_v36 }
0x1cd7   :  { %9758 = vmatprep.subr.bf16.mxu1 %v12078_v19 }
0x1cda   :  { %9759 = vmatpush3.bf16.msra.mxu1 %v12079_v33 }
0x1cdb   :  { %9760 = vmatprep.subr.bf16.mxu1 %v12080_v44 }
0x1cde   :  { %9761 = vmatpush3.bf16.msra.mxu1 %v12081_v22 }
0x1cdf   :  { %9762 = vmatprep.subr.bf16.mxu1 %v12082_v31 }
0x1ce2   :  { %9763 = vmatpush3.bf16.msra.mxu1 %v12083_v56 }
0x1ce3   :  { %9764 = vmatprep.subr.bf16.mxu1 %v12084_v60 }
0x1ce6   :  { %9765 = vmatpush3.bf16.msra.mxu1 %v12085_v2 }
0x1ce7   :  { %9766 = vmatprep.subr.bf16.mxu1 %v12086_v5 }
0x1cea   :  { %9767 = vmatpush3.bf16.msra.mxu1 %v12087_v49  ;;  %v12090_v49 = vld [vmem:[%s15960_s23 + $0x240] ss:$12 sps:$4 sm:$0xff]  }
0x1ceb   :  { %9768 = vmatprep.subr.bf16.mxu1 %v12088_v10  ;;  %v12092_v10 = vld [vmem:[%s15960_s23 + $0x244] ss:$12 sps:$4 sm:$0xff]  }
0x1cec   :  { %4459 = vmatprep.subr.bf16.mxu0 %v12092_v10 }
0x1ced   :  { %4460 = vmatpush1.bf16.msra.mxu0 %v12090_v49 }
0x1cee   :  { %9769 = vmatpush3.bf16.msra.mxu1 %v12089_v42  ;;  %v12095_v42 = vld [vmem:[%s15960_s23 + $0x25c] ss:$12 sps:$4 sm:$0xff]  }
0x1cef   :  { %4461 = vmatprep.subr.bf16.mxu0 %v12095_v42 }
0x1d1c   :  { %v3947_v27 = vpop.f32.mrb[84].mxu0 }
0x1d1d   :  { %v3948_v55 = vadd.f32 %v3947_v27, %v14272_v20  ;;  %v3949_v15 = vpop.f32.mrb[85].mxu0 }
0x1d1e   :  { %v3950_v17 = vadd.f32 %v3949_v15, %v14275_v0  ;;  %v3951_v48 = vpop.f32.mrb[86].mxu0 }
0x1d1f   :  { %v3952_v61 = vadd.f32 %v3951_v48, %v14272_v20  ;;  %v3953_v39 = vpop.f32.mrb[87].mxu0  ;;  %v3966_v59 = vmax.f32 %v3948_v55, 0.0 }
0x1d20   :  { %v3954_v28 = vadd.f32 %v3953_v39, %v14275_v0  ;;  %v3967_v29 = vmax.f32 %v3950_v17, 0.0 }
0x1d21   :  { %v3968_v14 = vmax.f32 %v3952_v61, 0.0 }
0x1d22   :  { %v3969_v24 = vmax.f32 %v3954_v28, 0.0 }
0x1d23   :  { %v3974_v13 = vpack.c.bf16 %v3968_v14, %v3966_v59 }
0x1d24   :  { %v3975_v26 = vpack.c.bf16 %v3969_v24, %v3967_v29 }
0x1d26   :  { %4112 = vmatprep.mubr.bf16.mxu1 %v3975_v26 }
0x1d27   :  { %4113 = vmatmul.mubr.bf16.vlgmr.msra.gmra.mrb[72].mxu1 %v3974_v13 }
0x1da4   :  { %v3729_v51 = vpop.f32.mrb[68].mxu1 }
0x1da5   :  { %v3744_v18 = vadd.f32 %v3729_v51, %v13966_v16  ;;  %v10803_v53 = vpop.f32.mrb[69].mxu1  ;;  %v14288_v16 = vld [vmem:[%s15942_s11 + $0x2] ss:$0 sm:$0xff] }
0x1da6   :  { %v3732_v52 = vpop.f32.mrb[70].mxu1 }
0x1da7   :  { %v3745_v35 = vadd.f32 %v3732_v52, %v13969_v45  ;;  %v10804_v57 = vpop.f32.mrb[71].mxu1  ;;  %v3754_v41 = vadd.f32 %v14119_v38, %v3744_v18 }
0x1da9   :  { %3760 = vadd.xlane.f32.xlu0 %v3754_v41  ;;  %v3755_v7 = vadd.f32 %v14119_v38, %v3745_v35 }
0x1dab   :  { %3762 = vadd.xlane.f32.xlu1 %v3755_v7 }
0x1dfa   :  { %v9770_v40 = vpop.f32.mrb[72].mxu1 }
0x1dfb   :  { %v9771_v6 = vpop.f32.mrb[73].mxu1 }
0x1dfc   :  { %v9772_v43 = vadd.f32 %v9771_v6, %v9770_v40  ;;  %v9773_v54 = vpop.f32.mrb[74].mxu1  ;;  %v12099_v40 = vld [vmem:[%s15960_s23 + $0x288] ss:$12 sps:$4 sm:$0xff]   ;;  %v12104_v6 = vld [vmem:[%s15960_s23 + $0x2a4] ss:$12 sps:$4 sm:$0xff]  }
0x1dfd   :  { %v9774_v47 = vpop.f32.mrb[75].mxu1 }
0x1dfe   :  { %v9775_v9 = vadd.f32 %v9774_v47, %v9773_v54  ;;  %v4115_v22 = vadd.f32 %v9772_v43, %v14288_v16  ;;  %v12102_v43 = vld [vmem:[%s15960_s23 + $0x2a0] ss:$12 sps:$4 sm:$0xff]   ;;  %v12107_v54 = vld [vmem:[%s15960_s23 + $0x2bc] ss:$12 sps:$4 sm:$0xff]   ;;  %v12105_v47 = vld [vmem:[%s15960_s23 + $0x2b8] ss:$12 sps:$4 sm:$0xff]  }
0x1e00   :  { %v4118_v56 = vadd.f32 %v9775_v9, %v14288_v16  ;;  %v4129_v2 = vadd.f32 %v4115_v22, %v14212_v12  ;;  %v12093_v12 = vld [vmem:[%s15960_s23 + $0x258] ss:$12 sps:$4 sm:$0xff]   ;;  %v12108_v9 = vld [vmem:[%s15960_s23 + $0x2d0] ss:$12 sps:$4 sm:$0xff]  }
0x1e01   :  { %4462 = vmatpush1.bf16.msra.mxu0 %v12093_v12  ;;  %v14363_v12 = vld [vmem:[%s15944_s15 + $0x2] ss:$0 sm:$0xff] }
0x1e02   :  { %v4130_v5 = vadd.f32 %v4118_v56, %v14215_v11 }
0x1e36   :  { %v3761_v36 = vpop.xlane.xlu0 %3760 }
0x1e37   :  { %v3766_v19 = vmul.f32 0.0078125, %v3761_v36  ;;  %v12110_v36 = vld [vmem:[%s15960_s23 + $0x2d4] ss:$12 sps:$4 sm:$0xff]  }
0x1e38   :  { %v3763_v45 = vpop.xlane.xlu1 %3762 }
0x1e39   :  { %v3770_v33 = vsub.f32 %v3754_v41, %v3766_v19  ;;  %v3767_v44 = vmul.f32 0.0078125, %v3763_v45  ;;  %v12113_v19 = vld [vmem:[%s15960_s23 + $0x2ec] ss:$12 sps:$4 sm:$0xff]   ;;  %v12111_v45 = vld [vmem:[%s15960_s23 + $0x2e8] ss:$12 sps:$4 sm:$0xff]  }
0x1e3b   :  { %v3771_v38 = vsub.f32 %v3755_v7, %v3767_v44  ;;  %v3774_v31 = vmul.f32 %v3770_v33, %v3770_v33  ;;  %v12098_v7 = vld [vmem:[%s15960_s23 + $0x274] ss:$12 sps:$4 sm:$0xff]  }
0x1e3c   :  { %4463 = vmatprep.subr.bf16.mxu0 %v12098_v7 }
0x1e3d   :  { %3780 = vadd.xlane.f32.xlu0 %v3774_v31  ;;  %v3775_v60 = vmul.f32 %v3771_v38, %v3771_v38 }
0x1e3f   :  { %3782 = vadd.xlane.f32.xlu1 %v3775_v60 }
0x1e41   :  { %4133 = vadd.xlane.f32.xlu0 %v4129_v2 }
0x1e43   :  { %4135 = vadd.xlane.f32.xlu1 %v4130_v5 }
0x1eca   :  { %v3781_v11 = vpop.xlane.xlu0 %3780 }
0x1ecb   :  { %v3786_v8 = vmul.f32 0.0078125, %v3781_v11 }
0x1ecc   :  { %v3783_v27 = vpop.xlane.xlu1 %3782 }
0x1ecd   :  { %v3790_v55 = vadd.f32 1e-05, %v3786_v8  ;;  %v3787_v15 = vmul.f32 0.0078125, %v3783_v27 }
0x1ece   :  { %v4134_v17 = vpop.xlane.xlu0 %4133 }
0x1ecf   :  { %12422 = vrsqrt.f32 %v3790_v55  ;;  %v3791_v48 = vadd.f32 1e-05, %v3787_v15  ;;  %v4141_v61 = vmul.f32 0.0078125, %v4134_v17 }
0x1ed0   :  { %v4136_v39 = vpop.xlane.xlu1 %4135 }
0x1ed1   :  { %12424 = vrsqrt.f32 %v3791_v48  ;;  %v4145_v28 = vsub.f32 %v4129_v2, %v4141_v61  ;;  %v4142_v59 = vmul.f32 0.0078125, %v4136_v39  ;;  %v14357_v2 = vld [vmem:[%s15943_s14 + $0x2] ss:$0 sm:$0xff] }
0x1ed3   :  { %v4146_v14 = vsub.f32 %v4130_v5, %v4142_v59  ;;  %v4149_v29 = vmul.f32 %v4145_v28, %v4145_v28 }
0x1ed5   :  { %4153 = vadd.xlane.f32.xlu0 %v4149_v29  ;;  %v4150_v24 = vmul.f32 %v4146_v14, %v4146_v14 }
0x1ed7   :  { %4155 = vadd.xlane.f32.xlu1 %v4150_v24 }
0x1ed9   :  { %v12423_v13 = vpop.eup %12422 }
0x1eda   :  { %v3798_v26 = vmul.f32 %v12423_v13, %v3770_v33 }
0x1edb   :  { %v12425_v51 = vpop.eup %12424 }
0x1edc   :  { %v3799_v18 = vmul.f32 %v12425_v51, %v3771_v38  ;;  %v3808_v53 = vmul.f32 %v14202_v3, %v3798_v26 }
0x1ede   :  { %v3809_v52 = vmul.f32 %v14202_v3, %v3799_v18  ;;  %v14309_v35 = vadd.f32 %v14208_v4, %v3808_v53  ;;  %v12096_v3 = vld [vmem:[%s15960_s23 + $0x270] ss:$12 sps:$4 sm:$0xff]   ;;  %v14382_v53 = vld [vmem:[%s15963_s28 + $0x9] sm:$0x7] }
0x1edf   :  { %4464 = vmatpush1.bf16.msra.mxu0 %v12096_v3 }
0x1ee0   :  { %v14312_v57 = vadd.f32 %v14208_v4, %v3809_v52  ;;  %v12101_v4 = vld [vmem:[%s15960_s23 + $0x28c] ss:$12 sps:$4 sm:$0xff]  }
0x1ee1   :  { %4465 = vmatprep.subr.bf16.mxu0 %v12101_v4 }
0x1ee2   :  { %v3821_v41 = vpack.c.bf16 %v14312_v57, %v14309_v35 }
0x1ee3   :  { %4466 = vmatpush1.bf16.msra.mxu0 %v12099_v40 }
0x1ee4   :  { %3956 = vmatmul.mubr.bf16.gmra.mrb[88].mxu0 %v3821_v41  ;;  %4467 = vmatprep.subr.bf16.mxu0 %v12104_v6 }
0x1ee5   :  { %4491 = vmatprep.mubr.bf16.mxu0 %v12574_v1 }
0x1ee7   :  { %4468 = vmatpush1.bf16.msra.mxu0 %v12102_v43 }
0x1ee8   :  { %4469 = vmatprep.subr.bf16.mxu0 %v12107_v54 }
0x1eeb   :  { %4470 = vmatpush1.bf16.msra.mxu0 %v12105_v47 }
0x1eec   :  { %4471 = vmatprep.subr.bf16.mxu0 %v12110_v36 }
0x1eef   :  { %4472 = vmatpush1.bf16.msra.mxu0 %v12108_v9  ;;  %v14405_v9 = vld [vmem:[%s15964_s4] sm:$0xff]  }
0x1ef0   :  { %4473 = vmatprep.subr.bf16.mxu0 %v12113_v19  ;;  %v14412_v19 = vld [vmem:[%s15964_s4 + $0x8] sm:$0xff]  }
0x1ef3   :  { %4474 = vmatpush1.bf16.msra.mxu0 %v12111_v45 }
0x1ef4   :  { %10825 = vmatprep.subr.bf16.mxu0 %v12575_v23 }
0x1f62   :  { %v4154_v33 = vpop.xlane.xlu0 %4153 }
0x1f63   :  { %v4161_v44 = vmul.f32 0.0078125, %v4154_v33  ;;  %v14419_v33 = vld [vmem:[%s15964_s4 + $0x10] sm:$0xff]  }
0x1f64   :  { %v4156_v22 = vpop.xlane.xlu1 %4155 }
0x1f65   :  { %v4165_v38 = vadd.f32 1e-05, %v4161_v44  ;;  %v4162_v31 = vmul.f32 0.0078125, %v4156_v22  ;;  %v14426_v22 = vld [vmem:[%s15964_s4 + $0x18] sm:$0xff]  }
0x1f67   :  { %12426 = vrsqrt.f32 %v4165_v38  ;;  %v4166_v56 = vadd.f32 1e-05, %v4162_v31  ;;  %v14433_v31 = vld [vmem:[%s15964_s4 + $0x20] sm:$0xff]  }
0x1f69   :  { %12428 = vrsqrt.f32 %v4166_v56 }
0x1f71   :  { %v12427_v60 = vpop.eup %12426 }
0x1f72   :  { %v4173_v5 = vmul.f32 %v12427_v60, %v4145_v28  ;;  %v14440_v60 = vld [vmem:[%s15964_s4 + $0x28] sm:$0xff]  }
0x1f73   :  { %v12429_v49 = vpop.eup %12428 }
0x1f74   :  { %v4183_v10 = vmul.f32 %v14357_v2, %v4173_v5  ;;  %v4174_v42 = vmul.f32 %v12429_v49, %v4146_v14  ;;  %v14447_v49 = vld [vmem:[%s15964_s4 + $0x30] sm:$0xff]  }
0x1f76   :  { %v4184_v11 = vmul.f32 %v14357_v2, %v4174_v42  ;;  %v14367_v8 = vadd.f32 %v14363_v12, %v4183_v10  ;;  %v14454_v42 = vld [vmem:[%s15964_s4 + $0x38] sm:$0xff]  }
0x1f78   :  { %v14370_v27 = vadd.f32 %v14363_v12, %v4184_v11 }
0x1f7a   :  { %v4313_v55 = vpack.c.bf16 %v14370_v27, %v14367_v8 }
0x1f7c   :  { %4492 = vmatmul.mubr.bf16.vlgmr.msra.gmra.mrb[92].mxu0 %v4313_v55 }
0x1f7d   :  { %4501 = vmatprep.mubr.bf16.mxu0 %v12574_v1 }
0x1fb7   :  { %v3957_v15 = vpop.f32.mrb[88].mxu0 }
0x1fb8   :  { %v3958_v17 = vadd.f32 %v3957_v15, %v14272_v20  ;;  %v3959_v48 = vpop.f32.mrb[89].mxu0 }
0x1fb9   :  { %v3960_v61 = vadd.f32 %v3959_v48, %v14275_v0  ;;  %v3961_v39 = vpop.f32.mrb[90].mxu0 }
0x1fba   :  { %v3962_v28 = vadd.f32 %v3961_v39, %v14272_v20  ;;  %v3963_v59 = vpop.f32.mrb[91].mxu0  ;;  %v3970_v29 = vmax.f32 %v3958_v17, 0.0  ;;  %v14386_v20 = vrot.slane %v14382_v53, %v12767_v32 }
0x1fbb   :  { %v3964_v14 = vadd.f32 %v3963_v59, %v14275_v0  ;;  %v3971_v13 = vmax.f32 %v3960_v61, 0.0  ;;  %v14390_v0 = vrot.slane %v14382_v53, %v12775_v34 }
0x1fbc   :  { %v3972_v24 = vmax.f32 %v3962_v28, 0.0 }
0x1fbd   :  { %v3973_v26 = vmax.f32 %v3964_v14, 0.0 }
0x1fbe   :  { %v3976_v51 = vpack.c.bf16 %v3972_v24, %v3970_v29  ;;  %v12114_v24 = vld [vmem:[%s15960_s23 + $0x248] ss:$12 sps:$4 sm:$0xff]  }
0x1fbf   :  { %v3977_v18 = vpack.c.bf16 %v3973_v26, %v3971_v13  ;;  %v12115_v13 = vld [vmem:[%s15960_s23 + $0x260] ss:$12 sps:$4 sm:$0xff]   ;;  %10805 = vmatprep.subr.bf16.mxu1 %v12114_v24 }
0x1fc0   :  { %10806 = vmatpush3.bf16.msra.mxu1 %v12114_v24 }
0x1fc1   :  { %4120 = vmatprep.mubr.bf16.mxu1 %v3977_v18  ;;  %10807 = vmatprep.subr.bf16.mxu1 %v12115_v13 }
0x1fc2   :  { %4121 = vmatmul.mubr.bf16.gmra.mrb[76].mxu1 %v3976_v51 }
0x1fc3   :  { %10821 = vmatprep.mubr.bf16.mxu1 %v4313_v55 }
0x1fc4   :  { %10808 = vmatpush3.bf16.msra.mxu1 %v12115_v13 }
0x204f   :  { %v4493_v52 = vpop.f32.mrb[92].mxu0 }
0x2050   :  { %v4495_v41 = vpop.f32.mrb[93].mxu0  ;;  %v14393_v3 = vadd.f32 %v4493_v52, %v14386_v20 }
0x2051   :  { %v4497_v7 = vpop.f32.mrb[94].mxu0  ;;  %v4496_v6 = vadd.f32 %v4495_v41, %v14390_v0 }
0x2052   :  { %v14396_v4 = vadd.f32 %v4497_v7, %v14386_v20  ;;  %v4499_v40 = vpop.f32.mrb[95].mxu0  ;;  %v12116_v7 = vld [vmem:[%s15960_s23 + $0x278] ss:$12 sps:$4 sm:$0xff]  }
0x2053   :  { %v4500_v43 = vadd.f32 %v4499_v40, %v14390_v0  ;;  %10809 = vmatprep.subr.bf16.mxu1 %v12116_v7  ;;  %v12117_v40 = vld [vmem:[%s15960_s23 + $0x290] ss:$12 sps:$4 sm:$0xff]  }
0x2054   :  { %v4561_v54 = vpack.c.bf16 %v14396_v4, %v14393_v3  ;;  %10810 = vmatpush3.bf16.msra.mxu1 %v12116_v7 }
0x2055   :  { %v4562_v47 = vpack.c.bf16 %v4500_v43, %v4496_v6  ;;  %10811 = vmatprep.subr.bf16.mxu1 %v12117_v40  ;;  %v12118_v6 = vld [vmem:[%s15960_s23 + $0x2a8] ss:$12 sps:$4 sm:$0xff]   ;;  %v12119_v43 = vld [vmem:[%s15960_s23 + $0x2c0] ss:$12 sps:$4 sm:$0xff]  }
0x2057   :  { %v4567_v36 = vmul.bf16 %v14405_v9, %v4562_v47  ;;  %v4568_v45 = vmul.bf16 %v14412_v19, %v4562_v47  ;;  %v4569_v44 = vmul.bf16 %v14419_v33, %v4562_v47  ;;  %v4570_v38 = vmul.bf16 %v14426_v22, %v4562_v47 }
0x2058   :  { %v4571_v56 = vmul.bf16 %v14433_v31, %v4562_v47  ;;  %v4572_v5 = vmul.bf16 %v14440_v60, %v4562_v47  ;;  %v4573_v10 = vmul.bf16 %v14447_v49, %v4562_v47  ;;  %v4574_v11 = vmul.bf16 %v14454_v42, %v4562_v47  ;;  %10812 = vmatpush3.bf16.msra.mxu1 %v12117_v40  ;;  %v12120_v47 = vld [vmem:[%s15960_s23 + $0x2d8] ss:$12 sps:$4 sm:$0xff]  }
0x2059   :  { %10826 = vmatpush3.bf16.xpose.msra.mxu0 %v4567_v36  ;;  %10813 = vmatprep.subr.bf16.mxu1 %v12118_v6  ;;  %v12121_v36 = vld [vmem:[%s15960_s23 + $0x2f0] ss:$12 sps:$4 sm:$0xff]  }
0x205a   :  { %10827 = vmatprep.subr.bf16.mxu0 %v12575_v23 }
0x205c   :  { %10814 = vmatpush3.bf16.msra.mxu1 %v12118_v6 }
0x205d   :  { %10815 = vmatprep.subr.bf16.mxu1 %v12119_v43 }
0x2060   :  { %10816 = vmatpush3.bf16.msra.mxu1 %v12119_v43 }
0x2061   :  { %10828 = vmatpush3.bf16.xpose.msra.mxu0 %v4568_v45  ;;  %10817 = vmatprep.subr.bf16.mxu1 %v12120_v47 }
0x2062   :  { %10829 = vmatprep.subr.bf16.mxu0 %v12575_v23 }
0x2064   :  { %10818 = vmatpush3.bf16.msra.mxu1 %v12120_v47 }
0x2065   :  { %10819 = vmatprep.subr.bf16.mxu1 %v12121_v36 }
0x2068   :  { %10820 = vmatpush3.bf16.msra.mxu1 %v12121_v36 }
0x2069   :  { %10830 = vmatpush3.bf16.xpose.msra.mxu0 %v4569_v44  ;;  %11648 = vmatprep.subr.bf16.mxu1 %v12877_v21 }
0x206a   :  { %10831 = vmatprep.subr.bf16.mxu0 %v12575_v23 }
0x2071   :  { %10832 = vmatpush3.bf16.xpose.msra.mxu0 %v4570_v38 }
0x2072   :  { %10833 = vmatprep.subr.bf16.mxu0 %v12575_v23 }
0x2079   :  { %10834 = vmatpush3.bf16.xpose.msra.mxu0 %v4571_v56 }
0x207a   :  { %10835 = vmatprep.subr.bf16.mxu0 %v12575_v23 }
0x2081   :  { %10836 = vmatpush3.bf16.xpose.msra.mxu0 %v4572_v5 }
0x2082   :  { %10837 = vmatprep.subr.bf16.mxu0 %v12575_v23 }
0x2089   :  { %10838 = vmatpush3.bf16.xpose.msra.mxu0 %v4573_v10 }
0x208a   :  { %10839 = vmatprep.subr.bf16.mxu0 %v12575_v23 }
0x2091   :  { %10840 = vmatpush3.bf16.xpose.msra.mxu0 %v4574_v11 }
0x2092   :  { %10900 = vmatprep.subr.bf16.mxu0 %v12575_v23 }
0x2095   :  { %v9776_v55 = vpop.f32.mrb[76].mxu1 }
0x2096   :  { %v9777_v15 = vpop.f32.mrb[77].mxu1 }
0x2097   :  { %v9778_v17 = vadd.f32 %v9777_v15, %v9776_v55  ;;  %v9779_v48 = vpop.f32.mrb[78].mxu1 }
0x2098   :  { %v9780_v61 = vpop.f32.mrb[79].mxu1 }
0x2099   :  { %v4123_v39 = vadd.f32 %v9778_v17, %v14288_v16  ;;  %v9781_v28 = vadd.f32 %v9780_v61, %v9779_v48 }
0x209b   :  { %v4126_v59 = vadd.f32 %v9781_v28, %v14288_v16  ;;  %v4131_v14 = vadd.f32 %v4123_v39, %v14309_v35 }
0x209d   :  { %4137 = vadd.xlane.f32.xlu0 %v4131_v14  ;;  %v4132_v29 = vadd.f32 %v4126_v59, %v14312_v57 }
0x209f   :  { %4139 = vadd.xlane.f32.xlu1 %v4132_v29 }
0x212a   :  { %v4138_v26 = vpop.xlane.xlu0 %4137 }
0x212b   :  { %v4143_v16 = vmul.f32 0.0078125, %v4138_v26 }
0x212c   :  { %v4140_v51 = vpop.xlane.xlu1 %4139 }
0x212d   :  { %v4147_v35 = vsub.f32 %v4131_v14, %v4143_v16  ;;  %v4144_v18 = vmul.f32 0.0078125, %v4140_v51 }
0x212f   :  { %v4148_v52 = vsub.f32 %v4132_v29, %v4144_v18  ;;  %v4151_v57 = vmul.f32 %v4147_v35, %v4147_v35 }
0x2131   :  { %4157 = vadd.xlane.f32.xlu0 %v4151_v57  ;;  %v4152_v41 = vmul.f32 %v4148_v52, %v4148_v52 }
0x2133   :  { %4159 = vadd.xlane.f32.xlu1 %v4152_v41 }
0x21be   :  { %v4158_v45 = vpop.xlane.xlu0 %4157 }
0x21bf   :  { %v4163_v44 = vmul.f32 0.0078125, %v4158_v45 }
0x21c0   :  { %v4160_v38 = vpop.xlane.xlu1 %4159 }
0x21c1   :  { %v4167_v56 = vadd.f32 1e-05, %v4163_v44  ;;  %v4164_v5 = vmul.f32 0.0078125, %v4160_v38 }
0x21c3   :  { %12430 = vrsqrt.f32 %v4167_v56  ;;  %v4168_v10 = vadd.f32 1e-05, %v4164_v5 }
0x21c5   :  { %12432 = vrsqrt.f32 %v4168_v10 }
0x21cd   :  { %v12431_v11 = vpop.eup %12430 }
0x21ce   :  { %v4175_v55 = vmul.f32 %v12431_v11, %v4147_v35 }
0x21cf   :  { %v12433_v15 = vpop.eup %12432 }
0x21d0   :  { %v4176_v17 = vmul.f32 %v12433_v15, %v4148_v52  ;;  %v4185_v48 = vmul.f32 %v14357_v2, %v4175_v55 }
0x21d2   :  { %v4186_v61 = vmul.f32 %v14357_v2, %v4176_v17  ;;  %v14490_v39 = vadd.f32 %v14363_v12, %v4185_v48  ;;  %v4327_v2 = vrot.slane %v14382_v53, %v12954_v63 }
0x21d4   :  { %v14493_v28 = vadd.f32 %v14363_v12, %v4186_v61 }
0x21d6   :  { %v4314_v59 = vpack.c.bf16 %v14493_v28, %v14490_v39 }
0x21d8   :  { %4502 = vmatmul.mubr.bf16.gmra.mrb[96].mxu0 %v4314_v59  ;;  %10822 = vmatmul.mubr.bf16.vlgmr.msra.gmra.mrb[80].mxu1 %v4314_v59 }
0x21d9   :  { %10841 = vmatprep.mubr.msk.bf16.mxu0 %vm12576_vm1, %v12575_v23  ;;  %11650 = vmatpush3.bf16.msra.mxu1 %v12877_v21 }
0x21da   :  { %11652 = vmatprep.subr.bf16.mxu1 %v12886_v25 }
0x21dd   :  { %11654 = vmatpush3.bf16.msra.mxu1 %v12886_v25 }
0x21de   :  { %11656 = vmatprep.subr.bf16.mxu1 %v12897_v30 }
0x21e0   :  { %10842 = vmatmul.mubr.bf16.vlgmr.msra.gmra.mrb[100].mxu0 %v4561_v54 }
0x21e1   :  { %11658 = vmatpush3.bf16.msra.mxu1 %v12897_v30  ;;  %10916 = vmatprep.mubr.msk.bf16.mxu0 %vm12576_vm1, %v12575_v23 }
0x21e2   :  { %11660 = vmatprep.subr.bf16.mxu1 %v12907_v37 }
0x21e5   :  { %11662 = vmatpush3.bf16.msra.mxu1 %v12907_v37 }
0x21e6   :  { %11664 = vmatprep.subr.bf16.mxu1 %v12918_v46 }
0x21e9   :  { %11666 = vmatpush3.bf16.msra.mxu1 %v12918_v46 }
0x21ea   :  { %11668 = vmatprep.subr.bf16.mxu1 %v12928_v50 }
0x21ed   :  { %11670 = vmatpush3.bf16.msra.mxu1 %v12928_v50 }
0x21ee   :  { %11672 = vmatprep.subr.bf16.mxu1 %v12941_v58 }
0x21f1   :  { %11674 = vmatpush3.bf16.msra.mxu1 %v12941_v58 }
0x21f2   :  { %11676 = vmatprep.subr.bf16.mxu1 %v12946_v62 }
0x21f5   :  { %11678 = vmatpush3.bf16.msra.mxu1 %v12946_v62 }
0x21f6   :  { %10880 = vmatprep.subr.bf16.mxu1 %v12575_v23 }
0x22ab   :  { %v4503_v12 = vpop.f32.mrb[96].mxu0  ;;  %v10823_v3 = vpop.f32.mrb[80].mxu1 }
0x22ac   :  { %v4555_v4 = vadd.f32 %v10823_v3, %v4327_v2  ;;  %v4505_v54 = vpop.f32.mrb[97].mxu0  ;;  %v4546_v14 = vpop.f32.mrb[81].mxu1  ;;  %v14523_v13 = vadd.f32 %v4503_v12, %v14386_v20 }
0x22ad   :  { %v4507_v29 = vpop.f32.mrb[98].mxu0  ;;  %v10824_v24 = vpop.f32.mrb[82].mxu1  ;;  %v4506_v18 = vadd.f32 %v4505_v54, %v14390_v0  ;;  %v4547_v52 = vadd.f32 %v4546_v14, %v4327_v2  ;;  %v12122_v54 = vld [vmem:[%s15935_s6 + $0xc0] sm:$0xff]   ;;  %v12123_v14 = vld [vmem:[%s15935_s6 + $0xc8] sm:$0xff]  }
0x22ae   :  { %v14526_v26 = vadd.f32 %v4507_v29, %v14386_v20  ;;  %v4558_v16 = vadd.f32 %v10824_v24, %v4327_v2  ;;  %v4509_v51 = vpop.f32.mrb[99].mxu0  ;;  %v4549_v35 = vpop.f32.mrb[83].mxu1  ;;  %10901 = vmatpush3.bf16.msra.mxu0 %v12122_v54  ;;  %v12124_v29 = vld [vmem:[%s15935_s6 + $0xd0] sm:$0xff]   ;;  %v12125_v24 = vld [vmem:[%s15935_s6 + $0xd8] sm:$0xff]  }
0x22af   :  { %v4510_v53 = vadd.f32 %v4509_v51, %v14390_v0  ;;  %v4550_v57 = vadd.f32 %v4549_v35, %v4327_v2  ;;  %10902 = vmatprep.subr.bf16.mxu0 %v12575_v23  ;;  %v12127_v51 = vld [vmem:[%s15935_s6 + $0xe8] sm:$0xff]   ;;  %v12128_v35 = vld [vmem:[%s15935_s6 + $0xf0] sm:$0xff]  }
0x22b0   :  { %v4564_v41 = vpack.c.bf16 %v14526_v26, %v14523_v13  ;;  %v14532_v7 = vpack.c.bf16 %v4558_v16, %v4555_v4  ;;  %v12126_v16 = vld [vmem:[%s15935_s6 + $0xe0] sm:$0xff]   ;;  %v12129_v13 = vld [vmem:[%s15935_s6 + $0xf8] sm:$0xff]  }
0x22b1   :  { %v14534_v40 = vpack.c.bf16 %v4510_v53, %v4506_v18  ;;  %v4563_v6 = vpack.c.bf16 %v4550_v57, %v4547_v52 }
0x22b2   :  { %10903 = vmatpush3.bf16.msra.mxu0 %v12123_v14 }
0x22b3   :  { %v4617_v43 = vpop.f32.mrb[100].mxu0  ;;  %v4575_v17 = vmul.bf16 %v14405_v9, %v4563_v6  ;;  %v4576_v48 = vmul.bf16 %v14412_v19, %v4563_v6  ;;  %v4577_v61 = vmul.bf16 %v14419_v33, %v4563_v6  ;;  %v4578_v59 = vmul.bf16 %v14426_v22, %v4563_v6  ;;  %10904 = vmatprep.subr.bf16.mxu0 %v12575_v23 }
0x22b4   :  { %v4624_v20 = vmul.f32 0.25, %v4617_v43  ;;  %v10843_v47 = vpop.f32.mrb[101].mxu0  ;;  %v4579_v2 = vmul.bf16 %v14433_v31, %v4563_v6  ;;  %v4580_v12 = vmul.bf16 %v14440_v60, %v4563_v6  ;;  %v4581_v3 = vmul.bf16 %v14447_v49, %v4563_v6 }
0x22b5   :  { %v4620_v36 = vpop.f32.mrb[102].mxu0  ;;  %v4582_v4 = vmul.bf16 %v14454_v42, %v4563_v6 }
0x22b6   :  { %v4625_v45 = vmul.f32 0.25, %v4620_v36  ;;  %4626 = vmax.xlane.f32.xlu0 %v4624_v20  ;;  %v10844_v44 = vpop.f32.mrb[103].mxu0  ;;  %10905 = vmatpush3.bf16.msra.mxu0 %v12124_v29 }
0x22b7   :  { %10906 = vmatprep.subr.bf16.mxu0 %v12575_v23  ;;  %v4852_v44 = vmul.bf16 %v14412_v19, %v14534_v40 }
0x22b8   :  { %4628 = vmax.xlane.f32.xlu1 %v4625_v45 }
0x22ba   :  { %10907 = vmatpush3.bf16.msra.mxu0 %v12125_v24 }
0x22bb   :  { %10908 = vmatprep.subr.bf16.mxu0 %v12575_v23 }
0x22be   :  { %10909 = vmatpush3.bf16.msra.mxu0 %v12126_v16 }
0x22bf   :  { %10910 = vmatprep.subr.bf16.mxu0 %v12575_v23 }
0x22c2   :  { %10911 = vmatpush3.bf16.msra.mxu0 %v12127_v51 }
0x22c3   :  { %10912 = vmatprep.subr.bf16.mxu0 %v12575_v23 }
0x22c6   :  { %10913 = vmatpush3.bf16.msra.mxu0 %v12128_v35 }
0x22c7   :  { %10914 = vmatprep.subr.bf16.mxu0 %v12575_v23 }
0x22ca   :  { %10915 = vmatpush3.bf16.msra.mxu0 %v12129_v13 }
0x22cb   :  { %11680 = vmatprep.subr.bf16.mxu0 %v12877_v21 }
0x2343   :  { %v4627_v38 = vpop.xlane.xlu0 %4626 }
0x2344   :  { %v4630_v56 = vsub.f32 %v4624_v20, %v4627_v38  ;;  %v4853_v38 = vmul.bf16 %v14419_v33, %v14534_v40 }
0x2345   :  { %v4629_v0 = vpop.xlane.xlu1 %4628 }
0x2346   :  { %v4632_v5 = vmul.f32 1.442695, %v4630_v56  ;;  %v4631_v10 = vsub.f32 %v4625_v45, %v4629_v0  ;;  %v4851_v45 = vmul.bf16 %v14405_v9, %v14534_v40  ;;  %v4854_v56 = vmul.bf16 %v14426_v22, %v14534_v40 }
0x2347   :  { %v4855_v0 = vmul.bf16 %v14433_v31, %v14534_v40 }
0x2348   :  { %12434 = vpow2.f32 %v4632_v5  ;;  %v4634_v11 = vmul.f32 1.442695, %v4631_v10  ;;  %v4856_v5 = vmul.bf16 %v14440_v60, %v14534_v40  ;;  %v4857_v10 = vmul.bf16 %v14447_v49, %v14534_v40 }
0x234a   :  { %12436 = vpow2.f32 %v4634_v11  ;;  %v4858_v11 = vmul.bf16 %v14454_v42, %v14534_v40 }
0x2352   :  { %v12435_v55 = vpop.eup %12434 }
0x2353   :  { %10877 = vmatprep.mubr.f32.mxu1 %v12435_v55 }
0x2354   :  { %v12437_v15 = vpop.eup %12436 }
0x2355   :  { %10878 = vmatmul.mubr.f32.vlgmr.msra.gmra.mrb[58].mxu1 %v12437_v15 }
0x2356   :  { %10881 = vmatpush3.bf16.msra.mxu1 %v4575_v17  ;;  %10896 = vmatprep.mubr.msk.bf16.mxu1 %vm12576_vm1, %v12575_v23 }
0x2357   :  { %10882 = vmatprep.subr.bf16.mxu1 %v12575_v23 }
0x235a   :  { %10883 = vmatpush3.bf16.msra.mxu1 %v4576_v48 }
0x235b   :  { %10884 = vmatprep.subr.bf16.mxu1 %v12575_v23 }
0x235e   :  { %10885 = vmatpush3.bf16.msra.mxu1 %v4577_v61 }
0x235f   :  { %10886 = vmatprep.subr.bf16.mxu1 %v12575_v23 }
0x2362   :  { %10887 = vmatpush3.bf16.msra.mxu1 %v4578_v59 }
0x2363   :  { %10888 = vmatprep.subr.bf16.mxu1 %v12575_v23 }
0x2366   :  { %10889 = vmatpush3.bf16.msra.mxu1 %v4579_v2 }
0x2367   :  { %10890 = vmatprep.subr.bf16.mxu1 %v12575_v23 }
0x236a   :  { %10891 = vmatpush3.bf16.msra.mxu1 %v4580_v12 }
0x236b   :  { %10892 = vmatprep.subr.bf16.mxu1 %v12575_v23 }
0x236e   :  { %10893 = vmatpush3.bf16.msra.mxu1 %v4581_v3 }
0x236f   :  { %10894 = vmatprep.subr.bf16.mxu1 %v12575_v23 }
0x2372   :  { %10895 = vmatpush3.bf16.msra.mxu1 %v4582_v4 }
0x2373   :  { %10920 = vmatprep.subr.bf16.mxu1 %v12575_v23 }
0x2428   :  { %v10879_v18 = vpop.f32.mrb[58].mxu1 }
0x2429   :  { %v4712_v52 = vmax.f32 %v10879_v18, 1e-30  ;;  %v4702_v53 = vpop.f32.mrb[59].mxu1 }
0x242a   :  { %v4711_v57 = vmax.f32 %v4702_v53, 1e-30 }
0x242b   :  { %12438 = vrcp.f32 %v4712_v52 }
0x242c   :  { %12440 = vrcp.f32 %v4711_v57 }
0x2435   :  { %v12439_v6 = vpop.eup %12438 }
0x2436   :  { %v12441_v43 = vpop.eup %12440  ;;  %v4716_v20 = vmul.f32 %v12439_v6, %v12437_v15 }
0x2437   :  { %v4715_v47 = vmul.f32 %v12441_v43, %v12435_v55 }
0x2439   :  { %v4717_v36 = vpack.c.bf16 %v4716_v20, %v4715_v47 }
0x243b   :  { %10897 = vmatmul.mubr.bf16.vlgmr.msra.gmra.mrb[84].mxu1 %v4717_v36  ;;  %v4859_v36 = vmul.bf16 %v14405_v9, %v14532_v7  ;;  %v4862_v9 = vmul.bf16 %v14426_v22, %v14532_v7  ;;  %v4866_v22 = vmul.bf16 %v14454_v42, %v14532_v7 }
0x243c   :  { %10921 = vmatpush3.bf16.xpose.msra.mxu1 %v4851_v45  ;;  %10936 = vmatprep.mubr.msk.bf16.mxu1 %vm12576_vm1, %v12575_v23  ;;  %v4863_v45 = vmul.bf16 %v14433_v31, %v14532_v7  ;;  %v12132_v31 = vld [vmem:[%s15937_s8 + $0x184] ss:$8 sps:$4 sm:$0xff]  }
0x243d   :  { %10922 = vmatprep.subr.bf16.mxu1 %v12575_v23 }
0x2444   :  { %10923 = vmatpush3.bf16.xpose.msra.mxu1 %v4852_v44 }
0x2445   :  { %10924 = vmatprep.subr.bf16.mxu1 %v12575_v23 }
0x244c   :  { %10925 = vmatpush3.bf16.xpose.msra.mxu1 %v4853_v38 }
0x244d   :  { %10926 = vmatprep.subr.bf16.mxu1 %v12575_v23 }
0x2454   :  { %10927 = vmatpush3.bf16.xpose.msra.mxu1 %v4854_v56 }
0x2455   :  { %10928 = vmatprep.subr.bf16.mxu1 %v12575_v23 }
0x245c   :  { %10929 = vmatpush3.bf16.xpose.msra.mxu1 %v4855_v0 }
0x245d   :  { %10930 = vmatprep.subr.bf16.mxu1 %v12575_v23 }
0x2464   :  { %10931 = vmatpush3.bf16.xpose.msra.mxu1 %v4856_v5 }
0x2465   :  { %10932 = vmatprep.subr.bf16.mxu1 %v12575_v23 }
0x246c   :  { %10933 = vmatpush3.bf16.xpose.msra.mxu1 %v4857_v10 }
0x246d   :  { %10934 = vmatprep.subr.bf16.mxu1 %v12575_v23 }
0x2474   :  { %10935 = vmatpush3.bf16.xpose.msra.mxu1 %v4858_v11 }
0x2475   :  { %10995 = vmatprep.subr.bf16.mxu1 %v12575_v23 }
0x247b   :  { %10937 = vmatmul.mubr.bf16.vlgmr.msra.gmra.mrb[88].mxu1 %v4564_v41 }
0x247c   :  { %10996 = vmatpush3.bf16.msra.mxu1 %v12122_v54  ;;  %11011 = vmatprep.mubr.msk.bf16.mxu1 %vm12576_vm1, %v12575_v23 }
0x247d   :  { %10997 = vmatprep.subr.bf16.mxu1 %v12575_v23 }
0x2480   :  { %10998 = vmatpush3.bf16.msra.mxu1 %v12123_v14 }
0x2481   :  { %10999 = vmatprep.subr.bf16.mxu1 %v12575_v23 }
0x2484   :  { %11000 = vmatpush3.bf16.msra.mxu1 %v12124_v29 }
0x2485   :  { %11001 = vmatprep.subr.bf16.mxu1 %v12575_v23 }
0x2488   :  { %11002 = vmatpush3.bf16.msra.mxu1 %v12125_v24 }
0x2489   :  { %11003 = vmatprep.subr.bf16.mxu1 %v12575_v23 }
0x248c   :  { %11004 = vmatpush3.bf16.msra.mxu1 %v12126_v16 }
0x248d   :  { %11005 = vmatprep.subr.bf16.mxu1 %v12575_v23 }
0x2490   :  { %11006 = vmatpush3.bf16.msra.mxu1 %v12127_v51  ;;  %v14643_v51 = vld [vmem:[%s15936_s7 + $0x3] ss:$0 sm:$0xff] }
0x2491   :  { %11007 = vmatprep.subr.bf16.mxu1 %v12575_v23 }
0x2494   :  { %11008 = vmatpush3.bf16.msra.mxu1 %v12128_v35 }
0x2495   :  { %11009 = vmatprep.subr.bf16.mxu1 %v12575_v23 }
0x2498   :  { %11010 = vmatpush3.bf16.msra.mxu1 %v12129_v13 }
0x250e   :  { %v4752_v26 = vpop.f32.mrb[84].mxu1 }
0x250f   :  { %v10898_v41 = vpop.f32.mrb[85].mxu1 }
0x2510   :  { %v4755_v40 = vpop.f32.mrb[86].mxu1 }
0x2511   :  { %v4759_v55 = vpack.c.bf16 %v4755_v40, %v4752_v26  ;;  %v10899_v15 = vpop.f32.mrb[87].mxu1 }
0x2512   :  { %v12130_v15 = vld [vmem:[%s15937_s8 + $0x180] ss:$8 sps:$4 sm:$0xff]  }
0x2513   :  { %10917 = vmatmul.mubr.bf16.vlgmr.msra.gmra.mrb[104].mxu0 %v4759_v55 }
0x2514   :  { %11682 = vmatpush3.bf16.msra.mxu0 %v12877_v21 }
0x2515   :  { %11684 = vmatprep.subr.bf16.mxu0 %v12886_v25 }
0x2518   :  { %11686 = vmatpush3.bf16.msra.mxu0 %v12886_v25 }
0x2519   :  { %11688 = vmatprep.subr.bf16.mxu0 %v12897_v30 }
0x251c   :  { %11690 = vmatpush3.bf16.msra.mxu0 %v12897_v30 }
0x251d   :  { %11692 = vmatprep.subr.bf16.mxu0 %v12907_v37 }
0x2520   :  { %11694 = vmatpush3.bf16.msra.mxu0 %v12907_v37 }
0x2521   :  { %11696 = vmatprep.subr.bf16.mxu0 %v12918_v46 }
0x2524   :  { %11698 = vmatpush3.bf16.msra.mxu0 %v12918_v46 }
0x2525   :  { %11700 = vmatprep.subr.bf16.mxu0 %v12928_v50 }
0x2528   :  { %11702 = vmatpush3.bf16.msra.mxu0 %v12928_v50 }
0x2529   :  { %11704 = vmatprep.subr.bf16.mxu0 %v12941_v58 }
0x252c   :  { %11706 = vmatpush3.bf16.msra.mxu0 %v12941_v58 }
0x252d   :  { %11708 = vmatprep.subr.bf16.mxu0 %v12946_v62 }
0x2530   :  { %11710 = vmatpush3.bf16.msra.mxu0 %v12946_v62 }
0x2531   :  { %10975 = vmatprep.subr.bf16.mxu0 %v12575_v23 }
0x254e   :  { %v4901_v17 = vpop.f32.mrb[88].mxu1 }
0x254f   :  { %v4908_v48 = vmul.f32 0.25, %v4901_v17  ;;  %v10938_v61 = vpop.f32.mrb[89].mxu1 }
0x2550   :  { %v4904_v59 = vpop.f32.mrb[90].mxu1  ;;  %v12133_v61 = vld [vmem:[%s15937_s8 + $0x190] ss:$8 sps:$4 sm:$0xff]  }
0x2551   :  { %v4909_v2 = vmul.f32 0.25, %v4904_v59  ;;  %4910 = vmax.xlane.f32.xlu0 %v4908_v48  ;;  %v10939_v12 = vpop.f32.mrb[91].mxu1  ;;  %v12138_v59 = vld [vmem:[%s15937_s8 + $0x1a4] ss:$8 sps:$4 sm:$0xff]  }
0x2552   :  { %v12141_v12 = vld [vmem:[%s15937_s8 + $0x1b4] ss:$8 sps:$4 sm:$0xff]  }
0x2553   :  { %4912 = vmax.xlane.f32.xlu1 %v4909_v2 }
0x25de   :  { %v4911_v3 = vpop.xlane.xlu0 %4910 }
0x25df   :  { %v4914_v4 = vsub.f32 %v4908_v48, %v4911_v3  ;;  %v12135_v48 = vld [vmem:[%s15937_s8 + $0x194] ss:$8 sps:$4 sm:$0xff]   ;;  %v12139_v3 = vld [vmem:[%s15937_s8 + $0x1b0] ss:$8 sps:$4 sm:$0xff]  }
0x25e0   :  { %v4913_v54 = vpop.xlane.xlu1 %4912 }
0x25e1   :  { %v4916_v14 = vmul.f32 1.442695, %v4914_v4  ;;  %v4915_v29 = vsub.f32 %v4909_v2, %v4913_v54  ;;  %v12136_v2 = vld [vmem:[%s15937_s8 + $0x1a0] ss:$8 sps:$4 sm:$0xff]   ;;  %v12144_v4 = vld [vmem:[%s15937_s8 + $0x1c4] ss:$8 sps:$4 sm:$0xff]  }
0x25e2   :  { %v12142_v54 = vld [vmem:[%s15937_s8 + $0x1c0] ss:$8 sps:$4 sm:$0xff]  }
0x25e3   :  { %12442 = vpow2.f32 %v4916_v14  ;;  %v4918_v24 = vmul.f32 1.442695, %v4915_v29  ;;  %v12147_v14 = vld [vmem:[%s15937_s8 + $0x1d4] ss:$8 sps:$4 sm:$0xff]   ;;  %v12145_v29 = vld [vmem:[%s15937_s8 + $0x1d0] ss:$8 sps:$4 sm:$0xff]  }
0x25e5   :  { %12444 = vpow2.f32 %v4918_v24  ;;  %v12150_v24 = vld [vmem:[%s15937_s8 + $0x1e4] ss:$8 sps:$4 sm:$0xff]  }
0x25e6   :  { %v4842_v16 = vpop.f32.mrb[104].mxu0 }
0x25e7   :  { %v5091_v35 = vadd.f32 %v4842_v16, %v14367_v8  ;;  %v10918_v18 = vpop.f32.mrb[105].mxu0  ;;  %v4860_v8 = vmul.bf16 %v14412_v19, %v14532_v7  ;;  %v4864_v19 = vmul.bf16 %v14440_v60, %v14532_v7  ;;  %v12148_v16 = vld [vmem:[%s15937_s8 + $0x1e0] ss:$8 sps:$4 sm:$0xff]  }
0x25e8   :  { %v4845_v52 = vpop.f32.mrb[106].mxu0  ;;  %v12151_v18 = vld [vmem:[%s15937_s8 + $0x1f0] ss:$8 sps:$4 sm:$0xff]  }
0x25e9   :  { %v5092_v53 = vadd.f32 %v4845_v52, %v14370_v27  ;;  %v10919_v57 = vpop.f32.mrb[107].mxu0  ;;  %v5101_v6 = vadd.f32 %v14643_v51, %v5091_v35  ;;  %v4861_v27 = vmul.bf16 %v14419_v33, %v14532_v7  ;;  %v4865_v33 = vmul.bf16 %v14447_v49, %v14532_v7  ;;  %v12153_v35 = vld [vmem:[%s15937_s8 + $0x1f4] ss:$8 sps:$4 sm:$0xff]  }
0x25eb   :  { %5105 = vadd.xlane.f32.xlu0 %v5101_v6  ;;  %v5102_v43 = vadd.f32 %v14643_v51, %v5092_v53 }
0x25ed   :  { %v12443_v20 = vpop.eup %12442  ;;  %5107 = vadd.xlane.f32.xlu1 %v5102_v43 }
0x25ee   :  { %10972 = vmatprep.mubr.f32.mxu0 %v12443_v20 }
0x25ef   :  { %v12445_v47 = vpop.eup %12444 }
0x25f0   :  { %10973 = vmatmul.mubr.f32.vlgmr.msra.gmra.mrb[78].mxu0 %v12445_v47 }
0x25f1   :  { %10976 = vmatpush3.bf16.msra.mxu0 %v4859_v36  ;;  %10991 = vmatprep.mubr.msk.bf16.mxu0 %vm12576_vm1, %v12575_v23  ;;  %v14726_v36 = vld [vmem:[%s15938_s12 + $0x3] ss:$0 sm:$0xff] }
0x25f2   :  { %10977 = vmatprep.subr.bf16.mxu0 %v12575_v23 }
0x25f5   :  { %10978 = vmatpush3.bf16.msra.mxu0 %v4860_v8 }
0x25f6   :  { %10979 = vmatprep.subr.bf16.mxu0 %v12575_v23 }
0x25f9   :  { %10980 = vmatpush3.bf16.msra.mxu0 %v4861_v27 }
0x25fa   :  { %10981 = vmatprep.subr.bf16.mxu0 %v12575_v23 }
0x25fd   :  { %10982 = vmatpush3.bf16.msra.mxu0 %v4862_v9 }
0x25fe   :  { %10983 = vmatprep.subr.bf16.mxu0 %v12575_v23 }
0x2601   :  { %10984 = vmatpush3.bf16.msra.mxu0 %v4863_v45 }
0x2602   :  { %10985 = vmatprep.subr.bf16.mxu0 %v12575_v23 }
0x2605   :  { %10986 = vmatpush3.bf16.msra.mxu0 %v4864_v19  ;;  %v14732_v19 = vld [vmem:[%s15939_s13 + $0x3] ss:$0 sm:$0xff] }
0x2606   :  { %10987 = vmatprep.subr.bf16.mxu0 %v12575_v23 }
0x2609   :  { %10988 = vmatpush3.bf16.msra.mxu0 %v4865_v33 }
0x260a   :  { %10989 = vmatprep.subr.bf16.mxu0 %v12575_v23 }
0x260d   :  { %10990 = vmatpush3.bf16.msra.mxu0 %v4866_v22 }
0x260e   :  { %5262 = vmatprep.subr.bf16.mxu0 %v12132_v31 }
0x2678   :  { %v5106_v44 = vpop.xlane.xlu0 %5105 }
0x2679   :  { %v5113_v60 = vmul.f32 0.0078125, %v5106_v44 }
0x267a   :  { %v5108_v38 = vpop.xlane.xlu1 %5107 }
0x267b   :  { %v5117_v56 = vsub.f32 %v5101_v6, %v5113_v60  ;;  %v5114_v0 = vmul.f32 0.0078125, %v5108_v38  ;;  %v12154_v60 = vld [vmem:[%s15940_s10 + $0x1c0] sm:$0xff]  }
0x267c   :  { %9882 = vmatprep.subr.bf16.mxu1 %v12154_v60 }
0x267d   :  { %v5118_v5 = vsub.f32 %v5102_v43, %v5114_v0  ;;  %v5121_v10 = vmul.f32 %v5117_v56, %v5117_v56 }
0x267f   :  { %5125 = vadd.xlane.f32.xlu0 %v5121_v10  ;;  %v5122_v49 = vmul.f32 %v5118_v5, %v5118_v5 }
0x2681   :  { %5127 = vadd.xlane.f32.xlu1 %v5122_v49 }
0x26c3   :  { %v10974_v11 = vpop.f32.mrb[78].mxu0 }
0x26c4   :  { %v4996_v13 = vmax.f32 %v10974_v11, 1e-30  ;;  %v4986_v26 = vpop.f32.mrb[79].mxu0  ;;  %v12156_v11 = vld [vmem:[%s15940_s10 + $0x1c8] sm:$0xff]  }
0x26c5   :  { %v4995_v42 = vmax.f32 %v4986_v26, 1e-30  ;;  %v12158_v26 = vld [vmem:[%s15940_s10 + $0x1d0] sm:$0xff]  }
0x26c6   :  { %12446 = vrcp.f32 %v4996_v13  ;;  %v12157_v13 = vld [vmem:[%s15940_s10 + $0x188] sm:$0xff]  }
0x26c7   :  { %12448 = vrcp.f32 %v4995_v42  ;;  %v12159_v42 = vld [vmem:[%s15940_s10 + $0x190] sm:$0xff]  }
0x26d0   :  { %v12447_v7 = vpop.eup %12446 }
0x26d1   :  { %v12449_v41 = vpop.eup %12448  ;;  %v5000_v40 = vmul.f32 %v12447_v7, %v12445_v47  ;;  %v12160_v7 = vld [vmem:[%s15940_s10 + $0x1d8] sm:$0xff]  }
0x26d2   :  { %v4999_v55 = vmul.f32 %v12449_v41, %v12443_v20  ;;  %v12161_v41 = vld [vmem:[%s15940_s10 + $0x198] sm:$0xff]  }
0x26d4   :  { %v5001_v17 = vpack.c.bf16 %v5000_v40, %v4999_v55  ;;  %v12162_v40 = vld [vmem:[%s15940_s10 + $0x1e0] sm:$0xff]  }
0x26d5   :  { %v12163_v55 = vld [vmem:[%s15940_s10 + $0x1a0] sm:$0xff]  }
0x26d6   :  { %10992 = vmatmul.mubr.bf16.vlgmr.msra.gmra.mrb[108].mxu0 %v5001_v17  ;;  %v12165_v17 = vld [vmem:[%s15940_s10 + $0x1a8] sm:$0xff]  }
0x26d7   :  { %5263 = vmatpush1.bf16.msra.mxu0 %v12130_v15  ;;  %5294 = vmatprep.mubr.bf16.mxu0 %v12574_v1  ;;  %v12164_v15 = vld [vmem:[%s15940_s10 + $0x1e8] sm:$0xff]  }
0x26d8   :  { %5264 = vmatprep.subr.bf16.mxu0 %v12135_v48  ;;  %v12166_v48 = vld [vmem:[%s15940_s10 + $0x1f0] sm:$0xff]  }
0x26db   :  { %5265 = vmatpush1.bf16.msra.mxu0 %v12133_v61  ;;  %v12167_v61 = vld [vmem:[%s15940_s10 + $0x1b0] sm:$0xff]  }
0x26dc   :  { %5266 = vmatprep.subr.bf16.mxu0 %v12138_v59  ;;  %v12168_v59 = vld [vmem:[%s15940_s10 + $0x1f8] sm:$0xff]  }
0x26df   :  { %5267 = vmatpush1.bf16.msra.mxu0 %v12136_v2  ;;  %v12169_v2 = vld [vmem:[%s15940_s10 + $0x1b8] sm:$0xff]  }
0x26e0   :  { %5268 = vmatprep.subr.bf16.mxu0 %v12141_v12  ;;  %v8931_v12 = vld [vmem:[%s15941_s9 + $0x6] sm:$0x3] }
0x26e3   :  { %5269 = vmatpush1.bf16.msra.mxu0 %v12139_v3  ;;  %v14796_v3 = vrot.slane %v8931_v12, %v12767_v32 }
0x26e4   :  { %5270 = vmatprep.subr.bf16.mxu0 %v12144_v4  ;;  %v14799_v4 = vrot.slane %v8931_v12, %v12775_v34 }
0x26e7   :  { %5271 = vmatpush1.bf16.msra.mxu0 %v12142_v54 }
0x26e8   :  { %5272 = vmatprep.subr.bf16.mxu0 %v12147_v14 }
0x26eb   :  { %5273 = vmatpush1.bf16.msra.mxu0 %v12145_v29 }
0x26ec   :  { %5274 = vmatprep.subr.bf16.mxu0 %v12150_v24 }
0x26ef   :  { %5275 = vmatpush1.bf16.msra.mxu0 %v12148_v16 }
0x26f0   :  { %5276 = vmatprep.subr.bf16.mxu0 %v12153_v35 }
0x26f3   :  { %5277 = vmatpush1.bf16.msra.mxu0 %v12151_v18 }
0x270c   :  { %v5126_v52 = vpop.xlane.xlu0 %5125 }
0x270d   :  { %v5133_v53 = vmul.f32 0.0078125, %v5126_v52 }
0x270e   :  { %v5128_v57 = vpop.xlane.xlu1 %5127 }
0x270f   :  { %v5137_v6 = vadd.f32 1e-05, %v5133_v53  ;;  %v5134_v43 = vmul.f32 0.0078125, %v5128_v57 }
0x2711   :  { %12450 = vrsqrt.f32 %v5137_v6  ;;  %v5138_v20 = vadd.f32 1e-05, %v5134_v43 }
0x2713   :  { %12452 = vrsqrt.f32 %v5138_v20 }
0x271b   :  { %v12451_v47 = vpop.eup %12450 }
0x271c   :  { %v5145_v8 = vmul.f32 %v12451_v47, %v5117_v56 }
0x271d   :  { %v12453_v27 = vpop.eup %12452 }
0x271e   :  { %v5146_v9 = vmul.f32 %v12453_v27, %v5118_v5  ;;  %v5155_v45 = vmul.f32 %v14726_v36, %v5145_v8  ;;  %v12155_v5 = vld [vmem:[%s15940_s10 + $0x180] sm:$0xff]  }
0x2720   :  { %v5156_v33 = vmul.f32 %v14726_v36, %v5146_v9  ;;  %v14736_v22 = vadd.f32 %v14732_v19, %v5155_v45 }
0x2722   :  { %v14739_v31 = vadd.f32 %v14732_v19, %v5156_v33 }
0x2724   :  { %v5169_v44 = vpack.c.bf16 %v14739_v31, %v14736_v22 }
0x2726   :  { %5295 = vmatmul.mubr.bf16.vlgmr.msra.gmra.mrb[112].mxu0 %v5169_v44 }
0x2727   :  { %5304 = vmatprep.mubr.bf16.mxu0 %v12574_v1 }
0x27a9   :  { %v5036_v38 = vpop.f32.mrb[108].mxu0 }
0x27aa   :  { %v10993_v56 = vpop.f32.mrb[109].mxu0 }
0x27ab   :  { %v5039_v0 = vpop.f32.mrb[110].mxu0 }
0x27ac   :  { %v5043_v10 = vpack.c.bf16 %v5039_v0, %v5036_v38  ;;  %v10994_v49 = vpop.f32.mrb[111].mxu0 }
0x27ae   :  { %11012 = vmatmul.mubr.bf16.vlgmr.msra.gmra.mrb[92].mxu1 %v5043_v10 }
0x27af   :  { %9883 = vmatpush3.bf16.msra.mxu1 %v12155_v5 }
0x27b0   :  { %9884 = vmatprep.subr.bf16.mxu1 %v12156_v11 }
0x27b3   :  { %9885 = vmatpush3.bf16.msra.mxu1 %v12157_v13 }
0x27b4   :  { %9886 = vmatprep.subr.bf16.mxu1 %v12158_v26 }
0x27b7   :  { %9887 = vmatpush3.bf16.msra.mxu1 %v12159_v42 }
0x27b8   :  { %9888 = vmatprep.subr.bf16.mxu1 %v12160_v7 }
0x27bb   :  { %9889 = vmatpush3.bf16.msra.mxu1 %v12161_v41 }
0x27bc   :  { %9890 = vmatprep.subr.bf16.mxu1 %v12162_v40 }
0x27bf   :  { %9891 = vmatpush3.bf16.msra.mxu1 %v12163_v55 }
0x27c0   :  { %9892 = vmatprep.subr.bf16.mxu1 %v12164_v15 }
0x27c3   :  { %9893 = vmatpush3.bf16.msra.mxu1 %v12165_v17 }
0x27c4   :  { %9894 = vmatprep.subr.bf16.mxu1 %v12166_v48 }
0x27c7   :  { %9895 = vmatpush3.bf16.msra.mxu1 %v12167_v61  ;;  %v12170_v61 = vld [vmem:[%s15960_s23 + $0x300] ss:$12 sps:$4 sm:$0xff]  }
0x27c8   :  { %9896 = vmatprep.subr.bf16.mxu1 %v12168_v59  ;;  %v12172_v59 = vld [vmem:[%s15960_s23 + $0x304] ss:$12 sps:$4 sm:$0xff]  }
0x27c9   :  { %5808 = vmatprep.subr.bf16.mxu0 %v12172_v59 }
0x27ca   :  { %5809 = vmatpush1.bf16.msra.mxu0 %v12170_v61 }
0x27cb   :  { %9897 = vmatpush3.bf16.msra.mxu1 %v12169_v2  ;;  %v12175_v2 = vld [vmem:[%s15960_s23 + $0x31c] ss:$12 sps:$4 sm:$0xff]  }
0x27cc   :  { %5810 = vmatprep.subr.bf16.mxu0 %v12175_v2 }
0x27f9   :  { %v5296_v54 = vpop.f32.mrb[112].mxu0 }
0x27fa   :  { %v5297_v14 = vadd.f32 %v5296_v54, %v14796_v3  ;;  %v5298_v29 = vpop.f32.mrb[113].mxu0 }
0x27fb   :  { %v5299_v24 = vadd.f32 %v5298_v29, %v14799_v4  ;;  %v5300_v16 = vpop.f32.mrb[114].mxu0 }
0x27fc   :  { %v5301_v35 = vadd.f32 %v5300_v16, %v14796_v3  ;;  %v5302_v18 = vpop.f32.mrb[115].mxu0  ;;  %v5315_v53 = vmax.f32 %v5297_v14, 0.0 }
0x27fd   :  { %v5303_v52 = vadd.f32 %v5302_v18, %v14799_v4  ;;  %v5316_v6 = vmax.f32 %v5299_v24, 0.0 }
0x27fe   :  { %v5317_v57 = vmax.f32 %v5301_v35, 0.0 }
0x27ff   :  { %v5318_v43 = vmax.f32 %v5303_v52, 0.0 }
0x2800   :  { %v5323_v20 = vpack.c.bf16 %v5317_v57, %v5315_v53 }
0x2801   :  { %v5324_v47 = vpack.c.bf16 %v5318_v43, %v5316_v6 }
0x2803   :  { %5461 = vmatprep.mubr.bf16.mxu1 %v5324_v47 }
0x2804   :  { %5462 = vmatmul.mubr.bf16.vlgmr.msra.gmra.mrb[96].mxu1 %v5323_v20 }
0x2881   :  { %v5078_v8 = vpop.f32.mrb[92].mxu1 }
0x2882   :  { %v5093_v27 = vadd.f32 %v5078_v8, %v14490_v39  ;;  %v11013_v9 = vpop.f32.mrb[93].mxu1  ;;  %v14812_v39 = vld [vmem:[%s15942_s11 + $0x3] ss:$0 sm:$0xff] }
0x2883   :  { %v5081_v45 = vpop.f32.mrb[94].mxu1 }
0x2884   :  { %v5094_v33 = vadd.f32 %v5081_v45, %v14493_v28  ;;  %v11014_v44 = vpop.f32.mrb[95].mxu1  ;;  %v5103_v60 = vadd.f32 %v14643_v51, %v5093_v27 }
0x2886   :  { %5109 = vadd.xlane.f32.xlu0 %v5103_v60  ;;  %v5104_v38 = vadd.f32 %v14643_v51, %v5094_v33 }
0x2888   :  { %5111 = vadd.xlane.f32.xlu1 %v5104_v38 }
0x28d7   :  { %v9898_v56 = vpop.f32.mrb[96].mxu1 }
0x28d8   :  { %v9899_v0 = vpop.f32.mrb[97].mxu1 }
0x28d9   :  { %v9900_v5 = vadd.f32 %v9899_v0, %v9898_v56  ;;  %v9901_v10 = vpop.f32.mrb[98].mxu1  ;;  %v12179_v56 = vld [vmem:[%s15960_s23 + $0x348] ss:$12 sps:$4 sm:$0xff]   ;;  %v12184_v0 = vld [vmem:[%s15960_s23 + $0x364] ss:$12 sps:$4 sm:$0xff]  }
0x28da   :  { %v9902_v49 = vpop.f32.mrb[99].mxu1 }
0x28db   :  { %v9903_v11 = vadd.f32 %v9902_v49, %v9901_v10  ;;  %v5464_v41 = vadd.f32 %v9900_v5, %v14812_v39  ;;  %v12182_v5 = vld [vmem:[%s15960_s23 + $0x360] ss:$12 sps:$4 sm:$0xff]   ;;  %v12187_v10 = vld [vmem:[%s15960_s23 + $0x37c] ss:$12 sps:$4 sm:$0xff]   ;;  %v12185_v49 = vld [vmem:[%s15960_s23 + $0x378] ss:$12 sps:$4 sm:$0xff]  }
0x28dd   :  { %v5467_v55 = vadd.f32 %v9903_v11, %v14812_v39  ;;  %v5478_v17 = vadd.f32 %v5464_v41, %v14736_v22  ;;  %v12173_v22 = vld [vmem:[%s15960_s23 + $0x318] ss:$12 sps:$4 sm:$0xff]   ;;  %v12188_v11 = vld [vmem:[%s15960_s23 + $0x390] ss:$12 sps:$4 sm:$0xff]  }
0x28de   :  { %5811 = vmatpush1.bf16.msra.mxu0 %v12173_v22  ;;  %v14887_v22 = vld [vmem:[%s15944_s15 + $0x3] ss:$0 sm:$0xff] }
0x28df   :  { %v5479_v48 = vadd.f32 %v5467_v55, %v14739_v31 }
0x2913   :  { %v5110_v13 = vpop.xlane.xlu0 %5109 }
0x2914   :  { %v5115_v26 = vmul.f32 0.0078125, %v5110_v13  ;;  %v12190_v13 = vld [vmem:[%s15960_s23 + $0x394] ss:$12 sps:$4 sm:$0xff]  }
0x2915   :  { %v5112_v28 = vpop.xlane.xlu1 %5111 }
0x2916   :  { %v5119_v42 = vsub.f32 %v5103_v60, %v5115_v26  ;;  %v5116_v7 = vmul.f32 0.0078125, %v5112_v28  ;;  %v12193_v26 = vld [vmem:[%s15960_s23 + $0x3ac] ss:$12 sps:$4 sm:$0xff]   ;;  %v12191_v28 = vld [vmem:[%s15960_s23 + $0x3a8] ss:$12 sps:$4 sm:$0xff]  }
0x2918   :  { %v5120_v51 = vsub.f32 %v5104_v38, %v5116_v7  ;;  %v5123_v40 = vmul.f32 %v5119_v42, %v5119_v42  ;;  %v12178_v38 = vld [vmem:[%s15960_s23 + $0x334] ss:$12 sps:$4 sm:$0xff]  }
0x2919   :  { %5812 = vmatprep.subr.bf16.mxu0 %v12178_v38 }
0x291a   :  { %5129 = vadd.xlane.f32.xlu0 %v5123_v40  ;;  %v5124_v15 = vmul.f32 %v5120_v51, %v5120_v51 }
0x291c   :  { %5131 = vadd.xlane.f32.xlu1 %v5124_v15 }
0x291e   :  { %5482 = vadd.xlane.f32.xlu0 %v5478_v17 }
0x2920   :  { %5484 = vadd.xlane.f32.xlu1 %v5479_v48 }
0x29a7   :  { %v5130_v31 = vpop.xlane.xlu0 %5129 }
0x29a8   :  { %v5135_v12 = vmul.f32 0.0078125, %v5130_v31 }
0x29a9   :  { %v5132_v54 = vpop.xlane.xlu1 %5131 }
0x29aa   :  { %v5139_v14 = vadd.f32 1e-05, %v5135_v12  ;;  %v5136_v29 = vmul.f32 0.0078125, %v5132_v54 }
0x29ab   :  { %v5483_v24 = vpop.xlane.xlu0 %5482 }
0x29ac   :  { %12454 = vrsqrt.f32 %v5139_v14  ;;  %v5140_v16 = vadd.f32 1e-05, %v5136_v29  ;;  %v5490_v35 = vmul.f32 0.0078125, %v5483_v24 }
0x29ad   :  { %v5485_v18 = vpop.xlane.xlu1 %5484 }
0x29ae   :  { %12456 = vrsqrt.f32 %v5140_v16  ;;  %v5494_v52 = vsub.f32 %v5478_v17, %v5490_v35  ;;  %v5491_v53 = vmul.f32 0.0078125, %v5485_v18  ;;  %v14881_v17 = vld [vmem:[%s15943_s14 + $0x3] ss:$0 sm:$0xff] }
0x29b0   :  { %v5495_v57 = vsub.f32 %v5479_v48, %v5491_v53  ;;  %v5498_v6 = vmul.f32 %v5494_v52, %v5494_v52 }
0x29b2   :  { %5502 = vadd.xlane.f32.xlu0 %v5498_v6  ;;  %v5499_v43 = vmul.f32 %v5495_v57, %v5495_v57 }
0x29b4   :  { %5504 = vadd.xlane.f32.xlu1 %v5499_v43 }
0x29b6   :  { %v12455_v20 = vpop.eup %12454 }
0x29b7   :  { %v5147_v47 = vmul.f32 %v12455_v20, %v5119_v42 }
0x29b8   :  { %v12457_v8 = vpop.eup %12456 }
0x29b9   :  { %v5148_v27 = vmul.f32 %v12457_v8, %v5120_v51  ;;  %v5157_v9 = vmul.f32 %v14726_v36, %v5147_v47 }
0x29bb   :  { %v5158_v45 = vmul.f32 %v14726_v36, %v5148_v27  ;;  %v14833_v33 = vadd.f32 %v14732_v19, %v5157_v9  ;;  %v12176_v36 = vld [vmem:[%s15960_s23 + $0x330] ss:$12 sps:$4 sm:$0xff]   ;;  %v14906_v9 = vld [vmem:[%s15963_s28 + $0xc] sm:$0x7] }
0x29bc   :  { %5813 = vmatpush1.bf16.msra.mxu0 %v12176_v36 }
0x29bd   :  { %v14836_v44 = vadd.f32 %v14732_v19, %v5158_v45  ;;  %v12181_v19 = vld [vmem:[%s15960_s23 + $0x34c] ss:$12 sps:$4 sm:$0xff]  }
0x29be   :  { %5814 = vmatprep.subr.bf16.mxu0 %v12181_v19 }
0x29bf   :  { %v5170_v60 = vpack.c.bf16 %v14836_v44, %v14833_v33 }
0x29c0   :  { %5815 = vmatpush1.bf16.msra.mxu0 %v12179_v56 }
0x29c1   :  { %5305 = vmatmul.mubr.bf16.gmra.mrb[116].mxu0 %v5170_v60  ;;  %5816 = vmatprep.subr.bf16.mxu0 %v12184_v0 }
0x29c2   :  { %5840 = vmatprep.mubr.bf16.mxu0 %v12574_v1 }
0x29c4   :  { %5817 = vmatpush1.bf16.msra.mxu0 %v12182_v5 }
0x29c5   :  { %5818 = vmatprep.subr.bf16.mxu0 %v12187_v10 }
0x29c8   :  { %5819 = vmatpush1.bf16.msra.mxu0 %v12185_v49 }
0x29c9   :  { %5820 = vmatprep.subr.bf16.mxu0 %v12190_v13 }
0x29cc   :  { %5821 = vmatpush1.bf16.msra.mxu0 %v12188_v11  ;;  %v14929_v11 = vld [vmem:[%s15964_s4] sm:$0xff]  }
0x29cd   :  { %5822 = vmatprep.subr.bf16.mxu0 %v12193_v26  ;;  %v14936_v26 = vld [vmem:[%s15964_s4 + $0x8] sm:$0xff]  }
0x29d0   :  { %5823 = vmatpush1.bf16.msra.mxu0 %v12191_v28 }
0x29d1   :  { %11035 = vmatprep.subr.bf16.mxu0 %v12575_v23 }
0x2a3f   :  { %v5503_v42 = vpop.xlane.xlu0 %5502 }
0x2a40   :  { %v5510_v7 = vmul.f32 0.0078125, %v5503_v42  ;;  %v14943_v42 = vld [vmem:[%s15964_s4 + $0x10] sm:$0xff]  }
0x2a41   :  { %v5505_v41 = vpop.xlane.xlu1 %5504 }
0x2a42   :  { %v5514_v51 = vadd.f32 1e-05, %v5510_v7  ;;  %v5511_v40 = vmul.f32 0.0078125, %v5505_v41  ;;  %v14950_v41 = vld [vmem:[%s15964_s4 + $0x18] sm:$0xff]  }
0x2a44   :  { %12458 = vrsqrt.f32 %v5514_v51  ;;  %v5515_v55 = vadd.f32 1e-05, %v5511_v40  ;;  %v14957_v40 = vld [vmem:[%s15964_s4 + $0x20] sm:$0xff]  }
0x2a46   :  { %12460 = vrsqrt.f32 %v5515_v55 }
0x2a4e   :  { %v12459_v15 = vpop.eup %12458 }
0x2a4f   :  { %v5522_v48 = vmul.f32 %v12459_v15, %v5494_v52  ;;  %v14964_v15 = vld [vmem:[%s15964_s4 + $0x28] sm:$0xff]  }
0x2a50   :  { %v12461_v61 = vpop.eup %12460 }
0x2a51   :  { %v5532_v59 = vmul.f32 %v14881_v17, %v5522_v48  ;;  %v5523_v2 = vmul.f32 %v12461_v61, %v5495_v57  ;;  %v14971_v61 = vld [vmem:[%s15964_s4 + $0x30] sm:$0xff]  }
0x2a53   :  { %v5533_v31 = vmul.f32 %v14881_v17, %v5523_v2  ;;  %v14891_v12 = vadd.f32 %v14887_v22, %v5532_v59  ;;  %v14978_v2 = vld [vmem:[%s15964_s4 + $0x38] sm:$0xff]  }
0x2a55   :  { %v14894_v54 = vadd.f32 %v14887_v22, %v5533_v31 }
0x2a57   :  { %v5662_v14 = vpack.c.bf16 %v14894_v54, %v14891_v12 }
0x2a59   :  { %5841 = vmatmul.mubr.bf16.vlgmr.msra.gmra.mrb[120].mxu0 %v5662_v14 }
0x2a5a   :  { %5850 = vmatprep.mubr.bf16.mxu0 %v12574_v1 }
0x2a94   :  { %v5306_v29 = vpop.f32.mrb[116].mxu0 }
0x2a95   :  { %v5307_v24 = vadd.f32 %v5306_v29, %v14796_v3  ;;  %v5308_v16 = vpop.f32.mrb[117].mxu0 }
0x2a96   :  { %v5309_v35 = vadd.f32 %v5308_v16, %v14799_v4  ;;  %v5310_v18 = vpop.f32.mrb[118].mxu0 }
0x2a97   :  { %v5311_v52 = vadd.f32 %v5310_v18, %v14796_v3  ;;  %v5312_v53 = vpop.f32.mrb[119].mxu0  ;;  %v5319_v6 = vmax.f32 %v5307_v24, 0.0  ;;  %v14910_v3 = vrot.slane %v14906_v9, %v12767_v32 }
0x2a98   :  { %v5313_v57 = vadd.f32 %v5312_v53, %v14799_v4  ;;  %v5320_v20 = vmax.f32 %v5309_v35, 0.0  ;;  %v14914_v4 = vrot.slane %v14906_v9, %v12775_v34 }
0x2a99   :  { %v5321_v43 = vmax.f32 %v5311_v52, 0.0 }
0x2a9a   :  { %v5322_v47 = vmax.f32 %v5313_v57, 0.0 }
0x2a9b   :  { %v5325_v8 = vpack.c.bf16 %v5321_v43, %v5319_v6  ;;  %v12194_v43 = vld [vmem:[%s15960_s23 + $0x308] ss:$12 sps:$4 sm:$0xff]  }
0x2a9c   :  { %v5326_v27 = vpack.c.bf16 %v5322_v47, %v5320_v20  ;;  %v12195_v20 = vld [vmem:[%s15960_s23 + $0x320] ss:$12 sps:$4 sm:$0xff]   ;;  %11015 = vmatprep.subr.bf16.mxu1 %v12194_v43 }
0x2a9d   :  { %11016 = vmatpush3.bf16.msra.mxu1 %v12194_v43 }
0x2a9e   :  { %5469 = vmatprep.mubr.bf16.mxu1 %v5326_v27  ;;  %11017 = vmatprep.subr.bf16.mxu1 %v12195_v20 }
0x2a9f   :  { %5470 = vmatmul.mubr.bf16.gmra.mrb[100].mxu1 %v5325_v8 }
0x2aa0   :  { %11031 = vmatprep.mubr.bf16.mxu1 %v5662_v14 }
0x2aa1   :  { %11018 = vmatpush3.bf16.msra.mxu1 %v12195_v20 }
0x2b2c   :  { %v5842_v45 = vpop.f32.mrb[120].mxu0 }
0x2b2d   :  { %v5844_v60 = vpop.f32.mrb[121].mxu0  ;;  %v14917_v36 = vadd.f32 %v5842_v45, %v14910_v3 }
0x2b2e   :  { %v5846_v38 = vpop.f32.mrb[122].mxu0  ;;  %v5845_v0 = vadd.f32 %v5844_v60, %v14914_v4 }
0x2b2f   :  { %v14920_v19 = vadd.f32 %v5846_v38, %v14910_v3  ;;  %v5848_v56 = vpop.f32.mrb[123].mxu0  ;;  %v12196_v38 = vld [vmem:[%s15960_s23 + $0x338] ss:$12 sps:$4 sm:$0xff]  }
0x2b30   :  { %v5849_v5 = vadd.f32 %v5848_v56, %v14914_v4  ;;  %11019 = vmatprep.subr.bf16.mxu1 %v12196_v38  ;;  %v12197_v56 = vld [vmem:[%s15960_s23 + $0x350] ss:$12 sps:$4 sm:$0xff]  }
0x2b31   :  { %v5910_v10 = vpack.c.bf16 %v14920_v19, %v14917_v36  ;;  %11020 = vmatpush3.bf16.msra.mxu1 %v12196_v38 }
0x2b32   :  { %v5911_v49 = vpack.c.bf16 %v5849_v5, %v5845_v0  ;;  %11021 = vmatprep.subr.bf16.mxu1 %v12197_v56  ;;  %v12198_v0 = vld [vmem:[%s15960_s23 + $0x368] ss:$12 sps:$4 sm:$0xff]   ;;  %v12199_v5 = vld [vmem:[%s15960_s23 + $0x380] ss:$12 sps:$4 sm:$0xff]  }
0x2b34   :  { %v5916_v13 = vmul.bf16 %v14929_v11, %v5911_v49  ;;  %v5917_v28 = vmul.bf16 %v14936_v26, %v5911_v49  ;;  %v5918_v7 = vmul.bf16 %v14943_v42, %v5911_v49  ;;  %v5919_v51 = vmul.bf16 %v14950_v41, %v5911_v49 }
0x2b35   :  { %v5920_v55 = vmul.bf16 %v14957_v40, %v5911_v49  ;;  %v5921_v48 = vmul.bf16 %v14964_v15, %v5911_v49  ;;  %v5922_v59 = vmul.bf16 %v14971_v61, %v5911_v49  ;;  %v5923_v31 = vmul.bf16 %v14978_v2, %v5911_v49  ;;  %11022 = vmatpush3.bf16.msra.mxu1 %v12197_v56  ;;  %v12200_v49 = vld [vmem:[%s15960_s23 + $0x398] ss:$12 sps:$4 sm:$0xff]  }
0x2b36   :  { %11036 = vmatpush3.bf16.xpose.msra.mxu0 %v5916_v13  ;;  %11023 = vmatprep.subr.bf16.mxu1 %v12198_v0  ;;  %v12201_v13 = vld [vmem:[%s15960_s23 + $0x3b0] ss:$12 sps:$4 sm:$0xff]  }
0x2b37   :  { %11037 = vmatprep.subr.bf16.mxu0 %v12575_v23 }
0x2b39   :  { %11024 = vmatpush3.bf16.msra.mxu1 %v12198_v0 }
0x2b3a   :  { %11025 = vmatprep.subr.bf16.mxu1 %v12199_v5 }
0x2b3d   :  { %11026 = vmatpush3.bf16.msra.mxu1 %v12199_v5 }
0x2b3e   :  { %11038 = vmatpush3.bf16.xpose.msra.mxu0 %v5917_v28  ;;  %11027 = vmatprep.subr.bf16.mxu1 %v12200_v49 }
0x2b3f   :  { %11039 = vmatprep.subr.bf16.mxu0 %v12575_v23 }
0x2b41   :  { %11028 = vmatpush3.bf16.msra.mxu1 %v12200_v49 }
0x2b42   :  { %11029 = vmatprep.subr.bf16.mxu1 %v12201_v13 }
0x2b45   :  { %11030 = vmatpush3.bf16.msra.mxu1 %v12201_v13 }
0x2b46   :  { %11040 = vmatpush3.bf16.xpose.msra.mxu0 %v5918_v7  ;;  %11712 = vmatprep.subr.bf16.mxu1 %v12877_v21 }
0x2b47   :  { %11041 = vmatprep.subr.bf16.mxu0 %v12575_v23 }
0x2b4e   :  { %11042 = vmatpush3.bf16.xpose.msra.mxu0 %v5919_v51 }
0x2b4f   :  { %11043 = vmatprep.subr.bf16.mxu0 %v12575_v23 }
0x2b56   :  { %11044 = vmatpush3.bf16.xpose.msra.mxu0 %v5920_v55 }
0x2b57   :  { %11045 = vmatprep.subr.bf16.mxu0 %v12575_v23 }
0x2b5e   :  { %11046 = vmatpush3.bf16.xpose.msra.mxu0 %v5921_v48 }
0x2b5f   :  { %11047 = vmatprep.subr.bf16.mxu0 %v12575_v23 }
0x2b66   :  { %11048 = vmatpush3.bf16.xpose.msra.mxu0 %v5922_v59 }
0x2b67   :  { %11049 = vmatprep.subr.bf16.mxu0 %v12575_v23 }
0x2b6e   :  { %11050 = vmatpush3.bf16.xpose.msra.mxu0 %v5923_v31 }
0x2b6f   :  { %11110 = vmatprep.subr.bf16.mxu0 %v12575_v23 }
0x2b72   :  { %v9904_v14 = vpop.f32.mrb[100].mxu1 }
0x2b73   :  { %v9905_v29 = vpop.f32.mrb[101].mxu1 }
0x2b74   :  { %v9906_v24 = vadd.f32 %v9905_v29, %v9904_v14  ;;  %v9907_v16 = vpop.f32.mrb[102].mxu1 }
0x2b75   :  { %v9908_v35 = vpop.f32.mrb[103].mxu1 }
0x2b76   :  { %v5472_v18 = vadd.f32 %v9906_v24, %v14812_v39  ;;  %v9909_v52 = vadd.f32 %v9908_v35, %v9907_v16 }
0x2b78   :  { %v5475_v53 = vadd.f32 %v9909_v52, %v14812_v39  ;;  %v5480_v57 = vadd.f32 %v5472_v18, %v14833_v33 }
0x2b7a   :  { %5486 = vadd.xlane.f32.xlu0 %v5480_v57  ;;  %v5481_v6 = vadd.f32 %v5475_v53, %v14836_v44 }
0x2b7c   :  { %5488 = vadd.xlane.f32.xlu1 %v5481_v6 }
0x2c07   :  { %v5487_v47 = vpop.xlane.xlu0 %5486 }
0x2c08   :  { %v5492_v39 = vmul.f32 0.0078125, %v5487_v47 }
0x2c09   :  { %v5489_v8 = vpop.xlane.xlu1 %5488 }
0x2c0a   :  { %v5496_v33 = vsub.f32 %v5480_v57, %v5492_v39  ;;  %v5493_v27 = vmul.f32 0.0078125, %v5489_v8 }
0x2c0c   :  { %v5497_v45 = vsub.f32 %v5481_v6, %v5493_v27  ;;  %v5500_v44 = vmul.f32 %v5496_v33, %v5496_v33 }
0x2c0e   :  { %5506 = vadd.xlane.f32.xlu0 %v5500_v44  ;;  %v5501_v60 = vmul.f32 %v5497_v45, %v5497_v45 }
0x2c10   :  { %5508 = vadd.xlane.f32.xlu1 %v5501_v60 }
0x2c9b   :  { %v5507_v28 = vpop.xlane.xlu0 %5506 }
0x2c9c   :  { %v5512_v7 = vmul.f32 0.0078125, %v5507_v28 }
0x2c9d   :  { %v5509_v51 = vpop.xlane.xlu1 %5508 }
0x2c9e   :  { %v5516_v55 = vadd.f32 1e-05, %v5512_v7  ;;  %v5513_v48 = vmul.f32 0.0078125, %v5509_v51 }
0x2ca0   :  { %12462 = vrsqrt.f32 %v5516_v55  ;;  %v5517_v59 = vadd.f32 1e-05, %v5513_v48 }
0x2ca2   :  { %12464 = vrsqrt.f32 %v5517_v59 }
0x2caa   :  { %v12463_v31 = vpop.eup %12462 }
0x2cab   :  { %v5524_v14 = vmul.f32 %v12463_v31, %v5496_v33 }
0x2cac   :  { %v12465_v29 = vpop.eup %12464 }
0x2cad   :  { %v5525_v24 = vmul.f32 %v12465_v29, %v5497_v45  ;;  %v5534_v16 = vmul.f32 %v14881_v17, %v5524_v14 }
0x2caf   :  { %v5535_v35 = vmul.f32 %v14881_v17, %v5525_v24  ;;  %v15014_v18 = vadd.f32 %v14887_v22, %v5534_v16  ;;  %v5676_v17 = vrot.slane %v14906_v9, %v12954_v63 }
0x2cb1   :  { %v15017_v52 = vadd.f32 %v14887_v22, %v5535_v35 }
0x2cb3   :  { %v5663_v53 = vpack.c.bf16 %v15017_v52, %v15014_v18 }
0x2cb5   :  { %5851 = vmatmul.mubr.bf16.gmra.mrb[124].mxu0 %v5663_v53  ;;  %11032 = vmatmul.mubr.bf16.vlgmr.msra.gmra.mrb[104].mxu1 %v5663_v53 }
0x2cb6   :  { %11051 = vmatprep.mubr.msk.bf16.mxu0 %vm12576_vm1, %v12575_v23  ;;  %11714 = vmatpush3.bf16.msra.mxu1 %v12877_v21 }
0x2cb7   :  { %11716 = vmatprep.subr.bf16.mxu1 %v12886_v25 }
0x2cba   :  { %11718 = vmatpush3.bf16.msra.mxu1 %v12886_v25 }
0x2cbb   :  { %11720 = vmatprep.subr.bf16.mxu1 %v12897_v30 }
0x2cbd   :  { %11052 = vmatmul.mubr.bf16.vlgmr.msra.gmra.mrb[128].mxu0 %v5910_v10 }
0x2cbe   :  { %11722 = vmatpush3.bf16.msra.mxu1 %v12897_v30  ;;  %11126 = vmatprep.mubr.msk.bf16.mxu0 %vm12576_vm1, %v12575_v23 }
0x2cbf   :  { %11724 = vmatprep.subr.bf16.mxu1 %v12907_v37 }
0x2cc2   :  { %11726 = vmatpush3.bf16.msra.mxu1 %v12907_v37 }
0x2cc3   :  { %11728 = vmatprep.subr.bf16.mxu1 %v12918_v46 }
0x2cc6   :  { %11730 = vmatpush3.bf16.msra.mxu1 %v12918_v46 }
0x2cc7   :  { %11732 = vmatprep.subr.bf16.mxu1 %v12928_v50 }
0x2cca   :  { %11734 = vmatpush3.bf16.msra.mxu1 %v12928_v50 }
0x2ccb   :  { %11736 = vmatprep.subr.bf16.mxu1 %v12941_v58 }
0x2cce   :  { %11738 = vmatpush3.bf16.msra.mxu1 %v12941_v58 }
0x2ccf   :  { %11740 = vmatprep.subr.bf16.mxu1 %v12946_v62 }
0x2cd2   :  { %11742 = vmatpush3.bf16.msra.mxu1 %v12946_v62 }
0x2cd3   :  { %11090 = vmatprep.subr.bf16.mxu1 %v12575_v23 }
0x2d88   :  { %v5852_v22 = vpop.f32.mrb[124].mxu0  ;;  %v11033_v36 = vpop.f32.mrb[104].mxu1 }
0x2d89   :  { %v5904_v19 = vadd.f32 %v11033_v36, %v5676_v17  ;;  %v5854_v10 = vpop.f32.mrb[125].mxu0  ;;  %v5895_v57 = vpop.f32.mrb[105].mxu1  ;;  %v15047_v20 = vadd.f32 %v5852_v22, %v14910_v3 }
0x2d8a   :  { %v5856_v6 = vpop.f32.mrb[126].mxu0  ;;  %v11034_v43 = vpop.f32.mrb[106].mxu1  ;;  %v5855_v27 = vadd.f32 %v5854_v10, %v14914_v4  ;;  %v5896_v45 = vadd.f32 %v5895_v57, %v5676_v17  ;;  %v12202_v10 = vld [vmem:[%s15935_s6 + $0x100] sm:$0xff]   ;;  %v12203_v57 = vld [vmem:[%s15935_s6 + $0x108] sm:$0xff]  }
0x2d8b   :  { %v15050_v47 = vadd.f32 %v5856_v6, %v14910_v3  ;;  %v5907_v39 = vadd.f32 %v11034_v43, %v5676_v17  ;;  %v5858_v8 = vpop.f32.mrb[127].mxu0  ;;  %v5898_v33 = vpop.f32.mrb[107].mxu1  ;;  %11111 = vmatpush3.bf16.msra.mxu0 %v12202_v10  ;;  %v12204_v6 = vld [vmem:[%s15935_s6 + $0x110] sm:$0xff]   ;;  %v12205_v43 = vld [vmem:[%s15935_s6 + $0x118] sm:$0xff]  }
0x2d8c   :  { %v5859_v9 = vadd.f32 %v5858_v8, %v14914_v4  ;;  %v5899_v44 = vadd.f32 %v5898_v33, %v5676_v17  ;;  %11112 = vmatprep.subr.bf16.mxu0 %v12575_v23  ;;  %v12207_v8 = vld [vmem:[%s15935_s6 + $0x128] sm:$0xff]   ;;  %v12208_v33 = vld [vmem:[%s15935_s6 + $0x130] sm:$0xff]  }
0x2d8d   :  { %v5913_v60 = vpack.c.bf16 %v15050_v47, %v15047_v20  ;;  %v15056_v38 = vpack.c.bf16 %v5907_v39, %v5904_v19  ;;  %v12206_v39 = vld [vmem:[%s15935_s6 + $0x120] sm:$0xff]   ;;  %v12209_v20 = vld [vmem:[%s15935_s6 + $0x138] sm:$0xff]  }
0x2d8e   :  { %v15058_v56 = vpack.c.bf16 %v5859_v9, %v5855_v27  ;;  %v5912_v0 = vpack.c.bf16 %v5899_v44, %v5896_v45 }
0x2d8f   :  { %11113 = vmatpush3.bf16.msra.mxu0 %v12203_v57 }
0x2d90   :  { %v5966_v5 = vpop.f32.mrb[128].mxu0  ;;  %v5924_v24 = vmul.bf16 %v14929_v11, %v5912_v0  ;;  %v5925_v16 = vmul.bf16 %v14936_v26, %v5912_v0  ;;  %v5926_v35 = vmul.bf16 %v14943_v42, %v5912_v0  ;;  %v5927_v53 = vmul.bf16 %v14950_v41, %v5912_v0  ;;  %11114 = vmatprep.subr.bf16.mxu0 %v12575_v23 }
0x2d91   :  { %v5973_v3 = vmul.f32 0.25, %v5966_v5  ;;  %v11053_v49 = vpop.f32.mrb[129].mxu0  ;;  %v5928_v17 = vmul.bf16 %v14957_v40, %v5912_v0  ;;  %v5929_v22 = vmul.bf16 %v14964_v15, %v5912_v0  ;;  %v5930_v36 = vmul.bf16 %v14971_v61, %v5912_v0 }
0x2d92   :  { %v5969_v13 = vpop.f32.mrb[130].mxu0  ;;  %v5931_v19 = vmul.bf16 %v14978_v2, %v5912_v0 }
0x2d93   :  { %v5974_v28 = vmul.f32 0.25, %v5969_v13  ;;  %5975 = vmax.xlane.f32.xlu0 %v5973_v3  ;;  %v11054_v7 = vpop.f32.mrb[131].mxu0  ;;  %11115 = vmatpush3.bf16.msra.mxu0 %v12204_v6 }
0x2d94   :  { %11116 = vmatprep.subr.bf16.mxu0 %v12575_v23  ;;  %v6201_v7 = vmul.bf16 %v14936_v26, %v15058_v56 }
0x2d95   :  { %5977 = vmax.xlane.f32.xlu1 %v5974_v28 }
0x2d97   :  { %11117 = vmatpush3.bf16.msra.mxu0 %v12205_v43 }
0x2d98   :  { %11118 = vmatprep.subr.bf16.mxu0 %v12575_v23 }
0x2d9b   :  { %11119 = vmatpush3.bf16.msra.mxu0 %v12206_v39 }
0x2d9c   :  { %11120 = vmatprep.subr.bf16.mxu0 %v12575_v23 }
0x2d9f   :  { %11121 = vmatpush3.bf16.msra.mxu0 %v12207_v8 }
0x2da0   :  { %11122 = vmatprep.subr.bf16.mxu0 %v12575_v23 }
0x2da3   :  { %11123 = vmatpush3.bf16.msra.mxu0 %v12208_v33 }
0x2da4   :  { %11124 = vmatprep.subr.bf16.mxu0 %v12575_v23 }
0x2da7   :  { %11125 = vmatpush3.bf16.msra.mxu0 %v12209_v20 }
0x2da8   :  { %11744 = vmatprep.subr.bf16.mxu0 %v12877_v21 }
0x2e20   :  { %v5976_v51 = vpop.xlane.xlu0 %5975 }
0x2e21   :  { %v5979_v55 = vsub.f32 %v5973_v3, %v5976_v51  ;;  %v6202_v51 = vmul.bf16 %v14943_v42, %v15058_v56 }
0x2e22   :  { %v5978_v4 = vpop.xlane.xlu1 %5977 }
0x2e23   :  { %v5981_v48 = vmul.f32 1.442695, %v5979_v55  ;;  %v5980_v59 = vsub.f32 %v5974_v28, %v5978_v4  ;;  %v6200_v28 = vmul.bf16 %v14929_v11, %v15058_v56  ;;  %v6203_v55 = vmul.bf16 %v14950_v41, %v15058_v56 }
0x2e24   :  { %v6204_v4 = vmul.bf16 %v14957_v40, %v15058_v56 }
0x2e25   :  { %12466 = vpow2.f32 %v5981_v48  ;;  %v5983_v31 = vmul.f32 1.442695, %v5980_v59  ;;  %v6205_v48 = vmul.bf16 %v14964_v15, %v15058_v56  ;;  %v6206_v59 = vmul.bf16 %v14971_v61, %v15058_v56 }
0x2e27   :  { %12468 = vpow2.f32 %v5983_v31  ;;  %v6207_v31 = vmul.bf16 %v14978_v2, %v15058_v56 }
0x2e2f   :  { %v12467_v14 = vpop.eup %12466 }
0x2e30   :  { %11087 = vmatprep.mubr.f32.mxu1 %v12467_v14 }
0x2e31   :  { %v12469_v29 = vpop.eup %12468 }
0x2e32   :  { %11088 = vmatmul.mubr.f32.vlgmr.msra.gmra.mrb[108].mxu1 %v12469_v29 }
0x2e33   :  { %11091 = vmatpush3.bf16.msra.mxu1 %v5924_v24  ;;  %11106 = vmatprep.mubr.msk.bf16.mxu1 %vm12576_vm1, %v12575_v23 }
0x2e34   :  { %11092 = vmatprep.subr.bf16.mxu1 %v12575_v23 }
0x2e37   :  { %11093 = vmatpush3.bf16.msra.mxu1 %v5925_v16 }
0x2e38   :  { %11094 = vmatprep.subr.bf16.mxu1 %v12575_v23 }
0x2e3b   :  { %11095 = vmatpush3.bf16.msra.mxu1 %v5926_v35 }
0x2e3c   :  { %11096 = vmatprep.subr.bf16.mxu1 %v12575_v23 }
0x2e3f   :  { %11097 = vmatpush3.bf16.msra.mxu1 %v5927_v53 }
0x2e40   :  { %11098 = vmatprep.subr.bf16.mxu1 %v12575_v23 }
0x2e43   :  { %11099 = vmatpush3.bf16.msra.mxu1 %v5928_v17 }
0x2e44   :  { %11100 = vmatprep.subr.bf16.mxu1 %v12575_v23 }
0x2e47   :  { %11101 = vmatpush3.bf16.msra.mxu1 %v5929_v22 }
0x2e48   :  { %11102 = vmatprep.subr.bf16.mxu1 %v12575_v23 }
0x2e4b   :  { %11103 = vmatpush3.bf16.msra.mxu1 %v5930_v36 }
0x2e4c   :  { %11104 = vmatprep.subr.bf16.mxu1 %v12575_v23 }
0x2e4f   :  { %11105 = vmatpush3.bf16.msra.mxu1 %v5931_v19 }
0x2e50   :  { %11130 = vmatprep.subr.bf16.mxu1 %v12575_v23 }
0x2f05   :  { %v11089_v27 = vpop.f32.mrb[108].mxu1 }
0x2f06   :  { %v6061_v45 = vmax.f32 %v11089_v27, 1e-30  ;;  %v6051_v9 = vpop.f32.mrb[109].mxu1 }
0x2f07   :  { %v6060_v44 = vmax.f32 %v6051_v9, 1e-30 }
0x2f08   :  { %12470 = vrcp.f32 %v6061_v45 }
0x2f09   :  { %12472 = vrcp.f32 %v6060_v44 }
0x2f12   :  { %v12471_v0 = vpop.eup %12470 }
0x2f13   :  { %v12473_v5 = vpop.eup %12472  ;;  %v6065_v3 = vmul.f32 %v12471_v0, %v12469_v29 }
0x2f14   :  { %v6064_v49 = vmul.f32 %v12473_v5, %v12467_v14 }
0x2f16   :  { %v6066_v13 = vpack.c.bf16 %v6065_v3, %v6064_v49 }
0x2f18   :  { %11107 = vmatmul.mubr.bf16.vlgmr.msra.gmra.mrb[112].mxu1 %v6066_v13  ;;  %v6208_v13 = vmul.bf16 %v14929_v11, %v15056_v38  ;;  %v6211_v11 = vmul.bf16 %v14950_v41, %v15056_v38  ;;  %v6215_v41 = vmul.bf16 %v14978_v2, %v15056_v38 }
0x2f19   :  { %11131 = vmatpush3.bf16.xpose.msra.mxu1 %v6200_v28  ;;  %11146 = vmatprep.mubr.msk.bf16.mxu1 %vm12576_vm1, %v12575_v23  ;;  %v6212_v28 = vmul.bf16 %v14957_v40, %v15056_v38  ;;  %v12212_v40 = vld [vmem:[%s15937_s8 + $0x204] ss:$8 sps:$4 sm:$0xff]  }
0x2f1a   :  { %11132 = vmatprep.subr.bf16.mxu1 %v12575_v23 }
0x2f21   :  { %11133 = vmatpush3.bf16.xpose.msra.mxu1 %v6201_v7 }
0x2f22   :  { %11134 = vmatprep.subr.bf16.mxu1 %v12575_v23 }
0x2f29   :  { %11135 = vmatpush3.bf16.xpose.msra.mxu1 %v6202_v51 }
0x2f2a   :  { %11136 = vmatprep.subr.bf16.mxu1 %v12575_v23 }
0x2f31   :  { %11137 = vmatpush3.bf16.xpose.msra.mxu1 %v6203_v55 }
0x2f32   :  { %11138 = vmatprep.subr.bf16.mxu1 %v12575_v23 }
0x2f39   :  { %11139 = vmatpush3.bf16.xpose.msra.mxu1 %v6204_v4 }
0x2f3a   :  { %11140 = vmatprep.subr.bf16.mxu1 %v12575_v23 }
0x2f41   :  { %11141 = vmatpush3.bf16.xpose.msra.mxu1 %v6205_v48 }
0x2f42   :  { %11142 = vmatprep.subr.bf16.mxu1 %v12575_v23 }
0x2f49   :  { %11143 = vmatpush3.bf16.xpose.msra.mxu1 %v6206_v59 }
0x2f4a   :  { %11144 = vmatprep.subr.bf16.mxu1 %v12575_v23 }
0x2f51   :  { %11145 = vmatpush3.bf16.xpose.msra.mxu1 %v6207_v31 }
0x2f52   :  { %11205 = vmatprep.subr.bf16.mxu1 %v12575_v23 }
0x2f58   :  { %11147 = vmatmul.mubr.bf16.vlgmr.msra.gmra.mrb[116].mxu1 %v5913_v60 }
0x2f59   :  { %11206 = vmatpush3.bf16.msra.mxu1 %v12202_v10  ;;  %11221 = vmatprep.mubr.msk.bf16.mxu1 %vm12576_vm1, %v12575_v23 }
0x2f5a   :  { %11207 = vmatprep.subr.bf16.mxu1 %v12575_v23 }
0x2f5d   :  { %11208 = vmatpush3.bf16.msra.mxu1 %v12203_v57 }
0x2f5e   :  { %11209 = vmatprep.subr.bf16.mxu1 %v12575_v23 }
0x2f61   :  { %11210 = vmatpush3.bf16.msra.mxu1 %v12204_v6 }
0x2f62   :  { %11211 = vmatprep.subr.bf16.mxu1 %v12575_v23 }
0x2f65   :  { %11212 = vmatpush3.bf16.msra.mxu1 %v12205_v43 }
0x2f66   :  { %11213 = vmatprep.subr.bf16.mxu1 %v12575_v23 }
0x2f69   :  { %11214 = vmatpush3.bf16.msra.mxu1 %v12206_v39 }
0x2f6a   :  { %11215 = vmatprep.subr.bf16.mxu1 %v12575_v23 }
0x2f6d   :  { %11216 = vmatpush3.bf16.msra.mxu1 %v12207_v8  ;;  %v15167_v8 = vld [vmem:[%s15936_s7 + $0x4] ss:$0 sm:$0xff] }
0x2f6e   :  { %11217 = vmatprep.subr.bf16.mxu1 %v12575_v23 }
0x2f71   :  { %11218 = vmatpush3.bf16.msra.mxu1 %v12208_v33 }
0x2f72   :  { %11219 = vmatprep.subr.bf16.mxu1 %v12575_v23 }
0x2f75   :  { %11220 = vmatpush3.bf16.msra.mxu1 %v12209_v20 }
0x2feb   :  { %v6101_v47 = vpop.f32.mrb[112].mxu1 }
0x2fec   :  { %v11108_v60 = vpop.f32.mrb[113].mxu1 }
0x2fed   :  { %v6104_v56 = vpop.f32.mrb[114].mxu1 }
0x2fee   :  { %v6108_v14 = vpack.c.bf16 %v6104_v56, %v6101_v47  ;;  %v11109_v29 = vpop.f32.mrb[115].mxu1 }
0x2fef   :  { %v12210_v29 = vld [vmem:[%s15937_s8 + $0x200] ss:$8 sps:$4 sm:$0xff]  }
0x2ff0   :  { %11127 = vmatmul.mubr.bf16.vlgmr.msra.gmra.mrb[132].mxu0 %v6108_v14 }
0x2ff1   :  { %11746 = vmatpush3.bf16.msra.mxu0 %v12877_v21 }
0x2ff2   :  { %11748 = vmatprep.subr.bf16.mxu0 %v12886_v25 }
0x2ff5   :  { %11750 = vmatpush3.bf16.msra.mxu0 %v12886_v25 }
0x2ff6   :  { %11752 = vmatprep.subr.bf16.mxu0 %v12897_v30 }
0x2ff9   :  { %11754 = vmatpush3.bf16.msra.mxu0 %v12897_v30 }
0x2ffa   :  { %11756 = vmatprep.subr.bf16.mxu0 %v12907_v37 }
0x2ffd   :  { %11758 = vmatpush3.bf16.msra.mxu0 %v12907_v37 }
0x2ffe   :  { %11760 = vmatprep.subr.bf16.mxu0 %v12918_v46 }
0x3001   :  { %11762 = vmatpush3.bf16.msra.mxu0 %v12918_v46 }
0x3002   :  { %11764 = vmatprep.subr.bf16.mxu0 %v12928_v50 }
0x3005   :  { %11766 = vmatpush3.bf16.msra.mxu0 %v12928_v50 }
0x3006   :  { %11768 = vmatprep.subr.bf16.mxu0 %v12941_v58 }
0x3009   :  { %11770 = vmatpush3.bf16.msra.mxu0 %v12941_v58 }
0x300a   :  { %11772 = vmatprep.subr.bf16.mxu0 %v12946_v62 }
0x300d   :  { %11774 = vmatpush3.bf16.msra.mxu0 %v12946_v62 }
0x300e   :  { %11185 = vmatprep.subr.bf16.mxu0 %v12575_v23 }
0x302b   :  { %v6250_v24 = vpop.f32.mrb[116].mxu1 }
0x302c   :  { %v6257_v16 = vmul.f32 0.25, %v6250_v24  ;;  %v11148_v35 = vpop.f32.mrb[117].mxu1 }
0x302d   :  { %v6253_v53 = vpop.f32.mrb[118].mxu1  ;;  %v12213_v35 = vld [vmem:[%s15937_s8 + $0x210] ss:$8 sps:$4 sm:$0xff]  }
0x302e   :  { %v6258_v17 = vmul.f32 0.25, %v6253_v53  ;;  %6259 = vmax.xlane.f32.xlu0 %v6257_v16  ;;  %v11149_v22 = vpop.f32.mrb[119].mxu1  ;;  %v12218_v53 = vld [vmem:[%s15937_s8 + $0x224] ss:$8 sps:$4 sm:$0xff]  }
0x302f   :  { %v12221_v22 = vld [vmem:[%s15937_s8 + $0x234] ss:$8 sps:$4 sm:$0xff]  }
0x3030   :  { %6261 = vmax.xlane.f32.xlu1 %v6258_v17 }
0x30bb   :  { %v6260_v36 = vpop.xlane.xlu0 %6259 }
0x30bc   :  { %v6263_v19 = vsub.f32 %v6257_v16, %v6260_v36  ;;  %v12215_v16 = vld [vmem:[%s15937_s8 + $0x214] ss:$8 sps:$4 sm:$0xff]   ;;  %v12219_v36 = vld [vmem:[%s15937_s8 + $0x230] ss:$8 sps:$4 sm:$0xff]  }
0x30bd   :  { %v6262_v10 = vpop.xlane.xlu1 %6261 }
0x30be   :  { %v6265_v57 = vmul.f32 1.442695, %v6263_v19  ;;  %v6264_v6 = vsub.f32 %v6258_v17, %v6262_v10  ;;  %v12216_v17 = vld [vmem:[%s15937_s8 + $0x220] ss:$8 sps:$4 sm:$0xff]   ;;  %v12224_v19 = vld [vmem:[%s15937_s8 + $0x244] ss:$8 sps:$4 sm:$0xff]  }
0x30bf   :  { %v12222_v10 = vld [vmem:[%s15937_s8 + $0x240] ss:$8 sps:$4 sm:$0xff]  }
0x30c0   :  { %12474 = vpow2.f32 %v6265_v57  ;;  %v6267_v43 = vmul.f32 1.442695, %v6264_v6  ;;  %v12227_v57 = vld [vmem:[%s15937_s8 + $0x254] ss:$8 sps:$4 sm:$0xff]   ;;  %v12225_v6 = vld [vmem:[%s15937_s8 + $0x250] ss:$8 sps:$4 sm:$0xff]  }
0x30c2   :  { %12476 = vpow2.f32 %v6267_v43  ;;  %v12230_v43 = vld [vmem:[%s15937_s8 + $0x264] ss:$8 sps:$4 sm:$0xff]  }
0x30c3   :  { %v6191_v39 = vpop.f32.mrb[132].mxu0 }
0x30c4   :  { %v6440_v33 = vadd.f32 %v6191_v39, %v14891_v12  ;;  %v11128_v27 = vpop.f32.mrb[133].mxu0  ;;  %v6209_v12 = vmul.bf16 %v14936_v26, %v15056_v38  ;;  %v6213_v26 = vmul.bf16 %v14964_v15, %v15056_v38  ;;  %v12228_v39 = vld [vmem:[%s15937_s8 + $0x260] ss:$8 sps:$4 sm:$0xff]  }
0x30c5   :  { %v6194_v45 = vpop.f32.mrb[134].mxu0  ;;  %v12231_v27 = vld [vmem:[%s15937_s8 + $0x270] ss:$8 sps:$4 sm:$0xff]  }
0x30c6   :  { %v6441_v9 = vadd.f32 %v6194_v45, %v14894_v54  ;;  %v11129_v44 = vpop.f32.mrb[135].mxu0  ;;  %v6450_v0 = vadd.f32 %v15167_v8, %v6440_v33  ;;  %v6210_v54 = vmul.bf16 %v14943_v42, %v15056_v38  ;;  %v6214_v42 = vmul.bf16 %v14971_v61, %v15056_v38  ;;  %v12233_v33 = vld [vmem:[%s15937_s8 + $0x274] ss:$8 sps:$4 sm:$0xff]  }
0x30c8   :  { %6454 = vadd.xlane.f32.xlu0 %v6450_v0  ;;  %v6451_v5 = vadd.f32 %v15167_v8, %v6441_v9 }
0x30ca   :  { %v12475_v3 = vpop.eup %12474  ;;  %6456 = vadd.xlane.f32.xlu1 %v6451_v5 }
0x30cb   :  { %11182 = vmatprep.mubr.f32.mxu0 %v12475_v3 }
0x30cc   :  { %v12477_v49 = vpop.eup %12476 }
0x30cd   :  { %11183 = vmatmul.mubr.f32.vlgmr.msra.gmra.mrb[136].mxu0 %v12477_v49 }
0x30ce   :  { %11186 = vmatpush3.bf16.msra.mxu0 %v6208_v13  ;;  %11201 = vmatprep.mubr.msk.bf16.mxu0 %vm12576_vm1, %v12575_v23  ;;  %v15250_v13 = vld [vmem:[%s15938_s12 + $0x4] ss:$0 sm:$0xff] }
0x30cf   :  { %11187 = vmatprep.subr.bf16.mxu0 %v12575_v23 }
0x30d2   :  { %11188 = vmatpush3.bf16.msra.mxu0 %v6209_v12 }
0x30d3   :  { %11189 = vmatprep.subr.bf16.mxu0 %v12575_v23 }
0x30d6   :  { %11190 = vmatpush3.bf16.msra.mxu0 %v6210_v54 }
0x30d7   :  { %11191 = vmatprep.subr.bf16.mxu0 %v12575_v23 }
0x30da   :  { %11192 = vmatpush3.bf16.msra.mxu0 %v6211_v11 }
0x30db   :  { %11193 = vmatprep.subr.bf16.mxu0 %v12575_v23 }
0x30de   :  { %11194 = vmatpush3.bf16.msra.mxu0 %v6212_v28 }
0x30df   :  { %11195 = vmatprep.subr.bf16.mxu0 %v12575_v23 }
0x30e2   :  { %11196 = vmatpush3.bf16.msra.mxu0 %v6213_v26  ;;  %v15256_v26 = vld [vmem:[%s15939_s13 + $0x4] ss:$0 sm:$0xff] }
0x30e3   :  { %11197 = vmatprep.subr.bf16.mxu0 %v12575_v23 }
0x30e6   :  { %11198 = vmatpush3.bf16.msra.mxu0 %v6214_v42 }
0x30e7   :  { %11199 = vmatprep.subr.bf16.mxu0 %v12575_v23 }
0x30ea   :  { %11200 = vmatpush3.bf16.msra.mxu0 %v6215_v41 }
0x30eb   :  { %6611 = vmatprep.subr.bf16.mxu0 %v12212_v40 }
0x3155   :  { %v6455_v7 = vpop.xlane.xlu0 %6454 }
0x3156   :  { %v6462_v15 = vmul.f32 0.0078125, %v6455_v7 }
0x3157   :  { %v6457_v51 = vpop.xlane.xlu1 %6456 }
0x3158   :  { %v6466_v55 = vsub.f32 %v6450_v0, %v6462_v15  ;;  %v6463_v4 = vmul.f32 0.0078125, %v6457_v51  ;;  %v12234_v15 = vld [vmem:[%s15940_s10 + $0x240] sm:$0xff]  }
0x3159   :  { %10010 = vmatprep.subr.bf16.mxu1 %v12234_v15 }
0x315a   :  { %v6467_v48 = vsub.f32 %v6451_v5, %v6463_v4  ;;  %v6470_v59 = vmul.f32 %v6466_v55, %v6466_v55 }
0x315c   :  { %6474 = vadd.xlane.f32.xlu0 %v6470_v59  ;;  %v6471_v61 = vmul.f32 %v6467_v48, %v6467_v48 }
0x315e   :  { %6476 = vadd.xlane.f32.xlu1 %v6471_v61 }
0x31a0   :  { %v11184_v31 = vpop.f32.mrb[136].mxu0 }
0x31a1   :  { %v6345_v20 = vmax.f32 %v11184_v31, 1e-30  ;;  %v6335_v47 = vpop.f32.mrb[137].mxu0  ;;  %v12236_v31 = vld [vmem:[%s15940_s10 + $0x248] sm:$0xff]  }
0x31a2   :  { %v6344_v2 = vmax.f32 %v6335_v47, 1e-30  ;;  %v12238_v47 = vld [vmem:[%s15940_s10 + $0x250] sm:$0xff]  }
0x31a3   :  { %12478 = vrcp.f32 %v6345_v20  ;;  %v12237_v20 = vld [vmem:[%s15940_s10 + $0x208] sm:$0xff]  }
0x31a4   :  { %12480 = vrcp.f32 %v6344_v2  ;;  %v12239_v2 = vld [vmem:[%s15940_s10 + $0x210] sm:$0xff]  }
0x31ad   :  { %v12479_v38 = vpop.eup %12478 }
0x31ae   :  { %v12481_v60 = vpop.eup %12480  ;;  %v6349_v56 = vmul.f32 %v12479_v38, %v12477_v49  ;;  %v12240_v38 = vld [vmem:[%s15940_s10 + $0x258] sm:$0xff]  }
0x31af   :  { %v6348_v14 = vmul.f32 %v12481_v60, %v12475_v3  ;;  %v12241_v60 = vld [vmem:[%s15940_s10 + $0x218] sm:$0xff]  }
0x31b1   :  { %v6350_v24 = vpack.c.bf16 %v6349_v56, %v6348_v14  ;;  %v12242_v56 = vld [vmem:[%s15940_s10 + $0x260] sm:$0xff]  }
0x31b2   :  { %v12243_v14 = vld [vmem:[%s15940_s10 + $0x220] sm:$0xff]  }
0x31b3   :  { %11202 = vmatmul.mubr.bf16.vlgmr.msra.gmra.mrb[140].mxu0 %v6350_v24  ;;  %v12245_v24 = vld [vmem:[%s15940_s10 + $0x228] sm:$0xff]  }
0x31b4   :  { %6612 = vmatpush1.bf16.msra.mxu0 %v12210_v29  ;;  %6643 = vmatprep.mubr.bf16.mxu0 %v12574_v1  ;;  %v12244_v29 = vld [vmem:[%s15940_s10 + $0x268] sm:$0xff]  }
0x31b5   :  { %6613 = vmatprep.subr.bf16.mxu0 %v12215_v16  ;;  %v12246_v16 = vld [vmem:[%s15940_s10 + $0x270] sm:$0xff]  }
0x31b8   :  { %6614 = vmatpush1.bf16.msra.mxu0 %v12213_v35  ;;  %v12247_v35 = vld [vmem:[%s15940_s10 + $0x230] sm:$0xff]  }
0x31b9   :  { %6615 = vmatprep.subr.bf16.mxu0 %v12218_v53  ;;  %v12248_v53 = vld [vmem:[%s15940_s10 + $0x278] sm:$0xff]  }
0x31bc   :  { %6616 = vmatpush1.bf16.msra.mxu0 %v12216_v17  ;;  %v12249_v17 = vld [vmem:[%s15940_s10 + $0x238] sm:$0xff]  }
0x31bd   :  { %6617 = vmatprep.subr.bf16.mxu0 %v12221_v22  ;;  %v9105_v22 = vld [vmem:[%s15941_s9 + $0x8] sm:$0x3] }
0x31c0   :  { %6618 = vmatpush1.bf16.msra.mxu0 %v12219_v36  ;;  %v15320_v36 = vrot.slane %v9105_v22, %v12767_v32 }
0x31c1   :  { %6619 = vmatprep.subr.bf16.mxu0 %v12224_v19  ;;  %v15323_v19 = vrot.slane %v9105_v22, %v12775_v34 }
0x31c4   :  { %6620 = vmatpush1.bf16.msra.mxu0 %v12222_v10 }
0x31c5   :  { %6621 = vmatprep.subr.bf16.mxu0 %v12227_v57 }
0x31c8   :  { %6622 = vmatpush1.bf16.msra.mxu0 %v12225_v6 }
0x31c9   :  { %6623 = vmatprep.subr.bf16.mxu0 %v12230_v43 }
0x31cc   :  { %6624 = vmatpush1.bf16.msra.mxu0 %v12228_v39 }
0x31cd   :  { %6625 = vmatprep.subr.bf16.mxu0 %v12233_v33 }
0x31d0   :  { %6626 = vmatpush1.bf16.msra.mxu0 %v12231_v27 }
0x31e9   :  { %v6475_v45 = vpop.xlane.xlu0 %6474 }
0x31ea   :  { %v6482_v9 = vmul.f32 0.0078125, %v6475_v45 }
0x31eb   :  { %v6477_v44 = vpop.xlane.xlu1 %6476 }
0x31ec   :  { %v6486_v0 = vadd.f32 1e-05, %v6482_v9  ;;  %v6483_v5 = vmul.f32 0.0078125, %v6477_v44 }
0x31ee   :  { %12482 = vrsqrt.f32 %v6486_v0  ;;  %v6487_v3 = vadd.f32 1e-05, %v6483_v5 }
0x31f0   :  { %12484 = vrsqrt.f32 %v6487_v3 }
0x31f8   :  { %v12483_v49 = vpop.eup %12482 }
0x31f9   :  { %v6494_v12 = vmul.f32 %v12483_v49, %v6466_v55 }
0x31fa   :  { %v12485_v54 = vpop.eup %12484 }
0x31fb   :  { %v6495_v11 = vmul.f32 %v12485_v54, %v6467_v48  ;;  %v6504_v28 = vmul.f32 %v15250_v13, %v6494_v12  ;;  %v12235_v48 = vld [vmem:[%s15940_s10 + $0x200] sm:$0xff]  }
0x31fd   :  { %v6505_v42 = vmul.f32 %v15250_v13, %v6495_v11  ;;  %v15260_v41 = vadd.f32 %v15256_v26, %v6504_v28 }
0x31ff   :  { %v15263_v40 = vadd.f32 %v15256_v26, %v6505_v42 }
0x3201   :  { %v6518_v7 = vpack.c.bf16 %v15263_v40, %v15260_v41 }
0x3203   :  { %6644 = vmatmul.mubr.bf16.vlgmr.msra.gmra.mrb[144].mxu0 %v6518_v7 }
0x3204   :  { %6653 = vmatprep.mubr.bf16.mxu0 %v12574_v1 }
0x3286   :  { %v6385_v51 = vpop.f32.mrb[140].mxu0 }
0x3287   :  { %v11203_v55 = vpop.f32.mrb[141].mxu0 }
0x3288   :  { %v6388_v4 = vpop.f32.mrb[142].mxu0 }
0x3289   :  { %v6392_v59 = vpack.c.bf16 %v6388_v4, %v6385_v51  ;;  %v11204_v61 = vpop.f32.mrb[143].mxu0 }
0x328b   :  { %11222 = vmatmul.mubr.bf16.vlgmr.msra.gmra.mrb[120].mxu1 %v6392_v59 }
0x328c   :  { %10011 = vmatpush3.bf16.msra.mxu1 %v12235_v48 }
0x328d   :  { %10012 = vmatprep.subr.bf16.mxu1 %v12236_v31 }
0x3290   :  { %10013 = vmatpush3.bf16.msra.mxu1 %v12237_v20 }
0x3291   :  { %10014 = vmatprep.subr.bf16.mxu1 %v12238_v47 }
0x3294   :  { %10015 = vmatpush3.bf16.msra.mxu1 %v12239_v2 }
0x3295   :  { %10016 = vmatprep.subr.bf16.mxu1 %v12240_v38 }
0x3298   :  { %10017 = vmatpush3.bf16.msra.mxu1 %v12241_v60 }
0x3299   :  { %10018 = vmatprep.subr.bf16.mxu1 %v12242_v56 }
0x329c   :  { %10019 = vmatpush3.bf16.msra.mxu1 %v12243_v14 }
0x329d   :  { %10020 = vmatprep.subr.bf16.mxu1 %v12244_v29 }
0x32a0   :  { %10021 = vmatpush3.bf16.msra.mxu1 %v12245_v24 }
0x32a1   :  { %10022 = vmatprep.subr.bf16.mxu1 %v12246_v16 }
0x32a4   :  { %10023 = vmatpush3.bf16.msra.mxu1 %v12247_v35  ;;  %v12250_v35 = vld [vmem:[%s15960_s23 + $0x3c0] ss:$12 sps:$4 sm:$0xff]  }
0x32a5   :  { %10024 = vmatprep.subr.bf16.mxu1 %v12248_v53  ;;  %v12252_v53 = vld [vmem:[%s15960_s23 + $0x3c4] ss:$12 sps:$4 sm:$0xff]  }
0x32a6   :  { %7157 = vmatprep.subr.bf16.mxu0 %v12252_v53 }
0x32a7   :  { %7158 = vmatpush1.bf16.msra.mxu0 %v12250_v35 }
0x32a8   :  { %10025 = vmatpush3.bf16.msra.mxu1 %v12249_v17  ;;  %v12255_v17 = vld [vmem:[%s15960_s23 + $0x3dc] ss:$12 sps:$4 sm:$0xff]  }
0x32a9   :  { %7159 = vmatprep.subr.bf16.mxu0 %v12255_v17 }
0x32d6   :  { %v6645_v10 = vpop.f32.mrb[144].mxu0 }
0x32d7   :  { %v6646_v57 = vadd.f32 %v6645_v10, %v15320_v36  ;;  %v6647_v6 = vpop.f32.mrb[145].mxu0 }
0x32d8   :  { %v6648_v43 = vadd.f32 %v6647_v6, %v15323_v19  ;;  %v6649_v39 = vpop.f32.mrb[146].mxu0 }
0x32d9   :  { %v6650_v33 = vadd.f32 %v6649_v39, %v15320_v36  ;;  %v6651_v27 = vpop.f32.mrb[147].mxu0  ;;  %v6664_v9 = vmax.f32 %v6646_v57, 0.0 }
0x32da   :  { %v6652_v45 = vadd.f32 %v6651_v27, %v15323_v19  ;;  %v6665_v0 = vmax.f32 %v6648_v43, 0.0 }
0x32db   :  { %v6666_v44 = vmax.f32 %v6650_v33, 0.0 }
0x32dc   :  { %v6667_v5 = vmax.f32 %v6652_v45, 0.0 }
0x32dd   :  { %v6672_v3 = vpack.c.bf16 %v6666_v44, %v6664_v9 }
0x32de   :  { %v6673_v49 = vpack.c.bf16 %v6667_v5, %v6665_v0 }
0x32e0   :  { %6810 = vmatprep.mubr.bf16.mxu1 %v6673_v49 }
0x32e1   :  { %6811 = vmatmul.mubr.bf16.vlgmr.msra.gmra.mrb[124].mxu1 %v6672_v3 }
0x335e   :  { %v6427_v12 = vpop.f32.mrb[120].mxu1 }
0x335f   :  { %v6442_v54 = vadd.f32 %v6427_v12, %v15014_v18  ;;  %v11223_v11 = vpop.f32.mrb[121].mxu1  ;;  %v15336_v18 = vld [vmem:[%s15942_s11 + $0x4] ss:$0 sm:$0xff] }
0x3360   :  { %v6430_v28 = vpop.f32.mrb[122].mxu1 }
0x3361   :  { %v6443_v42 = vadd.f32 %v6430_v28, %v15017_v52  ;;  %v11224_v7 = vpop.f32.mrb[123].mxu1  ;;  %v6452_v15 = vadd.f32 %v15167_v8, %v6442_v54 }
0x3363   :  { %6458 = vadd.xlane.f32.xlu0 %v6452_v15  ;;  %v6453_v51 = vadd.f32 %v15167_v8, %v6443_v42 }
0x3365   :  { %6460 = vadd.xlane.f32.xlu1 %v6453_v51 }
0x33b4   :  { %v10026_v55 = vpop.f32.mrb[124].mxu1 }
0x33b5   :  { %v10027_v4 = vpop.f32.mrb[125].mxu1 }
0x33b6   :  { %v10028_v48 = vadd.f32 %v10027_v4, %v10026_v55  ;;  %v10029_v59 = vpop.f32.mrb[126].mxu1  ;;  %v12259_v55 = vld [vmem:[%s15960_s23 + $0x408] ss:$12 sps:$4 sm:$0xff]   ;;  %v12264_v4 = vld [vmem:[%s15960_s23 + $0x424] ss:$12 sps:$4 sm:$0xff]  }
0x33b7   :  { %v10030_v61 = vpop.f32.mrb[127].mxu1 }
0x33b8   :  { %v10031_v31 = vadd.f32 %v10030_v61, %v10029_v59  ;;  %v6813_v60 = vadd.f32 %v10028_v48, %v15336_v18  ;;  %v12262_v48 = vld [vmem:[%s15960_s23 + $0x420] ss:$12 sps:$4 sm:$0xff]   ;;  %v12267_v59 = vld [vmem:[%s15960_s23 + $0x43c] ss:$12 sps:$4 sm:$0xff]   ;;  %v12265_v61 = vld [vmem:[%s15960_s23 + $0x438] ss:$12 sps:$4 sm:$0xff]  }
0x33ba   :  { %v6816_v14 = vadd.f32 %v10031_v31, %v15336_v18  ;;  %v6827_v24 = vadd.f32 %v6813_v60, %v15260_v41  ;;  %v12253_v41 = vld [vmem:[%s15960_s23 + $0x3d8] ss:$12 sps:$4 sm:$0xff]   ;;  %v12268_v31 = vld [vmem:[%s15960_s23 + $0x450] ss:$12 sps:$4 sm:$0xff]  }
0x33bb   :  { %7160 = vmatpush1.bf16.msra.mxu0 %v12253_v41  ;;  %v15411_v41 = vld [vmem:[%s15944_s15 + $0x4] ss:$0 sm:$0xff] }
0x33bc   :  { %v6828_v16 = vadd.f32 %v6816_v14, %v15263_v40 }
0x33f0   :  { %v6459_v20 = vpop.xlane.xlu0 %6458 }
0x33f1   :  { %v6464_v47 = vmul.f32 0.0078125, %v6459_v20  ;;  %v12270_v20 = vld [vmem:[%s15960_s23 + $0x454] ss:$12 sps:$4 sm:$0xff]  }
0x33f2   :  { %v6461_v52 = vpop.xlane.xlu1 %6460 }
0x33f3   :  { %v6468_v2 = vsub.f32 %v6452_v15, %v6464_v47  ;;  %v6465_v38 = vmul.f32 0.0078125, %v6461_v52  ;;  %v12273_v47 = vld [vmem:[%s15960_s23 + $0x46c] ss:$12 sps:$4 sm:$0xff]   ;;  %v12271_v52 = vld [vmem:[%s15960_s23 + $0x468] ss:$12 sps:$4 sm:$0xff]  }
0x33f5   :  { %v6469_v8 = vsub.f32 %v6453_v51, %v6465_v38  ;;  %v6472_v56 = vmul.f32 %v6468_v2, %v6468_v2  ;;  %v12258_v51 = vld [vmem:[%s15960_s23 + $0x3f4] ss:$12 sps:$4 sm:$0xff]  }
0x33f6   :  { %7161 = vmatprep.subr.bf16.mxu0 %v12258_v51 }
0x33f7   :  { %6478 = vadd.xlane.f32.xlu0 %v6472_v56  ;;  %v6473_v29 = vmul.f32 %v6469_v8, %v6469_v8 }
0x33f9   :  { %6480 = vadd.xlane.f32.xlu1 %v6473_v29 }
0x33fb   :  { %6831 = vadd.xlane.f32.xlu0 %v6827_v24 }
0x33fd   :  { %6833 = vadd.xlane.f32.xlu1 %v6828_v16 }
0x3484   :  { %v6479_v40 = vpop.xlane.xlu0 %6478 }
0x3485   :  { %v6484_v22 = vmul.f32 0.0078125, %v6479_v40 }
0x3486   :  { %v6481_v10 = vpop.xlane.xlu1 %6480 }
0x3487   :  { %v6488_v57 = vadd.f32 1e-05, %v6484_v22  ;;  %v6485_v6 = vmul.f32 0.0078125, %v6481_v10 }
0x3488   :  { %v6832_v43 = vpop.xlane.xlu0 %6831 }
0x3489   :  { %12486 = vrsqrt.f32 %v6488_v57  ;;  %v6489_v39 = vadd.f32 1e-05, %v6485_v6  ;;  %v6839_v33 = vmul.f32 0.0078125, %v6832_v43 }
0x348a   :  { %v6834_v27 = vpop.xlane.xlu1 %6833 }
0x348b   :  { %12488 = vrsqrt.f32 %v6489_v39  ;;  %v6843_v45 = vsub.f32 %v6827_v24, %v6839_v33  ;;  %v6840_v9 = vmul.f32 0.0078125, %v6834_v27  ;;  %v15405_v24 = vld [vmem:[%s15943_s14 + $0x4] ss:$0 sm:$0xff] }
0x348d   :  { %v6844_v44 = vsub.f32 %v6828_v16, %v6840_v9  ;;  %v6847_v0 = vmul.f32 %v6843_v45, %v6843_v45 }
0x348f   :  { %6851 = vadd.xlane.f32.xlu0 %v6847_v0  ;;  %v6848_v5 = vmul.f32 %v6844_v44, %v6844_v44 }
0x3491   :  { %6853 = vadd.xlane.f32.xlu1 %v6848_v5 }
0x3493   :  { %v12487_v3 = vpop.eup %12486 }
0x3494   :  { %v6496_v49 = vmul.f32 %v12487_v3, %v6468_v2 }
0x3495   :  { %v12489_v12 = vpop.eup %12488 }
0x3496   :  { %v6497_v54 = vmul.f32 %v12489_v12, %v6469_v8  ;;  %v6506_v11 = vmul.f32 %v15250_v13, %v6496_v49 }
0x3498   :  { %v6507_v28 = vmul.f32 %v15250_v13, %v6497_v54  ;;  %v15357_v42 = vadd.f32 %v15256_v26, %v6506_v11  ;;  %v12256_v13 = vld [vmem:[%s15960_s23 + $0x3f0] ss:$12 sps:$4 sm:$0xff]  }
0x3499   :  { %7162 = vmatpush1.bf16.msra.mxu0 %v12256_v13  ;;  %v15430_v11 = vld [vmem:[%s15963_s28 + $0xf] sm:$0x7] }
0x349a   :  { %v15360_v7 = vadd.f32 %v15256_v26, %v6507_v28  ;;  %v12261_v26 = vld [vmem:[%s15960_s23 + $0x40c] ss:$12 sps:$4 sm:$0xff]  }
0x349b   :  { %7163 = vmatprep.subr.bf16.mxu0 %v12261_v26 }
0x349c   :  { %v6519_v15 = vpack.c.bf16 %v15360_v7, %v15357_v42 }
0x349d   :  { %7164 = vmatpush1.bf16.msra.mxu0 %v12259_v55 }
0x349e   :  { %6654 = vmatmul.mubr.bf16.gmra.mrb[148].mxu0 %v6519_v15  ;;  %7165 = vmatprep.subr.bf16.mxu0 %v12264_v4 }
0x349f   :  { %7189 = vmatprep.mubr.bf16.mxu0 %v12574_v1 }
0x34a1   :  { %7166 = vmatpush1.bf16.msra.mxu0 %v12262_v48 }
0x34a2   :  { %7167 = vmatprep.subr.bf16.mxu0 %v12267_v59 }
0x34a5   :  { %7168 = vmatpush1.bf16.msra.mxu0 %v12265_v61 }
0x34a6   :  { %7169 = vmatprep.subr.bf16.mxu0 %v12270_v20 }
0x34a9   :  { %7170 = vmatpush1.bf16.msra.mxu0 %v12268_v31  ;;  %v15453_v31 = vld [vmem:[%s15964_s4] sm:$0xff]  }
0x34aa   :  { %7171 = vmatprep.subr.bf16.mxu0 %v12273_v47  ;;  %v15460_v47 = vld [vmem:[%s15964_s4 + $0x8] sm:$0xff]  }
0x34ad   :  { %7172 = vmatpush1.bf16.msra.mxu0 %v12271_v52 }
0x34ae   :  { %11245 = vmatprep.subr.bf16.mxu0 %v12575_v23 }
0x351c   :  { %v6852_v2 = vpop.xlane.xlu0 %6851 }
0x351d   :  { %v6859_v38 = vmul.f32 0.0078125, %v6852_v2  ;;  %v15467_v2 = vld [vmem:[%s15964_s4 + $0x10] sm:$0xff]  }
0x351e   :  { %v6854_v60 = vpop.xlane.xlu1 %6853 }
0x351f   :  { %v6863_v8 = vadd.f32 1e-05, %v6859_v38  ;;  %v6860_v56 = vmul.f32 0.0078125, %v6854_v60  ;;  %v15474_v60 = vld [vmem:[%s15964_s4 + $0x18] sm:$0xff]  }
0x3521   :  { %12490 = vrsqrt.f32 %v6863_v8  ;;  %v6864_v14 = vadd.f32 1e-05, %v6860_v56  ;;  %v15481_v56 = vld [vmem:[%s15964_s4 + $0x20] sm:$0xff]  }
0x3523   :  { %12492 = vrsqrt.f32 %v6864_v14 }
0x352b   :  { %v12491_v29 = vpop.eup %12490 }
0x352c   :  { %v6871_v16 = vmul.f32 %v12491_v29, %v6843_v45  ;;  %v15488_v29 = vld [vmem:[%s15964_s4 + $0x28] sm:$0xff]  }
0x352d   :  { %v12493_v35 = vpop.eup %12492 }
0x352e   :  { %v6881_v53 = vmul.f32 %v15405_v24, %v6871_v16  ;;  %v6872_v17 = vmul.f32 %v12493_v35, %v6844_v44  ;;  %v15495_v35 = vld [vmem:[%s15964_s4 + $0x30] sm:$0xff]  }
0x3530   :  { %v6882_v40 = vmul.f32 %v15405_v24, %v6872_v17  ;;  %v15415_v22 = vadd.f32 %v15411_v41, %v6881_v53  ;;  %v15502_v17 = vld [vmem:[%s15964_s4 + $0x38] sm:$0xff]  }
0x3532   :  { %v15418_v10 = vadd.f32 %v15411_v41, %v6882_v40 }
0x3534   :  { %v7011_v57 = vpack.c.bf16 %v15418_v10, %v15415_v22 }
0x3536   :  { %7190 = vmatmul.mubr.bf16.vlgmr.msra.gmra.mrb[152].mxu0 %v7011_v57 }
0x3537   :  { %7199 = vmatprep.mubr.bf16.mxu0 %v12574_v1 }
0x3571   :  { %v6655_v6 = vpop.f32.mrb[148].mxu0 }
0x3572   :  { %v6656_v43 = vadd.f32 %v6655_v6, %v15320_v36  ;;  %v6657_v39 = vpop.f32.mrb[149].mxu0 }
0x3573   :  { %v6658_v33 = vadd.f32 %v6657_v39, %v15323_v19  ;;  %v6659_v27 = vpop.f32.mrb[150].mxu0 }
0x3574   :  { %v6660_v45 = vadd.f32 %v6659_v27, %v15320_v36  ;;  %v6661_v9 = vpop.f32.mrb[151].mxu0  ;;  %v6668_v0 = vmax.f32 %v6656_v43, 0.0  ;;  %v15434_v36 = vrot.slane %v15430_v11, %v12767_v32 }
0x3575   :  { %v6662_v44 = vadd.f32 %v6661_v9, %v15323_v19  ;;  %v6669_v3 = vmax.f32 %v6658_v33, 0.0  ;;  %v15438_v19 = vrot.slane %v15430_v11, %v12775_v34 }
0x3576   :  { %v6670_v5 = vmax.f32 %v6660_v45, 0.0 }
0x3577   :  { %v6671_v49 = vmax.f32 %v6662_v44, 0.0 }
0x3578   :  { %v6674_v12 = vpack.c.bf16 %v6670_v5, %v6668_v0  ;;  %v12274_v5 = vld [vmem:[%s15960_s23 + $0x3c8] ss:$12 sps:$4 sm:$0xff]  }
0x3579   :  { %v6675_v54 = vpack.c.bf16 %v6671_v49, %v6669_v3  ;;  %v12275_v3 = vld [vmem:[%s15960_s23 + $0x3e0] ss:$12 sps:$4 sm:$0xff]   ;;  %11225 = vmatprep.subr.bf16.mxu1 %v12274_v5 }
0x357a   :  { %11226 = vmatpush3.bf16.msra.mxu1 %v12274_v5 }
0x357b   :  { %6818 = vmatprep.mubr.bf16.mxu1 %v6675_v54  ;;  %11227 = vmatprep.subr.bf16.mxu1 %v12275_v3 }
0x357c   :  { %6819 = vmatmul.mubr.bf16.gmra.mrb[128].mxu1 %v6674_v12 }
0x357d   :  { %11241 = vmatprep.mubr.bf16.mxu1 %v7011_v57 }
0x357e   :  { %11228 = vmatpush3.bf16.msra.mxu1 %v12275_v3 }
0x3609   :  { %v7191_v28 = vpop.f32.mrb[152].mxu0 }
0x360a   :  { %v7193_v15 = vpop.f32.mrb[153].mxu0  ;;  %v15441_v13 = vadd.f32 %v7191_v28, %v15434_v36 }
0x360b   :  { %v7195_v51 = vpop.f32.mrb[154].mxu0  ;;  %v7194_v4 = vadd.f32 %v7193_v15, %v15438_v19 }
0x360c   :  { %v15444_v26 = vadd.f32 %v7195_v51, %v15434_v36  ;;  %v7197_v55 = vpop.f32.mrb[155].mxu0  ;;  %v12276_v51 = vld [vmem:[%s15960_s23 + $0x3f8] ss:$12 sps:$4 sm:$0xff]  }
0x360d   :  { %v7198_v48 = vadd.f32 %v7197_v55, %v15438_v19  ;;  %11229 = vmatprep.subr.bf16.mxu1 %v12276_v51  ;;  %v12277_v55 = vld [vmem:[%s15960_s23 + $0x410] ss:$12 sps:$4 sm:$0xff]  }
0x360e   :  { %v7259_v59 = vpack.c.bf16 %v15444_v26, %v15441_v13  ;;  %11230 = vmatpush3.bf16.msra.mxu1 %v12276_v51 }
0x360f   :  { %v7260_v61 = vpack.c.bf16 %v7198_v48, %v7194_v4  ;;  %11231 = vmatprep.subr.bf16.mxu1 %v12277_v55  ;;  %v12278_v4 = vld [vmem:[%s15960_s23 + $0x428] ss:$12 sps:$4 sm:$0xff]   ;;  %v12279_v48 = vld [vmem:[%s15960_s23 + $0x440] ss:$12 sps:$4 sm:$0xff]  }
0x3611   :  { %v7265_v20 = vmul.bf16 %v15453_v31, %v7260_v61  ;;  %v7266_v52 = vmul.bf16 %v15460_v47, %v7260_v61  ;;  %v7267_v38 = vmul.bf16 %v15467_v2, %v7260_v61  ;;  %v7268_v8 = vmul.bf16 %v15474_v60, %v7260_v61 }
0x3612   :  { %v7269_v14 = vmul.bf16 %v15481_v56, %v7260_v61  ;;  %v7270_v16 = vmul.bf16 %v15488_v29, %v7260_v61  ;;  %v7271_v53 = vmul.bf16 %v15495_v35, %v7260_v61  ;;  %v7272_v40 = vmul.bf16 %v15502_v17, %v7260_v61  ;;  %11232 = vmatpush3.bf16.msra.mxu1 %v12277_v55  ;;  %v12280_v61 = vld [vmem:[%s15960_s23 + $0x458] ss:$12 sps:$4 sm:$0xff]  }
0x3613   :  { %11246 = vmatpush3.bf16.xpose.msra.mxu0 %v7265_v20  ;;  %11233 = vmatprep.subr.bf16.mxu1 %v12278_v4  ;;  %v12281_v20 = vld [vmem:[%s15960_s23 + $0x470] ss:$12 sps:$4 sm:$0xff]  }
0x3614   :  { %11247 = vmatprep.subr.bf16.mxu0 %v12575_v23 }
0x3616   :  { %11234 = vmatpush3.bf16.msra.mxu1 %v12278_v4 }
0x3617   :  { %11235 = vmatprep.subr.bf16.mxu1 %v12279_v48 }
0x361a   :  { %11236 = vmatpush3.bf16.msra.mxu1 %v12279_v48 }
0x361b   :  { %11248 = vmatpush3.bf16.xpose.msra.mxu0 %v7266_v52  ;;  %11237 = vmatprep.subr.bf16.mxu1 %v12280_v61 }
0x361c   :  { %11249 = vmatprep.subr.bf16.mxu0 %v12575_v23 }
0x361e   :  { %11238 = vmatpush3.bf16.msra.mxu1 %v12280_v61 }
0x361f   :  { %11239 = vmatprep.subr.bf16.mxu1 %v12281_v20 }
0x3622   :  { %11240 = vmatpush3.bf16.msra.mxu1 %v12281_v20 }
0x3623   :  { %11250 = vmatpush3.bf16.xpose.msra.mxu0 %v7267_v38  ;;  %11776 = vmatprep.subr.bf16.mxu1 %v12877_v21 }
0x3624   :  { %11251 = vmatprep.subr.bf16.mxu0 %v12575_v23 }
0x362b   :  { %11252 = vmatpush3.bf16.xpose.msra.mxu0 %v7268_v8 }
0x362c   :  { %11253 = vmatprep.subr.bf16.mxu0 %v12575_v23 }
0x3633   :  { %11254 = vmatpush3.bf16.xpose.msra.mxu0 %v7269_v14 }
0x3634   :  { %11255 = vmatprep.subr.bf16.mxu0 %v12575_v23 }
0x363b   :  { %11256 = vmatpush3.bf16.xpose.msra.mxu0 %v7270_v16 }
0x363c   :  { %11257 = vmatprep.subr.bf16.mxu0 %v12575_v23 }
0x3643   :  { %11258 = vmatpush3.bf16.xpose.msra.mxu0 %v7271_v53 }
0x3644   :  { %11259 = vmatprep.subr.bf16.mxu0 %v12575_v23 }
0x364b   :  { %11260 = vmatpush3.bf16.xpose.msra.mxu0 %v7272_v40 }
0x364c   :  { %11320 = vmatprep.subr.bf16.mxu0 %v12575_v23 }
0x364f   :  { %v10032_v57 = vpop.f32.mrb[128].mxu1 }
0x3650   :  { %v10033_v6 = vpop.f32.mrb[129].mxu1 }
0x3651   :  { %v10034_v43 = vadd.f32 %v10033_v6, %v10032_v57  ;;  %v10035_v39 = vpop.f32.mrb[130].mxu1 }
0x3652   :  { %v10036_v33 = vpop.f32.mrb[131].mxu1 }
0x3653   :  { %v6821_v27 = vadd.f32 %v10034_v43, %v15336_v18  ;;  %v10037_v45 = vadd.f32 %v10036_v33, %v10035_v39 }
0x3655   :  { %v6824_v9 = vadd.f32 %v10037_v45, %v15336_v18  ;;  %v6829_v44 = vadd.f32 %v6821_v27, %v15357_v42 }
0x3657   :  { %6835 = vadd.xlane.f32.xlu0 %v6829_v44  ;;  %v6830_v0 = vadd.f32 %v6824_v9, %v15360_v7 }
0x3659   :  { %6837 = vadd.xlane.f32.xlu1 %v6830_v0 }
0x36e4   :  { %v6836_v49 = vpop.xlane.xlu0 %6835 }
0x36e5   :  { %v6841_v18 = vmul.f32 0.0078125, %v6836_v49 }
0x36e6   :  { %v6838_v12 = vpop.xlane.xlu1 %6837 }
0x36e7   :  { %v6845_v42 = vsub.f32 %v6829_v44, %v6841_v18  ;;  %v6842_v54 = vmul.f32 0.0078125, %v6838_v12 }
0x36e9   :  { %v6846_v28 = vsub.f32 %v6830_v0, %v6842_v54  ;;  %v6849_v7 = vmul.f32 %v6845_v42, %v6845_v42 }
0x36eb   :  { %6855 = vadd.xlane.f32.xlu0 %v6849_v7  ;;  %v6850_v15 = vmul.f32 %v6846_v28, %v6846_v28 }
0x36ed   :  { %6857 = vadd.xlane.f32.xlu1 %v6850_v15 }
0x3778   :  { %v6856_v52 = vpop.xlane.xlu0 %6855 }
0x3779   :  { %v6861_v38 = vmul.f32 0.0078125, %v6856_v52 }
0x377a   :  { %v6858_v8 = vpop.xlane.xlu1 %6857 }
0x377b   :  { %v6865_v14 = vadd.f32 1e-05, %v6861_v38  ;;  %v6862_v16 = vmul.f32 0.0078125, %v6858_v8 }
0x377d   :  { %12494 = vrsqrt.f32 %v6865_v14  ;;  %v6866_v53 = vadd.f32 1e-05, %v6862_v16 }
0x377f   :  { %12496 = vrsqrt.f32 %v6866_v53 }
0x3787   :  { %v12495_v40 = vpop.eup %12494 }
0x3788   :  { %v6873_v57 = vmul.f32 %v12495_v40, %v6845_v42 }
0x3789   :  { %v12497_v6 = vpop.eup %12496 }
0x378a   :  { %v6874_v43 = vmul.f32 %v12497_v6, %v6846_v28  ;;  %v6883_v39 = vmul.f32 %v15405_v24, %v6873_v57 }
0x378c   :  { %v6884_v33 = vmul.f32 %v15405_v24, %v6874_v43  ;;  %v15538_v27 = vadd.f32 %v15411_v41, %v6883_v39  ;;  %v7025_v24 = vrot.slane %v15430_v11, %v12954_v63 }
0x378e   :  { %v15541_v45 = vadd.f32 %v15411_v41, %v6884_v33 }
0x3790   :  { %v7012_v9 = vpack.c.bf16 %v15541_v45, %v15538_v27 }
0x3792   :  { %7200 = vmatmul.mubr.bf16.gmra.mrb[156].mxu0 %v7012_v9  ;;  %11242 = vmatmul.mubr.bf16.vlgmr.msra.gmra.mrb[132].mxu1 %v7012_v9 }
0x3793   :  { %11261 = vmatprep.mubr.msk.bf16.mxu0 %vm12576_vm1, %v12575_v23  ;;  %11778 = vmatpush3.bf16.msra.mxu1 %v12877_v21 }
0x3794   :  { %11780 = vmatprep.subr.bf16.mxu1 %v12886_v25 }
0x3797   :  { %11782 = vmatpush3.bf16.msra.mxu1 %v12886_v25 }
0x3798   :  { %11784 = vmatprep.subr.bf16.mxu1 %v12897_v30 }
0x379a   :  { %11262 = vmatmul.mubr.bf16.vlgmr.msra.gmra.mrb[160].mxu0 %v7259_v59 }
0x379b   :  { %11786 = vmatpush3.bf16.msra.mxu1 %v12897_v30  ;;  %11336 = vmatprep.mubr.msk.bf16.mxu0 %vm12576_vm1, %v12575_v23 }
0x379c   :  { %11788 = vmatprep.subr.bf16.mxu1 %v12907_v37 }
0x379f   :  { %11790 = vmatpush3.bf16.msra.mxu1 %v12907_v37 }
0x37a0   :  { %11792 = vmatprep.subr.bf16.mxu1 %v12918_v46 }
0x37a3   :  { %11794 = vmatpush3.bf16.msra.mxu1 %v12918_v46 }
0x37a4   :  { %11796 = vmatprep.subr.bf16.mxu1 %v12928_v50 }
0x37a7   :  { %11798 = vmatpush3.bf16.msra.mxu1 %v12928_v50 }
0x37a8   :  { %11800 = vmatprep.subr.bf16.mxu1 %v12941_v58 }
0x37ab   :  { %11802 = vmatpush3.bf16.msra.mxu1 %v12941_v58 }
0x37ac   :  { %11804 = vmatprep.subr.bf16.mxu1 %v12946_v62 }
0x37af   :  { %11806 = vmatpush3.bf16.msra.mxu1 %v12946_v62 }
0x37b0   :  { %11300 = vmatprep.subr.bf16.mxu1 %v12575_v23 }
0x3865   :  { %v7201_v41 = vpop.f32.mrb[156].mxu0  ;;  %v11243_v13 = vpop.f32.mrb[132].mxu1 }
0x3866   :  { %v7253_v26 = vadd.f32 %v11243_v13, %v7025_v24  ;;  %v7203_v59 = vpop.f32.mrb[157].mxu0  ;;  %v7244_v44 = vpop.f32.mrb[133].mxu1  ;;  %v15571_v3 = vadd.f32 %v7201_v41, %v15434_v36 }
0x3867   :  { %v7205_v0 = vpop.f32.mrb[158].mxu0  ;;  %v11244_v5 = vpop.f32.mrb[134].mxu1  ;;  %v7204_v54 = vadd.f32 %v7203_v59, %v15438_v19  ;;  %v7245_v28 = vadd.f32 %v7244_v44, %v7025_v24  ;;  %v12283_v59 = vld [vmem:[%s15935_s6 + $0x148] sm:$0xff]   ;;  %v12284_v44 = vld [vmem:[%s15935_s6 + $0x150] sm:$0xff]  }
0x3868   :  { %v15574_v49 = vadd.f32 %v7205_v0, %v15434_v36  ;;  %v7256_v18 = vadd.f32 %v11244_v5, %v7025_v24  ;;  %v7207_v12 = vpop.f32.mrb[159].mxu0  ;;  %v7247_v42 = vpop.f32.mrb[135].mxu1  ;;  %v12285_v0 = vld [vmem:[%s15935_s6 + $0x158] sm:$0xff]   ;;  %v12286_v5 = vld [vmem:[%s15935_s6 + $0x160] sm:$0xff]  }
0x3869   :  { %v7208_v63 = vadd.f32 %v7207_v12, %v15438_v19  ;;  %v7248_v11 = vadd.f32 %v7247_v42, %v7025_v24  ;;  %v12288_v12 = vld [vmem:[%s15935_s6 + $0x170] sm:$0xff]  }
0x386a   :  { %v7262_v7 = vpack.c.bf16 %v15574_v49, %v15571_v3  ;;  %v15580_v15 = vpack.c.bf16 %v7256_v18, %v7253_v26  ;;  %v12282_v26 = vld [vmem:[%s15935_s6 + $0x140] sm:$0xff]   ;;  %v12287_v18 = vld [vmem:[%s15935_s6 + $0x168] sm:$0xff]   ;;  %v12289_v3 = vld [vmem:[%s15935_s6 + $0x178] sm:$0xff]  }
0x386b   :  { %v15582_v51 = vpack.c.bf16 %v7208_v63, %v7204_v54  ;;  %v7261_v55 = vpack.c.bf16 %v7248_v11, %v7245_v28  ;;  %11321 = vmatpush3.bf16.msra.mxu0 %v12282_v26 }
0x386c   :  { %11322 = vmatprep.subr.bf16.mxu0 %v12575_v23 }
0x386d   :  { %v7315_v4 = vpop.f32.mrb[160].mxu0  ;;  %v7273_v6 = vmul.bf16 %v15453_v31, %v7261_v55  ;;  %v7274_v43 = vmul.bf16 %v15460_v47, %v7261_v55  ;;  %v7275_v39 = vmul.bf16 %v15467_v2, %v7261_v55  ;;  %v7276_v33 = vmul.bf16 %v15474_v60, %v7261_v55 }
0x386e   :  { %v7322_v36 = vmul.f32 0.25, %v7315_v4  ;;  %v11263_v48 = vpop.f32.mrb[161].mxu0  ;;  %v7277_v9 = vmul.bf16 %v15481_v56, %v7261_v55  ;;  %v7278_v24 = vmul.bf16 %v15488_v29, %v7261_v55  ;;  %v7279_v41 = vmul.bf16 %v15495_v35, %v7261_v55 }
0x386f   :  { %v7318_v61 = vpop.f32.mrb[162].mxu0  ;;  %v7280_v13 = vmul.bf16 %v15502_v17, %v7261_v55  ;;  %11323 = vmatpush3.bf16.msra.mxu0 %v12283_v59 }
0x3870   :  { %v7323_v20 = vmul.f32 0.25, %v7318_v61  ;;  %7324 = vmax.xlane.f32.xlu0 %v7322_v36  ;;  %v11264_v52 = vpop.f32.mrb[163].mxu0  ;;  %11324 = vmatprep.subr.bf16.mxu0 %v12575_v23  ;;  %v7549_v61 = vmul.bf16 %v15453_v31, %v15582_v51 }
0x3871   :  { %v7551_v52 = vmul.bf16 %v15467_v2, %v15582_v51 }
0x3872   :  { %7326 = vmax.xlane.f32.xlu1 %v7323_v20 }
0x3873   :  { %11325 = vmatpush3.bf16.msra.mxu0 %v12284_v44 }
0x3874   :  { %11326 = vmatprep.subr.bf16.mxu0 %v12575_v23 }
0x3877   :  { %11327 = vmatpush3.bf16.msra.mxu0 %v12285_v0 }
0x3878   :  { %11328 = vmatprep.subr.bf16.mxu0 %v12575_v23 }
0x387b   :  { %11329 = vmatpush3.bf16.msra.mxu0 %v12286_v5 }
0x387c   :  { %11330 = vmatprep.subr.bf16.mxu0 %v12575_v23 }
0x387f   :  { %11331 = vmatpush3.bf16.msra.mxu0 %v12287_v18 }
0x3880   :  { %11332 = vmatprep.subr.bf16.mxu0 %v12575_v23 }
0x3883   :  { %11333 = vmatpush3.bf16.msra.mxu0 %v12288_v12 }
0x3884   :  { %11334 = vmatprep.subr.bf16.mxu0 %v12575_v23 }
0x3887   :  { %11335 = vmatpush3.bf16.msra.mxu0 %v12289_v3 }
0x3888   :  { %11808 = vmatprep.subr.bf16.mxu0 %v12877_v21 }
0x38fd   :  { %v7325_v38 = vpop.xlane.xlu0 %7324 }
0x38fe   :  { %v7328_v8 = vsub.f32 %v7322_v36, %v7325_v38  ;;  %v7552_v38 = vmul.bf16 %v15474_v60, %v15582_v51 }
0x38ff   :  { %v7327_v19 = vpop.xlane.xlu1 %7326 }
0x3900   :  { %v7330_v14 = vmul.f32 1.442695, %v7328_v8  ;;  %v7329_v16 = vsub.f32 %v7323_v20, %v7327_v19  ;;  %v7550_v20 = vmul.bf16 %v15460_v47, %v15582_v51  ;;  %v7553_v8 = vmul.bf16 %v15481_v56, %v15582_v51 }
0x3901   :  { %v7554_v19 = vmul.bf16 %v15488_v29, %v15582_v51 }
0x3902   :  { %12498 = vpow2.f32 %v7330_v14  ;;  %v7332_v53 = vmul.f32 1.442695, %v7329_v16  ;;  %v7555_v14 = vmul.bf16 %v15495_v35, %v15582_v51  ;;  %v7556_v16 = vmul.bf16 %v15502_v17, %v15582_v51 }
0x3904   :  { %12500 = vpow2.f32 %v7332_v53 }
0x390c   :  { %v12499_v40 = vpop.eup %12498 }
0x390d   :  { %11297 = vmatprep.mubr.f32.mxu1 %v12499_v40 }
0x390e   :  { %v12501_v57 = vpop.eup %12500 }
0x390f   :  { %11298 = vmatmul.mubr.f32.vlgmr.msra.gmra.mrb[110].mxu1 %v12501_v57 }
0x3910   :  { %11301 = vmatpush3.bf16.msra.mxu1 %v7273_v6  ;;  %11316 = vmatprep.mubr.msk.bf16.mxu1 %vm12576_vm1, %v12575_v23 }
0x3911   :  { %11302 = vmatprep.subr.bf16.mxu1 %v12575_v23 }
0x3914   :  { %11303 = vmatpush3.bf16.msra.mxu1 %v7274_v43 }
0x3915   :  { %11304 = vmatprep.subr.bf16.mxu1 %v12575_v23 }
0x3918   :  { %11305 = vmatpush3.bf16.msra.mxu1 %v7275_v39 }
0x3919   :  { %11306 = vmatprep.subr.bf16.mxu1 %v12575_v23 }
0x391c   :  { %11307 = vmatpush3.bf16.msra.mxu1 %v7276_v33 }
0x391d   :  { %11308 = vmatprep.subr.bf16.mxu1 %v12575_v23 }
0x3920   :  { %11309 = vmatpush3.bf16.msra.mxu1 %v7277_v9 }
0x3921   :  { %11310 = vmatprep.subr.bf16.mxu1 %v12575_v23 }
0x3924   :  { %11311 = vmatpush3.bf16.msra.mxu1 %v7278_v24 }
0x3925   :  { %11312 = vmatprep.subr.bf16.mxu1 %v12575_v23 }
0x3928   :  { %11313 = vmatpush3.bf16.msra.mxu1 %v7279_v41 }
0x3929   :  { %11314 = vmatprep.subr.bf16.mxu1 %v12575_v23 }
0x392c   :  { %11315 = vmatpush3.bf16.msra.mxu1 %v7280_v13 }
0x392d   :  { %11340 = vmatprep.subr.bf16.mxu1 %v12575_v23 }
0x39e2   :  { %v11299_v42 = vpop.f32.mrb[110].mxu1 }
0x39e3   :  { %v7410_v54 = vmax.f32 %v11299_v42, 1e-30  ;;  %v7400_v28 = vpop.f32.mrb[111].mxu1  ;;  %v7561_v42 = vmul.bf16 %v15481_v56, %v15580_v15 }
0x39e4   :  { %v7409_v63 = vmax.f32 %v7400_v28, 1e-30 }
0x39e5   :  { %12502 = vrcp.f32 %v7410_v54 }
0x39e6   :  { %12504 = vrcp.f32 %v7409_v63 }
0x39ef   :  { %v12503_v11 = vpop.eup %12502 }
0x39f0   :  { %v12505_v55 = vpop.eup %12504  ;;  %v7414_v4 = vmul.f32 %v12503_v11, %v12501_v57 }
0x39f1   :  { %v7413_v36 = vmul.f32 %v12505_v55, %v12499_v40 }
0x39f3   :  { %v7415_v48 = vpack.c.bf16 %v7414_v4, %v7413_v36 }
0x39f5   :  { %11317 = vmatmul.mubr.bf16.vlgmr.msra.gmra.mrb[136].mxu1 %v7415_v48 }
0x39f6   :  { %11341 = vmatpush3.bf16.xpose.msra.mxu1 %v7549_v61  ;;  %11356 = vmatprep.mubr.msk.bf16.mxu1 %vm12576_vm1, %v12575_v23 }
0x39f7   :  { %11342 = vmatprep.subr.bf16.mxu1 %v12575_v23 }
0x39fe   :  { %11343 = vmatpush3.bf16.xpose.msra.mxu1 %v7550_v20 }
0x39ff   :  { %11344 = vmatprep.subr.bf16.mxu1 %v12575_v23 }
0x3a06   :  { %11345 = vmatpush3.bf16.xpose.msra.mxu1 %v7551_v52  ;;  %v12292_v52 = vld [vmem:[%s15937_s8 + $0x284] ss:$8 sps:$4 sm:$0xff]  }
0x3a07   :  { %11346 = vmatprep.subr.bf16.mxu1 %v12575_v23 }
0x3a0e   :  { %11347 = vmatpush3.bf16.xpose.msra.mxu1 %v7552_v38 }
0x3a0f   :  { %11348 = vmatprep.subr.bf16.mxu1 %v12575_v23 }
0x3a16   :  { %11349 = vmatpush3.bf16.xpose.msra.mxu1 %v7553_v8 }
0x3a17   :  { %11350 = vmatprep.subr.bf16.mxu1 %v12575_v23 }
0x3a1e   :  { %11351 = vmatpush3.bf16.xpose.msra.mxu1 %v7554_v19 }
0x3a1f   :  { %11352 = vmatprep.subr.bf16.mxu1 %v12575_v23 }
0x3a26   :  { %11353 = vmatpush3.bf16.xpose.msra.mxu1 %v7555_v14 }
0x3a27   :  { %11354 = vmatprep.subr.bf16.mxu1 %v12575_v23 }
0x3a2e   :  { %11355 = vmatpush3.bf16.xpose.msra.mxu1 %v7556_v16 }
0x3a2f   :  { %11415 = vmatprep.subr.bf16.mxu1 %v12575_v23 }
0x3a35   :  { %11357 = vmatmul.mubr.bf16.vlgmr.msra.gmra.mrb[140].mxu1 %v7262_v7 }
0x3a36   :  { %11416 = vmatpush3.bf16.msra.mxu1 %v12282_v26  ;;  %11431 = vmatprep.mubr.msk.bf16.mxu1 %vm12576_vm1, %v12575_v23 }
0x3a37   :  { %11417 = vmatprep.subr.bf16.mxu1 %v12575_v23 }
0x3a3a   :  { %11418 = vmatpush3.bf16.msra.mxu1 %v12283_v59 }
0x3a3b   :  { %11419 = vmatprep.subr.bf16.mxu1 %v12575_v23 }
0x3a3e   :  { %11420 = vmatpush3.bf16.msra.mxu1 %v12284_v44 }
0x3a3f   :  { %11421 = vmatprep.subr.bf16.mxu1 %v12575_v23 }
0x3a42   :  { %11422 = vmatpush3.bf16.msra.mxu1 %v12285_v0 }
0x3a43   :  { %11423 = vmatprep.subr.bf16.mxu1 %v12575_v23 }
0x3a46   :  { %11424 = vmatpush3.bf16.msra.mxu1 %v12286_v5 }
0x3a47   :  { %11425 = vmatprep.subr.bf16.mxu1 %v12575_v23 }
0x3a4a   :  { %11426 = vmatpush3.bf16.msra.mxu1 %v12287_v18 }
0x3a4b   :  { %11427 = vmatprep.subr.bf16.mxu1 %v12575_v23 }
0x3a4e   :  { %11428 = vmatpush3.bf16.msra.mxu1 %v12288_v12  ;;  %v7559_v12 = vmul.bf16 %v15467_v2, %v15580_v15  ;;  %v7563_v2 = vmul.bf16 %v15495_v35, %v15580_v15 }
0x3a4f   :  { %11429 = vmatprep.subr.bf16.mxu1 %v12575_v23 }
0x3a52   :  { %11430 = vmatpush3.bf16.msra.mxu1 %v12289_v3 }
0x3ac8   :  { %v7450_v49 = vpop.f32.mrb[136].mxu1 }
0x3ac9   :  { %v11318_v7 = vpop.f32.mrb[137].mxu1 }
0x3aca   :  { %v7453_v51 = vpop.f32.mrb[138].mxu1 }
0x3acb   :  { %v7457_v53 = vpack.c.bf16 %v7453_v51, %v7450_v49  ;;  %v11319_v40 = vpop.f32.mrb[139].mxu1 }
0x3acd   :  { %11337 = vmatmul.mubr.bf16.vlgmr.msra.gmra.mrb[164].mxu0 %v7457_v53 }
0x3ace   :  { %11810 = vmatpush3.bf16.msra.mxu0 %v12877_v21 }
0x3acf   :  { %11812 = vmatprep.subr.bf16.mxu0 %v12886_v25 }
0x3ad2   :  { %11814 = vmatpush3.bf16.msra.mxu0 %v12886_v25 }
0x3ad3   :  { %11816 = vmatprep.subr.bf16.mxu0 %v12897_v30 }
0x3ad6   :  { %11818 = vmatpush3.bf16.msra.mxu0 %v12897_v30 }
0x3ad7   :  { %11820 = vmatprep.subr.bf16.mxu0 %v12907_v37 }
0x3ada   :  { %11822 = vmatpush3.bf16.msra.mxu0 %v12907_v37 }
0x3adb   :  { %11824 = vmatprep.subr.bf16.mxu0 %v12918_v46 }
0x3ade   :  { %11826 = vmatpush3.bf16.msra.mxu0 %v12918_v46 }
0x3adf   :  { %11828 = vmatprep.subr.bf16.mxu0 %v12928_v50 }
0x3ae2   :  { %11830 = vmatpush3.bf16.msra.mxu0 %v12928_v50 }
0x3ae3   :  { %11832 = vmatprep.subr.bf16.mxu0 %v12941_v58 }
0x3ae6   :  { %11834 = vmatpush3.bf16.msra.mxu0 %v12941_v58 }
0x3ae7   :  { %11836 = vmatprep.subr.bf16.mxu0 %v12946_v62 }
0x3aea   :  { %11838 = vmatpush3.bf16.msra.mxu0 %v12946_v62  ;;  %v15691_v62 = vld [vmem:[%s15936_s7 + $0x5] ss:$0 sm:$0xff] }
0x3aeb   :  { %11395 = vmatprep.subr.bf16.mxu0 %v12575_v23 }
0x3b08   :  { %v7599_v21 = vpop.f32.mrb[140].mxu1 }
0x3b09   :  { %v7606_v25 = vmul.f32 0.25, %v7599_v21  ;;  %v11358_v30 = vpop.f32.mrb[141].mxu1 }
0x3b0a   :  { %v7602_v37 = vpop.f32.mrb[142].mxu1 }
0x3b0b   :  { %v7607_v57 = vmul.f32 0.25, %v7602_v37  ;;  %7608 = vmax.xlane.f32.xlu0 %v7606_v25  ;;  %v11359_v46 = vpop.f32.mrb[143].mxu1 }
0x3b0c   :  { %v12295_v46 = vld [vmem:[%s15937_s8 + $0x294] ss:$8 sps:$4 sm:$0xff]  }
0x3b0d   :  { %7610 = vmax.xlane.f32.xlu1 %v7607_v57 }
0x3b98   :  { %v7609_v6 = vpop.xlane.xlu0 %7608 }
0x3b99   :  { %v7612_v50 = vsub.f32 %v7606_v25, %v7609_v6  ;;  %v12296_v6 = vld [vmem:[%s15937_s8 + $0x2a0] ss:$8 sps:$4 sm:$0xff]  }
0x3b9a   :  { %v7611_v43 = vpop.xlane.xlu1 %7610 }
0x3b9b   :  { %v7614_v39 = vmul.f32 1.442695, %v7612_v50  ;;  %v7613_v33 = vsub.f32 %v7607_v57, %v7611_v43  ;;  %v12301_v50 = vld [vmem:[%s15937_s8 + $0x2b4] ss:$8 sps:$4 sm:$0xff]   ;;  %v12299_v43 = vld [vmem:[%s15937_s8 + $0x2b0] ss:$8 sps:$4 sm:$0xff]  }
0x3b9d   :  { %12506 = vpow2.f32 %v7614_v39  ;;  %v7616_v58 = vmul.f32 1.442695, %v7613_v33  ;;  %v12304_v39 = vld [vmem:[%s15937_s8 + $0x2c4] ss:$8 sps:$4 sm:$0xff]   ;;  %v12302_v33 = vld [vmem:[%s15937_s8 + $0x2c0] ss:$8 sps:$4 sm:$0xff]  }
0x3b9f   :  { %12508 = vpow2.f32 %v7616_v58  ;;  %v12307_v58 = vld [vmem:[%s15937_s8 + $0x2d4] ss:$8 sps:$4 sm:$0xff]  }
0x3ba0   :  { %v7540_v9 = vpop.f32.mrb[164].mxu0 }
0x3ba1   :  { %v7789_v24 = vadd.f32 %v7540_v9, %v15415_v22  ;;  %v11338_v41 = vpop.f32.mrb[165].mxu0  ;;  %v7557_v22 = vmul.bf16 %v15453_v31, %v15580_v15  ;;  %v7560_v31 = vmul.bf16 %v15474_v60, %v15580_v15  ;;  %v7564_v60 = vmul.bf16 %v15502_v17, %v15580_v15  ;;  %v12310_v9 = vld [vmem:[%s15937_s8 + $0x2e4] ss:$8 sps:$4 sm:$0xff]  }
0x3ba2   :  { %v7543_v13 = vpop.f32.mrb[166].mxu0  ;;  %v12313_v41 = vld [vmem:[%s15937_s8 + $0x2f4] ss:$8 sps:$4 sm:$0xff]  }
0x3ba3   :  { %v15695_v26 = vadd.f32 %v15691_v62, %v7789_v24  ;;  %v7790_v59 = vadd.f32 %v7543_v13, %v15418_v10  ;;  %v11339_v44 = vpop.f32.mrb[167].mxu0  ;;  %v7558_v10 = vmul.bf16 %v15460_v47, %v15580_v15  ;;  %v7562_v47 = vmul.bf16 %v15488_v29, %v15580_v15  ;;  %v12290_v15 = vld [vmem:[%s15937_s8 + $0x280] ss:$8 sps:$4 sm:$0xff]   ;;  %v12311_v13 = vld [vmem:[%s15937_s8 + $0x2f0] ss:$8 sps:$4 sm:$0xff]  }
0x3ba4   :  { %v12308_v24 = vld [vmem:[%s15937_s8 + $0x2e0] ss:$8 sps:$4 sm:$0xff]  }
0x3ba5   :  { %v15699_v0 = vadd.f32 %v15691_v62, %v7790_v59  ;;  %7803 = vadd.xlane.f32.xlu0 %v15695_v26 }
0x3ba7   :  { %v12507_v5 = vpop.eup %12506  ;;  %7805 = vadd.xlane.f32.xlu1 %v15699_v0 }
0x3ba8   :  { %11392 = vmatprep.mubr.f32.mxu0 %v12507_v5 }
0x3ba9   :  { %v12509_v18 = vpop.eup %12508 }
0x3baa   :  { %11393 = vmatmul.mubr.f32.vlgmr.msra.gmra.mrb[138].mxu0 %v12509_v18 }
0x3bab   :  { %11396 = vmatpush3.bf16.msra.mxu0 %v7557_v22  ;;  %11411 = vmatprep.mubr.msk.bf16.mxu0 %vm12576_vm1, %v12575_v23 }
0x3bac   :  { %11397 = vmatprep.subr.bf16.mxu0 %v12575_v23 }
0x3baf   :  { %11398 = vmatpush3.bf16.msra.mxu0 %v7558_v10 }
0x3bb0   :  { %11399 = vmatprep.subr.bf16.mxu0 %v12575_v23 }
0x3bb3   :  { %11400 = vmatpush3.bf16.msra.mxu0 %v7559_v12 }
0x3bb4   :  { %11401 = vmatprep.subr.bf16.mxu0 %v12575_v23 }
0x3bb7   :  { %11402 = vmatpush3.bf16.msra.mxu0 %v7560_v31 }
0x3bb8   :  { %11403 = vmatprep.subr.bf16.mxu0 %v12575_v23 }
0x3bbb   :  { %11404 = vmatpush3.bf16.msra.mxu0 %v7561_v42 }
0x3bbc   :  { %11405 = vmatprep.subr.bf16.mxu0 %v12575_v23 }
0x3bbf   :  { %11406 = vmatpush3.bf16.msra.mxu0 %v7562_v47 }
0x3bc0   :  { %11407 = vmatprep.subr.bf16.mxu0 %v12575_v23 }
0x3bc3   :  { %11408 = vmatpush3.bf16.msra.mxu0 %v7563_v2 }
0x3bc4   :  { %11409 = vmatprep.subr.bf16.mxu0 %v12575_v23 }
0x3bc7   :  { %11410 = vmatpush3.bf16.msra.mxu0 %v7564_v60 }
0x3bc8   :  { %7960 = vmatprep.subr.bf16.mxu0 %v12292_v52  ;;  %v12319_v52 = vld [vmem:[%s15940_s10 + $0x290] sm:$0xff]  }
0x3c32   :  { %v7804_v38 = vpop.xlane.xlu0 %7803 }
0x3c33   :  { %v7811_v19 = vmul.f32 0.0078125, %v7804_v38  ;;  %v12320_v38 = vld [vmem:[%s15940_s10 + $0x2d8] sm:$0xff]  }
0x3c34   :  { %v7806_v8 = vpop.xlane.xlu1 %7805 }
0x3c35   :  { %v7812_v16 = vmul.f32 0.0078125, %v7806_v8  ;;  %v7815_v51 = vsub.f32 %v15695_v26, %v7811_v19  ;;  %v12321_v8 = vld [vmem:[%s15940_s10 + $0x298] sm:$0xff]   ;;  %v12322_v19 = vld [vmem:[%s15940_s10 + $0x2e0] sm:$0xff]  }
0x3c37   :  { %v7816_v25 = vsub.f32 %v15699_v0, %v7812_v16  ;;  %v7819_v37 = vmul.f32 %v7815_v51, %v7815_v51  ;;  %v12324_v16 = vld [vmem:[%s15940_s10 + $0x2e8] sm:$0xff]  }
0x3c39   :  { %v7820_v57 = vmul.f32 %v7816_v25, %v7816_v25 }
0x3c7d   :  { %v11394_v56 = vpop.f32.mrb[138].mxu0 }
0x3c7e   :  { %v7694_v54 = vmax.f32 %v11394_v56, 1e-30  ;;  %v7684_v28 = vpop.f32.mrb[139].mxu0 }
0x3c7f   :  { %v7693_v63 = vmax.f32 %v7684_v28, 1e-30 }
0x3c80   :  { %12510 = vrcp.f32 %v7694_v54  ;;  %v9350_v54 = vld [vmem:[%s15938_s12 + $0x5] ss:$0 sm:$0xff] }
0x3c81   :  { %12512 = vrcp.f32 %v7693_v63 }
0x3c8a   :  { %v12511_v29 = vpop.eup %12510 }
0x3c8b   :  { %v12513_v11 = vpop.eup %12512  ;;  %v7698_v55 = vmul.f32 %v12511_v29, %v12509_v18 }
0x3c8c   :  { %v7697_v4 = vmul.f32 %v12513_v11, %v12507_v5 }
0x3c8e   :  { %v7699_v36 = vpack.c.bf16 %v7698_v55, %v7697_v4  ;;  %v9351_v55 = vld [vmem:[%s15939_s13 + $0x5] ss:$0 sm:$0xff] }
0x3c90   :  { %11412 = vmatmul.mubr.bf16.vlgmr.msra.gmra.mrb[168].mxu0 %v7699_v36 }
0x3c91   :  { %7992 = vmatprep.mubr.bf16.mxu0 %v12574_v1  ;;  %7961 = vmatpush1.bf16.msra.mxu0 %v12290_v15  ;;  %v12317_v15 = vld [vmem:[%s15940_s10 + $0x288] sm:$0xff]  }
0x3c92   :  { %7962 = vmatprep.subr.bf16.mxu0 %v12295_v46 }
0x3d63   :  { %v7734_v35 = vpop.f32.mrb[168].mxu0 }
0x3d64   :  { %v11413_v48 = vpop.f32.mrb[169].mxu0 }
0x3d65   :  { %v7737_v61 = vpop.f32.mrb[170].mxu0 }
0x3d66   :  { %v7741_v20 = vpack.c.bf16 %v7737_v61, %v7734_v35  ;;  %v11414_v17 = vpop.f32.mrb[171].mxu0  ;;  %v12314_v61 = vld [vmem:[%s15940_s10 + $0x2c0] sm:$0xff]  }
0x3d67   :  { %v12316_v17 = vld [vmem:[%s15940_s10 + $0x2c8] sm:$0xff]   ;;  %10138 = vmatprep.subr.bf16.mxu1 %v12314_v61 }
0x3d68   :  { %11432 = vmatmul.mubr.bf16.vlgmr.msra.gmra.mrb[144].mxu1 %v7741_v20  ;;  %v12315_v20 = vld [vmem:[%s15940_s10 + $0x280] sm:$0xff]  }
0x3d69   :  { %10139 = vmatpush3.bf16.msra.mxu1 %v12315_v20 }
0x3d6a   :  { %10140 = vmatprep.subr.bf16.mxu1 %v12316_v17  ;;  %v9368_v17 = vld [vmem:[%s15942_s11 + $0x5] ss:$0 sm:$0xff] }
0x3d6d   :  { %10141 = vmatpush3.bf16.msra.mxu1 %v12317_v15 }
0x3e3b   :  { %v7776_v14 = vpop.f32.mrb[144].mxu1 }
0x3e3c   :  { %v7791_v3 = vadd.f32 %v7776_v14, %v15538_v27  ;;  %v11433_v49 = vpop.f32.mrb[145].mxu1  ;;  %v12293_v27 = vld [vmem:[%s15937_s8 + $0x290] ss:$8 sps:$4 sm:$0xff]   ;;  %v12323_v14 = vld [vmem:[%s15940_s10 + $0x2a0] sm:$0xff]  }
0x3e3d   :  { %v7779_v7 = vpop.f32.mrb[146].mxu1  ;;  %7963 = vmatpush1.bf16.msra.mxu0 %v12293_v27  ;;  %v12326_v49 = vld [vmem:[%s15940_s10 + $0x2f0] sm:$0xff]  }
0x3e3e   :  { %v7801_v53 = vadd.f32 %v15691_v62, %v7791_v3  ;;  %v7792_v40 = vadd.f32 %v7779_v7, %v15541_v45  ;;  %v11434_v21 = vpop.f32.mrb[147].mxu1  ;;  %v12298_v45 = vld [vmem:[%s15937_s8 + $0x2a4] ss:$8 sps:$4 sm:$0xff]   ;;  %v12327_v7 = vld [vmem:[%s15940_s10 + $0x2b0] sm:$0xff]  }
0x3e3f   :  { %7964 = vmatprep.subr.bf16.mxu0 %v12298_v45  ;;  %v12325_v3 = vld [vmem:[%s15940_s10 + $0x2a8] sm:$0xff]  }
0x3e40   :  { %v7802_v30 = vadd.f32 %v15691_v62, %v7792_v40  ;;  %7807 = vadd.xlane.f32.xlu0 %v7801_v53  ;;  %v12305_v62 = vld [vmem:[%s15937_s8 + $0x2d0] ss:$8 sps:$4 sm:$0xff]  }
0x3e41   :  { %7965 = vmatpush1.bf16.msra.mxu0 %v12296_v6 }
0x3e42   :  { %7809 = vadd.xlane.f32.xlu1 %v7802_v30  ;;  %7966 = vmatprep.subr.bf16.mxu0 %v12301_v50 }
0x3e44   :  { %7823 = vadd.xlane.f32.xlu0 %v7819_v37 }
0x3e45   :  { %7967 = vmatpush1.bf16.msra.mxu0 %v12299_v43 }
0x3e46   :  { %7825 = vadd.xlane.f32.xlu1 %v7820_v57  ;;  %7968 = vmatprep.subr.bf16.mxu0 %v12304_v39 }
0x3e49   :  { %7969 = vmatpush1.bf16.msra.mxu0 %v12302_v33 }
0x3e4a   :  { %7970 = vmatprep.subr.bf16.mxu0 %v12307_v58 }
0x3e4d   :  { %7971 = vmatpush1.bf16.msra.mxu0 %v12305_v62  ;;  %v9279_v62 = vld [vmem:[%s15941_s9 + $0xa] sm:$0x3] }
0x3e4e   :  { %7972 = vmatprep.subr.bf16.mxu0 %v12310_v9  ;;  %v7873_v9 = vrot.slane %v9279_v62, %v12767_v32 }
0x3e51   :  { %7973 = vmatpush1.bf16.msra.mxu0 %v12308_v24  ;;  %v7877_v24 = vrot.slane %v9279_v62, %v12775_v34 }
0x3e52   :  { %7974 = vmatprep.subr.bf16.mxu0 %v12313_v41 }
0x3e55   :  { %7975 = vmatpush1.bf16.msra.mxu0 %v12311_v13 }
0x3e56   :  { %11435 = vmatprep.subr.bf16.mxu0 %v12575_v23 }
0x3ecd   :  { %v7808_v26 = vpop.xlane.xlu0 %7807 }
0x3ece   :  { %v7813_v59 = vmul.f32 0.0078125, %v7808_v26 }
0x3ecf   :  { %v7810_v44 = vpop.xlane.xlu1 %7809 }
0x3ed0   :  { %v15784_v0 = vsub.f32 %v7801_v53, %v7813_v59  ;;  %v7814_v5 = vmul.f32 0.0078125, %v7810_v44  ;;  %v12329_v53 = vld [vmem:[%s15940_s10 + $0x2b8] sm:$0xff]  }
0x3ed1   :  { %v7824_v18 = vpop.xlane.xlu0 %7823 }
0x3ed2   :  { %v15786_v22 = vsub.f32 %v7802_v30, %v7814_v5  ;;  %v7831_v10 = vmul.f32 0.0078125, %v7824_v18  ;;  %v7821_v12 = vmul.f32 %v15784_v0, %v15784_v0 }
0x3ed3   :  { %v7826_v31 = vpop.xlane.xlu1 %7825 }
0x3ed4   :  { %v7835_v42 = vadd.f32 1e-05, %v7831_v10  ;;  %v7832_v47 = vmul.f32 0.0078125, %v7826_v31  ;;  %7827 = vadd.xlane.f32.xlu0 %v7821_v12  ;;  %v7822_v2 = vmul.f32 %v15786_v22, %v15786_v22 }
0x3ed6   :  { %12514 = vrsqrt.f32 %v7835_v42  ;;  %v7836_v60 = vadd.f32 1e-05, %v7832_v47  ;;  %7829 = vadd.xlane.f32.xlu1 %v7822_v2 }
0x3ed8   :  { %12516 = vrsqrt.f32 %v7836_v60 }
0x3ee0   :  { %v12515_v56 = vpop.eup %12514 }
0x3ee1   :  { %v7843_v28 = vmul.f32 %v12515_v56, %v7815_v51  ;;  %v12328_v51 = vld [vmem:[%s15940_s10 + $0x2f8] sm:$0xff]  }
0x3ee2   :  { %v12517_v63 = vpop.eup %12516 }
0x3ee3   :  { %v7844_v29 = vmul.f32 %v12517_v63, %v7816_v25  ;;  %v7853_v11 = vmul.f32 %v9350_v54, %v7843_v28 }
0x3ee5   :  { %v7854_v4 = vmul.f32 %v9350_v54, %v7844_v29  ;;  %v15798_v36 = vadd.f32 %v9351_v55, %v7853_v11 }
0x3ee7   :  { %v15800_v35 = vadd.f32 %v9351_v55, %v7854_v4 }
0x3ee9   :  { %v7867_v48 = vpack.c.bf16 %v15800_v35, %v15798_v36 }
0x3eeb   :  { %7993 = vmatmul.mubr.bf16.vlgmr.msra.gmra.mrb[172].mxu0 %v7867_v48 }
0x3eec   :  { %8002 = vmatprep.mubr.bf16.mxu0 %v12574_v1  ;;  %v12318_v1 = vld [vmem:[%s15940_s10 + $0x2d0] sm:$0xff]  }
0x3eed   :  { %10142 = vmatprep.subr.bf16.mxu1 %v12318_v1 }
0x3eee   :  { %10143 = vmatpush3.bf16.msra.mxu1 %v12319_v52 }
0x3eef   :  { %10144 = vmatprep.subr.bf16.mxu1 %v12320_v38 }
0x3ef2   :  { %10145 = vmatpush3.bf16.msra.mxu1 %v12321_v8 }
0x3ef3   :  { %10146 = vmatprep.subr.bf16.mxu1 %v12322_v19 }
0x3ef6   :  { %10147 = vmatpush3.bf16.msra.mxu1 %v12323_v14 }
0x3ef7   :  { %10148 = vmatprep.subr.bf16.mxu1 %v12324_v16 }
0x3efa   :  { %10149 = vmatpush3.bf16.msra.mxu1 %v12325_v3 }
0x3efb   :  { %10150 = vmatprep.subr.bf16.mxu1 %v12326_v49 }
0x3efe   :  { %10151 = vmatpush3.bf16.msra.mxu1 %v12327_v7 }
0x3eff   :  { %10152 = vmatprep.subr.bf16.mxu1 %v12328_v51 }
0x3f02   :  { %10153 = vmatpush3.bf16.msra.mxu1 %v12329_v53 }
0x3f61   :  { %v7828_v40 = vpop.xlane.xlu0 %7827 }
0x3f62   :  { %v7833_v21 = vmul.f32 0.0078125, %v7828_v40 }
0x3f63   :  { %v7830_v25 = vpop.xlane.xlu1 %7829 }
0x3f64   :  { %v7837_v30 = vadd.f32 1e-05, %v7833_v21  ;;  %v7834_v37 = vmul.f32 0.0078125, %v7830_v25 }
0x3f66   :  { %12518 = vrsqrt.f32 %v7837_v30  ;;  %v7838_v57 = vadd.f32 1e-05, %v7834_v37 }
0x3f68   :  { %12520 = vrsqrt.f32 %v7838_v57 }
0x3f70   :  { %v12519_v27 = vpop.eup %12518 }
0x3f71   :  { %v7845_v46 = vmul.f32 %v12519_v27, %v15784_v0 }
0x3f72   :  { %v12521_v45 = vpop.eup %12520 }
0x3f73   :  { %v7846_v6 = vmul.f32 %v12521_v45, %v15786_v22  ;;  %v7855_v50 = vmul.f32 %v9350_v54, %v7845_v46 }
0x3f75   :  { %v7856_v43 = vmul.f32 %v9350_v54, %v7846_v6  ;;  %v15855_v39 = vadd.f32 %v9351_v55, %v7855_v50 }
0x3f77   :  { %v15857_v33 = vadd.f32 %v9351_v55, %v7856_v43 }
0x3f79   :  { %v7868_v58 = vpack.c.bf16 %v15857_v33, %v15855_v39 }
0x3f7b   :  { %8003 = vmatmul.mubr.bf16.gmra.mrb[176].mxu0 %v7868_v58 }
0x3f7c   :  { %11451 = vmatprep.mubr.msk.bf16.mxu0 %vm12576_vm1, %v12575_v23 }
0x3fbe   :  { %v7994_v41 = vpop.f32.mrb[172].mxu0 }
0x3fbf   :  { %v7995_v13 = vadd.f32 %v7994_v41, %v7873_v9  ;;  %v7996_v26 = vpop.f32.mrb[173].mxu0 }
0x3fc0   :  { %v7997_v59 = vadd.f32 %v7996_v26, %v7877_v24  ;;  %v7998_v44 = vpop.f32.mrb[174].mxu0 }
0x3fc1   :  { %v7999_v0 = vadd.f32 %v7998_v44, %v7873_v9  ;;  %v8000_v5 = vpop.f32.mrb[175].mxu0  ;;  %v8013_v22 = vmax.f32 %v7995_v13, 0.0 }
0x3fc2   :  { %v8001_v18 = vadd.f32 %v8000_v5, %v7877_v24  ;;  %v8014_v12 = vmax.f32 %v7997_v59, 0.0 }
0x3fc3   :  { %v8015_v10 = vmax.f32 %v7999_v0, 0.0 }
0x3fc4   :  { %v8016_v31 = vmax.f32 %v8001_v18, 0.0 }
0x3fc5   :  { %v8021_v42 = vpack.c.bf16 %v8015_v10, %v8013_v22 }
0x3fc6   :  { %v8022_v47 = vpack.c.bf16 %v8016_v31, %v8014_v12 }
0x3fc8   :  { %8159 = vmatprep.mubr.bf16.mxu1 %v8022_v47  ;;  %v9385_v47 = vld [vmem:[%s15943_s14 + $0x5] ss:$0 sm:$0xff] }
0x3fc9   :  { %8160 = vmatmul.mubr.bf16.vlgmr.msra.gmra.mrb[148].mxu1 %v8021_v42 }
0x404e   :  { %v8004_v2 = vpop.f32.mrb[176].mxu0 }
0x404f   :  { %v8005_v32 = vadd.f32 %v8004_v2, %v7873_v9  ;;  %v8006_v60 = vpop.f32.mrb[177].mxu0 }
0x4050   :  { %v8007_v34 = vadd.f32 %v8006_v60, %v7877_v24  ;;  %v8008_v56 = vpop.f32.mrb[178].mxu0 }
0x4051   :  { %v8009_v54 = vadd.f32 %v8008_v56, %v7873_v9  ;;  %v8010_v28 = vpop.f32.mrb[179].mxu0  ;;  %v8017_v29 = vmax.f32 %v8005_v32, 0.0 }
0x4052   :  { %v8011_v63 = vadd.f32 %v8010_v28, %v7877_v24  ;;  %v8018_v55 = vmax.f32 %v8007_v34, 0.0 }
0x4053   :  { %v8019_v11 = vmax.f32 %v8009_v54, 0.0 }
0x4054   :  { %v8020_v4 = vmax.f32 %v8011_v63, 0.0  ;;  %v9386_v63 = vld [vmem:[%s15944_s15 + $0x5] ss:$0 sm:$0xff] }
0x4055   :  { %v8023_v48 = vpack.c.bf16 %v8019_v11, %v8017_v29 }
0x4056   :  { %v8024_v61 = vpack.c.bf16 %v8020_v4, %v8018_v55 }
0x4058   :  { %8167 = vmatprep.mubr.bf16.mxu1 %v8024_v61 }
0x4059   :  { %8168 = vmatmul.mubr.bf16.gmra.mrb[152].mxu1 %v8023_v48 }
0x409c   :  { %v10154_v20 = vpop.f32.mrb[148].mxu1 }
0x409d   :  { %v10155_v15 = vpop.f32.mrb[149].mxu1 }
0x409e   :  { %v10156_v1 = vadd.f32 %v10155_v15, %v10154_v20  ;;  %v10157_v52 = vpop.f32.mrb[150].mxu1 }
0x409f   :  { %v10158_v38 = vpop.f32.mrb[151].mxu1 }
0x40a0   :  { %v8162_v8 = vadd.f32 %v10156_v1, %v9368_v17  ;;  %v10159_v19 = vadd.f32 %v10158_v38, %v10157_v52 }
0x40a2   :  { %v8165_v14 = vadd.f32 %v10159_v19, %v9368_v17  ;;  %v8176_v16 = vadd.f32 %v8162_v8, %v15798_v36 }
0x40a4   :  { %8180 = vadd.xlane.f32.xlu0 %v8176_v16  ;;  %v8177_v3 = vadd.f32 %v8165_v14, %v15800_v35 }
0x40a6   :  { %8182 = vadd.xlane.f32.xlu1 %v8177_v3 }
0x412c   :  { %v10160_v49 = vpop.f32.mrb[152].mxu1 }
0x412d   :  { %v10161_v7 = vpop.f32.mrb[153].mxu1 }
0x412e   :  { %v10162_v51 = vadd.f32 %v10161_v7, %v10160_v49  ;;  %v10163_v53 = vpop.f32.mrb[154].mxu1 }
0x412f   :  { %v10164_v40 = vpop.f32.mrb[155].mxu1 }
0x4130   :  { %v8170_v21 = vadd.f32 %v10162_v51, %v9368_v17  ;;  %v10165_v25 = vadd.f32 %v10164_v40, %v10163_v53 }
0x4131   :  { %v8181_v30 = vpop.xlane.xlu0 %8180 }
0x4132   :  { %v8173_v37 = vadd.f32 %v10165_v25, %v9368_v17  ;;  %v8188_v57 = vmul.f32 0.0078125, %v8181_v30  ;;  %v8178_v27 = vadd.f32 %v8170_v21, %v15855_v39 }
0x4133   :  { %v8183_v46 = vpop.xlane.xlu1 %8182 }
0x4134   :  { %v8192_v45 = vsub.f32 %v8176_v16, %v8188_v57  ;;  %v8189_v6 = vmul.f32 0.0078125, %v8183_v46  ;;  %8184 = vadd.xlane.f32.xlu0 %v8178_v27  ;;  %v8179_v36 = vadd.f32 %v8173_v37, %v15857_v33 }
0x4136   :  { %v8193_v35 = vsub.f32 %v8177_v3, %v8189_v6  ;;  %8186 = vadd.xlane.f32.xlu1 %v8179_v36  ;;  %v8196_v50 = vmul.f32 %v8192_v45, %v8192_v45 }
0x4138   :  { %8200 = vadd.xlane.f32.xlu0 %v8196_v50  ;;  %v8197_v43 = vmul.f32 %v8193_v35, %v8193_v35 }
0x413a   :  { %8202 = vadd.xlane.f32.xlu1 %v8197_v43 }
0x41c1   :  { %v8185_v58 = vpop.xlane.xlu0 %8184 }
0x41c2   :  { %v8190_v62 = vmul.f32 0.0078125, %v8185_v58 }
0x41c3   :  { %v8187_v9 = vpop.xlane.xlu1 %8186 }
0x41c4   :  { %v8194_v24 = vsub.f32 %v8178_v27, %v8190_v62  ;;  %v8191_v41 = vmul.f32 0.0078125, %v8187_v9 }
0x41c5   :  { %v8201_v44 = vpop.xlane.xlu0 %8200 }
0x41c6   :  { %v8195_v13 = vsub.f32 %v8179_v36, %v8191_v41  ;;  %v8198_v26 = vmul.f32 %v8194_v24, %v8194_v24  ;;  %v8208_v33 = vmul.f32 0.0078125, %v8201_v44  ;;  %v12331_v41 = vld [vmem:[%s15945_s18 + $0x8] sm:$0xff]   ;;  %v12336_v44 = vld [vmem:[%s15945_s18 + $0x30] sm:$0xff]  }
0x41c7   :  { %v8203_v59 = vpop.xlane.xlu1 %8202 }
0x41c8   :  { %8204 = vadd.xlane.f32.xlu0 %v8198_v26  ;;  %v8199_v39 = vmul.f32 %v8195_v13, %v8195_v13  ;;  %v8209_v0 = vmul.f32 0.0078125, %v8203_v59  ;;  %v8212_v18 = vadd.f32 1e-05, %v8208_v33  ;;  %v12333_v26 = vld [vmem:[%s15945_s18 + $0x18] sm:$0xff]   ;;  %v12335_v59 = vld [vmem:[%s15945_s18 + $0x28] sm:$0xff]  }
0x41ca   :  { %8206 = vadd.xlane.f32.xlu1 %v8199_v39  ;;  %v8213_v5 = vadd.f32 1e-05, %v8209_v0  ;;  %v12334_v39 = vld [vmem:[%s15945_s18 + $0x20] sm:$0xff]   ;;  %v12337_v0 = vld [vmem:[%s15945_s18 + $0x38] sm:$0xff]  }
0x41cc   :  { %12522 = vrsqrt.f32 %v8213_v5 }
0x41cd   :  { %12524 = vrsqrt.f32 %v8212_v18 }
0x41d6   :  { %v12523_v22 = vpop.eup %12522 }
0x41d7   :  { %v12525_v10 = vpop.eup %12524  ;;  %v8221_v12 = vmul.f32 %v12523_v22, %v8193_v35 }
0x41d8   :  { %v8220_v31 = vmul.f32 %v12525_v10, %v8192_v45  ;;  %v9387_v10 = vld [vmem:[%s15946_s16] ss:$0 sm:$0xff] }
0x41d9   :  { %v8231_v32 = vmul.f32 %v9385_v47, %v8221_v12 }
0x41da   :  { %v8230_v54 = vmul.f32 %v9385_v47, %v8220_v31 }
0x41db   :  { %v8241_v29 = vadd.f32 %v9386_v63, %v8231_v32 }
0x41dc   :  { %v8240_v11 = vadd.f32 %v9386_v63, %v8230_v54 }
0x41de   :  { %v8244_v55 = vadd.f32 %v8241_v29, %v8240_v11 }
0x41e0   :  { %v8245_v4 = vrot.slane %v8244_v55, 4 }
0x41e2   :  { %v8246_v1 = vadd.f32 %v8245_v4, %v8244_v55  ;;  %v9389_v55 = vld [vmem:[%s15948_s19] ss:$0 sm:$0xff] }
0x41e4   :  { %v8247_v19 = vrot.slane %v8246_v1, 2 }
0x41e6   :  { %v8248_v16 = vadd.f32 %v8247_v19, %v8246_v1 }
0x41e8   :  { %v8249_v7 = vrot.slane %v8248_v16, 1 }
0x41ea   :  { %v8250_v40 = vadd.f32 %v8249_v7, %v8248_v16 }
0x41ec   :  { %v8259_v30 = vmul.f32 0.0625, %v8250_v40 }
0x4255   :  { %v8205_v42 = vpop.xlane.xlu0 %8204 }
0x4256   :  { %v8210_v2 = vmul.f32 0.0078125, %v8205_v42  ;;  %v9388_v42 = vld [vmem:[%s15947_s17] ss:$0 sm:$0xff] }
0x4257   :  { %v8207_v60 = vpop.xlane.xlu1 %8206 }
0x4258   :  { %v8214_v34 = vadd.f32 1e-05, %v8210_v2  ;;  %v8211_v56 = vmul.f32 0.0078125, %v8207_v60 }
0x425a   :  { %12526 = vrsqrt.f32 %v8214_v34  ;;  %v8215_v28 = vadd.f32 1e-05, %v8211_v56 }
0x425c   :  { %12528 = vrsqrt.f32 %v8215_v28 }
0x4264   :  { %v12527_v48 = vpop.eup %12526 }
0x4265   :  { %v8222_v61 = vmul.f32 %v12527_v48, %v8194_v24  ;;  %v12330_v24 = vld [vmem:[%s15945_s18] sm:$0xff]  }
0x4266   :  { %v12529_v20 = vpop.eup %12528  ;;  %11436 = vmatpush3.bf16.msra.mxu0 %v12330_v24 }
0x4267   :  { %v8232_v17 = vmul.f32 %v9385_v47, %v8222_v61  ;;  %v8223_v15 = vmul.f32 %v12529_v20, %v8195_v13  ;;  %11437 = vmatprep.subr.bf16.mxu0 %v12575_v23  ;;  %v12332_v13 = vld [vmem:[%s15945_s18 + $0x10] sm:$0xff]  }
0x4269   :  { %v8233_v52 = vmul.f32 %v9385_v47, %v8223_v15  ;;  %v8242_v38 = vadd.f32 %v9386_v63, %v8232_v17 }
0x426a   :  { %11438 = vmatpush3.bf16.msra.mxu0 %v12331_v41 }
0x426b   :  { %v8243_v8 = vadd.f32 %v9386_v63, %v8233_v52  ;;  %11439 = vmatprep.subr.bf16.mxu0 %v12575_v23 }
0x426d   :  { %v8251_v14 = vadd.f32 %v8243_v8, %v8242_v38 }
0x426e   :  { %11440 = vmatpush3.bf16.msra.mxu0 %v12332_v13 }
0x426f   :  { %v8252_v3 = vrot.slane %v8251_v14, 4  ;;  %11441 = vmatprep.subr.bf16.mxu0 %v12575_v23 }
0x4271   :  { %v8253_v49 = vadd.f32 %v8252_v3, %v8251_v14 }
0x4272   :  { %11442 = vmatpush3.bf16.msra.mxu0 %v12333_v26 }
0x4273   :  { %v8254_v51 = vrot.slane %v8253_v49, 2  ;;  %11443 = vmatprep.subr.bf16.mxu0 %v12575_v23 }
0x4275   :  { %v8255_v53 = vadd.f32 %v8254_v51, %v8253_v49 }
0x4276   :  { %11444 = vmatpush3.bf16.msra.mxu0 %v12334_v39 }
0x4277   :  { %v8256_v21 = vrot.slane %v8255_v53, 1  ;;  %11445 = vmatprep.subr.bf16.mxu0 %v12575_v23 }
0x4279   :  { %v8257_v25 = vadd.f32 %v8256_v21, %v8255_v53 }
0x427a   :  { %11446 = vmatpush3.bf16.msra.mxu0 %v12335_v59 }
0x427b   :  { %v8260_v37 = vmul.f32 0.0625, %v8257_v25  ;;  %11447 = vmatprep.subr.bf16.mxu0 %v12575_v23 }
0x427d   :  { %v8266_v57 = vsel %vm8265_vm2, %v8260_v37, %v8259_v30 }
0x427e   :  { %v8268_v27 = vsel %vm78_vm0, %v8266_v57, 0.0  ;;  %11448 = vmatpush3.bf16.msra.mxu0 %v12336_v44 }
0x427f   :  { %8269 = vadd.xlane.f32.xlu0 %v8268_v27  ;;  %11449 = vmatprep.subr.bf16.mxu0 %v12575_v23 }
0x4282   :  { %11450 = vmatpush3.bf16.msra.mxu0 %v12337_v0 }
0x430c   :  { %v8270_v46 = vpop.xlane.xlu0 %8269 }
0x430d   :  { %v8271_v45 = vmul.f32 0.0078125, %v8270_v46 }
0x430f   :  { %v8273_v6 = vrot.slane %v8271_v45, 1  ;;  %v8276_v36 = vsub.f32 %v8259_v30, %v8271_v45 }
0x4311   :  { %v8277_v35 = vsub.f32 %v8260_v37, %v8273_v6  ;;  %v8278_v43 = vmul.f32 %v8276_v36, %v8276_v36 }
0x4313   :  { %v8279_v50 = vmul.f32 %v8277_v35, %v8277_v35 }
0x4315   :  { %v8282_v58 = vrot.slane %v8279_v50, 7 }
0x4317   :  { %v8283_v62 = vsel %vm8265_vm2, %v8282_v58, %v8278_v43 }
0x4318   :  { %v8285_v9 = vsel %vm78_vm0, %v8283_v62, 0.0 }
0x4319   :  { %8286 = vadd.xlane.f32.xlu1 %v8285_v9 }
0x43a6   :  { %v8287_v33 = vpop.xlane.xlu1 %8286 }
0x43a7   :  { %v8288_v5 = vmul.f32 0.0078125, %v8287_v33 }
0x43a9   :  { %v8289_v18 = vadd.f32 1e-05, %v8288_v5 }
0x43ab   :  { %12530 = vrsqrt.f32 %v8289_v18 }
0x43b5   :  { %v12531_v22 = vpop.eup %12530 }
0x43b6   :  { %v8292_v12 = vrot.slane %v12531_v22, 1  ;;  %v8295_v31 = vmul.f32 %v12531_v22, %v8276_v36 }
0x43b8   :  { %v8296_v47 = vmul.f32 %v8292_v12, %v8277_v35  ;;  %v8303_v2 = vmul.f32 %v9387_v10, %v8295_v31 }
0x43ba   :  { %v8304_v32 = vmul.f32 %v9387_v10, %v8296_v47  ;;  %v8311_v23 = vadd.f32 %v9388_v42, %v8303_v2 }
0x43bc   :  { %v8312_v60 = vadd.f32 %v9388_v42, %v8304_v32  ;;  %v8313_v34 = vpack.c.bf16 %v8311_v23, %v8311_v23 }
0x43be   :  { %v8314_v56 = vpack.c.bf16 %v8312_v60, %v8312_v60  ;;  %v8340_v28 = vunpack.c.l.b16 %v8313_v34 }
0x43c0   :  { %v8341_v54 = vunpack.c.l.b16 %v8314_v56 }
0x43c2   :  { %v8342_v63 = vrot.slane %v8341_v54, 7 }
0x43c4   :  { %v8343_v29 = vsel %vm8265_vm2, %v8342_v63, %v8340_v28 }
0x43c5   :  { %v8344_v11 = vpack.c.b16 %v8343_v29, %v8343_v29 }
0x43c7   :  { %11452 = vmatmul.mubr.bf16.vlgmr.msra.gmra.mrb[180].mxu0 %v8344_v11 }
0x449a   :  { %v8428_v4 = vpop.f32.mrb[180].mxu0 }
0x449b   :  { %v8429_v48 = vadd.f32 %v9389_v55, %v8428_v4  ;;  %v11453_v61 = vpop.f32.mrb[181].mxu0 }
0x449c   :  { %v8431_v20 = vpop.f32.mrb[182].mxu0 }
0x449d   :  { %8434 = vst [vmem:[%s15949_s20] sm:$0x3] %v8429_v48  ;;  %v11454_v17 = vpop.f32.mrb[183].mxu0 }

</bundles_post_ra>
